<compile_context>
chip_gen: v5e
topology: v5e:2x2
jax: 0.10.0
libtpu: 0.0.40
codegen_flags: <defaults>
</compile_context>

<pallas_src>
import functools

import numpy as np
import jax
import jax.numpy as jnp
from jax.experimental import pallas as pl
from jax.experimental.pallas import tpu as pltpu


# ----------------------------- host-side constants ---------------------------
def _centered_dft_mat(n: int, inverse: bool) -> np.ndarray:
    """1-D centered orthonormal (i)DFT matrix, fastmri fft2c/ifft2c convention."""
    eye = np.eye(n, dtype=np.complex64)
    shifted = np.fft.ifftshift(eye, axes=0)
    if inverse:
        f = np.fft.ifft(shifted, axis=0, norm="ortho")
    else:
        f = np.fft.fft(shifted, axis=0, norm="ortho")
    return np.fft.fftshift(f, axes=0)


def _dft2_cat_t(h: int, w: int, inverse: bool) -> jnp.ndarray:
    """(h*w, 2*h*w) = [real | imag] of the transposed centered 2-D (i)DFT.

    y_flat = x_flat @ M2^T  <=>  Y = Mh @ X @ Mw^T (row-major flattening).
    Concatenating real/imag on the lane axis lets one matmul produce both
    component products.
    """
    m2 = np.kron(_centered_dft_mat(h, inverse), _centered_dft_mat(w, inverse))
    m2t = np.ascontiguousarray(m2.T)
    cat = np.concatenate([m2t.real, m2t.imag], axis=1).astype(np.float32)
    return jnp.asarray(cat)


def _conv_valid_masks(h: int, w: int) -> np.ndarray:
    """(9, h*w) zero-padding validity mask per 3x3 tap (row-major flattening)."""
    pos = np.arange(h * w)
    row, col = pos // w, pos % w
    out = np.zeros((9, h * w), np.float32)
    for t in range(9):
        oi, oj = t // 3 - 1, t % 3 - 1
        out[t] = ((row + oi >= 0) & (row + oi < h)
                  & (col + oj >= 0) & (col + oj < w)).astype(np.float32)
    return out


# ----------------------------- fused per-frame kernel -------------------------
def _mfmc_kernel(kri_ref, mask_ref, mi_cat_ref, mf_cat_ref,
                 w1_ref, b1_ref, w2_ref, b2_ref, valid_ref, dcw_ref,
                 out_ref,
                 u_ref, col1_ref, col2_ref, x_scr, e_scr,
                 *, num_cascades, hid, hh, ww, coil):
    hw = hh * ww
    dot = lambda a, b: jnp.dot(a, b, preferred_element_type=jnp.float32)

    kri = kri_ref[0]                      # (2*coil, hw) stacked real|imag kspace
    kr = kri[:coil, :]
    ki = kri[coil:, :]
    mvals = mask_ref[0]                   # (2, hw)
    maskr = mvals[0:1, :]
    maski = mvals[1:2, :]
    valid = valid_ref[...]                # (9, hw) conv boundary masks
    dcw = dcw_ref[0]
    mi_cat = mi_cat_ref[...]              # (hw, 2*hw)  ifft2c^T, [real|imag]
    mf_cat = mf_cat_ref[...]              # (hw, 2*hw)  fft2c^T,  [real|imag]

    def cplx_fft(stk, bcat):
        # stk: (2*coil, hw) with rows [:coil]=real, [coil:]=imag.
        # One MXU matmul yields both real/imag products; recombine with adds.
        z = dot(stk, bcat)                # (2*coil, 2*hw)
        real = z[:coil, :hw] - z[coil:, hw:]
        imag = z[:coil, hw:] + z[coil:, :hw]
        return real, imag

    # ---- sensitivity maps (stand-in): ifft2c(masked kspace) + coil-RSS norm.
    # TODO(synk): SensitivityModel / EspiritCalibration internals not defined
    # in the reference snippet.
    cir, cii = cplx_fft(kri, mi_cat)                          # (coil, hw)
    inv_rss = jax.lax.rsqrt(
        jnp.sum(cir * cir + cii * cii, axis=0, keepdims=True) + 1e-24)
    sr = cir * inv_rss
    si = cii * inv_rss

    taps = [(t // 3 - 1, t % 3 - 1) for t in range(9)]

    def im2col(x, cin, col_ref):
        # x: (cin, hw) -> col_ref rows [t*cin + c] = zero-padded tap t of chan c
        for t, (oi, oj) in enumerate(taps):
            s = oi * ww + oj
            shifted = x if s == 0 else pltpu.roll(x, shift=(-s) % hw, axis=1)
            col_ref[t * cin:(t + 1) * cin, :] = shifted * valid[t:t + 1, :]

    x_scr[...] = kri                      # cascade iterate lives in VMEM
    for _ in range(num_cascades):
        # ---- sens_reduce: ifft2c(x) * conj(sens), summed over coils -> (2, hw)
        ir_, ii_ = cplx_fft(x_scr[...], mi_cat)
        u_ref[0:1, :] = jnp.sum(ir_ * sr + ii_ * si, axis=0, keepdims=True)
        u_ref[1:2, :] = jnp.sum(ii_ * sr - ir_ * si, axis=0, keepdims=True)
        u = u_ref[...]                                        # (2, hw)

        # ---- NormUnet: norm -> 2-layer 3x3 conv stand-in -> unnorm
        # TODO(synk): generic U-Net `model` not defined in the snippet.
        mean = jnp.mean(u, axis=1, keepdims=True)
        cent = u - mean
        var = jnp.sum(cent * cent, axis=1, keepdims=True) / (hw - 1)  # ddof=1
        std = jnp.sqrt(var)                                   # no eps (as ref)
        xn = cent * jax.lax.rsqrt(var)

        im2col(xn, 2, col1_ref)
        h1 = jnp.maximum(dot(w1_ref[...], col1_ref[...]) + b1_ref[...], 0.0)
        im2col(h1, hid, col2_ref)
        y = dot(w2_ref[...], col2_ref[...]) + b2_ref[...]
        y = y * std + mean                                    # unnorm, (2, hw)
        ur = y[0:1, :]
        ui = y[1:2, :]

        # ---- sens_expand: fft2c(complex_mul(u, sens))
        e_scr[:coil, :] = ur * sr - ui * si                   # (coil, hw) real
        e_scr[coil:, :] = ur * si + ui * sr                   # (coil, hw) imag
        fr, fi = cplx_fft(e_scr[...], mf_cat)

        # ---- soft data consistency (kept literal to the reference forward)
        soft_r = jnp.where(maskr > 0.5, fr - kr, 0.0) * dcw
        soft_i = jnp.where(maski > 0.5, fi - ki, 0.0) * dcw
        x_scr[:coil, :] = kr - soft_r - fr
        x_scr[coil:, :] = ki - soft_i - fi

    out_ref[0] = x_scr[...]


# ----------------------------- wrapper ----------------------------------------
def mfmc_forward(masked_kspace, mask, w1, b1, w2, b2, dc_weight,
                 *, num_cascades, hidden):
    b, T, coil, h, w, two = masked_kspace.shape
    assert two == 2
    n = b * T
    hw = h * w

    # lane-dense stacked planar k-space: (n, 2*coil, h*w), real rows first
    kri = jnp.moveaxis(masked_kspace, -1, 2).reshape(n, 2 * coil, hw)

    # per-frame mask, channels-major real/imag, flattened spatial (tiny)
    m = jnp.moveaxis(mask[:, 0, 0], -1, 1).reshape(b, 2, hw)
    m = jnp.broadcast_to(m[:, None], (b, T, 2, hw)).reshape(n, 2, hw)

    # centered 2-D DFT matrices, transposed + [real|imag] lane-concatenated
    mi_cat = _dft2_cat_t(h, w, inverse=True)      # (hw, 2*hw) ifft2c
    mf_cat = _dft2_cat_t(h, w, inverse=False)     # (hw, 2*hw) fft2c
    valid = jnp.asarray(_conv_valid_masks(h, w))

    # conv weights as (cout, 9*cin) with column k = tap*cin + cin_index
    w1m = jnp.transpose(w1, (0, 2, 3, 1)).reshape(hidden, 9 * 2)
    w2m = jnp.transpose(w2, (0, 2, 3, 1)).reshape(2, 9 * hidden)
    b1c = b1.reshape(hidden, 1)
    b2c = b2.reshape(2, 1)

    kern = functools.partial(_mfmc_kernel, num_cascades=num_cascades,
                             hid=hidden, hh=h, ww=w, coil=coil)

    spec_x = pl.BlockSpec((1, 2 * coil, hw), lambda i: (i, 0, 0))
    const2 = lambda i: (0, 0)
    grid_spec = pltpu.PrefetchScalarGridSpec(
        num_scalar_prefetch=0,
        grid=(n,),
        in_specs=[
            spec_x,
            pl.BlockSpec((1, 2, hw), lambda i: (i, 0, 0)),
            pl.BlockSpec((hw, 2 * hw), const2),
            pl.BlockSpec((hw, 2 * hw), const2),
            pl.BlockSpec((hidden, 9 * 2), const2),
            pl.BlockSpec((hidden, 1), const2),
            pl.BlockSpec((2, 9 * hidden), const2),
            pl.BlockSpec((2, 1), const2),
            pl.BlockSpec((9, hw), const2),
            pl.BlockSpec(memory_space=pltpu.MemorySpace.SMEM),
        ],
        out_specs=spec_x,
        scratch_shapes=[
            pltpu.VMEM((2, hw), jnp.float32),            # reduced image (2 chan)
            pltpu.VMEM((9 * 2, hw), jnp.float32),        # im2col layer 1
            pltpu.VMEM((9 * hidden, hw), jnp.float32),   # im2col layer 2
            pltpu.VMEM((2 * coil, hw), jnp.float32),     # cascade iterate x
            pltpu.VMEM((2 * coil, hw), jnp.float32),     # sens_expand staging
        ],
    )
    xri = pl.pallas_call(
        kern,
        grid_spec=grid_spec,
        out_shape=jax.ShapeDtypeStruct((n, 2 * coil, hw), jnp.float32),
        compiler_params=pltpu.CompilerParams(
            dimension_semantics=("parallel",),
            vmem_limit_bytes=32 * 1024 * 1024),
    )(kri, m, mi_cat, mf_cat, w1m, b1c, w2m, b2c, valid, dc_weight)

    out = xri.reshape(b, T, 2, coil, h, w)
    return jnp.moveaxis(out, 2, -1)       # (b, T, coil, h, w, 2)


if __name__ == "__main__":
    key = jax.random.PRNGKey(0)
    b, T, coil, h, w = 1, 2, 4, 16, 16
    hidden = 8
    num_cascades = 3

    k1, k2, k3, k4 = jax.random.split(key, 4)
    kspace_full = jax.random.normal(k1, (b, T, coil, h, w, 2), dtype=jnp.float32)
    # undersampling mask over k-space columns (same for both complex components)
    col_keep = (jax.random.uniform(k2, (w,)) < 0.6).astype(jnp.float32)
    mask = jnp.broadcast_to(col_keep[None, None, None, None, :, None],
                            (b, 1, 1, h, w, 2))
    masked_kspace = kspace_full * jnp.broadcast_to(mask, kspace_full.shape)

    # deterministic parameters (stand-in for the U-Net model + dc_weight)
    w1 = 0.1 * jax.random.normal(k3, (hidden, 2, 3, 3), dtype=jnp.float32)
    b1 = jnp.zeros((hidden,), jnp.float32)
    w2 = 0.1 * jax.random.normal(k4, (2, hidden, 3, 3), dtype=jnp.float32)
    b2 = jnp.zeros((2,), jnp.float32)
    dc_weight = jnp.ones((1,), jnp.float32)     # nn.Parameter(torch.ones(1))

    fwd = jax.jit(functools.partial(mfmc_forward,
                                    num_cascades=num_cascades, hidden=hidden))
    out = fwd(masked_kspace, mask, w1, b1, w2, b2, dc_weight)
    out = jax.block_until_ready(out)
    assert out.shape == (b, T, coil, h, w, 2)
    assert bool(jnp.all(jnp.isfinite(out)))
    print("KERNEL_OK")
</pallas_src>

<mosaic_0001>
module attributes {stable_mosaic.version = 11 : i64} {
  func.func @_mfmc_kernel(%arg0: i32, %arg1: memref<1x8x256xf32, #tpu.memory_space<vmem>>, %arg2: memref<1x2x256xf32, #tpu.memory_space<vmem>>, %arg3: memref<256x512xf32, #tpu.memory_space<vmem>>, %arg4: memref<256x512xf32, #tpu.memory_space<vmem>>, %arg5: memref<8x18xf32, #tpu.memory_space<vmem>>, %arg6: memref<8x1xf32, #tpu.memory_space<vmem>>, %arg7: memref<2x72xf32, #tpu.memory_space<vmem>>, %arg8: memref<2x1xf32, #tpu.memory_space<vmem>>, %arg9: memref<9x256xf32, #tpu.memory_space<vmem>>, %arg10: memref<1xf32, #tpu.memory_space<smem>>, %arg11: memref<1x8x256xf32, #tpu.memory_space<vmem>>, %arg12: memref<2x256xf32, #tpu.memory_space<vmem>>, %arg13: memref<18x256xf32, #tpu.memory_space<vmem>>, %arg14: memref<72x256xf32, #tpu.memory_space<vmem>>, %arg15: memref<8x256xf32, #tpu.memory_space<vmem>>, %arg16: memref<8x256xf32, #tpu.memory_space<vmem>>) attributes {dimension_semantics = [#tpu.dimension_semantics<parallel>], iteration_bounds = array<i64: 2>, scalar_prefetch = 0 : i64, scratch_operands = 5 : i64, tpu.core_type = #tpu.core_type<tc>, window_params = [{transform_indices = @transform_0, window_bounds = array<i64: 1, 8, 256>}, {transform_indices = @transform_1, window_bounds = array<i64: 1, 2, 256>}, {pipeline_mode = #tpu.pipeline_mode<synchronous>, transform_indices = @transform_2, window_bounds = array<i64: 256, 512>}, {pipeline_mode = #tpu.pipeline_mode<synchronous>, transform_indices = @transform_3, window_bounds = array<i64: 256, 512>}, {pipeline_mode = #tpu.pipeline_mode<synchronous>, transform_indices = @transform_4, window_bounds = array<i64: 8, 18>}, {pipeline_mode = #tpu.pipeline_mode<synchronous>, transform_indices = @transform_5, window_bounds = array<i64: 8, 1>}, {pipeline_mode = #tpu.pipeline_mode<synchronous>, transform_indices = @transform_6, window_bounds = array<i64: 2, 72>}, {pipeline_mode = #tpu.pipeline_mode<synchronous>, transform_indices = @transform_7, window_bounds = array<i64: 2, 1>}, {pipeline_mode = #tpu.pipeline_mode<synchronous>, transform_indices = @transform_8, window_bounds = array<i64: 9, 256>}, {transform_indices = @transform_9, window_bounds = array<i64: 1>}, {transform_indices = @transform_10, window_bounds = array<i64: 1, 8, 256>}]} {
    %c0 = arith.constant 0 : index
    %c0_0 = arith.constant 0 : index
    %c0_1 = arith.constant 0 : index
    %0 = vector.load %arg1[%c0, %c0_0, %c0_1] : memref<1x8x256xf32, #tpu.memory_space<vmem>>, vector<1x8x256xf32>
    %1 = vector.shape_cast %0 : vector<1x8x256xf32> to vector<8x256xf32>
    %2 = vector.extract_strided_slice %1 {offsets = [0, 0], sizes = [4, 256], strides = [1, 1]} : vector<8x256xf32> to vector<4x256xf32>
    %3 = vector.extract_strided_slice %1 {offsets = [4, 0], sizes = [4, 256], strides = [1, 1]} : vector<8x256xf32> to vector<4x256xf32>
    %c0_2 = arith.constant 0 : index
    %c0_3 = arith.constant 0 : index
    %c0_4 = arith.constant 0 : index
    %4 = vector.load %arg2[%c0_2, %c0_3, %c0_4] : memref<1x2x256xf32, #tpu.memory_space<vmem>>, vector<1x2x256xf32>
    %5 = vector.shape_cast %4 : vector<1x2x256xf32> to vector<2x256xf32>
    %6 = vector.extract_strided_slice %5 {offsets = [0, 0], sizes = [1, 256], strides = [1, 1]} : vector<2x256xf32> to vector<1x256xf32>
    %7 = vector.extract_strided_slice %5 {offsets = [1, 0], sizes = [1, 256], strides = [1, 1]} : vector<2x256xf32> to vector<1x256xf32>
    %c0_5 = arith.constant 0 : index
    %c0_6 = arith.constant 0 : index
    %8 = vector.load %arg9[%c0_5, %c0_6] : memref<9x256xf32, #tpu.memory_space<vmem>>, vector<9x256xf32>
    %c0_7 = arith.constant 0 : index
    %9 = memref.load %arg10[%c0_7] : memref<1xf32, #tpu.memory_space<smem>>
    %c0_8 = arith.constant 0 : index
    %c0_9 = arith.constant 0 : index
    %10 = vector.load %arg3[%c0_8, %c0_9] : memref<256x512xf32, #tpu.memory_space<vmem>>, vector<256x512xf32>
    %c0_10 = arith.constant 0 : index
    %c0_11 = arith.constant 0 : index
    %11 = vector.load %arg4[%c0_10, %c0_11] : memref<256x512xf32, #tpu.memory_space<vmem>>, vector<256x512xf32>
    %cst = arith.constant dense<0.000000e+00> : vector<8x512xf32>
    %12 = tpu.matmul %1, %10, %cst {dimension_numbers = #tpu.dot_dimension_numbers<[1], [0], [0], [1], [0, 0, 1, 1], [], []>} : vector<8x256xf32>, vector<256x512xf32>, vector<8x512xf32> -> vector<8x512xf32>
    %13 = vector.extract_strided_slice %12 {offsets = [0, 0], sizes = [4, 256], strides = [1, 1]} : vector<8x512xf32> to vector<4x256xf32>
    %14 = vector.extract_strided_slice %12 {offsets = [4, 256], sizes = [4, 256], strides = [1, 1]} : vector<8x512xf32> to vector<4x256xf32>
    %15 = arith.subf %13, %14 : vector<4x256xf32>
    %16 = vector.extract_strided_slice %12 {offsets = [0, 256], sizes = [4, 256], strides = [1, 1]} : vector<8x512xf32> to vector<4x256xf32>
    %17 = vector.extract_strided_slice %12 {offsets = [4, 0], sizes = [4, 256], strides = [1, 1]} : vector<8x512xf32> to vector<4x256xf32>
    %18 = arith.addf %16, %17 : vector<4x256xf32>
    %19 = arith.mulf %15, %15 : vector<4x256xf32>
    %20 = arith.mulf %18, %18 : vector<4x256xf32>
    %21 = arith.addf %19, %20 : vector<4x256xf32>
    %cst_12 = arith.constant dense<0.000000e+00> : vector<256xf32>
    %22 = vector.multi_reduction <add>, %21, %cst_12 [0] : vector<4x256xf32> to vector<256xf32>
    %23 = vector.shape_cast %22 : vector<256xf32> to vector<1x256xf32>
    %cst_13 = arith.constant 1.000000e-24 : f32
    %24 = vector.broadcast %cst_13 : f32 to vector<1x256xf32>
    %25 = arith.addf %23, %24 : vector<1x256xf32>
    %26 = math.rsqrt %25 : vector<1x256xf32>
    %27 = vector.broadcast %26 : vector<1x256xf32> to vector<4x256xf32>
    %28 = arith.mulf %15, %27 : vector<4x256xf32>
    %29 = vector.broadcast %26 : vector<1x256xf32> to vector<4x256xf32>
    %30 = arith.mulf %18, %29 : vector<4x256xf32>
    %c0_14 = arith.constant 0 : index
    %c0_15 = arith.constant 0 : index
    %31 = vector.load %arg15[%c0_14, %c0_15] : memref<8x256xf32, #tpu.memory_space<vmem>>, vector<8x256xf32>
    tpu.vector_store %arg15[%c0_14, %c0_15], %1 {strides = array<i32>} : memref<8x256xf32, #tpu.memory_space<vmem>>, vector<8x256xf32>,
    %c0_16 = arith.constant 0 : index
    %c0_17 = arith.constant 0 : index
    %32 = vector.load %arg15[%c0_16, %c0_17] : memref<8x256xf32, #tpu.memory_space<vmem>>, vector<8x256xf32>
    %cst_18 = arith.constant dense<0.000000e+00> : vector<8x512xf32>
    %33 = tpu.matmul %32, %10, %cst_18 {dimension_numbers = #tpu.dot_dimension_numbers<[1], [0], [0], [1], [0, 0, 1, 1], [], []>} : vector<8x256xf32>, vector<256x512xf32>, vector<8x512xf32> -> vector<8x512xf32>
    %34 = vector.extract_strided_slice %33 {offsets = [0, 0], sizes = [4, 256], strides = [1, 1]} : vector<8x512xf32> to vector<4x256xf32>
    %35 = vector.extract_strided_slice %33 {offsets = [4, 256], sizes = [4, 256], strides = [1, 1]} : vector<8x512xf32> to vector<4x256xf32>
    %36 = arith.subf %34, %35 : vector<4x256xf32>
    %37 = vector.extract_strided_slice %33 {offsets = [0, 256], sizes = [4, 256], strides = [1, 1]} : vector<8x512xf32> to vector<4x256xf32>
    %38 = vector.extract_strided_slice %33 {offsets = [4, 0], sizes = [4, 256], strides = [1, 1]} : vector<8x512xf32> to vector<4x256xf32>
    %39 = arith.addf %37, %38 : vector<4x256xf32>
    %40 = arith.mulf %36, %28 : vector<4x256xf32>
    %41 = arith.mulf %39, %30 : vector<4x256xf32>
    %42 = arith.addf %40, %41 : vector<4x256xf32>
    %cst_19 = arith.constant dense<0.000000e+00> : vector<256xf32>
    %43 = vector.multi_reduction <add>, %42, %cst_19 [0] : vector<4x256xf32> to vector<256xf32>
    %44 = vector.shape_cast %43 : vector<256xf32> to vector<1x256xf32>
    %c0_20 = arith.constant 0 : index
    %c0_21 = arith.constant 0 : index
    %45 = vector.load %arg12[%c0_20, %c0_21] : memref<2x256xf32, #tpu.memory_space<vmem>>, vector<1x256xf32>
    tpu.vector_store %arg12[%c0_20, %c0_21], %44 {strides = array<i32>} : memref<2x256xf32, #tpu.memory_space<vmem>>, vector<1x256xf32>,
    %46 = arith.mulf %39, %28 : vector<4x256xf32>
    %47 = arith.mulf %36, %30 : vector<4x256xf32>
    %48 = arith.subf %46, %47 : vector<4x256xf32>
    %cst_22 = arith.constant dense<0.000000e+00> : vector<256xf32>
    %49 = vector.multi_reduction <add>, %48, %cst_22 [0] : vector<4x256xf32> to vector<256xf32>
    %50 = vector.shape_cast %49 : vector<256xf32> to vector<1x256xf32>
    %c1 = arith.constant 1 : index
    %c0_23 = arith.constant 0 : index
    %51 = vector.load %arg12[%c1, %c0_23] : memref<2x256xf32, #tpu.memory_space<vmem>>, vector<1x256xf32>
    tpu.vector_store %arg12[%c1, %c0_23], %50 {strides = array<i32>} : memref<2x256xf32, #tpu.memory_space<vmem>>, vector<1x256xf32>,
    %c0_24 = arith.constant 0 : index
    %c0_25 = arith.constant 0 : index
    %52 = vector.load %arg12[%c0_24, %c0_25] : memref<2x256xf32, #tpu.memory_space<vmem>>, vector<2x256xf32>
    %cst_26 = arith.constant dense<0.000000e+00> : vector<2xf32>
    %53 = vector.multi_reduction <add>, %52, %cst_26 [1] : vector<2x256xf32> to vector<2xf32>
    %54 = vector.shape_cast %53 : vector<2xf32> to vector<2x1xf32>
    %cst_27 = arith.constant 2.560000e+02 : f32
    %55 = vector.broadcast %cst_27 : f32 to vector<2x1xf32>
    %56 = arith.divf %54, %55 : vector<2x1xf32>
    %57 = vector.broadcast %56 : vector<2x1xf32> to vector<2x256xf32>
    %58 = arith.subf %52, %57 : vector<2x256xf32>
    %59 = arith.mulf %58, %58 : vector<2x256xf32>
    %cst_28 = arith.constant dense<0.000000e+00> : vector<2xf32>
    %60 = vector.multi_reduction <add>, %59, %cst_28 [1] : vector<2x256xf32> to vector<2xf32>
    %61 = vector.shape_cast %60 : vector<2xf32> to vector<2x1xf32>
    %cst_29 = arith.constant 2.550000e+02 : f32
    %62 = vector.broadcast %cst_29 : f32 to vector<2x1xf32>
    %63 = arith.divf %61, %62 : vector<2x1xf32>
    %64 = math.sqrt %63 : vector<2x1xf32>
    %65 = math.rsqrt %63 : vector<2x1xf32>
    %66 = vector.broadcast %65 : vector<2x1xf32> to vector<2x256xf32>
    %67 = arith.mulf %58, %66 : vector<2x256xf32>
    %c17_i32 = arith.constant 17 : i32
    %68 = tpu.dynamic_rotate %67 by %c17_i32 dim 1 : vector<2x256xf32>, i32 -> vector<2x256xf32>
    %69 = vector.extract_strided_slice %8 {offsets = [0, 0], sizes = [1, 256], strides = [1, 1]} : vector<9x256xf32> to vector<1x256xf32>
    %70 = vector.broadcast %69 : vector<1x256xf32> to vector<2x256xf32>
    %71 = arith.mulf %68, %70 : vector<2x256xf32>
    %c0_30 = arith.constant 0 : index
    %c0_31 = arith.constant 0 : index
    %72 = vector.load %arg13[%c0_30, %c0_31] : memref<18x256xf32, #tpu.memory_space<vmem>>, vector<2x256xf32>
    tpu.vector_store %arg13[%c0_30, %c0_31], %71 {strides = array<i32>} : memref<18x256xf32, #tpu.memory_space<vmem>>, vector<2x256xf32>,
    %c16_i32 = arith.constant 16 : i32
    %73 = tpu.dynamic_rotate %67 by %c16_i32 dim 1 : vector<2x256xf32>, i32 -> vector<2x256xf32>
    %74 = vector.extract_strided_slice %8 {offsets = [1, 0], sizes = [1, 256], strides = [1, 1]} : vector<9x256xf32> to vector<1x256xf32>
    %75 = vector.broadcast %74 : vector<1x256xf32> to vector<2x256xf32>
    %76 = arith.mulf %73, %75 : vector<2x256xf32>
    %c2 = arith.constant 2 : index
    %c0_32 = arith.constant 0 : index
    %77 = vector.load %arg13[%c2, %c0_32] : memref<18x256xf32, #tpu.memory_space<vmem>>, vector<2x256xf32>
    tpu.vector_store %arg13[%c2, %c0_32], %76 {strides = array<i32>} : memref<18x256xf32, #tpu.memory_space<vmem>>, vector<2x256xf32>,
    %c15_i32 = arith.constant 15 : i32
    %78 = tpu.dynamic_rotate %67 by %c15_i32 dim 1 : vector<2x256xf32>, i32 -> vector<2x256xf32>
    %79 = vector.extract_strided_slice %8 {offsets = [2, 0], sizes = [1, 256], strides = [1, 1]} : vector<9x256xf32> to vector<1x256xf32>
    %80 = vector.broadcast %79 : vector<1x256xf32> to vector<2x256xf32>
    %81 = arith.mulf %78, %80 : vector<2x256xf32>
    %c4 = arith.constant 4 : index
    %c0_33 = arith.constant 0 : index
    %82 = vector.load %arg13[%c4, %c0_33] : memref<18x256xf32, #tpu.memory_space<vmem>>, vector<2x256xf32>
    tpu.vector_store %arg13[%c4, %c0_33], %81 {strides = array<i32>} : memref<18x256xf32, #tpu.memory_space<vmem>>, vector<2x256xf32>,
    %c1_i32 = arith.constant 1 : i32
    %83 = tpu.dynamic_rotate %67 by %c1_i32 dim 1 : vector<2x256xf32>, i32 -> vector<2x256xf32>
    %84 = vector.extract_strided_slice %8 {offsets = [3, 0], sizes = [1, 256], strides = [1, 1]} : vector<9x256xf32> to vector<1x256xf32>
    %85 = vector.broadcast %84 : vector<1x256xf32> to vector<2x256xf32>
    %86 = arith.mulf %83, %85 : vector<2x256xf32>
    %c6 = arith.constant 6 : index
    %c0_34 = arith.constant 0 : index
    %87 = vector.load %arg13[%c6, %c0_34] : memref<18x256xf32, #tpu.memory_space<vmem>>, vector<2x256xf32>
    tpu.vector_store %arg13[%c6, %c0_34], %86 {strides = array<i32>} : memref<18x256xf32, #tpu.memory_space<vmem>>, vector<2x256xf32>,
    %88 = vector.extract_strided_slice %8 {offsets = [4, 0], sizes = [1, 256], strides = [1, 1]} : vector<9x256xf32> to vector<1x256xf32>
    %89 = vector.broadcast %88 : vector<1x256xf32> to vector<2x256xf32>
    %90 = arith.mulf %67, %89 : vector<2x256xf32>
    %c8 = arith.constant 8 : index
    %c0_35 = arith.constant 0 : index
    %91 = vector.load %arg13[%c8, %c0_35] : memref<18x256xf32, #tpu.memory_space<vmem>>, vector<2x256xf32>
    tpu.vector_store %arg13[%c8, %c0_35], %90 {strides = array<i32>} : memref<18x256xf32, #tpu.memory_space<vmem>>, vector<2x256xf32>,
    %c255_i32 = arith.constant 255 : i32
    %92 = tpu.dynamic_rotate %67 by %c255_i32 dim 1 : vector<2x256xf32>, i32 -> vector<2x256xf32>
    %93 = vector.extract_strided_slice %8 {offsets = [5, 0], sizes = [1, 256], strides = [1, 1]} : vector<9x256xf32> to vector<1x256xf32>
    %94 = vector.broadcast %93 : vector<1x256xf32> to vector<2x256xf32>
    %95 = arith.mulf %92, %94 : vector<2x256xf32>
    %c10 = arith.constant 10 : index
    %c0_36 = arith.constant 0 : index
    %96 = vector.load %arg13[%c10, %c0_36] : memref<18x256xf32, #tpu.memory_space<vmem>>, vector<2x256xf32>
    tpu.vector_store %arg13[%c10, %c0_36], %95 {strides = array<i32>} : memref<18x256xf32, #tpu.memory_space<vmem>>, vector<2x256xf32>,
    %c241_i32 = arith.constant 241 : i32
    %97 = tpu.dynamic_rotate %67 by %c241_i32 dim 1 : vector<2x256xf32>, i32 -> vector<2x256xf32>
    %98 = vector.extract_strided_slice %8 {offsets = [6, 0], sizes = [1, 256], strides = [1, 1]} : vector<9x256xf32> to vector<1x256xf32>
    %99 = vector.broadcast %98 : vector<1x256xf32> to vector<2x256xf32>
    %100 = arith.mulf %97, %99 : vector<2x256xf32>
    %c12 = arith.constant 12 : index
    %c0_37 = arith.constant 0 : index
    %101 = vector.load %arg13[%c12, %c0_37] : memref<18x256xf32, #tpu.memory_space<vmem>>, vector<2x256xf32>
    tpu.vector_store %arg13[%c12, %c0_37], %100 {strides = array<i32>} : memref<18x256xf32, #tpu.memory_space<vmem>>, vector<2x256xf32>,
    %c240_i32 = arith.constant 240 : i32
    %102 = tpu.dynamic_rotate %67 by %c240_i32 dim 1 : vector<2x256xf32>, i32 -> vector<2x256xf32>
    %103 = vector.extract_strided_slice %8 {offsets = [7, 0], sizes = [1, 256], strides = [1, 1]} : vector<9x256xf32> to vector<1x256xf32>
    %104 = vector.broadcast %103 : vector<1x256xf32> to vector<2x256xf32>
    %105 = arith.mulf %102, %104 : vector<2x256xf32>
    %c14 = arith.constant 14 : index
    %c0_38 = arith.constant 0 : index
    %106 = vector.load %arg13[%c14, %c0_38] : memref<18x256xf32, #tpu.memory_space<vmem>>, vector<2x256xf32>
    tpu.vector_store %arg13[%c14, %c0_38], %105 {strides = array<i32>} : memref<18x256xf32, #tpu.memory_space<vmem>>, vector<2x256xf32>,
    %c239_i32 = arith.constant 239 : i32
    %107 = tpu.dynamic_rotate %67 by %c239_i32 dim 1 : vector<2x256xf32>, i32 -> vector<2x256xf32>
    %108 = vector.extract_strided_slice %8 {offsets = [8, 0], sizes = [1, 256], strides = [1, 1]} : vector<9x256xf32> to vector<1x256xf32>
    %109 = vector.broadcast %108 : vector<1x256xf32> to vector<2x256xf32>
    %110 = arith.mulf %107, %109 : vector<2x256xf32>
    %c16 = arith.constant 16 : index
    %c0_39 = arith.constant 0 : index
    %111 = vector.load %arg13[%c16, %c0_39] : memref<18x256xf32, #tpu.memory_space<vmem>>, vector<2x256xf32>
    tpu.vector_store %arg13[%c16, %c0_39], %110 {strides = array<i32>} : memref<18x256xf32, #tpu.memory_space<vmem>>, vector<2x256xf32>,
    %c0_40 = arith.constant 0 : index
    %c0_41 = arith.constant 0 : index
    %112 = vector.load %arg5[%c0_40, %c0_41] : memref<8x18xf32, #tpu.memory_space<vmem>>, vector<8x18xf32>
    %c0_42 = arith.constant 0 : index
    %c0_43 = arith.constant 0 : index
    %113 = vector.load %arg13[%c0_42, %c0_43] : memref<18x256xf32, #tpu.memory_space<vmem>>, vector<18x256xf32>
    %cst_44 = arith.constant dense<0.000000e+00> : vector<8x256xf32>
    %114 = tpu.matmul %112, %113, %cst_44 {dimension_numbers = #tpu.dot_dimension_numbers<[1], [0], [0], [1], [0, 0, 1, 1], [], []>} : vector<8x18xf32>, vector<18x256xf32>, vector<8x256xf32> -> vector<8x256xf32>
    %c0_45 = arith.constant 0 : index
    %c0_46 = arith.constant 0 : index
    %115 = vector.load %arg6[%c0_45, %c0_46] : memref<8x1xf32, #tpu.memory_space<vmem>>, vector<8x1xf32>
    %116 = vector.broadcast %115 : vector<8x1xf32> to vector<8x256xf32>
    %117 = arith.addf %114, %116 : vector<8x256xf32>
    %cst_47 = arith.constant 0.000000e+00 : f32
    %118 = vector.broadcast %cst_47 : f32 to vector<8x256xf32>
    %119 = arith.maximumf %117, %118 : vector<8x256xf32>
    %c17_i32_48 = arith.constant 17 : i32
    %120 = tpu.dynamic_rotate %119 by %c17_i32_48 dim 1 : vector<8x256xf32>, i32 -> vector<8x256xf32>
    %121 = vector.extract_strided_slice %8 {offsets = [0, 0], sizes = [1, 256], strides = [1, 1]} : vector<9x256xf32> to vector<1x256xf32>
    %122 = vector.broadcast %121 : vector<1x256xf32> to vector<8x256xf32>
    %123 = arith.mulf %120, %122 : vector<8x256xf32>
    %c0_49 = arith.constant 0 : index
    %c0_50 = arith.constant 0 : index
    %124 = vector.load %arg14[%c0_49, %c0_50] : memref<72x256xf32, #tpu.memory_space<vmem>>, vector<8x256xf32>
    tpu.vector_store %arg14[%c0_49, %c0_50], %123 {strides = array<i32>} : memref<72x256xf32, #tpu.memory_space<vmem>>, vector<8x256xf32>,
    %c16_i32_51 = arith.constant 16 : i32
    %125 = tpu.dynamic_rotate %119 by %c16_i32_51 dim 1 : vector<8x256xf32>, i32 -> vector<8x256xf32>
    %126 = vector.extract_strided_slice %8 {offsets = [1, 0], sizes = [1, 256], strides = [1, 1]} : vector<9x256xf32> to vector<1x256xf32>
    %127 = vector.broadcast %126 : vector<1x256xf32> to vector<8x256xf32>
    %128 = arith.mulf %125, %127 : vector<8x256xf32>
    %c8_52 = arith.constant 8 : index
    %c0_53 = arith.constant 0 : index
    %129 = vector.load %arg14[%c8_52, %c0_53] : memref<72x256xf32, #tpu.memory_space<vmem>>, vector<8x256xf32>
    tpu.vector_store %arg14[%c8_52, %c0_53], %128 {strides = array<i32>} : memref<72x256xf32, #tpu.memory_space<vmem>>, vector<8x256xf32>,
    %c15_i32_54 = arith.constant 15 : i32
    %130 = tpu.dynamic_rotate %119 by %c15_i32_54 dim 1 : vector<8x256xf32>, i32 -> vector<8x256xf32>
    %131 = vector.extract_strided_slice %8 {offsets = [2, 0], sizes = [1, 256], strides = [1, 1]} : vector<9x256xf32> to vector<1x256xf32>
    %132 = vector.broadcast %131 : vector<1x256xf32> to vector<8x256xf32>
    %133 = arith.mulf %130, %132 : vector<8x256xf32>
    %c16_55 = arith.constant 16 : index
    %c0_56 = arith.constant 0 : index
    %134 = vector.load %arg14[%c16_55, %c0_56] : memref<72x256xf32, #tpu.memory_space<vmem>>, vector<8x256xf32>
    tpu.vector_store %arg14[%c16_55, %c0_56], %133 {strides = array<i32>} : memref<72x256xf32, #tpu.memory_space<vmem>>, vector<8x256xf32>,
    %c1_i32_57 = arith.constant 1 : i32
    %135 = tpu.dynamic_rotate %119 by %c1_i32_57 dim 1 : vector<8x256xf32>, i32 -> vector<8x256xf32>
    %136 = vector.extract_strided_slice %8 {offsets = [3, 0], sizes = [1, 256], strides = [1, 1]} : vector<9x256xf32> to vector<1x256xf32>
    %137 = vector.broadcast %136 : vector<1x256xf32> to vector<8x256xf32>
    %138 = arith.mulf %135, %137 : vector<8x256xf32>
    %c24 = arith.constant 24 : index
    %c0_58 = arith.constant 0 : index
    %139 = vector.load %arg14[%c24, %c0_58] : memref<72x256xf32, #tpu.memory_space<vmem>>, vector<8x256xf32>
    tpu.vector_store %arg14[%c24, %c0_58], %138 {strides = array<i32>} : memref<72x256xf32, #tpu.memory_space<vmem>>, vector<8x256xf32>,
    %140 = vector.extract_strided_slice %8 {offsets = [4, 0], sizes = [1, 256], strides = [1, 1]} : vector<9x256xf32> to vector<1x256xf32>
    %141 = vector.broadcast %140 : vector<1x256xf32> to vector<8x256xf32>
    %142 = arith.mulf %119, %141 : vector<8x256xf32>
    %c32 = arith.constant 32 : index
    %c0_59 = arith.constant 0 : index
    %143 = vector.load %arg14[%c32, %c0_59] : memref<72x256xf32, #tpu.memory_space<vmem>>, vector<8x256xf32>
    tpu.vector_store %arg14[%c32, %c0_59], %142 {strides = array<i32>} : memref<72x256xf32, #tpu.memory_space<vmem>>, vector<8x256xf32>,
    %c255_i32_60 = arith.constant 255 : i32
    %144 = tpu.dynamic_rotate %119 by %c255_i32_60 dim 1 : vector<8x256xf32>, i32 -> vector<8x256xf32>
    %145 = vector.extract_strided_slice %8 {offsets = [5, 0], sizes = [1, 256], strides = [1, 1]} : vector<9x256xf32> to vector<1x256xf32>
    %146 = vector.broadcast %145 : vector<1x256xf32> to vector<8x256xf32>
    %147 = arith.mulf %144, %146 : vector<8x256xf32>
    %c40 = arith.constant 40 : index
    %c0_61 = arith.constant 0 : index
    %148 = vector.load %arg14[%c40, %c0_61] : memref<72x256xf32, #tpu.memory_space<vmem>>, vector<8x256xf32>
    tpu.vector_store %arg14[%c40, %c0_61], %147 {strides = array<i32>} : memref<72x256xf32, #tpu.memory_space<vmem>>, vector<8x256xf32>,
    %c241_i32_62 = arith.constant 241 : i32
    %149 = tpu.dynamic_rotate %119 by %c241_i32_62 dim 1 : vector<8x256xf32>, i32 -> vector<8x256xf32>
    %150 = vector.extract_strided_slice %8 {offsets = [6, 0], sizes = [1, 256], strides = [1, 1]} : vector<9x256xf32> to vector<1x256xf32>
    %151 = vector.broadcast %150 : vector<1x256xf32> to vector<8x256xf32>
    %152 = arith.mulf %149, %151 : vector<8x256xf32>
    %c48 = arith.constant 48 : index
    %c0_63 = arith.constant 0 : index
    %153 = vector.load %arg14[%c48, %c0_63] : memref<72x256xf32, #tpu.memory_space<vmem>>, vector<8x256xf32>
    tpu.vector_store %arg14[%c48, %c0_63], %152 {strides = array<i32>} : memref<72x256xf32, #tpu.memory_space<vmem>>, vector<8x256xf32>,
    %c240_i32_64 = arith.constant 240 : i32
    %154 = tpu.dynamic_rotate %119 by %c240_i32_64 dim 1 : vector<8x256xf32>, i32 -> vector<8x256xf32>
    %155 = vector.extract_strided_slice %8 {offsets = [7, 0], sizes = [1, 256], strides = [1, 1]} : vector<9x256xf32> to vector<1x256xf32>
    %156 = vector.broadcast %155 : vector<1x256xf32> to vector<8x256xf32>
    %157 = arith.mulf %154, %156 : vector<8x256xf32>
    %c56 = arith.constant 56 : index
    %c0_65 = arith.constant 0 : index
    %158 = vector.load %arg14[%c56, %c0_65] : memref<72x256xf32, #tpu.memory_space<vmem>>, vector<8x256xf32>
    tpu.vector_store %arg14[%c56, %c0_65], %157 {strides = array<i32>} : memref<72x256xf32, #tpu.memory_space<vmem>>, vector<8x256xf32>,
    %c239_i32_66 = arith.constant 239 : i32
    %159 = tpu.dynamic_rotate %119 by %c239_i32_66 dim 1 : vector<8x256xf32>, i32 -> vector<8x256xf32>
    %160 = vector.extract_strided_slice %8 {offsets = [8, 0], sizes = [1, 256], strides = [1, 1]} : vector<9x256xf32> to vector<1x256xf32>
    %161 = vector.broadcast %160 : vector<1x256xf32> to vector<8x256xf32>
    %162 = arith.mulf %159, %161 : vector<8x256xf32>
    %c64 = arith.constant 64 : index
    %c0_67 = arith.constant 0 : index
    %163 = vector.load %arg14[%c64, %c0_67] : memref<72x256xf32, #tpu.memory_space<vmem>>, vector<8x256xf32>
    tpu.vector_store %arg14[%c64, %c0_67], %162 {strides = array<i32>} : memref<72x256xf32, #tpu.memory_space<vmem>>, vector<8x256xf32>,
    %c0_68 = arith.constant 0 : index
    %c0_69 = arith.constant 0 : index
    %164 = vector.load %arg7[%c0_68, %c0_69] : memref<2x72xf32, #tpu.memory_space<vmem>>, vector<2x72xf32>
    %c0_70 = arith.constant 0 : index
    %c0_71 = arith.constant 0 : index
    %165 = vector.load %arg14[%c0_70, %c0_71] : memref<72x256xf32, #tpu.memory_space<vmem>>, vector<72x256xf32>
    %cst_72 = arith.constant dense<0.000000e+00> : vector<2x256xf32>
    %166 = tpu.matmul %164, %165, %cst_72 {dimension_numbers = #tpu.dot_dimension_numbers<[1], [0], [0], [1], [0, 0, 1, 1], [], []>} : vector<2x72xf32>, vector<72x256xf32>, vector<2x256xf32> -> vector<2x256xf32>
    %c0_73 = arith.constant 0 : index
    %c0_74 = arith.constant 0 : index
    %167 = vector.load %arg8[%c0_73, %c0_74] : memref<2x1xf32, #tpu.memory_space<vmem>>, vector<2x1xf32>
    %168 = vector.broadcast %167 : vector<2x1xf32> to vector<2x256xf32>
    %169 = arith.addf %166, %168 : vector<2x256xf32>
    %170 = vector.broadcast %64 : vector<2x1xf32> to vector<2x256xf32>
    %171 = arith.mulf %169, %170 : vector<2x256xf32>
    %172 = vector.broadcast %56 : vector<2x1xf32> to vector<2x256xf32>
    %173 = arith.addf %171, %172 : vector<2x256xf32>
    %174 = vector.extract_strided_slice %173 {offsets = [0, 0], sizes = [1, 256], strides = [1, 1]} : vector<2x256xf32> to vector<1x256xf32>
    %175 = vector.extract_strided_slice %173 {offsets = [1, 0], sizes = [1, 256], strides = [1, 1]} : vector<2x256xf32> to vector<1x256xf32>
    %176 = vector.broadcast %174 : vector<1x256xf32> to vector<4x256xf32>
    %177 = arith.mulf %176, %28 : vector<4x256xf32>
    %178 = vector.broadcast %175 : vector<1x256xf32> to vector<4x256xf32>
    %179 = arith.mulf %178, %30 : vector<4x256xf32>
    %180 = arith.subf %177, %179 : vector<4x256xf32>
    %c0_75 = arith.constant 0 : index
    %c0_76 = arith.constant 0 : index
    %181 = vector.load %arg16[%c0_75, %c0_76] : memref<8x256xf32, #tpu.memory_space<vmem>>, vector<4x256xf32>
    tpu.vector_store %arg16[%c0_75, %c0_76], %180 {strides = array<i32>} : memref<8x256xf32, #tpu.memory_space<vmem>>, vector<4x256xf32>,
    %182 = vector.broadcast %174 : vector<1x256xf32> to vector<4x256xf32>
    %183 = arith.mulf %182, %30 : vector<4x256xf32>
    %184 = vector.broadcast %175 : vector<1x256xf32> to vector<4x256xf32>
    %185 = arith.mulf %184, %28 : vector<4x256xf32>
    %186 = arith.addf %183, %185 : vector<4x256xf32>
    %c4_77 = arith.constant 4 : index
    %c0_78 = arith.constant 0 : index
    %187 = vector.load %arg16[%c4_77, %c0_78] : memref<8x256xf32, #tpu.memory_space<vmem>>, vector<4x256xf32>
    tpu.vector_store %arg16[%c4_77, %c0_78], %186 {strides = array<i32>} : memref<8x256xf32, #tpu.memory_space<vmem>>, vector<4x256xf32>,
    %c0_79 = arith.constant 0 : index
    %c0_80 = arith.constant 0 : index
    %188 = vector.load %arg16[%c0_79, %c0_80] : memref<8x256xf32, #tpu.memory_space<vmem>>, vector<8x256xf32>
    %cst_81 = arith.constant dense<0.000000e+00> : vector<8x512xf32>
    %189 = tpu.matmul %188, %11, %cst_81 {dimension_numbers = #tpu.dot_dimension_numbers<[1], [0], [0], [1], [0, 0, 1, 1], [], []>} : vector<8x256xf32>, vector<256x512xf32>, vector<8x512xf32> -> vector<8x512xf32>
    %190 = vector.extract_strided_slice %189 {offsets = [0, 0], sizes = [4, 256], strides = [1, 1]} : vector<8x512xf32> to vector<4x256xf32>
    %191 = vector.extract_strided_slice %189 {offsets = [4, 256], sizes = [4, 256], strides = [1, 1]} : vector<8x512xf32> to vector<4x256xf32>
    %192 = arith.subf %190, %191 : vector<4x256xf32>
    %193 = vector.extract_strided_slice %189 {offsets = [0, 256], sizes = [4, 256], strides = [1, 1]} : vector<8x512xf32> to vector<4x256xf32>
    %194 = vector.extract_strided_slice %189 {offsets = [4, 0], sizes = [4, 256], strides = [1, 1]} : vector<8x512xf32> to vector<4x256xf32>
    %195 = arith.addf %193, %194 : vector<4x256xf32>
    %cst_82 = arith.constant 5.000000e-01 : f32
    %196 = vector.broadcast %cst_82 : f32 to vector<1x256xf32>
    %197 = arith.cmpf ogt, %6, %196 : vector<1x256xf32>
    %198 = arith.subf %192, %2 : vector<4x256xf32>
    %cst_83 = arith.constant 0.000000e+00 : f32
    %199 = vector.shape_cast %197 : vector<1x256xi1> to vector<1x256xi1>
    %200 = vector.broadcast %199 : vector<1x256xi1> to vector<4x256xi1>
    %201 = vector.broadcast %cst_83 : f32 to vector<4x256xf32>
    %202 = arith.select %200, %198, %201 : vector<4x256xi1>, vector<4x256xf32>
    %203 = vector.broadcast %9 : f32 to vector<4x256xf32>
    %204 = arith.mulf %202, %203 : vector<4x256xf32>
    %cst_84 = arith.constant 5.000000e-01 : f32
    %205 = vector.broadcast %cst_84 : f32 to vector<1x256xf32>
    %206 = arith.cmpf ogt, %7, %205 : vector<1x256xf32>
    %207 = arith.subf %195, %3 : vector<4x256xf32>
    %cst_85 = arith.constant 0.000000e+00 : f32
    %208 = vector.shape_cast %206 : vector<1x256xi1> to vector<1x256xi1>
    %209 = vector.broadcast %208 : vector<1x256xi1> to vector<4x256xi1>
    %210 = vector.broadcast %cst_85 : f32 to vector<4x256xf32>
    %211 = arith.select %209, %207, %210 : vector<4x256xi1>, vector<4x256xf32>
    %212 = vector.broadcast %9 : f32 to vector<4x256xf32>
    %213 = arith.mulf %211, %212 : vector<4x256xf32>
    %214 = arith.subf %2, %204 : vector<4x256xf32>
    %215 = arith.subf %214, %192 : vector<4x256xf32>
    %c0_86 = arith.constant 0 : index
    %c0_87 = arith.constant 0 : index
    %216 = vector.load %arg15[%c0_86, %c0_87] : memref<8x256xf32, #tpu.memory_space<vmem>>, vector<4x256xf32>
    tpu.vector_store %arg15[%c0_86, %c0_87], %215 {strides = array<i32>} : memref<8x256xf32, #tpu.memory_space<vmem>>, vector<4x256xf32>,
    %217 = arith.subf %3, %213 : vector<4x256xf32>
    %218 = arith.subf %217, %195 : vector<4x256xf32>
    %c4_88 = arith.constant 4 : index
    %c0_89 = arith.constant 0 : index
    %219 = vector.load %arg15[%c4_88, %c0_89] : memref<8x256xf32, #tpu.memory_space<vmem>>, vector<4x256xf32>
    tpu.vector_store %arg15[%c4_88, %c0_89], %218 {strides = array<i32>} : memref<8x256xf32, #tpu.memory_space<vmem>>, vector<4x256xf32>,
    %c0_90 = arith.constant 0 : index
    %c0_91 = arith.constant 0 : index
    %220 = vector.load %arg15[%c0_90, %c0_91] : memref<8x256xf32, #tpu.memory_space<vmem>>, vector<8x256xf32>
    %cst_92 = arith.constant dense<0.000000e+00> : vector<8x512xf32>
    %221 = tpu.matmul %220, %10, %cst_92 {dimension_numbers = #tpu.dot_dimension_numbers<[1], [0], [0], [1], [0, 0, 1, 1], [], []>} : vector<8x256xf32>, vector<256x512xf32>, vector<8x512xf32> -> vector<8x512xf32>
    %222 = vector.extract_strided_slice %221 {offsets = [0, 0], sizes = [4, 256], strides = [1, 1]} : vector<8x512xf32> to vector<4x256xf32>
    %223 = vector.extract_strided_slice %221 {offsets = [4, 256], sizes = [4, 256], strides = [1, 1]} : vector<8x512xf32> to vector<4x256xf32>
    %224 = arith.subf %222, %223 : vector<4x256xf32>
    %225 = vector.extract_strided_slice %221 {offsets = [0, 256], sizes = [4, 256], strides = [1, 1]} : vector<8x512xf32> to vector<4x256xf32>
    %226 = vector.extract_strided_slice %221 {offsets = [4, 0], sizes = [4, 256], strides = [1, 1]} : vector<8x512xf32> to vector<4x256xf32>
    %227 = arith.addf %225, %226 : vector<4x256xf32>
    %228 = arith.mulf %224, %28 : vector<4x256xf32>
    %229 = arith.mulf %227, %30 : vector<4x256xf32>
    %230 = arith.addf %228, %229 : vector<4x256xf32>
    %cst_93 = arith.constant dense<0.000000e+00> : vector<256xf32>
    %231 = vector.multi_reduction <add>, %230, %cst_93 [0] : vector<4x256xf32> to vector<256xf32>
    %232 = vector.shape_cast %231 : vector<256xf32> to vector<1x256xf32>
    %c0_94 = arith.constant 0 : index
    %c0_95 = arith.constant 0 : index
    %233 = vector.load %arg12[%c0_94, %c0_95] : memref<2x256xf32, #tpu.memory_space<vmem>>, vector<1x256xf32>
    tpu.vector_store %arg12[%c0_94, %c0_95], %232 {strides = array<i32>} : memref<2x256xf32, #tpu.memory_space<vmem>>, vector<1x256xf32>,
    %234 = arith.mulf %227, %28 : vector<4x256xf32>
    %235 = arith.mulf %224, %30 : vector<4x256xf32>
    %236 = arith.subf %234, %235 : vector<4x256xf32>
    %cst_96 = arith.constant dense<0.000000e+00> : vector<256xf32>
    %237 = vector.multi_reduction <add>, %236, %cst_96 [0] : vector<4x256xf32> to vector<256xf32>
    %238 = vector.shape_cast %237 : vector<256xf32> to vector<1x256xf32>
    %c1_97 = arith.constant 1 : index
    %c0_98 = arith.constant 0 : index
    %239 = vector.load %arg12[%c1_97, %c0_98] : memref<2x256xf32, #tpu.memory_space<vmem>>, vector<1x256xf32>
    tpu.vector_store %arg12[%c1_97, %c0_98], %238 {strides = array<i32>} : memref<2x256xf32, #tpu.memory_space<vmem>>, vector<1x256xf32>,
    %c0_99 = arith.constant 0 : index
    %c0_100 = arith.constant 0 : index
    %240 = vector.load %arg12[%c0_99, %c0_100] : memref<2x256xf32, #tpu.memory_space<vmem>>, vector<2x256xf32>
    %cst_101 = arith.constant dense<0.000000e+00> : vector<2xf32>
    %241 = vector.multi_reduction <add>, %240, %cst_101 [1] : vector<2x256xf32> to vector<2xf32>
    %242 = vector.shape_cast %241 : vector<2xf32> to vector<2x1xf32>
    %cst_102 = arith.constant 2.560000e+02 : f32
    %243 = vector.broadcast %cst_102 : f32 to vector<2x1xf32>
    %244 = arith.divf %242, %243 : vector<2x1xf32>
    %245 = vector.broadcast %244 : vector<2x1xf32> to vector<2x256xf32>
    %246 = arith.subf %240, %245 : vector<2x256xf32>
    %247 = arith.mulf %246, %246 : vector<2x256xf32>
    %cst_103 = arith.constant dense<0.000000e+00> : vector<2xf32>
    %248 = vector.multi_reduction <add>, %247, %cst_103 [1] : vector<2x256xf32> to vector<2xf32>
    %249 = vector.shape_cast %248 : vector<2xf32> to vector<2x1xf32>
    %cst_104 = arith.constant 2.550000e+02 : f32
    %250 = vector.broadcast %cst_104 : f32 to vector<2x1xf32>
    %251 = arith.divf %249, %250 : vector<2x1xf32>
    %252 = math.sqrt %251 : vector<2x1xf32>
    %253 = math.rsqrt %251 : vector<2x1xf32>
    %254 = vector.broadcast %253 : vector<2x1xf32> to vector<2x256xf32>
    %255 = arith.mulf %246, %254 : vector<2x256xf32>
    %c17_i32_105 = arith.constant 17 : i32
    %256 = tpu.dynamic_rotate %255 by %c17_i32_105 dim 1 : vector<2x256xf32>, i32 -> vector<2x256xf32>
    %257 = vector.extract_strided_slice %8 {offsets = [0, 0], sizes = [1, 256], strides = [1, 1]} : vector<9x256xf32> to vector<1x256xf32>
    %258 = vector.broadcast %257 : vector<1x256xf32> to vector<2x256xf32>
    %259 = arith.mulf %256, %258 : vector<2x256xf32>
    %c0_106 = arith.constant 0 : index
    %c0_107 = arith.constant 0 : index
    %260 = vector.load %arg13[%c0_106, %c0_107] : memref<18x256xf32, #tpu.memory_space<vmem>>, vector<2x256xf32>
    tpu.vector_store %arg13[%c0_106, %c0_107], %259 {strides = array<i32>} : memref<18x256xf32, #tpu.memory_space<vmem>>, vector<2x256xf32>,
    %c16_i32_108 = arith.constant 16 : i32
    %261 = tpu.dynamic_rotate %255 by %c16_i32_108 dim 1 : vector<2x256xf32>, i32 -> vector<2x256xf32>
    %262 = vector.extract_strided_slice %8 {offsets = [1, 0], sizes = [1, 256], strides = [1, 1]} : vector<9x256xf32> to vector<1x256xf32>
    %263 = vector.broadcast %262 : vector<1x256xf32> to vector<2x256xf32>
    %264 = arith.mulf %261, %263 : vector<2x256xf32>
    %c2_109 = arith.constant 2 : index
    %c0_110 = arith.constant 0 : index
    %265 = vector.load %arg13[%c2_109, %c0_110] : memref<18x256xf32, #tpu.memory_space<vmem>>, vector<2x256xf32>
    tpu.vector_store %arg13[%c2_109, %c0_110], %264 {strides = array<i32>} : memref<18x256xf32, #tpu.memory_space<vmem>>, vector<2x256xf32>,
    %c15_i32_111 = arith.constant 15 : i32
    %266 = tpu.dynamic_rotate %255 by %c15_i32_111 dim 1 : vector<2x256xf32>, i32 -> vector<2x256xf32>
    %267 = vector.extract_strided_slice %8 {offsets = [2, 0], sizes = [1, 256], strides = [1, 1]} : vector<9x256xf32> to vector<1x256xf32>
    %268 = vector.broadcast %267 : vector<1x256xf32> to vector<2x256xf32>
    %269 = arith.mulf %266, %268 : vector<2x256xf32>
    %c4_112 = arith.constant 4 : index
    %c0_113 = arith.constant 0 : index
    %270 = vector.load %arg13[%c4_112, %c0_113] : memref<18x256xf32, #tpu.memory_space<vmem>>, vector<2x256xf32>
    tpu.vector_store %arg13[%c4_112, %c0_113], %269 {strides = array<i32>} : memref<18x256xf32, #tpu.memory_space<vmem>>, vector<2x256xf32>,
    %c1_i32_114 = arith.constant 1 : i32
    %271 = tpu.dynamic_rotate %255 by %c1_i32_114 dim 1 : vector<2x256xf32>, i32 -> vector<2x256xf32>
    %272 = vector.extract_strided_slice %8 {offsets = [3, 0], sizes = [1, 256], strides = [1, 1]} : vector<9x256xf32> to vector<1x256xf32>
    %273 = vector.broadcast %272 : vector<1x256xf32> to vector<2x256xf32>
    %274 = arith.mulf %271, %273 : vector<2x256xf32>
    %c6_115 = arith.constant 6 : index
    %c0_116 = arith.constant 0 : index
    %275 = vector.load %arg13[%c6_115, %c0_116] : memref<18x256xf32, #tpu.memory_space<vmem>>, vector<2x256xf32>
    tpu.vector_store %arg13[%c6_115, %c0_116], %274 {strides = array<i32>} : memref<18x256xf32, #tpu.memory_space<vmem>>, vector<2x256xf32>,
    %276 = vector.extract_strided_slice %8 {offsets = [4, 0], sizes = [1, 256], strides = [1, 1]} : vector<9x256xf32> to vector<1x256xf32>
    %277 = vector.broadcast %276 : vector<1x256xf32> to vector<2x256xf32>
    %278 = arith.mulf %255, %277 : vector<2x256xf32>
    %c8_117 = arith.constant 8 : index
    %c0_118 = arith.constant 0 : index
    %279 = vector.load %arg13[%c8_117, %c0_118] : memref<18x256xf32, #tpu.memory_space<vmem>>, vector<2x256xf32>
    tpu.vector_store %arg13[%c8_117, %c0_118], %278 {strides = array<i32>} : memref<18x256xf32, #tpu.memory_space<vmem>>, vector<2x256xf32>,
    %c255_i32_119 = arith.constant 255 : i32
    %280 = tpu.dynamic_rotate %255 by %c255_i32_119 dim 1 : vector<2x256xf32>, i32 -> vector<2x256xf32>
    %281 = vector.extract_strided_slice %8 {offsets = [5, 0], sizes = [1, 256], strides = [1, 1]} : vector<9x256xf32> to vector<1x256xf32>
    %282 = vector.broadcast %281 : vector<1x256xf32> to vector<2x256xf32>
    %283 = arith.mulf %280, %282 : vector<2x256xf32>
    %c10_120 = arith.constant 10 : index
    %c0_121 = arith.constant 0 : index
    %284 = vector.load %arg13[%c10_120, %c0_121] : memref<18x256xf32, #tpu.memory_space<vmem>>, vector<2x256xf32>
    tpu.vector_store %arg13[%c10_120, %c0_121], %283 {strides = array<i32>} : memref<18x256xf32, #tpu.memory_space<vmem>>, vector<2x256xf32>,
    %c241_i32_122 = arith.constant 241 : i32
    %285 = tpu.dynamic_rotate %255 by %c241_i32_122 dim 1 : vector<2x256xf32>, i32 -> vector<2x256xf32>
    %286 = vector.extract_strided_slice %8 {offsets = [6, 0], sizes = [1, 256], strides = [1, 1]} : vector<9x256xf32> to vector<1x256xf32>
    %287 = vector.broadcast %286 : vector<1x256xf32> to vector<2x256xf32>
    %288 = arith.mulf %285, %287 : vector<2x256xf32>
    %c12_123 = arith.constant 12 : index
    %c0_124 = arith.constant 0 : index
    %289 = vector.load %arg13[%c12_123, %c0_124] : memref<18x256xf32, #tpu.memory_space<vmem>>, vector<2x256xf32>
    tpu.vector_store %arg13[%c12_123, %c0_124], %288 {strides = array<i32>} : memref<18x256xf32, #tpu.memory_space<vmem>>, vector<2x256xf32>,
    %c240_i32_125 = arith.constant 240 : i32
    %290 = tpu.dynamic_rotate %255 by %c240_i32_125 dim 1 : vector<2x256xf32>, i32 -> vector<2x256xf32>
    %291 = vector.extract_strided_slice %8 {offsets = [7, 0], sizes = [1, 256], strides = [1, 1]} : vector<9x256xf32> to vector<1x256xf32>
    %292 = vector.broadcast %291 : vector<1x256xf32> to vector<2x256xf32>
    %293 = arith.mulf %290, %292 : vector<2x256xf32>
    %c14_126 = arith.constant 14 : index
    %c0_127 = arith.constant 0 : index
    %294 = vector.load %arg13[%c14_126, %c0_127] : memref<18x256xf32, #tpu.memory_space<vmem>>, vector<2x256xf32>
    tpu.vector_store %arg13[%c14_126, %c0_127], %293 {strides = array<i32>} : memref<18x256xf32, #tpu.memory_space<vmem>>, vector<2x256xf32>,
    %c239_i32_128 = arith.constant 239 : i32
    %295 = tpu.dynamic_rotate %255 by %c239_i32_128 dim 1 : vector<2x256xf32>, i32 -> vector<2x256xf32>
    %296 = vector.extract_strided_slice %8 {offsets = [8, 0], sizes = [1, 256], strides = [1, 1]} : vector<9x256xf32> to vector<1x256xf32>
    %297 = vector.broadcast %296 : vector<1x256xf32> to vector<2x256xf32>
    %298 = arith.mulf %295, %297 : vector<2x256xf32>
    %c16_129 = arith.constant 16 : index
    %c0_130 = arith.constant 0 : index
    %299 = vector.load %arg13[%c16_129, %c0_130] : memref<18x256xf32, #tpu.memory_space<vmem>>, vector<2x256xf32>
    tpu.vector_store %arg13[%c16_129, %c0_130], %298 {strides = array<i32>} : memref<18x256xf32, #tpu.memory_space<vmem>>, vector<2x256xf32>,
    %c0_131 = arith.constant 0 : index
    %c0_132 = arith.constant 0 : index
    %300 = vector.load %arg5[%c0_131, %c0_132] : memref<8x18xf32, #tpu.memory_space<vmem>>, vector<8x18xf32>
    %c0_133 = arith.constant 0 : index
    %c0_134 = arith.constant 0 : index
    %301 = vector.load %arg13[%c0_133, %c0_134] : memref<18x256xf32, #tpu.memory_space<vmem>>, vector<18x256xf32>
    %cst_135 = arith.constant dense<0.000000e+00> : vector<8x256xf32>
    %302 = tpu.matmul %300, %301, %cst_135 {dimension_numbers = #tpu.dot_dimension_numbers<[1], [0], [0], [1], [0, 0, 1, 1], [], []>} : vector<8x18xf32>, vector<18x256xf32>, vector<8x256xf32> -> vector<8x256xf32>
    %c0_136 = arith.constant 0 : index
    %c0_137 = arith.constant 0 : index
    %303 = vector.load %arg6[%c0_136, %c0_137] : memref<8x1xf32, #tpu.memory_space<vmem>>, vector<8x1xf32>
    %304 = vector.broadcast %303 : vector<8x1xf32> to vector<8x256xf32>
    %305 = arith.addf %302, %304 : vector<8x256xf32>
    %cst_138 = arith.constant 0.000000e+00 : f32
    %306 = vector.broadcast %cst_138 : f32 to vector<8x256xf32>
    %307 = arith.maximumf %305, %306 : vector<8x256xf32>
    %c17_i32_139 = arith.constant 17 : i32
    %308 = tpu.dynamic_rotate %307 by %c17_i32_139 dim 1 : vector<8x256xf32>, i32 -> vector<8x256xf32>
    %309 = vector.extract_strided_slice %8 {offsets = [0, 0], sizes = [1, 256], strides = [1, 1]} : vector<9x256xf32> to vector<1x256xf32>
    %310 = vector.broadcast %309 : vector<1x256xf32> to vector<8x256xf32>
    %311 = arith.mulf %308, %310 : vector<8x256xf32>
    %c0_140 = arith.constant 0 : index
    %c0_141 = arith.constant 0 : index
    %312 = vector.load %arg14[%c0_140, %c0_141] : memref<72x256xf32, #tpu.memory_space<vmem>>, vector<8x256xf32>
    tpu.vector_store %arg14[%c0_140, %c0_141], %311 {strides = array<i32>} : memref<72x256xf32, #tpu.memory_space<vmem>>, vector<8x256xf32>,
    %c16_i32_142 = arith.constant 16 : i32
    %313 = tpu.dynamic_rotate %307 by %c16_i32_142 dim 1 : vector<8x256xf32>, i32 -> vector<8x256xf32>
    %314 = vector.extract_strided_slice %8 {offsets = [1, 0], sizes = [1, 256], strides = [1, 1]} : vector<9x256xf32> to vector<1x256xf32>
    %315 = vector.broadcast %314 : vector<1x256xf32> to vector<8x256xf32>
    %316 = arith.mulf %313, %315 : vector<8x256xf32>
    %c8_143 = arith.constant 8 : index
    %c0_144 = arith.constant 0 : index
    %317 = vector.load %arg14[%c8_143, %c0_144] : memref<72x256xf32, #tpu.memory_space<vmem>>, vector<8x256xf32>
    tpu.vector_store %arg14[%c8_143, %c0_144], %316 {strides = array<i32>} : memref<72x256xf32, #tpu.memory_space<vmem>>, vector<8x256xf32>,
    %c15_i32_145 = arith.constant 15 : i32
    %318 = tpu.dynamic_rotate %307 by %c15_i32_145 dim 1 : vector<8x256xf32>, i32 -> vector<8x256xf32>
    %319 = vector.extract_strided_slice %8 {offsets = [2, 0], sizes = [1, 256], strides = [1, 1]} : vector<9x256xf32> to vector<1x256xf32>
    %320 = vector.broadcast %319 : vector<1x256xf32> to vector<8x256xf32>
    %321 = arith.mulf %318, %320 : vector<8x256xf32>
    %c16_146 = arith.constant 16 : index
    %c0_147 = arith.constant 0 : index
    %322 = vector.load %arg14[%c16_146, %c0_147] : memref<72x256xf32, #tpu.memory_space<vmem>>, vector<8x256xf32>
    tpu.vector_store %arg14[%c16_146, %c0_147], %321 {strides = array<i32>} : memref<72x256xf32, #tpu.memory_space<vmem>>, vector<8x256xf32>,
    %c1_i32_148 = arith.constant 1 : i32
    %323 = tpu.dynamic_rotate %307 by %c1_i32_148 dim 1 : vector<8x256xf32>, i32 -> vector<8x256xf32>
    %324 = vector.extract_strided_slice %8 {offsets = [3, 0], sizes = [1, 256], strides = [1, 1]} : vector<9x256xf32> to vector<1x256xf32>
    %325 = vector.broadcast %324 : vector<1x256xf32> to vector<8x256xf32>
    %326 = arith.mulf %323, %325 : vector<8x256xf32>
    %c24_149 = arith.constant 24 : index
    %c0_150 = arith.constant 0 : index
    %327 = vector.load %arg14[%c24_149, %c0_150] : memref<72x256xf32, #tpu.memory_space<vmem>>, vector<8x256xf32>
    tpu.vector_store %arg14[%c24_149, %c0_150], %326 {strides = array<i32>} : memref<72x256xf32, #tpu.memory_space<vmem>>, vector<8x256xf32>,
    %328 = vector.extract_strided_slice %8 {offsets = [4, 0], sizes = [1, 256], strides = [1, 1]} : vector<9x256xf32> to vector<1x256xf32>
    %329 = vector.broadcast %328 : vector<1x256xf32> to vector<8x256xf32>
    %330 = arith.mulf %307, %329 : vector<8x256xf32>
    %c32_151 = arith.constant 32 : index
    %c0_152 = arith.constant 0 : index
    %331 = vector.load %arg14[%c32_151, %c0_152] : memref<72x256xf32, #tpu.memory_space<vmem>>, vector<8x256xf32>
    tpu.vector_store %arg14[%c32_151, %c0_152], %330 {strides = array<i32>} : memref<72x256xf32, #tpu.memory_space<vmem>>, vector<8x256xf32>,
    %c255_i32_153 = arith.constant 255 : i32
    %332 = tpu.dynamic_rotate %307 by %c255_i32_153 dim 1 : vector<8x256xf32>, i32 -> vector<8x256xf32>
    %333 = vector.extract_strided_slice %8 {offsets = [5, 0], sizes = [1, 256], strides = [1, 1]} : vector<9x256xf32> to vector<1x256xf32>
    %334 = vector.broadcast %333 : vector<1x256xf32> to vector<8x256xf32>
    %335 = arith.mulf %332, %334 : vector<8x256xf32>
    %c40_154 = arith.constant 40 : index
    %c0_155 = arith.constant 0 : index
    %336 = vector.load %arg14[%c40_154, %c0_155] : memref<72x256xf32, #tpu.memory_space<vmem>>, vector<8x256xf32>
    tpu.vector_store %arg14[%c40_154, %c0_155], %335 {strides = array<i32>} : memref<72x256xf32, #tpu.memory_space<vmem>>, vector<8x256xf32>,
    %c241_i32_156 = arith.constant 241 : i32
    %337 = tpu.dynamic_rotate %307 by %c241_i32_156 dim 1 : vector<8x256xf32>, i32 -> vector<8x256xf32>
    %338 = vector.extract_strided_slice %8 {offsets = [6, 0], sizes = [1, 256], strides = [1, 1]} : vector<9x256xf32> to vector<1x256xf32>
    %339 = vector.broadcast %338 : vector<1x256xf32> to vector<8x256xf32>
    %340 = arith.mulf %337, %339 : vector<8x256xf32>
    %c48_157 = arith.constant 48 : index
    %c0_158 = arith.constant 0 : index
    %341 = vector.load %arg14[%c48_157, %c0_158] : memref<72x256xf32, #tpu.memory_space<vmem>>, vector<8x256xf32>
    tpu.vector_store %arg14[%c48_157, %c0_158], %340 {strides = array<i32>} : memref<72x256xf32, #tpu.memory_space<vmem>>, vector<8x256xf32>,
    %c240_i32_159 = arith.constant 240 : i32
    %342 = tpu.dynamic_rotate %307 by %c240_i32_159 dim 1 : vector<8x256xf32>, i32 -> vector<8x256xf32>
    %343 = vector.extract_strided_slice %8 {offsets = [7, 0], sizes = [1, 256], strides = [1, 1]} : vector<9x256xf32> to vector<1x256xf32>
    %344 = vector.broadcast %343 : vector<1x256xf32> to vector<8x256xf32>
    %345 = arith.mulf %342, %344 : vector<8x256xf32>
    %c56_160 = arith.constant 56 : index
    %c0_161 = arith.constant 0 : index
    %346 = vector.load %arg14[%c56_160, %c0_161] : memref<72x256xf32, #tpu.memory_space<vmem>>, vector<8x256xf32>
    tpu.vector_store %arg14[%c56_160, %c0_161], %345 {strides = array<i32>} : memref<72x256xf32, #tpu.memory_space<vmem>>, vector<8x256xf32>,
    %c239_i32_162 = arith.constant 239 : i32
    %347 = tpu.dynamic_rotate %307 by %c239_i32_162 dim 1 : vector<8x256xf32>, i32 -> vector<8x256xf32>
    %348 = vector.extract_strided_slice %8 {offsets = [8, 0], sizes = [1, 256], strides = [1, 1]} : vector<9x256xf32> to vector<1x256xf32>
    %349 = vector.broadcast %348 : vector<1x256xf32> to vector<8x256xf32>
    %350 = arith.mulf %347, %349 : vector<8x256xf32>
    %c64_163 = arith.constant 64 : index
    %c0_164 = arith.constant 0 : index
    %351 = vector.load %arg14[%c64_163, %c0_164] : memref<72x256xf32, #tpu.memory_space<vmem>>, vector<8x256xf32>
    tpu.vector_store %arg14[%c64_163, %c0_164], %350 {strides = array<i32>} : memref<72x256xf32, #tpu.memory_space<vmem>>, vector<8x256xf32>,
    %c0_165 = arith.constant 0 : index
    %c0_166 = arith.constant 0 : index
    %352 = vector.load %arg7[%c0_165, %c0_166] : memref<2x72xf32, #tpu.memory_space<vmem>>, vector<2x72xf32>
    %c0_167 = arith.constant 0 : index
    %c0_168 = arith.constant 0 : index
    %353 = vector.load %arg14[%c0_167, %c0_168] : memref<72x256xf32, #tpu.memory_space<vmem>>, vector<72x256xf32>
    %cst_169 = arith.constant dense<0.000000e+00> : vector<2x256xf32>
    %354 = tpu.matmul %352, %353, %cst_169 {dimension_numbers = #tpu.dot_dimension_numbers<[1], [0], [0], [1], [0, 0, 1, 1], [], []>} : vector<2x72xf32>, vector<72x256xf32>, vector<2x256xf32> -> vector<2x256xf32>
    %c0_170 = arith.constant 0 : index
    %c0_171 = arith.constant 0 : index
    %355 = vector.load %arg8[%c0_170, %c0_171] : memref<2x1xf32, #tpu.memory_space<vmem>>, vector<2x1xf32>
    %356 = vector.broadcast %355 : vector<2x1xf32> to vector<2x256xf32>
    %357 = arith.addf %354, %356 : vector<2x256xf32>
    %358 = vector.broadcast %252 : vector<2x1xf32> to vector<2x256xf32>
    %359 = arith.mulf %357, %358 : vector<2x256xf32>
    %360 = vector.broadcast %244 : vector<2x1xf32> to vector<2x256xf32>
    %361 = arith.addf %359, %360 : vector<2x256xf32>
    %362 = vector.extract_strided_slice %361 {offsets = [0, 0], sizes = [1, 256], strides = [1, 1]} : vector<2x256xf32> to vector<1x256xf32>
    %363 = vector.extract_strided_slice %361 {offsets = [1, 0], sizes = [1, 256], strides = [1, 1]} : vector<2x256xf32> to vector<1x256xf32>
    %364 = vector.broadcast %362 : vector<1x256xf32> to vector<4x256xf32>
    %365 = arith.mulf %364, %28 : vector<4x256xf32>
    %366 = vector.broadcast %363 : vector<1x256xf32> to vector<4x256xf32>
    %367 = arith.mulf %366, %30 : vector<4x256xf32>
    %368 = arith.subf %365, %367 : vector<4x256xf32>
    %c0_172 = arith.constant 0 : index
    %c0_173 = arith.constant 0 : index
    %369 = vector.load %arg16[%c0_172, %c0_173] : memref<8x256xf32, #tpu.memory_space<vmem>>, vector<4x256xf32>
    tpu.vector_store %arg16[%c0_172, %c0_173], %368 {strides = array<i32>} : memref<8x256xf32, #tpu.memory_space<vmem>>, vector<4x256xf32>,
    %370 = vector.broadcast %362 : vector<1x256xf32> to vector<4x256xf32>
    %371 = arith.mulf %370, %30 : vector<4x256xf32>
    %372 = vector.broadcast %363 : vector<1x256xf32> to vector<4x256xf32>
    %373 = arith.mulf %372, %28 : vector<4x256xf32>
    %374 = arith.addf %371, %373 : vector<4x256xf32>
    %c4_174 = arith.constant 4 : index
    %c0_175 = arith.constant 0 : index
    %375 = vector.load %arg16[%c4_174, %c0_175] : memref<8x256xf32, #tpu.memory_space<vmem>>, vector<4x256xf32>
    tpu.vector_store %arg16[%c4_174, %c0_175], %374 {strides = array<i32>} : memref<8x256xf32, #tpu.memory_space<vmem>>, vector<4x256xf32>,
    %c0_176 = arith.constant 0 : index
    %c0_177 = arith.constant 0 : index
    %376 = vector.load %arg16[%c0_176, %c0_177] : memref<8x256xf32, #tpu.memory_space<vmem>>, vector<8x256xf32>
    %cst_178 = arith.constant dense<0.000000e+00> : vector<8x512xf32>
    %377 = tpu.matmul %376, %11, %cst_178 {dimension_numbers = #tpu.dot_dimension_numbers<[1], [0], [0], [1], [0, 0, 1, 1], [], []>} : vector<8x256xf32>, vector<256x512xf32>, vector<8x512xf32> -> vector<8x512xf32>
    %378 = vector.extract_strided_slice %377 {offsets = [0, 0], sizes = [4, 256], strides = [1, 1]} : vector<8x512xf32> to vector<4x256xf32>
    %379 = vector.extract_strided_slice %377 {offsets = [4, 256], sizes = [4, 256], strides = [1, 1]} : vector<8x512xf32> to vector<4x256xf32>
    %380 = arith.subf %378, %379 : vector<4x256xf32>
    %381 = vector.extract_strided_slice %377 {offsets = [0, 256], sizes = [4, 256], strides = [1, 1]} : vector<8x512xf32> to vector<4x256xf32>
    %382 = vector.extract_strided_slice %377 {offsets = [4, 0], sizes = [4, 256], strides = [1, 1]} : vector<8x512xf32> to vector<4x256xf32>
    %383 = arith.addf %381, %382 : vector<4x256xf32>
    %cst_179 = arith.constant 5.000000e-01 : f32
    %384 = vector.broadcast %cst_179 : f32 to vector<1x256xf32>
    %385 = arith.cmpf ogt, %6, %384 : vector<1x256xf32>
    %386 = arith.subf %380, %2 : vector<4x256xf32>
    %cst_180 = arith.constant 0.000000e+00 : f32
    %387 = vector.shape_cast %385 : vector<1x256xi1> to vector<1x256xi1>
    %388 = vector.broadcast %387 : vector<1x256xi1> to vector<4x256xi1>
    %389 = vector.broadcast %cst_180 : f32 to vector<4x256xf32>
    %390 = arith.select %388, %386, %389 : vector<4x256xi1>, vector<4x256xf32>
    %391 = vector.broadcast %9 : f32 to vector<4x256xf32>
    %392 = arith.mulf %390, %391 : vector<4x256xf32>
    %cst_181 = arith.constant 5.000000e-01 : f32
    %393 = vector.broadcast %cst_181 : f32 to vector<1x256xf32>
    %394 = arith.cmpf ogt, %7, %393 : vector<1x256xf32>
    %395 = arith.subf %383, %3 : vector<4x256xf32>
    %cst_182 = arith.constant 0.000000e+00 : f32
    %396 = vector.shape_cast %394 : vector<1x256xi1> to vector<1x256xi1>
    %397 = vector.broadcast %396 : vector<1x256xi1> to vector<4x256xi1>
    %398 = vector.broadcast %cst_182 : f32 to vector<4x256xf32>
    %399 = arith.select %397, %395, %398 : vector<4x256xi1>, vector<4x256xf32>
    %400 = vector.broadcast %9 : f32 to vector<4x256xf32>
    %401 = arith.mulf %399, %400 : vector<4x256xf32>
    %402 = arith.subf %2, %392 : vector<4x256xf32>
    %403 = arith.subf %402, %380 : vector<4x256xf32>
    %c0_183 = arith.constant 0 : index
    %c0_184 = arith.constant 0 : index
    %404 = vector.load %arg15[%c0_183, %c0_184] : memref<8x256xf32, #tpu.memory_space<vmem>>, vector<4x256xf32>
    tpu.vector_store %arg15[%c0_183, %c0_184], %403 {strides = array<i32>} : memref<8x256xf32, #tpu.memory_space<vmem>>, vector<4x256xf32>,
    %405 = arith.subf %3, %401 : vector<4x256xf32>
    %406 = arith.subf %405, %383 : vector<4x256xf32>
    %c4_185 = arith.constant 4 : index
    %c0_186 = arith.constant 0 : index
    %407 = vector.load %arg15[%c4_185, %c0_186] : memref<8x256xf32, #tpu.memory_space<vmem>>, vector<4x256xf32>
    tpu.vector_store %arg15[%c4_185, %c0_186], %406 {strides = array<i32>} : memref<8x256xf32, #tpu.memory_space<vmem>>, vector<4x256xf32>,
    %c0_187 = arith.constant 0 : index
    %c0_188 = arith.constant 0 : index
    %408 = vector.load %arg15[%c0_187, %c0_188] : memref<8x256xf32, #tpu.memory_space<vmem>>, vector<8x256xf32>
    %cst_189 = arith.constant dense<0.000000e+00> : vector<8x512xf32>
    %409 = tpu.matmul %408, %10, %cst_189 {dimension_numbers = #tpu.dot_dimension_numbers<[1], [0], [0], [1], [0, 0, 1, 1], [], []>} : vector<8x256xf32>, vector<256x512xf32>, vector<8x512xf32> -> vector<8x512xf32>
    %410 = vector.extract_strided_slice %409 {offsets = [0, 0], sizes = [4, 256], strides = [1, 1]} : vector<8x512xf32> to vector<4x256xf32>
    %411 = vector.extract_strided_slice %409 {offsets = [4, 256], sizes = [4, 256], strides = [1, 1]} : vector<8x512xf32> to vector<4x256xf32>
    %412 = arith.subf %410, %411 : vector<4x256xf32>
    %413 = vector.extract_strided_slice %409 {offsets = [0, 256], sizes = [4, 256], strides = [1, 1]} : vector<8x512xf32> to vector<4x256xf32>
    %414 = vector.extract_strided_slice %409 {offsets = [4, 0], sizes = [4, 256], strides = [1, 1]} : vector<8x512xf32> to vector<4x256xf32>
    %415 = arith.addf %413, %414 : vector<4x256xf32>
    %416 = arith.mulf %412, %28 : vector<4x256xf32>
    %417 = arith.mulf %415, %30 : vector<4x256xf32>
    %418 = arith.addf %416, %417 : vector<4x256xf32>
    %cst_190 = arith.constant dense<0.000000e+00> : vector<256xf32>
    %419 = vector.multi_reduction <add>, %418, %cst_190 [0] : vector<4x256xf32> to vector<256xf32>
    %420 = vector.shape_cast %419 : vector<256xf32> to vector<1x256xf32>
    %c0_191 = arith.constant 0 : index
    %c0_192 = arith.constant 0 : index
    %421 = vector.load %arg12[%c0_191, %c0_192] : memref<2x256xf32, #tpu.memory_space<vmem>>, vector<1x256xf32>
    tpu.vector_store %arg12[%c0_191, %c0_192], %420 {strides = array<i32>} : memref<2x256xf32, #tpu.memory_space<vmem>>, vector<1x256xf32>,
    %422 = arith.mulf %415, %28 : vector<4x256xf32>
    %423 = arith.mulf %412, %30 : vector<4x256xf32>
    %424 = arith.subf %422, %423 : vector<4x256xf32>
    %cst_193 = arith.constant dense<0.000000e+00> : vector<256xf32>
    %425 = vector.multi_reduction <add>, %424, %cst_193 [0] : vector<4x256xf32> to vector<256xf32>
    %426 = vector.shape_cast %425 : vector<256xf32> to vector<1x256xf32>
    %c1_194 = arith.constant 1 : index
    %c0_195 = arith.constant 0 : index
    %427 = vector.load %arg12[%c1_194, %c0_195] : memref<2x256xf32, #tpu.memory_space<vmem>>, vector<1x256xf32>
    tpu.vector_store %arg12[%c1_194, %c0_195], %426 {strides = array<i32>} : memref<2x256xf32, #tpu.memory_space<vmem>>, vector<1x256xf32>,
    %c0_196 = arith.constant 0 : index
    %c0_197 = arith.constant 0 : index
    %428 = vector.load %arg12[%c0_196, %c0_197] : memref<2x256xf32, #tpu.memory_space<vmem>>, vector<2x256xf32>
    %cst_198 = arith.constant dense<0.000000e+00> : vector<2xf32>
    %429 = vector.multi_reduction <add>, %428, %cst_198 [1] : vector<2x256xf32> to vector<2xf32>
    %430 = vector.shape_cast %429 : vector<2xf32> to vector<2x1xf32>
    %cst_199 = arith.constant 2.560000e+02 : f32
    %431 = vector.broadcast %cst_199 : f32 to vector<2x1xf32>
    %432 = arith.divf %430, %431 : vector<2x1xf32>
    %433 = vector.broadcast %432 : vector<2x1xf32> to vector<2x256xf32>
    %434 = arith.subf %428, %433 : vector<2x256xf32>
    %435 = arith.mulf %434, %434 : vector<2x256xf32>
    %cst_200 = arith.constant dense<0.000000e+00> : vector<2xf32>
    %436 = vector.multi_reduction <add>, %435, %cst_200 [1] : vector<2x256xf32> to vector<2xf32>
    %437 = vector.shape_cast %436 : vector<2xf32> to vector<2x1xf32>
    %cst_201 = arith.constant 2.550000e+02 : f32
    %438 = vector.broadcast %cst_201 : f32 to vector<2x1xf32>
    %439 = arith.divf %437, %438 : vector<2x1xf32>
    %440 = math.sqrt %439 : vector<2x1xf32>
    %441 = math.rsqrt %439 : vector<2x1xf32>
    %442 = vector.broadcast %441 : vector<2x1xf32> to vector<2x256xf32>
    %443 = arith.mulf %434, %442 : vector<2x256xf32>
    %c17_i32_202 = arith.constant 17 : i32
    %444 = tpu.dynamic_rotate %443 by %c17_i32_202 dim 1 : vector<2x256xf32>, i32 -> vector<2x256xf32>
    %445 = vector.extract_strided_slice %8 {offsets = [0, 0], sizes = [1, 256], strides = [1, 1]} : vector<9x256xf32> to vector<1x256xf32>
    %446 = vector.broadcast %445 : vector<1x256xf32> to vector<2x256xf32>
    %447 = arith.mulf %444, %446 : vector<2x256xf32>
    %c0_203 = arith.constant 0 : index
    %c0_204 = arith.constant 0 : index
    %448 = vector.load %arg13[%c0_203, %c0_204] : memref<18x256xf32, #tpu.memory_space<vmem>>, vector<2x256xf32>
    tpu.vector_store %arg13[%c0_203, %c0_204], %447 {strides = array<i32>} : memref<18x256xf32, #tpu.memory_space<vmem>>, vector<2x256xf32>,
    %c16_i32_205 = arith.constant 16 : i32
    %449 = tpu.dynamic_rotate %443 by %c16_i32_205 dim 1 : vector<2x256xf32>, i32 -> vector<2x256xf32>
    %450 = vector.extract_strided_slice %8 {offsets = [1, 0], sizes = [1, 256], strides = [1, 1]} : vector<9x256xf32> to vector<1x256xf32>
    %451 = vector.broadcast %450 : vector<1x256xf32> to vector<2x256xf32>
    %452 = arith.mulf %449, %451 : vector<2x256xf32>
    %c2_206 = arith.constant 2 : index
    %c0_207 = arith.constant 0 : index
    %453 = vector.load %arg13[%c2_206, %c0_207] : memref<18x256xf32, #tpu.memory_space<vmem>>, vector<2x256xf32>
    tpu.vector_store %arg13[%c2_206, %c0_207], %452 {strides = array<i32>} : memref<18x256xf32, #tpu.memory_space<vmem>>, vector<2x256xf32>,
    %c15_i32_208 = arith.constant 15 : i32
    %454 = tpu.dynamic_rotate %443 by %c15_i32_208 dim 1 : vector<2x256xf32>, i32 -> vector<2x256xf32>
    %455 = vector.extract_strided_slice %8 {offsets = [2, 0], sizes = [1, 256], strides = [1, 1]} : vector<9x256xf32> to vector<1x256xf32>
    %456 = vector.broadcast %455 : vector<1x256xf32> to vector<2x256xf32>
    %457 = arith.mulf %454, %456 : vector<2x256xf32>
    %c4_209 = arith.constant 4 : index
    %c0_210 = arith.constant 0 : index
    %458 = vector.load %arg13[%c4_209, %c0_210] : memref<18x256xf32, #tpu.memory_space<vmem>>, vector<2x256xf32>
    tpu.vector_store %arg13[%c4_209, %c0_210], %457 {strides = array<i32>} : memref<18x256xf32, #tpu.memory_space<vmem>>, vector<2x256xf32>,
    %c1_i32_211 = arith.constant 1 : i32
    %459 = tpu.dynamic_rotate %443 by %c1_i32_211 dim 1 : vector<2x256xf32>, i32 -> vector<2x256xf32>
    %460 = vector.extract_strided_slice %8 {offsets = [3, 0], sizes = [1, 256], strides = [1, 1]} : vector<9x256xf32> to vector<1x256xf32>
    %461 = vector.broadcast %460 : vector<1x256xf32> to vector<2x256xf32>
    %462 = arith.mulf %459, %461 : vector<2x256xf32>
    %c6_212 = arith.constant 6 : index
    %c0_213 = arith.constant 0 : index
    %463 = vector.load %arg13[%c6_212, %c0_213] : memref<18x256xf32, #tpu.memory_space<vmem>>, vector<2x256xf32>
    tpu.vector_store %arg13[%c6_212, %c0_213], %462 {strides = array<i32>} : memref<18x256xf32, #tpu.memory_space<vmem>>, vector<2x256xf32>,
    %464 = vector.extract_strided_slice %8 {offsets = [4, 0], sizes = [1, 256], strides = [1, 1]} : vector<9x256xf32> to vector<1x256xf32>
    %465 = vector.broadcast %464 : vector<1x256xf32> to vector<2x256xf32>
    %466 = arith.mulf %443, %465 : vector<2x256xf32>
    %c8_214 = arith.constant 8 : index
    %c0_215 = arith.constant 0 : index
    %467 = vector.load %arg13[%c8_214, %c0_215] : memref<18x256xf32, #tpu.memory_space<vmem>>, vector<2x256xf32>
    tpu.vector_store %arg13[%c8_214, %c0_215], %466 {strides = array<i32>} : memref<18x256xf32, #tpu.memory_space<vmem>>, vector<2x256xf32>,
    %c255_i32_216 = arith.constant 255 : i32
    %468 = tpu.dynamic_rotate %443 by %c255_i32_216 dim 1 : vector<2x256xf32>, i32 -> vector<2x256xf32>
    %469 = vector.extract_strided_slice %8 {offsets = [5, 0], sizes = [1, 256], strides = [1, 1]} : vector<9x256xf32> to vector<1x256xf32>
    %470 = vector.broadcast %469 : vector<1x256xf32> to vector<2x256xf32>
    %471 = arith.mulf %468, %470 : vector<2x256xf32>
    %c10_217 = arith.constant 10 : index
    %c0_218 = arith.constant 0 : index
    %472 = vector.load %arg13[%c10_217, %c0_218] : memref<18x256xf32, #tpu.memory_space<vmem>>, vector<2x256xf32>
    tpu.vector_store %arg13[%c10_217, %c0_218], %471 {strides = array<i32>} : memref<18x256xf32, #tpu.memory_space<vmem>>, vector<2x256xf32>,
    %c241_i32_219 = arith.constant 241 : i32
    %473 = tpu.dynamic_rotate %443 by %c241_i32_219 dim 1 : vector<2x256xf32>, i32 -> vector<2x256xf32>
    %474 = vector.extract_strided_slice %8 {offsets = [6, 0], sizes = [1, 256], strides = [1, 1]} : vector<9x256xf32> to vector<1x256xf32>
    %475 = vector.broadcast %474 : vector<1x256xf32> to vector<2x256xf32>
    %476 = arith.mulf %473, %475 : vector<2x256xf32>
    %c12_220 = arith.constant 12 : index
    %c0_221 = arith.constant 0 : index
    %477 = vector.load %arg13[%c12_220, %c0_221] : memref<18x256xf32, #tpu.memory_space<vmem>>, vector<2x256xf32>
    tpu.vector_store %arg13[%c12_220, %c0_221], %476 {strides = array<i32>} : memref<18x256xf32, #tpu.memory_space<vmem>>, vector<2x256xf32>,
    %c240_i32_222 = arith.constant 240 : i32
    %478 = tpu.dynamic_rotate %443 by %c240_i32_222 dim 1 : vector<2x256xf32>, i32 -> vector<2x256xf32>
    %479 = vector.extract_strided_slice %8 {offsets = [7, 0], sizes = [1, 256], strides = [1, 1]} : vector<9x256xf32> to vector<1x256xf32>
    %480 = vector.broadcast %479 : vector<1x256xf32> to vector<2x256xf32>
    %481 = arith.mulf %478, %480 : vector<2x256xf32>
    %c14_223 = arith.constant 14 : index
    %c0_224 = arith.constant 0 : index
    %482 = vector.load %arg13[%c14_223, %c0_224] : memref<18x256xf32, #tpu.memory_space<vmem>>, vector<2x256xf32>
    tpu.vector_store %arg13[%c14_223, %c0_224], %481 {strides = array<i32>} : memref<18x256xf32, #tpu.memory_space<vmem>>, vector<2x256xf32>,
    %c239_i32_225 = arith.constant 239 : i32
    %483 = tpu.dynamic_rotate %443 by %c239_i32_225 dim 1 : vector<2x256xf32>, i32 -> vector<2x256xf32>
    %484 = vector.extract_strided_slice %8 {offsets = [8, 0], sizes = [1, 256], strides = [1, 1]} : vector<9x256xf32> to vector<1x256xf32>
    %485 = vector.broadcast %484 : vector<1x256xf32> to vector<2x256xf32>
    %486 = arith.mulf %483, %485 : vector<2x256xf32>
    %c16_226 = arith.constant 16 : index
    %c0_227 = arith.constant 0 : index
    %487 = vector.load %arg13[%c16_226, %c0_227] : memref<18x256xf32, #tpu.memory_space<vmem>>, vector<2x256xf32>
    tpu.vector_store %arg13[%c16_226, %c0_227], %486 {strides = array<i32>} : memref<18x256xf32, #tpu.memory_space<vmem>>, vector<2x256xf32>,
    %c0_228 = arith.constant 0 : index
    %c0_229 = arith.constant 0 : index
    %488 = vector.load %arg5[%c0_228, %c0_229] : memref<8x18xf32, #tpu.memory_space<vmem>>, vector<8x18xf32>
    %c0_230 = arith.constant 0 : index
    %c0_231 = arith.constant 0 : index
    %489 = vector.load %arg13[%c0_230, %c0_231] : memref<18x256xf32, #tpu.memory_space<vmem>>, vector<18x256xf32>
    %cst_232 = arith.constant dense<0.000000e+00> : vector<8x256xf32>
    %490 = tpu.matmul %488, %489, %cst_232 {dimension_numbers = #tpu.dot_dimension_numbers<[1], [0], [0], [1], [0, 0, 1, 1], [], []>} : vector<8x18xf32>, vector<18x256xf32>, vector<8x256xf32> -> vector<8x256xf32>
    %c0_233 = arith.constant 0 : index
    %c0_234 = arith.constant 0 : index
    %491 = vector.load %arg6[%c0_233, %c0_234] : memref<8x1xf32, #tpu.memory_space<vmem>>, vector<8x1xf32>
    %492 = vector.broadcast %491 : vector<8x1xf32> to vector<8x256xf32>
    %493 = arith.addf %490, %492 : vector<8x256xf32>
    %cst_235 = arith.constant 0.000000e+00 : f32
    %494 = vector.broadcast %cst_235 : f32 to vector<8x256xf32>
    %495 = arith.maximumf %493, %494 : vector<8x256xf32>
    %c17_i32_236 = arith.constant 17 : i32
    %496 = tpu.dynamic_rotate %495 by %c17_i32_236 dim 1 : vector<8x256xf32>, i32 -> vector<8x256xf32>
    %497 = vector.extract_strided_slice %8 {offsets = [0, 0], sizes = [1, 256], strides = [1, 1]} : vector<9x256xf32> to vector<1x256xf32>
    %498 = vector.broadcast %497 : vector<1x256xf32> to vector<8x256xf32>
    %499 = arith.mulf %496, %498 : vector<8x256xf32>
    %c0_237 = arith.constant 0 : index
    %c0_238 = arith.constant 0 : index
    %500 = vector.load %arg14[%c0_237, %c0_238] : memref<72x256xf32, #tpu.memory_space<vmem>>, vector<8x256xf32>
    tpu.vector_store %arg14[%c0_237, %c0_238], %499 {strides = array<i32>} : memref<72x256xf32, #tpu.memory_space<vmem>>, vector<8x256xf32>,
    %c16_i32_239 = arith.constant 16 : i32
    %501 = tpu.dynamic_rotate %495 by %c16_i32_239 dim 1 : vector<8x256xf32>, i32 -> vector<8x256xf32>
    %502 = vector.extract_strided_slice %8 {offsets = [1, 0], sizes = [1, 256], strides = [1, 1]} : vector<9x256xf32> to vector<1x256xf32>
    %503 = vector.broadcast %502 : vector<1x256xf32> to vector<8x256xf32>
    %504 = arith.mulf %501, %503 : vector<8x256xf32>
    %c8_240 = arith.constant 8 : index
    %c0_241 = arith.constant 0 : index
    %505 = vector.load %arg14[%c8_240, %c0_241] : memref<72x256xf32, #tpu.memory_space<vmem>>, vector<8x256xf32>
    tpu.vector_store %arg14[%c8_240, %c0_241], %504 {strides = array<i32>} : memref<72x256xf32, #tpu.memory_space<vmem>>, vector<8x256xf32>,
    %c15_i32_242 = arith.constant 15 : i32
    %506 = tpu.dynamic_rotate %495 by %c15_i32_242 dim 1 : vector<8x256xf32>, i32 -> vector<8x256xf32>
    %507 = vector.extract_strided_slice %8 {offsets = [2, 0], sizes = [1, 256], strides = [1, 1]} : vector<9x256xf32> to vector<1x256xf32>
    %508 = vector.broadcast %507 : vector<1x256xf32> to vector<8x256xf32>
    %509 = arith.mulf %506, %508 : vector<8x256xf32>
    %c16_243 = arith.constant 16 : index
    %c0_244 = arith.constant 0 : index
    %510 = vector.load %arg14[%c16_243, %c0_244] : memref<72x256xf32, #tpu.memory_space<vmem>>, vector<8x256xf32>
    tpu.vector_store %arg14[%c16_243, %c0_244], %509 {strides = array<i32>} : memref<72x256xf32, #tpu.memory_space<vmem>>, vector<8x256xf32>,
    %c1_i32_245 = arith.constant 1 : i32
    %511 = tpu.dynamic_rotate %495 by %c1_i32_245 dim 1 : vector<8x256xf32>, i32 -> vector<8x256xf32>
    %512 = vector.extract_strided_slice %8 {offsets = [3, 0], sizes = [1, 256], strides = [1, 1]} : vector<9x256xf32> to vector<1x256xf32>
    %513 = vector.broadcast %512 : vector<1x256xf32> to vector<8x256xf32>
    %514 = arith.mulf %511, %513 : vector<8x256xf32>
    %c24_246 = arith.constant 24 : index
    %c0_247 = arith.constant 0 : index
    %515 = vector.load %arg14[%c24_246, %c0_247] : memref<72x256xf32, #tpu.memory_space<vmem>>, vector<8x256xf32>
    tpu.vector_store %arg14[%c24_246, %c0_247], %514 {strides = array<i32>} : memref<72x256xf32, #tpu.memory_space<vmem>>, vector<8x256xf32>,
    %516 = vector.extract_strided_slice %8 {offsets = [4, 0], sizes = [1, 256], strides = [1, 1]} : vector<9x256xf32> to vector<1x256xf32>
    %517 = vector.broadcast %516 : vector<1x256xf32> to vector<8x256xf32>
    %518 = arith.mulf %495, %517 : vector<8x256xf32>
    %c32_248 = arith.constant 32 : index
    %c0_249 = arith.constant 0 : index
    %519 = vector.load %arg14[%c32_248, %c0_249] : memref<72x256xf32, #tpu.memory_space<vmem>>, vector<8x256xf32>
    tpu.vector_store %arg14[%c32_248, %c0_249], %518 {strides = array<i32>} : memref<72x256xf32, #tpu.memory_space<vmem>>, vector<8x256xf32>,
    %c255_i32_250 = arith.constant 255 : i32
    %520 = tpu.dynamic_rotate %495 by %c255_i32_250 dim 1 : vector<8x256xf32>, i32 -> vector<8x256xf32>
    %521 = vector.extract_strided_slice %8 {offsets = [5, 0], sizes = [1, 256], strides = [1, 1]} : vector<9x256xf32> to vector<1x256xf32>
    %522 = vector.broadcast %521 : vector<1x256xf32> to vector<8x256xf32>
    %523 = arith.mulf %520, %522 : vector<8x256xf32>
    %c40_251 = arith.constant 40 : index
    %c0_252 = arith.constant 0 : index
    %524 = vector.load %arg14[%c40_251, %c0_252] : memref<72x256xf32, #tpu.memory_space<vmem>>, vector<8x256xf32>
    tpu.vector_store %arg14[%c40_251, %c0_252], %523 {strides = array<i32>} : memref<72x256xf32, #tpu.memory_space<vmem>>, vector<8x256xf32>,
    %c241_i32_253 = arith.constant 241 : i32
    %525 = tpu.dynamic_rotate %495 by %c241_i32_253 dim 1 : vector<8x256xf32>, i32 -> vector<8x256xf32>
    %526 = vector.extract_strided_slice %8 {offsets = [6, 0], sizes = [1, 256], strides = [1, 1]} : vector<9x256xf32> to vector<1x256xf32>
    %527 = vector.broadcast %526 : vector<1x256xf32> to vector<8x256xf32>
    %528 = arith.mulf %525, %527 : vector<8x256xf32>
    %c48_254 = arith.constant 48 : index
    %c0_255 = arith.constant 0 : index
    %529 = vector.load %arg14[%c48_254, %c0_255] : memref<72x256xf32, #tpu.memory_space<vmem>>, vector<8x256xf32>
    tpu.vector_store %arg14[%c48_254, %c0_255], %528 {strides = array<i32>} : memref<72x256xf32, #tpu.memory_space<vmem>>, vector<8x256xf32>,
    %c240_i32_256 = arith.constant 240 : i32
    %530 = tpu.dynamic_rotate %495 by %c240_i32_256 dim 1 : vector<8x256xf32>, i32 -> vector<8x256xf32>
    %531 = vector.extract_strided_slice %8 {offsets = [7, 0], sizes = [1, 256], strides = [1, 1]} : vector<9x256xf32> to vector<1x256xf32>
    %532 = vector.broadcast %531 : vector<1x256xf32> to vector<8x256xf32>
    %533 = arith.mulf %530, %532 : vector<8x256xf32>
    %c56_257 = arith.constant 56 : index
    %c0_258 = arith.constant 0 : index
    %534 = vector.load %arg14[%c56_257, %c0_258] : memref<72x256xf32, #tpu.memory_space<vmem>>, vector<8x256xf32>
    tpu.vector_store %arg14[%c56_257, %c0_258], %533 {strides = array<i32>} : memref<72x256xf32, #tpu.memory_space<vmem>>, vector<8x256xf32>,
    %c239_i32_259 = arith.constant 239 : i32
    %535 = tpu.dynamic_rotate %495 by %c239_i32_259 dim 1 : vector<8x256xf32>, i32 -> vector<8x256xf32>
    %536 = vector.extract_strided_slice %8 {offsets = [8, 0], sizes = [1, 256], strides = [1, 1]} : vector<9x256xf32> to vector<1x256xf32>
    %537 = vector.broadcast %536 : vector<1x256xf32> to vector<8x256xf32>
    %538 = arith.mulf %535, %537 : vector<8x256xf32>
    %c64_260 = arith.constant 64 : index
    %c0_261 = arith.constant 0 : index
    %539 = vector.load %arg14[%c64_260, %c0_261] : memref<72x256xf32, #tpu.memory_space<vmem>>, vector<8x256xf32>
    tpu.vector_store %arg14[%c64_260, %c0_261], %538 {strides = array<i32>} : memref<72x256xf32, #tpu.memory_space<vmem>>, vector<8x256xf32>,
    %c0_262 = arith.constant 0 : index
    %c0_263 = arith.constant 0 : index
    %540 = vector.load %arg7[%c0_262, %c0_263] : memref<2x72xf32, #tpu.memory_space<vmem>>, vector<2x72xf32>
    %c0_264 = arith.constant 0 : index
    %c0_265 = arith.constant 0 : index
    %541 = vector.load %arg14[%c0_264, %c0_265] : memref<72x256xf32, #tpu.memory_space<vmem>>, vector<72x256xf32>
    %cst_266 = arith.constant dense<0.000000e+00> : vector<2x256xf32>
    %542 = tpu.matmul %540, %541, %cst_266 {dimension_numbers = #tpu.dot_dimension_numbers<[1], [0], [0], [1], [0, 0, 1, 1], [], []>} : vector<2x72xf32>, vector<72x256xf32>, vector<2x256xf32> -> vector<2x256xf32>
    %c0_267 = arith.constant 0 : index
    %c0_268 = arith.constant 0 : index
    %543 = vector.load %arg8[%c0_267, %c0_268] : memref<2x1xf32, #tpu.memory_space<vmem>>, vector<2x1xf32>
    %544 = vector.broadcast %543 : vector<2x1xf32> to vector<2x256xf32>
    %545 = arith.addf %542, %544 : vector<2x256xf32>
    %546 = vector.broadcast %440 : vector<2x1xf32> to vector<2x256xf32>
    %547 = arith.mulf %545, %546 : vector<2x256xf32>
    %548 = vector.broadcast %432 : vector<2x1xf32> to vector<2x256xf32>
    %549 = arith.addf %547, %548 : vector<2x256xf32>
    %550 = vector.extract_strided_slice %549 {offsets = [0, 0], sizes = [1, 256], strides = [1, 1]} : vector<2x256xf32> to vector<1x256xf32>
    %551 = vector.extract_strided_slice %549 {offsets = [1, 0], sizes = [1, 256], strides = [1, 1]} : vector<2x256xf32> to vector<1x256xf32>
    %552 = vector.broadcast %550 : vector<1x256xf32> to vector<4x256xf32>
    %553 = arith.mulf %552, %28 : vector<4x256xf32>
    %554 = vector.broadcast %551 : vector<1x256xf32> to vector<4x256xf32>
    %555 = arith.mulf %554, %30 : vector<4x256xf32>
    %556 = arith.subf %553, %555 : vector<4x256xf32>
    %c0_269 = arith.constant 0 : index
    %c0_270 = arith.constant 0 : index
    %557 = vector.load %arg16[%c0_269, %c0_270] : memref<8x256xf32, #tpu.memory_space<vmem>>, vector<4x256xf32>
    tpu.vector_store %arg16[%c0_269, %c0_270], %556 {strides = array<i32>} : memref<8x256xf32, #tpu.memory_space<vmem>>, vector<4x256xf32>,
    %558 = vector.broadcast %550 : vector<1x256xf32> to vector<4x256xf32>
    %559 = arith.mulf %558, %30 : vector<4x256xf32>
    %560 = vector.broadcast %551 : vector<1x256xf32> to vector<4x256xf32>
    %561 = arith.mulf %560, %28 : vector<4x256xf32>
    %562 = arith.addf %559, %561 : vector<4x256xf32>
    %c4_271 = arith.constant 4 : index
    %c0_272 = arith.constant 0 : index
    %563 = vector.load %arg16[%c4_271, %c0_272] : memref<8x256xf32, #tpu.memory_space<vmem>>, vector<4x256xf32>
    tpu.vector_store %arg16[%c4_271, %c0_272], %562 {strides = array<i32>} : memref<8x256xf32, #tpu.memory_space<vmem>>, vector<4x256xf32>,
    %c0_273 = arith.constant 0 : index
    %c0_274 = arith.constant 0 : index
    %564 = vector.load %arg16[%c0_273, %c0_274] : memref<8x256xf32, #tpu.memory_space<vmem>>, vector<8x256xf32>
    %cst_275 = arith.constant dense<0.000000e+00> : vector<8x512xf32>
    %565 = tpu.matmul %564, %11, %cst_275 {dimension_numbers = #tpu.dot_dimension_numbers<[1], [0], [0], [1], [0, 0, 1, 1], [], []>} : vector<8x256xf32>, vector<256x512xf32>, vector<8x512xf32> -> vector<8x512xf32>
    %566 = vector.extract_strided_slice %565 {offsets = [0, 0], sizes = [4, 256], strides = [1, 1]} : vector<8x512xf32> to vector<4x256xf32>
    %567 = vector.extract_strided_slice %565 {offsets = [4, 256], sizes = [4, 256], strides = [1, 1]} : vector<8x512xf32> to vector<4x256xf32>
    %568 = arith.subf %566, %567 : vector<4x256xf32>
    %569 = vector.extract_strided_slice %565 {offsets = [0, 256], sizes = [4, 256], strides = [1, 1]} : vector<8x512xf32> to vector<4x256xf32>
    %570 = vector.extract_strided_slice %565 {offsets = [4, 0], sizes = [4, 256], strides = [1, 1]} : vector<8x512xf32> to vector<4x256xf32>
    %571 = arith.addf %569, %570 : vector<4x256xf32>
    %cst_276 = arith.constant 5.000000e-01 : f32
    %572 = vector.broadcast %cst_276 : f32 to vector<1x256xf32>
    %573 = arith.cmpf ogt, %6, %572 : vector<1x256xf32>
    %574 = arith.subf %568, %2 : vector<4x256xf32>
    %cst_277 = arith.constant 0.000000e+00 : f32
    %575 = vector.shape_cast %573 : vector<1x256xi1> to vector<1x256xi1>
    %576 = vector.broadcast %575 : vector<1x256xi1> to vector<4x256xi1>
    %577 = vector.broadcast %cst_277 : f32 to vector<4x256xf32>
    %578 = arith.select %576, %574, %577 : vector<4x256xi1>, vector<4x256xf32>
    %579 = vector.broadcast %9 : f32 to vector<4x256xf32>
    %580 = arith.mulf %578, %579 : vector<4x256xf32>
    %cst_278 = arith.constant 5.000000e-01 : f32
    %581 = vector.broadcast %cst_278 : f32 to vector<1x256xf32>
    %582 = arith.cmpf ogt, %7, %581 : vector<1x256xf32>
    %583 = arith.subf %571, %3 : vector<4x256xf32>
    %cst_279 = arith.constant 0.000000e+00 : f32
    %584 = vector.shape_cast %582 : vector<1x256xi1> to vector<1x256xi1>
    %585 = vector.broadcast %584 : vector<1x256xi1> to vector<4x256xi1>
    %586 = vector.broadcast %cst_279 : f32 to vector<4x256xf32>
    %587 = arith.select %585, %583, %586 : vector<4x256xi1>, vector<4x256xf32>
    %588 = vector.broadcast %9 : f32 to vector<4x256xf32>
    %589 = arith.mulf %587, %588 : vector<4x256xf32>
    %590 = arith.subf %2, %580 : vector<4x256xf32>
    %591 = arith.subf %590, %568 : vector<4x256xf32>
    %c0_280 = arith.constant 0 : index
    %c0_281 = arith.constant 0 : index
    %592 = vector.load %arg15[%c0_280, %c0_281] : memref<8x256xf32, #tpu.memory_space<vmem>>, vector<4x256xf32>
    tpu.vector_store %arg15[%c0_280, %c0_281], %591 {strides = array<i32>} : memref<8x256xf32, #tpu.memory_space<vmem>>, vector<4x256xf32>,
    %593 = arith.subf %3, %589 : vector<4x256xf32>
    %594 = arith.subf %593, %571 : vector<4x256xf32>
    %c4_282 = arith.constant 4 : index
    %c0_283 = arith.constant 0 : index
    %595 = vector.load %arg15[%c4_282, %c0_283] : memref<8x256xf32, #tpu.memory_space<vmem>>, vector<4x256xf32>
    tpu.vector_store %arg15[%c4_282, %c0_283], %594 {strides = array<i32>} : memref<8x256xf32, #tpu.memory_space<vmem>>, vector<4x256xf32>,
    %c0_284 = arith.constant 0 : index
    %c0_285 = arith.constant 0 : index
    %596 = vector.load %arg15[%c0_284, %c0_285] : memref<8x256xf32, #tpu.memory_space<vmem>>, vector<8x256xf32>
    %c0_286 = arith.constant 0 : index
    %c0_287 = arith.constant 0 : index
    %c0_288 = arith.constant 0 : index
    %597 = vector.load %arg11[%c0_286, %c0_287, %c0_288] : memref<1x8x256xf32, #tpu.memory_space<vmem>>, vector<1x8x256xf32>
    %598 = vector.shape_cast %597 : vector<1x8x256xf32> to vector<8x256xf32>
    %599 = vector.shape_cast %596 : vector<8x256xf32> to vector<1x8x256xf32>
    tpu.vector_store %arg11[%c0_286, %c0_287, %c0_288], %599 {strides = array<i32>} : memref<1x8x256xf32, #tpu.memory_space<vmem>>, vector<1x8x256xf32>,
    return
  }
  func.func @transform_0(%arg0: i32) -> (i32, i32, i32) {
    %c0_i32 = arith.constant 0 : i32
    %c0_i32_0 = arith.constant 0 : i32
    %c0_i32_1 = arith.constant 0 : i32
    return %arg0, %c0_i32, %c0_i32_0 : i32, i32, i32
  }
  func.func @transform_1(%arg0: i32) -> (i32, i32, i32) {
    %c0_i32 = arith.constant 0 : i32
    %c0_i32_0 = arith.constant 0 : i32
    %c0_i32_1 = arith.constant 0 : i32
    return %arg0, %c0_i32, %c0_i32_0 : i32, i32, i32
  }
  func.func @transform_2(%arg0: i32) -> (i32, i32) {
    %c0_i32 = arith.constant 0 : i32
    %c0_i32_0 = arith.constant 0 : i32
    %c0_i32_1 = arith.constant 0 : i32
    return %c0_i32, %c0_i32_0 : i32, i32
  }
  func.func @transform_3(%arg0: i32) -> (i32, i32) {
    %c0_i32 = arith.constant 0 : i32
    %c0_i32_0 = arith.constant 0 : i32
    %c0_i32_1 = arith.constant 0 : i32
    return %c0_i32, %c0_i32_0 : i32, i32
  }
  func.func @transform_4(%arg0: i32) -> (i32, i32) {
    %c0_i32 = arith.constant 0 : i32
    %c0_i32_0 = arith.constant 0 : i32
    %c0_i32_1 = arith.constant 0 : i32
    return %c0_i32, %c0_i32_0 : i32, i32
  }
  func.func @transform_5(%arg0: i32) -> (i32, i32) {
    %c0_i32 = arith.constant 0 : i32
    %c0_i32_0 = arith.constant 0 : i32
    %c0_i32_1 = arith.constant 0 : i32
    return %c0_i32, %c0_i32_0 : i32, i32
  }
  func.func @transform_6(%arg0: i32) -> (i32, i32) {
    %c0_i32 = arith.constant 0 : i32
    %c0_i32_0 = arith.constant 0 : i32
    %c0_i32_1 = arith.constant 0 : i32
    return %c0_i32, %c0_i32_0 : i32, i32
  }
  func.func @transform_7(%arg0: i32) -> (i32, i32) {
    %c0_i32 = arith.constant 0 : i32
    %c0_i32_0 = arith.constant 0 : i32
    %c0_i32_1 = arith.constant 0 : i32
    return %c0_i32, %c0_i32_0 : i32, i32
  }
  func.func @transform_8(%arg0: i32) -> (i32, i32) {
    %c0_i32 = arith.constant 0 : i32
    %c0_i32_0 = arith.constant 0 : i32
    %c0_i32_1 = arith.constant 0 : i32
    return %c0_i32, %c0_i32_0 : i32, i32
  }
  func.func @transform_9(%arg0: i32) -> i32 {
    %c0_i32 = arith.constant 0 : i32
    %c0_i32_0 = arith.constant 0 : i32
    return %c0_i32 : i32
  }
  func.func @transform_10(%arg0: i32) -> (i32, i32, i32) {
    %c0_i32 = arith.constant 0 : i32
    %c0_i32_0 = arith.constant 0 : i32
    %c0_i32_1 = arith.constant 0 : i32
    return %arg0, %c0_i32, %c0_i32_0 : i32, i32, i32
  }
}

</mosaic_0001>

<bundles_post_ra>
// kernel: mfmc_forward.1
= control target key start
LH: loop header
LB: loop body
LE: loop exit
PB: predicated region body
PF: predicated region fallthrough
CT: control target
= control target key end

     0   :  { %s6148_s0 = inlined_call_operand.vmem [shape: f32[2,8,256], index: 0, kind: input, shape index: {}]   ;;  %s6149_s1 = inlined_call_operand.vmem [shape: f32[2,2,256], index: 1, kind: input, shape index: {}]   ;;  %s6150_s2 = inlined_call_operand.hbm [shape: f32[256,512], index: 2, kind: input, shape index: {}]   ;;  %s6151_s3 = inlined_call_operand.hbm [shape: f32[256,512], index: 3, kind: input, shape index: {}]   ;;  %s6152_s4 = inlined_call_operand.vmem [shape: f32[8,18], index: 4, kind: input, shape index: {}]   ;;  %s6153_s5 = inlined_call_operand.vmem [shape: f32[8,1], index: 5, kind: input, shape index: {}]   ;;  %s6154_s6 = inlined_call_operand.vmem [shape: f32[2,72], index: 6, kind: input, shape index: {}]   ;;  %s6155_s7 = inlined_call_operand.vmem [shape: f32[2,1], index: 7, kind: input, shape index: {}]   ;;  %s6156_s8 = inlined_call_operand.vmem [shape: f32[9,256], index: 8, kind: input, shape index: {}]   ;;  %s6157_s9 = inlined_call_operand.<no memory space> [shape: f32[1], index: 9, kind: input, shape index: {}]   ;;  %s6158_s10 = inlined_call_operand.vmem [shape: f32[2,8,256], index: 10, kind: output, shape index: {}]  }
   0x1   :  { %15 = sst [smem:[#allocation7]] %s6157_s9 }
   0x2   :  { %16 = vsyncpa [#allocation9], 0 }
   0x3   :  { %17 = vsyncpa [#allocation11], 0  ;;  %s4549_s15 = smov 0  }
   0x4 LB: > { %s285_s18 = sshll.u32 %s6150_s2, 4  ;;  %s4558_s19 = sadd.s32 4294967295, %s4473_s15   ;;  %s4473_s15 = sphi %s4549_s15, %s23_s15   ;;  %s286_s18 = int_to_ptr.hbm [resolvable:$true] %s285_s18 }
   0x5   : > { %p3830_p0 = scmp.ge.s32.totalorder %s4473_s15, 1  ;;  %p274_p1 = scmp.lt.s32.totalorder %s4473_s15, 3 }
   0x6   : > { %p3881_p2 = scmp.eq.s32.totalorder %s4558_s19, 0  ;;  %s4475_s20 = smov [#allocation8]  }
   0x7   : > { %p4563_p3 = pnand %p3830_p0, %p274_p1  ;;  %s287_s21 = sshll.u32 %s4475_s20, 4  ;;  %s288_s21 = int_to_ptr.vmem [resolvable:$true] %s287_s21 }
   0x8   : > { %s299_s24 = sshll.u32 %s6151_s3, 4  ;;  %s4476_s25 = smov [#allocation10]   ;;  %s300_s24 = int_to_ptr.hbm [resolvable:$true] %s299_s24 }
   0x9   : > { %p3874_p4 = pneg %p4563_p3  ;;  %s301_s26 = sshll.u32 %s4476_s25, 4  ;;  %s302_s26 = int_to_ptr.vmem [resolvable:$true] %s301_s26 }
   0xa   : > { %s4477_s27 = smov 512   ;;  %s4478_s28 = smov 32  }
   0xb   : > { %p3875_p5 = pnand %p3881_p2, %p3874_p4  ;;  %351 = sbr.rel (%p4563_p3) target bundleno = 4023 (0xfb7), region = 60 }
   0xd   : > { %3877 = dma.hbm_to_vmem [thread:$0]  (!%p3875_p5), %s286_s18, 16384, %s288_s21, [#allocation9], %s4477_s27, %s4477_s27, %s4478_s28  }
   0xe   : > { %3880 = dma.hbm_to_vmem [thread:$0]  (!%p3875_p5), %s300_s24, 16384, %s302_s26, [#allocation11], %s4477_s27, %s4477_s27, %s4478_s28  }
  0x10   : > { %4464 = dma.done.wait (%p3881_p2), [#allocation9], 16384  }
  0x11   : > { %4466 = vsyncadd (%p3881_p2), [#allocation9], 4294950912 }
  0x12   : > { %4468 = dma.done.wait (%p3881_p2), [#allocation11], 16384  }
  0x13   : > { %4470 = vsyncadd (%p3881_p2), [#allocation11], 4294950912  ;;  %v4584_v0 = vld [vmem:[#allocation8 + $0x1e0] sm:$0xff]  ;;  %v4588_v2 = vld [vmem:[#allocation8 + $0x1e8] sm:$0xff]  ;;  %p400_p6 = scmp.lt.s32.totalorder %s4558_s19, 1  ;;  %vm6295_vm0 = vcmask 1043456  }
  0x14   : > { %v4586_v1 = vld [vmem:[#allocation8 + $0x3e0] sm:$0xff]  ;;  %679 = vmatpush.msra.mxu0 %v4584_v0  ;;  %v4592_v3 = vld [vmem:[#allocation8 + $0x3e8] sm:$0xff]  ;;  %719 = vmatpush.msra.mxu2 %v4588_v2  ;;  %vm6294_vm7 = vcmask 1040384   ;;  %vm1147_vm9 = vcmask 1041408   ;;  %s4482_s16 = smov 16   ;;  %s4483_s9 = smov 15  }
  0x15   : > { %699 = vmatpush.msra.mxu1 %v4586_v1  ;;  %v4594_v4 = vld [vmem:[#allocation8 + $0x1c0] sm:$0xff]  ;;  %739 = vmatpush.msra.mxu3 %v4592_v3  ;;  %v4600_v6 = vld [vmem:[#allocation8 + $0x1c8] sm:$0xff]  ;;  %s6530_s19 = smov (!%p400_p6, %s4558_s19), 1  ;;  %s4484_s20 = smov 1  }
  0x16   : > { %v4596_v5 = vld [vmem:[#allocation8 + $0x3c0] sm:$0xff]  ;;  %v4602_v7 = vld [vmem:[#allocation8 + $0x3c8] sm:$0xff]  ;;  %680 = vmatpush.msra.mxu0 %v4594_v4  ;;  %720 = vmatpush.msra.mxu2 %v4600_v6  ;;  %s3863_s29 = sshll.u32 %s6530_s19, 4  ;;  %s4485_s21 = smov 127  }
  0x17   : > { %v4604_v8 = vld [vmem:[#allocation8 + $0x1a0] sm:$0xff]  ;;  %700 = vmatpush.msra.mxu1 %v4596_v5  ;;  %v4610_v10 = vld [vmem:[#allocation8 + $0x1a8] sm:$0xff]  ;;  %740 = vmatpush.msra.mxu3 %v4602_v7  ;;  %s404_s12 = scalar_lea.vmem %s6148_s0, %s3863_s29  ;;  %s4486_s22 = smov 113  }
  0x18   : > { %v4608_v9 = vld [vmem:[#allocation8 + $0x3a0] sm:$0xff]  ;;  %v4612_v11 = vld [vmem:[#allocation8 + $0x3a8] sm:$0xff]  ;;  %681 = vmatpush.msra.mxu0 %v4604_v8  ;;  %721 = vmatpush.msra.mxu2 %v4610_v10  ;;  %s4487_s23 = smov 112   ;;  %s4488_s24 = smov 111  }
  0x19   : > { %v4616_v12 = vld [vmem:[#allocation8 + $0x180] sm:$0xff]  ;;  %701 = vmatpush.msra.mxu1 %v4608_v9  ;;  %v4622_v14 = vld [vmem:[#allocation8 + $0x188] sm:$0xff]  ;;  %741 = vmatpush.msra.mxu3 %v4612_v11  ;;  %s4489_s25 = smov 17   ;;  %s3864_s28 = sshll.u32 %s6530_s19, 2 }
  0x1a   : > { %v4618_v13 = vld [vmem:[#allocation8 + $0x380] sm:$0xff]  ;;  %v4624_v15 = vld [vmem:[#allocation8 + $0x388] sm:$0xff]  ;;  %682 = vmatpush.msra.mxu0 %v4616_v12  ;;  %722 = vmatpush.msra.mxu2 %v4622_v14  ;;  %s422_s13 = sld [smem:[#allocation7]] }
  0x1b   : > { %v4628_v16 = vld [vmem:[#allocation8 + $0x160] sm:$0xff]  ;;  %702 = vmatpush.msra.mxu1 %v4618_v13  ;;  %v4634_v18 = vld [vmem:[#allocation8 + $0x168] sm:$0xff]  ;;  %742 = vmatpush.msra.mxu3 %v4624_v15 }
  0x1c   : > { %v4630_v17 = vld [vmem:[#allocation8 + $0x360] sm:$0xff]  ;;  %v4636_v19 = vld [vmem:[#allocation8 + $0x368] sm:$0xff]  ;;  %683 = vmatpush.msra.mxu0 %v4628_v16  ;;  %723 = vmatpush.msra.mxu2 %v4634_v18 }
  0x1d   : > { %v4640_v20 = vld [vmem:[#allocation8 + $0x140] sm:$0xff]  ;;  %703 = vmatpush.msra.mxu1 %v4630_v17  ;;  %v4646_v22 = vld [vmem:[#allocation8 + $0x148] sm:$0xff]  ;;  %743 = vmatpush.msra.mxu3 %v4636_v19 }
  0x1e   : > { %v4642_v21 = vld [vmem:[#allocation8 + $0x340] sm:$0xff]  ;;  %v4648_v23 = vld [vmem:[#allocation8 + $0x348] sm:$0xff]  ;;  %684 = vmatpush.msra.mxu0 %v4640_v20  ;;  %724 = vmatpush.msra.mxu2 %v4646_v22 }
  0x1f   : > { %v4652_v24 = vld [vmem:[#allocation8 + $0x120] sm:$0xff]  ;;  %704 = vmatpush.msra.mxu1 %v4642_v21  ;;  %v4658_v26 = vld [vmem:[#allocation8 + $0x128] sm:$0xff]  ;;  %744 = vmatpush.msra.mxu3 %v4648_v23 }
  0x20   : > { %v4654_v25 = vld [vmem:[#allocation8 + $0x320] sm:$0xff]  ;;  %v4660_v27 = vld [vmem:[#allocation8 + $0x328] sm:$0xff]  ;;  %685 = vmatpush.msra.mxu0 %v4652_v24  ;;  %725 = vmatpush.msra.mxu2 %v4658_v26 }
  0x21   : > { %v4664_v28 = vld [vmem:[#allocation8 + $0x100] sm:$0xff]  ;;  %705 = vmatpush.msra.mxu1 %v4654_v25  ;;  %v4670_v30 = vld [vmem:[#allocation8 + $0x108] sm:$0xff]  ;;  %745 = vmatpush.msra.mxu3 %v4660_v27 }
  0x22   : > { %v4666_v29 = vld [vmem:[#allocation8 + $0x300] sm:$0xff]  ;;  %v4672_v31 = vld [vmem:[#allocation8 + $0x308] sm:$0xff]  ;;  %686 = vmatpush.msra.mxu0 %v4664_v28  ;;  %726 = vmatpush.msra.mxu2 %v4670_v30 }
  0x23   : > { %v4676_v32 = vld [vmem:[#allocation8 + $0xe0] sm:$0xff]  ;;  %706 = vmatpush.msra.mxu1 %v4666_v29  ;;  %v4682_v34 = vld [vmem:[#allocation8 + $0xe8] sm:$0xff]  ;;  %746 = vmatpush.msra.mxu3 %v4672_v31 }
  0x24   : > { %v4678_v33 = vld [vmem:[#allocation8 + $0x2e0] sm:$0xff]  ;;  %v4684_v35 = vld [vmem:[#allocation8 + $0x2e8] sm:$0xff]  ;;  %687 = vmatpush.msra.mxu0 %v4676_v32  ;;  %727 = vmatpush.msra.mxu2 %v4682_v34 }
  0x25   : > { %v4688_v36 = vld [vmem:[#allocation8 + $0xc0] sm:$0xff]  ;;  %707 = vmatpush.msra.mxu1 %v4678_v33  ;;  %v4694_v38 = vld [vmem:[#allocation8 + $0xc8] sm:$0xff]  ;;  %747 = vmatpush.msra.mxu3 %v4684_v35 }
  0x26   : > { %v4690_v37 = vld [vmem:[#allocation8 + $0x2c0] sm:$0xff]  ;;  %v4696_v39 = vld [vmem:[#allocation8 + $0x2c8] sm:$0xff]  ;;  %688 = vmatpush.msra.mxu0 %v4688_v36  ;;  %728 = vmatpush.msra.mxu2 %v4694_v38 }
  0x27   : > { %v4700_v40 = vld [vmem:[#allocation8 + $0xa0] sm:$0xff]  ;;  %708 = vmatpush.msra.mxu1 %v4690_v37  ;;  %v4706_v42 = vld [vmem:[#allocation8 + $0xa8] sm:$0xff]  ;;  %748 = vmatpush.msra.mxu3 %v4696_v39 }
  0x28   : > { %v4702_v41 = vld [vmem:[#allocation8 + $0x2a0] sm:$0xff]  ;;  %v4708_v43 = vld [vmem:[#allocation8 + $0x2a8] sm:$0xff]  ;;  %689 = vmatpush.msra.mxu0 %v4700_v40  ;;  %729 = vmatpush.msra.mxu2 %v4706_v42 }
  0x29   : > { %v4712_v44 = vld [vmem:[#allocation8 + $0x80] sm:$0xff]  ;;  %709 = vmatpush.msra.mxu1 %v4702_v41  ;;  %v4718_v46 = vld [vmem:[#allocation8 + $0x88] sm:$0xff]  ;;  %749 = vmatpush.msra.mxu3 %v4708_v43 }
  0x2a   : > { %v4714_v45 = vld [vmem:[#allocation8 + $0x280] sm:$0xff]  ;;  %v4720_v47 = vld [vmem:[#allocation8 + $0x288] sm:$0xff]  ;;  %690 = vmatpush.msra.mxu0 %v4712_v44  ;;  %730 = vmatpush.msra.mxu2 %v4718_v46 }
  0x2b   : > { %v4724_v48 = vld [vmem:[#allocation8 + $0x60] sm:$0xff]  ;;  %710 = vmatpush.msra.mxu1 %v4714_v45  ;;  %v4730_v50 = vld [vmem:[#allocation8 + $0x68] sm:$0xff]  ;;  %750 = vmatpush.msra.mxu3 %v4720_v47 }
  0x2c   : > { %v4726_v49 = vld [vmem:[#allocation8 + $0x260] sm:$0xff]  ;;  %6300 = vst [vmem:[#allocation14_spill] sm:$0xff] %v4730_v50  ;;  %v4732_v51 = vld [vmem:[#allocation8 + $0x268] sm:$0xff]  ;;  %691 = vmatpush.msra.mxu0 %v4724_v48  ;;  %731 = vmatpush.msra.mxu2 %v4730_v50  ;;  %v4882_v50 = vld [vmem:[#allocation8 + $0x318] sm:$0xff] }
  0x2d   : > { %6301 = vst [vmem:[#allocation15_spill] sm:$0xff] %v4732_v51  ;;  %v4737_v52 = vld [vmem:[#allocation8 + $0x40] sm:$0xff]  ;;  %711 = vmatpush.msra.mxu1 %v4726_v49  ;;  %v4743_v54 = vld [vmem:[#allocation8 + $0x48] sm:$0xff]  ;;  %751 = vmatpush.msra.mxu3 %v4732_v51  ;;  %v4862_v51 = vld [vmem:[#allocation8 + $0x130] sm:$0xff] }
  0x2e   : > { %6302 = vst [vmem:[#allocation16_spill] sm:$0xff] %v4737_v52  ;;  %v4739_v53 = vld [vmem:[#allocation8 + $0x240] sm:$0xff]  ;;  %v4745_v55 = vld [vmem:[#allocation8 + $0x248] sm:$0xff]  ;;  %692 = vmatpush.msra.mxu0 %v4737_v52  ;;  %732 = vmatpush.msra.mxu2 %v4743_v54 }
  0x2f   : > { %6303 = vst [vmem:[#allocation17_spill] sm:$0xff] %v4739_v53  ;;  %v4749_v56 = vld [vmem:[#allocation8 + $0x20] sm:$0xff]  ;;  %712 = vmatpush.msra.mxu1 %v4739_v53  ;;  %v4755_v58 = vld [vmem:[#allocation8 + $0x28] sm:$0xff]  ;;  %752 = vmatpush.msra.mxu3 %v4745_v55  ;;  %v4780_v53 = vld [vmem:[#allocation8 + $0x3f0] sm:$0xff] }
  0x30   : > { %6304 = vst [vmem:[#allocation18_spill] sm:$0xff] %v4743_v54  ;;  %v4751_v57 = vld [vmem:[#allocation8 + $0x220] sm:$0xff]  ;;  %v4757_v59 = vld [vmem:[#allocation8 + $0x228] sm:$0xff]  ;;  %693 = vmatpush.msra.mxu0 %v4749_v56  ;;  %733 = vmatpush.msra.mxu2 %v4755_v58  ;;  %v4778_v54 = vld [vmem:[#allocation8 + $0x1f0] sm:$0xff] }
  0x31   : > { %6305 = vst [vmem:[#allocation19_spill] sm:$0xff] %v4745_v55  ;;  %v4766_v60 = vld [vmem:[#allocation8] sm:$0xff]  ;;  %713 = vmatpush.msra.mxu1 %v4751_v57  ;;  %v4772_v62 = vld [vmem:[#allocation8 + $0x8] sm:$0xff]  ;;  %753 = vmatpush.msra.mxu3 %v4757_v59  ;;  %v4803_v55 = vld [vmem:[#allocation8 + $0x1b0] sm:$0xff] }
  0x32   : > { %6306 = vst [vmem:[#allocation20_spill] sm:$0xff] %v4749_v56  ;;  %v4768_v61 = vld [vmem:[#allocation8 + $0x200] sm:$0xff]  ;;  %v4774_v63 = vld [vmem:[#allocation8 + $0x208] sm:$0xff]  ;;  %694 = vmatpush.msra.mxu0 %v4766_v60  ;;  %v4784_v56 = vld [vmem:[#allocation8 + $0x1f8] sm:$0xff]  ;;  %734 = vmatpush.msra.mxu2 %v4772_v62 }
  0x33   : > { %6307 = vst [vmem:[#allocation21_spill] sm:$0xff] %v4751_v57  ;;  %714 = vmatpush.msra.mxu1 %v4768_v61  ;;  %v4786_v57 = vld [vmem:[#allocation8 + $0x3f8] sm:$0xff]  ;;  %754 = vmatpush.msra.mxu3 %v4774_v63  ;;  %v4839_v52 = vld [vmem:[%s404_s12 + $0x8] sm:$0xff] }
  0x34   : > { %6308 = vst [vmem:[#allocation22_spill] sm:$0xff] %v4755_v58  ;;  %v4791_v58 = vld [vmem:[#allocation8 + $0x1d0] sm:$0xff]  ;;  %759 = vmatpush.msrb.mxu0 %v4778_v54  ;;  %799 = vmatpush.msrb.mxu2 %v4784_v56 }
  0x35   : > { %6309 = vst [vmem:[#allocation23_spill] sm:$0xff] %v4757_v59  ;;  %v4793_v59 = vld [vmem:[#allocation8 + $0x3d0] sm:$0xff]  ;;  %779 = vmatpush.msrb.mxu1 %v4780_v53  ;;  %819 = vmatpush.msrb.mxu3 %v4786_v57 }
  0x36   : > { %6310 = vst [vmem:[#allocation24_spill] sm:$0xff] %v4766_v60  ;;  %v4797_v60 = vld [vmem:[#allocation8 + $0x1d8] sm:$0xff]  ;;  %760 = vmatpush.msrb.mxu0 %v4791_v58  ;;  %715 = vmatmul.f32.vlgmr.msra.gmra.mxu1 %v4839_v52 }
  0x37   : > { %6311 = vst [vmem:[#allocation25_spill] sm:$0xff] %v4768_v61  ;;  %v4799_v61 = vld [vmem:[#allocation8 + $0x3d8] sm:$0xff]  ;;  %780 = vmatpush.msrb.mxu1 %v4793_v59  ;;  %800 = vmatpush.msrb.mxu2 %v4797_v60 }
  0x38   : > { %6312 = vst [vmem:[#allocation26_spill] sm:$0xff] %v4772_v62  ;;  %v4805_v62 = vld [vmem:[#allocation8 + $0x3b0] sm:$0xff]  ;;  %820 = vmatpush.msrb.mxu3 %v4799_v61  ;;  %761 = vmatpush.msrb.mxu0 %v4803_v55 }
  0x39   : > { %6313 = vst [vmem:[#allocation27_spill] sm:$0xff] %v4774_v63  ;;  %781 = vmatpush.msrb.mxu1 %v4805_v62  ;;  %v4826_v63 = vld [vmem:[#allocation8 + $0x198] sm:$0xff]  ;;  %755 = vmatmul.f32.vlgmr.msra.gmra.mxu3 %v4839_v52 }
  0x3a   : > { %6314 = vst [vmem:[#allocation28_spill] sm:$0xff] %v4778_v54  ;;  %v4816_v54 = vld [vmem:[#allocation8 + $0x3b8] sm:$0xff] }
  0x3b   : > { %6315 = vst [vmem:[#allocation29_spill] sm:$0xff] %v4780_v53  ;;  %v4814_v53 = vld [vmem:[#allocation8 + $0x1b8] sm:$0xff]  ;;  %821 = vmatpush.msrb.mxu3 %v4816_v54 }
  0x3c   : > { %6316 = vst [vmem:[#allocation30_spill] sm:$0xff] %v4784_v56  ;;  %v4822_v56 = vld [vmem:[#allocation8 + $0x390] sm:$0xff]  ;;  %801 = vmatpush.msrb.mxu2 %v4814_v53 }
  0x3d   : > { %6317 = vst [vmem:[#allocation31_spill] sm:$0xff] %v4786_v57  ;;  %v4820_v57 = vld [vmem:[#allocation8 + $0x190] sm:$0xff]  ;;  %782 = vmatpush.msrb.mxu1 %v4822_v56 }
  0x3e   : > { %6318 = vst [vmem:[#allocation32_spill] sm:$0xff] %v4791_v58  ;;  %v4828_v58 = vld [vmem:[#allocation8 + $0x398] sm:$0xff]  ;;  %762 = vmatpush.msrb.mxu0 %v4820_v57  ;;  %802 = vmatpush.msrb.mxu2 %v4826_v63 }
  0x3f   : > { %6319 = vst [vmem:[#allocation33_spill] sm:$0xff] %v4793_v59  ;;  %v4830_v59 = vld [vmem:[%s404_s12] sm:$0xff]  ;;  %822 = vmatpush.msrb.mxu3 %v4828_v58  ;;  %s409_s12 = scalar_lea.vmem %s6149_s1, %s3864_s28 }
  0x40   : > { %6320 = vst [vmem:[#allocation34_spill] sm:$0xff] %v4797_v60  ;;  %v4834_v60 = vld [vmem:[#allocation8 + $0x170] sm:$0xff]  ;;  %695 = vmatmul.f32.vlgmr.msra.gmra.mxu0 %v4830_v59  ;;  %735 = vmatmul.f32.vlgmr.msra.gmra.mxu2 %v4830_v59 }
  0x41   : > { %6321 = vst [vmem:[#allocation35_spill] sm:$0xff] %v4799_v61  ;;  %v4836_v61 = vld [vmem:[#allocation8 + $0x370] sm:$0xff]  ;;  %763 = vmatpush.msrb.mxu0 %v4834_v60 }
  0x42   : > { %6322 = vst [vmem:[#allocation36_spill] sm:$0xff] %v4803_v55  ;;  %v4845_v55 = vld [vmem:[#allocation8 + $0x378] sm:$0xff]  ;;  %783 = vmatpush.msrb.mxu1 %v4836_v61 }
  0x43   : > { %6323 = vst [vmem:[#allocation37_spill] sm:$0xff] %v4805_v62  ;;  %v4843_v62 = vld [vmem:[#allocation8 + $0x178] sm:$0xff]  ;;  %823 = vmatpush.msrb.mxu3 %v4845_v55 }
  0x44   : > { %6324 = vst [vmem:[#allocation38_spill] sm:$0xff] %v4814_v53  ;;  %v4852_v53 = vld [vmem:[#allocation8 + $0x350] sm:$0xff]  ;;  %803 = vmatpush.msrb.mxu2 %v4843_v62 }
  0x45   : > { %6325 = vst [vmem:[#allocation39_spill] sm:$0xff] %v4816_v54  ;;  %v4850_v54 = vld [vmem:[#allocation8 + $0x150] sm:$0xff]  ;;  %784 = vmatpush.msrb.mxu1 %v4852_v53 }
  0x46   : > { %6326 = vst [vmem:[#allocation40_spill] sm:$0xff] %v4820_v57  ;;  %v4856_v57 = vld [vmem:[#allocation8 + $0x158] sm:$0xff]  ;;  %764 = vmatpush.msrb.mxu0 %v4850_v54 }
  0x47   : > { %6327 = vst [vmem:[#allocation41_spill] sm:$0xff] %v4822_v56  ;;  %v4858_v56 = vld [vmem:[#allocation8 + $0x358] sm:$0xff]  ;;  %804 = vmatpush.msrb.mxu2 %v4856_v57 }
  0x48   : > { %6328 = vst [vmem:[#allocation42_spill] sm:$0xff] %v4826_v63  ;;  %v4864_v63 = vld [vmem:[#allocation8 + $0x330] sm:$0xff]  ;;  %824 = vmatpush.msrb.mxu3 %v4858_v56  ;;  %765 = vmatpush.msrb.mxu0 %v4862_v51 }
  0x49   : > { %6329 = vst [vmem:[#allocation43_spill] sm:$0xff] %v4828_v58  ;;  %v4866_v58 = vld [vmem:[#allocation8 + $0x138] sm:$0xff]  ;;  %785 = vmatpush.msrb.mxu1 %v4864_v63 }
  0x4a   : > { %6330 = vst [vmem:[#allocation44_spill] sm:$0xff] %v4834_v60  ;;  %v4870_v60 = vld [vmem:[#allocation8 + $0x338] sm:$0xff]  ;;  %805 = vmatpush.msrb.mxu2 %v4866_v58 }
  0x4b   : > { %6331 = vst [vmem:[#allocation45_spill] sm:$0xff] %v4836_v61  ;;  %v4874_v61 = vld [vmem:[#allocation8 + $0x110] sm:$0xff]  ;;  %825 = vmatpush.msrb.mxu3 %v4870_v60 }
  0x4c   : > { %902 = vst [vmem:[#allocation5] sm:$0xff] %v4830_v59  ;;  %766 = vmatpush.msrb.mxu0 %v4874_v61 }
  0x4d   : > { %6332 = vst [vmem:[#allocation46_spill] sm:$0xff] %v4843_v62  ;;  %v4876_v62 = vld [vmem:[#allocation8 + $0x310] sm:$0xff]  ;;  %826 = vmatpush.msrb.mxu3 %v4882_v50 }
  0x4e   : > { %6333 = vst [vmem:[#allocation47_spill] sm:$0xff] %v4845_v55  ;;  %v4880_v55 = vld [vmem:[#allocation8 + $0x118] sm:$0xff]  ;;  %786 = vmatpush.msrb.mxu1 %v4876_v62 }
  0x4f   : > { %903 = vst [vmem:[#allocation5 + $0x8] sm:$0xff] %v4839_v52  ;;  %806 = vmatpush.msrb.mxu2 %v4880_v55 }
  0x50   : > { %6334 = vst [vmem:[#allocation48_spill] sm:$0xff] %v4852_v53  ;;  %v4886_v53 = vld [vmem:[#allocation8 + $0xf0] sm:$0xff] }
  0x51   : > { %6335 = vst [vmem:[#allocation49_spill] sm:$0xff] %v4856_v57  ;;  %v4888_v57 = vld [vmem:[#allocation8 + $0x2f0] sm:$0xff]  ;;  %767 = vmatpush.msrb.mxu0 %v4886_v53 }
  0x52   : > { %6336 = vst [vmem:[#allocation50_spill] sm:$0xff] %v4858_v56  ;;  %v4892_v56 = vld [vmem:[#allocation8 + $0xf8] sm:$0xff]  ;;  %787 = vmatpush.msrb.mxu1 %v4888_v57 }
  0x53   : > { %6337 = vst [vmem:[#allocation51_spill] sm:$0xff] %v4862_v51  ;;  %v4894_v51 = vld [vmem:[#allocation8 + $0x2f8] sm:$0xff]  ;;  %807 = vmatpush.msrb.mxu2 %v4892_v56 }
  0x54   : > { %6338 = vst [vmem:[#allocation52_spill] sm:$0xff] %v4864_v63  ;;  %v4898_v63 = vld [vmem:[#allocation8 + $0xd0] sm:$0xff]  ;;  %827 = vmatpush.msrb.mxu3 %v4894_v51 }
  0x55   : > { %6339 = vst [vmem:[#allocation53_spill] sm:$0xff] %v4866_v58  ;;  %v4900_v58 = vld [vmem:[#allocation8 + $0x2d0] sm:$0xff]  ;;  %768 = vmatpush.msrb.mxu0 %v4898_v63 }
  0x56   : > { %6340 = vst [vmem:[#allocation54_spill] sm:$0xff] %v4870_v60  ;;  %v4904_v60 = vld [vmem:[#allocation8 + $0xd8] sm:$0xff]  ;;  %788 = vmatpush.msrb.mxu1 %v4900_v58 }
  0x57   : > { %6341 = vst [vmem:[#allocation55_spill] sm:$0xff] %v4874_v61  ;;  %v4906_v61 = vld [vmem:[#allocation8 + $0x2d8] sm:$0xff]  ;;  %808 = vmatpush.msrb.mxu2 %v4904_v60 }
  0x58   : > { %6342 = vst [vmem:[#allocation56_spill] sm:$0xff] %v4876_v62  ;;  %v4910_v62 = vld [vmem:[#allocation8 + $0xb0] sm:$0xff]  ;;  %828 = vmatpush.msrb.mxu3 %v4906_v61 }
  0x59   : > { %6343 = vst [vmem:[#allocation57_spill] sm:$0xff] %v4880_v55  ;;  %v4912_v55 = vld [vmem:[#allocation8 + $0x2b0] sm:$0xff]  ;;  %769 = vmatpush.msrb.mxu0 %v4910_v62 }
  0x5a   : > { %6344 = vst [vmem:[#allocation58_spill] sm:$0xff] %v4882_v50  ;;  %v4916_v50 = vld [vmem:[#allocation8 + $0xb8] sm:$0xff]  ;;  %789 = vmatpush.msrb.mxu1 %v4912_v55 }
  0x5b   : > { %6345 = vst [vmem:[#allocation59_spill] sm:$0xff] %v4886_v53  ;;  %v4918_v53 = vld [vmem:[#allocation8 + $0x2b8] sm:$0xff]  ;;  %809 = vmatpush.msrb.mxu2 %v4916_v50 }
  0x5c   : > { %6346 = vst [vmem:[#allocation60_spill] sm:$0xff] %v4888_v57  ;;  %v4922_v57 = vld [vmem:[#allocation8 + $0x90] sm:$0xff]  ;;  %829 = vmatpush.msrb.mxu3 %v4918_v53 }
  0x5d   : > { %6347 = vst [vmem:[#allocation61_spill] sm:$0xff] %v4892_v56  ;;  %v4924_v56 = vld [vmem:[#allocation8 + $0x290] sm:$0xff]  ;;  %770 = vmatpush.msrb.mxu0 %v4922_v57 }
  0x5e   : > { %6348 = vst [vmem:[#allocation62_spill] sm:$0xff] %v4894_v51  ;;  %v4928_v51 = vld [vmem:[#allocation8 + $0x98] sm:$0xff]  ;;  %790 = vmatpush.msrb.mxu1 %v4924_v56 }
  0x5f   : > { %6349 = vst [vmem:[#allocation63_spill] sm:$0xff] %v4898_v63  ;;  %v4930_v63 = vld [vmem:[#allocation8 + $0x298] sm:$0xff]  ;;  %810 = vmatpush.msrb.mxu2 %v4928_v51 }
  0x60   : > { %6350 = vst [vmem:[#allocation64_spill] sm:$0xff] %v4900_v58  ;;  %830 = vmatpush.msrb.mxu3 %v4930_v63  ;;  %v4968_v58 = vld [vmem:[#allocation8 + $0x38] sm:$0xff] }
  0x61   : > { %6351 = vst [vmem:[#allocation65_spill] sm:$0xff] %v4904_v60  ;;  %v4964_v60 = vld [vmem:[#allocation8 + $0x230] sm:$0xff] }
  0x62   : > { %6352 = vst [vmem:[#allocation66_spill] sm:$0xff] %v4906_v61  ;;  %v4938_v61 = vld [vmem:[#allocation8 + $0x70] sm:$0xff] }
  0x63   : > { %6353 = vst [vmem:[#allocation67_spill] sm:$0xff] %v4910_v62  ;;  %v4940_v62 = vld [vmem:[#allocation8 + $0x270] sm:$0xff]  ;;  %771 = vmatpush.msrb.mxu0 %v4938_v61 }
  0x64   : > { %6354 = vst [vmem:[#allocation68_spill] sm:$0xff] %v4912_v55  ;;  %v4944_v55 = vld [vmem:[#allocation8 + $0x78] sm:$0xff]  ;;  %791 = vmatpush.msrb.mxu1 %v4940_v62 }
  0x65   : > { %6355 = vst [vmem:[#allocation69_spill] sm:$0xff] %v4916_v50  ;;  %v4946_v50 = vld [vmem:[#allocation8 + $0x278] sm:$0xff]  ;;  %811 = vmatpush.msrb.mxu2 %v4944_v55 }
  0x66   : > { %6356 = vst [vmem:[#allocation70_spill] sm:$0xff] %v4918_v53  ;;  %831 = vmatpush.msrb.mxu3 %v4946_v50  ;;  %v4962_v53 = vld [vmem:[#allocation8 + $0x30] sm:$0xff] }
  0x67   : > { %6357 = vst [vmem:[#allocation71_spill] sm:$0xff] %v4922_v57  ;;  %v4958_v57 = vld [vmem:[#allocation8 + $0x258] sm:$0xff] }
  0x68   : > { %6358 = vst [vmem:[#allocation72_spill] sm:$0xff] %v4924_v56  ;;  %v4950_v56 = vld [vmem:[#allocation8 + $0x50] sm:$0xff]  ;;  %832 = vmatpush.msrb.mxu3 %v4958_v57 }
  0x69   : > { %6359 = vst [vmem:[#allocation73_spill] sm:$0xff] %v4928_v51  ;;  %v4952_v51 = vld [vmem:[#allocation8 + $0x250] sm:$0xff]  ;;  %772 = vmatpush.msrb.mxu0 %v4950_v56 }
  0x6a   : > { %6360 = vst [vmem:[#allocation74_spill] sm:$0xff] %v4930_v63  ;;  %v4956_v63 = vld [vmem:[#allocation8 + $0x58] sm:$0xff]  ;;  %792 = vmatpush.msrb.mxu1 %v4952_v51 }
  0x6b   : > { %6361 = vst [vmem:[#allocation75_spill] sm:$0xff] %v4938_v61  ;;  %v4970_v61 = vld [vmem:[#allocation8 + $0x238] sm:$0xff]  ;;  %812 = vmatpush.msrb.mxu2 %v4956_v63  ;;  %773 = vmatpush.msrb.mxu0 %v4962_v53 }
  0x6c   : > { %6362 = vst [vmem:[#allocation76_spill] sm:$0xff] %v4940_v62  ;;  %v4974_v62 = vld [vmem:[#allocation8 + $0x10] sm:$0xff]  ;;  %793 = vmatpush.msrb.mxu1 %v4964_v60  ;;  %833 = vmatpush.msrb.mxu3 %v4970_v61 }
  0x6d   : > { %6363 = vst [vmem:[#allocation77_spill] sm:$0xff] %v4944_v55  ;;  %v4976_v55 = vld [vmem:[#allocation8 + $0x210] sm:$0xff]  ;;  %813 = vmatpush.msrb.mxu2 %v4968_v58  ;;  %774 = vmatpush.msrb.mxu0 %v4974_v62 }
  0x6e   : > { %6364 = vst [vmem:[#allocation78_spill] sm:$0xff] %v4946_v50  ;;  %v4980_v50 = vld [vmem:[#allocation8 + $0x18] sm:$0xff]  ;;  %794 = vmatpush.msrb.mxu1 %v4976_v55  ;;  %775 = vmatmul.f32.vlgmr.msrb.gmra.mxu0 %v4830_v59 }
  0x6f   : > { %6365 = vst [vmem:[#allocation79_spill] sm:$0xff] %v4950_v56  ;;  %v4982_v56 = vld [vmem:[#allocation8 + $0x218] sm:$0xff]  ;;  %814 = vmatpush.msrb.mxu2 %v4980_v50  ;;  %795 = vmatmul.f32.vlgmr.msrb.gmra.mxu1 %v4839_v52 }
  0x70   : > { %834 = vmatpush.msrb.mxu3 %v4982_v56  ;;  %815 = vmatmul.f32.vlgmr.msrb.gmra.mxu2 %v4830_v59 }
  0x71   : > { %835 = vmatmul.f32.vlgmr.msrb.gmra.mxu3 %v4839_v52  ;;  %906 = vmatpush.msra.mxu0 %v4584_v0  ;;  %v6366_v0 = vld [vmem:[#allocation14_spill] sm:$0xff] }
  0x72   : > { %926 = vmatpush.msra.mxu1 %v4586_v1  ;;  %946 = vmatpush.msra.mxu2 %v4588_v2  ;;  %v6367_v1 = vld [vmem:[#allocation15_spill] sm:$0xff]  ;;  %v6368_v2 = vld [vmem:[#allocation16_spill] sm:$0xff] }
  0x73   : > { %966 = vmatpush.msra.mxu3 %v4592_v3  ;;  %907 = vmatpush.msra.mxu0 %v4594_v4  ;;  %v6369_v3 = vld [vmem:[#allocation17_spill] sm:$0xff]  ;;  %v6370_v4 = vld [vmem:[#allocation18_spill] sm:$0xff] }
  0x74   : > { %927 = vmatpush.msra.mxu1 %v4596_v5  ;;  %947 = vmatpush.msra.mxu2 %v4600_v6  ;;  %v6371_v5 = vld [vmem:[#allocation19_spill] sm:$0xff]  ;;  %v6372_v6 = vld [vmem:[#allocation20_spill] sm:$0xff] }
  0x75   : > { %967 = vmatpush.msra.mxu3 %v4602_v7  ;;  %908 = vmatpush.msra.mxu0 %v4604_v8  ;;  %v6373_v7 = vld [vmem:[#allocation21_spill] sm:$0xff]  ;;  %v6374_v8 = vld [vmem:[#allocation22_spill] sm:$0xff] }
  0x76   : > { %928 = vmatpush.msra.mxu1 %v4608_v9  ;;  %948 = vmatpush.msra.mxu2 %v4610_v10  ;;  %v6375_v9 = vld [vmem:[#allocation23_spill] sm:$0xff]  ;;  %v6376_v10 = vld [vmem:[#allocation24_spill] sm:$0xff] }
  0x77   : > { %968 = vmatpush.msra.mxu3 %v4612_v11  ;;  %909 = vmatpush.msra.mxu0 %v4616_v12  ;;  %v6377_v11 = vld [vmem:[#allocation25_spill] sm:$0xff]  ;;  %v6378_v12 = vld [vmem:[#allocation26_spill] sm:$0xff] }
  0x78   : > { %929 = vmatpush.msra.mxu1 %v4618_v13  ;;  %949 = vmatpush.msra.mxu2 %v4622_v14  ;;  %v6379_v13 = vld [vmem:[#allocation27_spill] sm:$0xff]  ;;  %v6380_v14 = vld [vmem:[#allocation28_spill] sm:$0xff] }
  0x79   : > { %969 = vmatpush.msra.mxu3 %v4624_v15  ;;  %910 = vmatpush.msra.mxu0 %v4628_v16  ;;  %v6381_v15 = vld [vmem:[#allocation29_spill] sm:$0xff]  ;;  %v6382_v16 = vld [vmem:[#allocation30_spill] sm:$0xff] }
  0x7a   : > { %930 = vmatpush.msra.mxu1 %v4630_v17  ;;  %950 = vmatpush.msra.mxu2 %v4634_v18  ;;  %v6383_v17 = vld [vmem:[#allocation31_spill] sm:$0xff]  ;;  %v6384_v18 = vld [vmem:[#allocation32_spill] sm:$0xff] }
  0x7b   : > { %970 = vmatpush.msra.mxu3 %v4636_v19  ;;  %911 = vmatpush.msra.mxu0 %v4640_v20  ;;  %v6385_v19 = vld [vmem:[#allocation33_spill] sm:$0xff]  ;;  %v6386_v20 = vld [vmem:[#allocation34_spill] sm:$0xff] }
  0x7c   : > { %931 = vmatpush.msra.mxu1 %v4642_v21  ;;  %951 = vmatpush.msra.mxu2 %v4646_v22  ;;  %v6387_v21 = vld [vmem:[#allocation35_spill] sm:$0xff]  ;;  %v6388_v22 = vld [vmem:[#allocation36_spill] sm:$0xff] }
  0x7d   : > { %971 = vmatpush.msra.mxu3 %v4648_v23  ;;  %912 = vmatpush.msra.mxu0 %v4652_v24  ;;  %v6389_v23 = vld [vmem:[#allocation37_spill] sm:$0xff]  ;;  %v6390_v24 = vld [vmem:[#allocation38_spill] sm:$0xff] }
  0x7e   : > { %932 = vmatpush.msra.mxu1 %v4654_v25  ;;  %952 = vmatpush.msra.mxu2 %v4658_v26  ;;  %v6391_v25 = vld [vmem:[#allocation39_spill] sm:$0xff]  ;;  %v6392_v26 = vld [vmem:[#allocation40_spill] sm:$0xff] }
  0x7f   : > { %972 = vmatpush.msra.mxu3 %v4660_v27  ;;  %913 = vmatpush.msra.mxu0 %v4664_v28  ;;  %v6393_v27 = vld [vmem:[#allocation41_spill] sm:$0xff]  ;;  %v6394_v28 = vld [vmem:[#allocation42_spill] sm:$0xff] }
  0x80   : > { %933 = vmatpush.msra.mxu1 %v4666_v29  ;;  %953 = vmatpush.msra.mxu2 %v4670_v30  ;;  %v6395_v29 = vld [vmem:[#allocation43_spill] sm:$0xff]  ;;  %v6396_v30 = vld [vmem:[#allocation44_spill] sm:$0xff] }
  0x81   : > { %973 = vmatpush.msra.mxu3 %v4672_v31  ;;  %914 = vmatpush.msra.mxu0 %v4676_v32  ;;  %v6397_v31 = vld [vmem:[#allocation45_spill] sm:$0xff]  ;;  %v6398_v32 = vld [vmem:[#allocation46_spill] sm:$0xff] }
  0x82   : > { %934 = vmatpush.msra.mxu1 %v4678_v33  ;;  %954 = vmatpush.msra.mxu2 %v4682_v34  ;;  %v6399_v33 = vld [vmem:[#allocation47_spill] sm:$0xff]  ;;  %v6400_v34 = vld [vmem:[#allocation48_spill] sm:$0xff] }
  0x83   : > { %974 = vmatpush.msra.mxu3 %v4684_v35  ;;  %915 = vmatpush.msra.mxu0 %v4688_v36  ;;  %v6401_v35 = vld [vmem:[#allocation49_spill] sm:$0xff]  ;;  %v6402_v36 = vld [vmem:[#allocation50_spill] sm:$0xff] }
  0x84   : > { %935 = vmatpush.msra.mxu1 %v4690_v37  ;;  %955 = vmatpush.msra.mxu2 %v4694_v38  ;;  %v6403_v37 = vld [vmem:[#allocation51_spill] sm:$0xff]  ;;  %v6404_v38 = vld [vmem:[#allocation52_spill] sm:$0xff] }
  0x85   : > { %975 = vmatpush.msra.mxu3 %v4696_v39  ;;  %916 = vmatpush.msra.mxu0 %v4700_v40  ;;  %v6405_v39 = vld [vmem:[#allocation53_spill] sm:$0xff]  ;;  %v6406_v40 = vld [vmem:[#allocation54_spill] sm:$0xff] }
  0x86   : > { %936 = vmatpush.msra.mxu1 %v4702_v41  ;;  %956 = vmatpush.msra.mxu2 %v4706_v42  ;;  %v6407_v41 = vld [vmem:[#allocation55_spill] sm:$0xff]  ;;  %v6408_v42 = vld [vmem:[#allocation56_spill] sm:$0xff] }
  0x87   : > { %976 = vmatpush.msra.mxu3 %v4708_v43  ;;  %917 = vmatpush.msra.mxu0 %v4712_v44  ;;  %v6409_v43 = vld [vmem:[#allocation57_spill] sm:$0xff]  ;;  %v6410_v44 = vld [vmem:[#allocation58_spill] sm:$0xff] }
  0x88   : > { %937 = vmatpush.msra.mxu1 %v4714_v45  ;;  %957 = vmatpush.msra.mxu2 %v4718_v46  ;;  %v6411_v45 = vld [vmem:[#allocation59_spill] sm:$0xff]  ;;  %v6412_v46 = vld [vmem:[#allocation60_spill] sm:$0xff] }
  0x89   : > { %977 = vmatpush.msra.mxu3 %v4720_v47  ;;  %918 = vmatpush.msra.mxu0 %v4724_v48  ;;  %v6413_v47 = vld [vmem:[#allocation61_spill] sm:$0xff]  ;;  %v6414_v48 = vld [vmem:[#allocation62_spill] sm:$0xff] }
  0x8a   : > { %938 = vmatpush.msra.mxu1 %v4726_v49  ;;  %958 = vmatpush.msra.mxu2 %v6366_v0  ;;  %v6415_v49 = vld [vmem:[#allocation63_spill] sm:$0xff]  ;;  %v6417_v0 = vld [vmem:[#allocation65_spill] sm:$0xff] }
  0x8b   : > { %978 = vmatpush.msra.mxu3 %v6367_v1  ;;  %919 = vmatpush.msra.mxu0 %v6368_v2  ;;  %v6418_v1 = vld [vmem:[#allocation66_spill] sm:$0xff]  ;;  %v6419_v2 = vld [vmem:[#allocation67_spill] sm:$0xff] }
  0x8c   : > { %939 = vmatpush.msra.mxu1 %v6369_v3  ;;  %959 = vmatpush.msra.mxu2 %v6370_v4  ;;  %v6420_v3 = vld [vmem:[#allocation68_spill] sm:$0xff]  ;;  %v6421_v4 = vld [vmem:[#allocation69_spill] sm:$0xff] }
  0x8d   : > { %979 = vmatpush.msra.mxu3 %v6371_v5  ;;  %920 = vmatpush.msra.mxu0 %v6372_v6  ;;  %v6422_v5 = vld [vmem:[#allocation70_spill] sm:$0xff]  ;;  %v6423_v6 = vld [vmem:[#allocation71_spill] sm:$0xff] }
  0x8e   : > { %940 = vmatpush.msra.mxu1 %v6373_v7  ;;  %960 = vmatpush.msra.mxu2 %v6374_v8  ;;  %v6424_v7 = vld [vmem:[#allocation72_spill] sm:$0xff]  ;;  %v6425_v8 = vld [vmem:[#allocation73_spill] sm:$0xff] }
  0x8f   : > { %980 = vmatpush.msra.mxu3 %v6375_v9  ;;  %921 = vmatpush.msra.mxu0 %v6376_v10  ;;  %v6426_v9 = vld [vmem:[#allocation74_spill] sm:$0xff]  ;;  %v6427_v10 = vld [vmem:[#allocation75_spill] sm:$0xff] }
  0x90   : > { %941 = vmatpush.msra.mxu1 %v6377_v11  ;;  %961 = vmatpush.msra.mxu2 %v6378_v12  ;;  %v6428_v11 = vld [vmem:[#allocation76_spill] sm:$0xff]  ;;  %v6429_v12 = vld [vmem:[#allocation77_spill] sm:$0xff] }
  0x91   : > { %981 = vmatpush.msra.mxu3 %v6379_v13  ;;  %986 = vmatpush.msrb.mxu0 %v6380_v14  ;;  %v6430_v13 = vld [vmem:[#allocation78_spill] sm:$0xff]  ;;  %v6431_v14 = vld [vmem:[#allocation79_spill] sm:$0xff] }
  0x92   : > { %1006 = vmatpush.msrb.mxu1 %v6381_v15  ;;  %1026 = vmatpush.msrb.mxu2 %v6382_v16 }
  0x93   : > { %1046 = vmatpush.msrb.mxu3 %v6383_v17  ;;  %987 = vmatpush.msrb.mxu0 %v6384_v18 }
  0x94   : > { %1007 = vmatpush.msrb.mxu1 %v6385_v19  ;;  %1027 = vmatpush.msrb.mxu2 %v6386_v20 }
  0x95   : > { %1047 = vmatpush.msrb.mxu3 %v6387_v21  ;;  %988 = vmatpush.msrb.mxu0 %v6388_v22 }
  0x96   : > { %1008 = vmatpush.msrb.mxu1 %v6389_v23  ;;  %1028 = vmatpush.msrb.mxu2 %v6390_v24 }
  0x97   : > { %1048 = vmatpush.msrb.mxu3 %v6391_v25  ;;  %989 = vmatpush.msrb.mxu0 %v6392_v26 }
  0x98   : > { %1009 = vmatpush.msrb.mxu1 %v6393_v27  ;;  %1029 = vmatpush.msrb.mxu2 %v6394_v28 }
  0x99   : > { %1049 = vmatpush.msrb.mxu3 %v6395_v29  ;;  %990 = vmatpush.msrb.mxu0 %v6396_v30 }
  0x9a   : > { %1010 = vmatpush.msrb.mxu1 %v6397_v31  ;;  %1030 = vmatpush.msrb.mxu2 %v6398_v32 }
  0x9b   : > { %1050 = vmatpush.msrb.mxu3 %v6399_v33  ;;  %991 = vmatpush.msrb.mxu0 %v4850_v54  ;;  %v6416_v54 = vld [vmem:[#allocation64_spill] sm:$0xff] }
  0x9c   : > { %1011 = vmatpush.msrb.mxu1 %v6400_v34  ;;  %1031 = vmatpush.msrb.mxu2 %v6401_v35 }
  0x9d   : > { %1051 = vmatpush.msrb.mxu3 %v6402_v36  ;;  %992 = vmatpush.msrb.mxu0 %v6403_v37 }
  0x9e   : > { %1012 = vmatpush.msrb.mxu1 %v6404_v38  ;;  %1032 = vmatpush.msrb.mxu2 %v6405_v39 }
  0x9f   : > { %1052 = vmatpush.msrb.mxu3 %v6406_v40  ;;  %993 = vmatpush.msrb.mxu0 %v6407_v41 }
  0xa0   : > { %1013 = vmatpush.msrb.mxu1 %v6408_v42  ;;  %1033 = vmatpush.msrb.mxu2 %v6409_v43 }
  0xa1   : > { %1053 = vmatpush.msrb.mxu3 %v6410_v44  ;;  %994 = vmatpush.msrb.mxu0 %v6411_v45 }
  0xa2   : > { %1014 = vmatpush.msrb.mxu1 %v6412_v46  ;;  %1034 = vmatpush.msrb.mxu2 %v6413_v47 }
  0xa3   : > { %1054 = vmatpush.msrb.mxu3 %v6414_v48  ;;  %995 = vmatpush.msrb.mxu0 %v6415_v49 }
  0xa4   : > { %1015 = vmatpush.msrb.mxu1 %v6416_v54  ;;  %1035 = vmatpush.msrb.mxu2 %v6417_v0 }
  0xa5   : > { %1055 = vmatpush.msrb.mxu3 %v6418_v1  ;;  %996 = vmatpush.msrb.mxu0 %v6419_v2 }
  0xa6   : > { %1016 = vmatpush.msrb.mxu1 %v6420_v3  ;;  %1036 = vmatpush.msrb.mxu2 %v6421_v4 }
  0xa7   : > { %1056 = vmatpush.msrb.mxu3 %v6422_v5  ;;  %997 = vmatpush.msrb.mxu0 %v6423_v6 }
  0xa8   : > { %1017 = vmatpush.msrb.mxu1 %v6424_v7  ;;  %1037 = vmatpush.msrb.mxu2 %v6425_v8 }
  0xa9   : > { %1057 = vmatpush.msrb.mxu3 %v6426_v9  ;;  %922 = vmatmul.f32.vlgmr.msra.gmra.mxu0 %v4830_v59 }
  0xaa   : > { %942 = vmatmul.f32.vlgmr.msra.gmra.mxu1 %v4839_v52  ;;  %962 = vmatmul.f32.vlgmr.msra.gmra.mxu2 %v4830_v59 }
  0xab   : > { %982 = vmatmul.f32.vlgmr.msra.gmra.mxu3 %v4839_v52  ;;  %998 = vmatpush.msrb.mxu0 %v6427_v10 }
  0xac   : > { %1018 = vmatpush.msrb.mxu1 %v6428_v11  ;;  %1038 = vmatpush.msrb.mxu2 %v6429_v12 }
  0xad   : > { %1058 = vmatpush.msrb.mxu3 %v6430_v13  ;;  %999 = vmatpush.msrb.mxu0 %v6431_v14 }
  0xae   : > { %1019 = vmatpush.msrb.mxu1 %v4952_v51  ;;  %1039 = vmatpush.msrb.mxu2 %v4956_v63 }
  0xaf   : > { %1059 = vmatpush.msrb.mxu3 %v4958_v57  ;;  %1000 = vmatpush.msrb.mxu0 %v4962_v53 }
  0xb0   : > { %1020 = vmatpush.msrb.mxu1 %v4964_v60  ;;  %1040 = vmatpush.msrb.mxu2 %v4968_v58 }
  0xb1   : > { %1060 = vmatpush.msrb.mxu3 %v4970_v61  ;;  %1001 = vmatpush.msrb.mxu0 %v4974_v62 }
  0xb2   : > { %1021 = vmatpush.msrb.mxu1 %v4976_v55  ;;  %1041 = vmatpush.msrb.mxu2 %v4980_v50 }
  0xb3   : > { %1061 = vmatpush.msrb.mxu3 %v4982_v56  ;;  %1002 = vmatmul.f32.vlgmr.msrb.gmra.mxu0 %v4830_v59  ;;  %v716_v53 = vpop.f32.mrf.mxu1 }
  0xb4   : > { %1022 = vmatmul.f32.vlgmr.msrb.gmra.mxu1 %v4839_v52  ;;  %1042 = vmatmul.f32.vlgmr.msrb.gmra.mxu2 %v4830_v59 }
  0xb5   : > { %1062 = vmatmul.f32.vlgmr.msrb.gmra.mxu3 %v4839_v52 }
  0xbc   : > { %v756_v60 = vpop.f32.mrf.mxu3 }
  0xbd   : > { %v696_v51 = vpop.f32.mrf.mxu0 }
  0xbe   : > { %v717_v57 = vadd.f32 %v716_v53, %v696_v51 }
  0xc0   : > { %v849_v61 = vrot.slane %v717_v57, 4 }
  0xc3   : > { %v736_v58 = vpop.f32.mrf.mxu2 }
  0xc4   : > { %v757_v50 = vadd.f32 %v756_v60, %v736_v58 }
  0xc6   : > { %v850_v59 = vrot.slane %v757_v50, 4 }
  0xeb   : > { %v776_v62 = vpop.f32.mrf.mxu0 }
  0xec   : > { %v796_v55 = vpop.f32.mrf.mxu1 }
  0xed   : > { %v797_v63 = vadd.f32 %v796_v55, %v776_v62 }
  0xef   : > { %v841_v15 = vrot.slane %v797_v63, 4  ;;  %v5130_v56 = vadd.f32 %v849_v61, %v797_v63 }
  0xf1   : > { %v845_v16 = vsub.f32 %v717_v57, %v841_v15  ;;  %v857_v17 = vmul.f32 %v5130_v56, %v5130_v56 }
  0xf3   : > { %v855_v18 = vmul.f32 %v845_v16, %v845_v16  ;;  %v816_v52 = vpop.f32.mrf.mxu2 }
  0xf4   : > { %v836_v19 = vpop.f32.mrf.mxu3 }
  0xf5   : > { %v837_v20 = vadd.f32 %v836_v19, %v816_v52  ;;  %v859_v21 = vadd.f32 %v857_v17, %v855_v18 }
  0xf7   : > { %v842_v22 = vrot.slane %v837_v20, 4  ;;  %v5134_v23 = vadd.f32 %v850_v59, %v837_v20  ;;  %v862_v24 = vsel %vm6295_vm0, %v859_v21, 0.0 }
  0xf8   : > { %v863_v27 = vrot.slane %v862_v24, 4 }
  0xf9   : > { %v5137_v25 = vsub.f32 %v757_v50, %v842_v22  ;;  %v858_v26 = vmul.f32 %v5134_v23, %v5134_v23 }
  0xfa   : > { %v864_v30 = vadd.f32 %v863_v27, %v862_v24 }
  0xfb   : > { %v856_v28 = vmul.f32 %v5137_v25, %v5137_v25 }
  0xfc   : > { %v865_v33 = vrot.slane %v864_v30, 2 }
  0xfd   : > { %v860_v29 = vadd.f32 %v858_v26, %v856_v28 }
  0xfe   : > { %v866_v35 = vadd.f32 %v865_v33, %v864_v30 }
  0xff   : > { %v869_v31 = vsel %vm6295_vm0, %v860_v29, 0.0 }
 0x100   : > { %v870_v32 = vrot.slane %v869_v31, 4  ;;  %v867_v37 = vrot.slane %v866_v35, 1 }
 0x102   : > { %v871_v34 = vadd.f32 %v870_v32, %v869_v31  ;;  %v868_v39 = vadd.f32 %v867_v37, %v866_v35 }
 0x104   : > { %v872_v36 = vrot.slane %v871_v34, 2  ;;  %v876_v41 = vadd.f32 1e-24, %v868_v39 }
 0x106   : > { %v873_v38 = vadd.f32 %v872_v36, %v871_v34  ;;  %3914 = vrsqrt.f32 %v876_v41  ;;  %vm884_vm2 = vweird.f32 %v876_v41 }
 0x108   : > { %v874_v40 = vrot.slane %v873_v38, 1 }
 0x10a   : > { %v875_v42 = vadd.f32 %v874_v40, %v873_v38 }
 0x10c   : > { %v877_v43 = vadd.f32 1e-24, %v875_v42  ;;  %v3915_v44 = vpop.eup %3914 }
 0x10d   : > { %v879_v45 = vmul.f32 %v3915_v44, %v876_v41  ;;  %vm885_vm1 = vweird.f32 %v3915_v44 }
 0x10e   : > { %3916 = vrsqrt.f32 %v877_v43  ;;  %vm886_vm3 = vmor %vm884_vm2, %vm885_vm1  ;;  %vm894_vm5 = vweird.f32 %v877_v43 }
 0x10f   : > { %v880_v47 = vmul.f32 %v3915_v44, %v879_v45 }
 0x111   : > { %v881_v49 = vmul.f32 0.5, %v880_v47 }
 0x113   : > { %v882_v2 = vsub.f32 1.5, %v881_v49 }
 0x114   : > { %v3917_v46 = vpop.eup %3916 }
 0x115   : > { %v889_v48 = vmul.f32 %v3917_v46, %v877_v43  ;;  %v883_v7 = vmul.f32 %v3915_v44, %v882_v2  ;;  %vm895_vm4 = vweird.f32 %v3917_v46 }
 0x116   : > { %vm896_vm6 = vmor %vm894_vm5, %vm895_vm4 }
 0x117   : > { %v890_v1 = vmul.f32 %v3917_v46, %v889_v48  ;;  %v887_v13 = vsel %vm886_vm3, %v3915_v44, %v883_v7 }
 0x118   : > { %v5144_v58 = vmul.f32 %v887_v13, %v845_v16  ;;  %v5147_v60 = vmul.f32 %v887_v13, %v5130_v56 }
 0x119   : > { %v891_v4 = vmul.f32 0.5, %v890_v1 }
 0x11a   : > { %6432 = vst [vmem:[#allocation14_spill] sm:$0xff] %v5144_v58 }
 0x11b   : > { %v892_v9 = vsub.f32 1.5, %v891_v4  ;;  %6433 = vst [vmem:[#allocation15_spill] sm:$0xff] %v5147_v60 }
 0x11d   : > { %v893_v53 = vmul.f32 %v3917_v46, %v892_v9 }
 0x11f   : > { %v897_v59 = vsel %vm896_vm6, %v3917_v46, %v893_v53 }
 0x120   : > { %v5154_v21 = vmul.f32 %v897_v59, %v5137_v25  ;;  %v5159_v26 = vmul.f32 %v897_v59, %v5134_v23  ;;  %v4480_v59 = vmov 269488144  }
 0x122   : > { %6434 = vst [vmem:[#allocation16_spill] sm:$0xff] %v5154_v21 }
 0x123   : > { %6435 = vst [vmem:[#allocation17_spill] sm:$0xff] %v5159_v26 }
 0x126   : > { %v923_v54 = vpop.f32.mrf.mxu0 }
 0x127   : > { %v943_v0 = vpop.f32.mrf.mxu1 }
 0x128   : > { %v944_v3 = vadd.f32 %v943_v0, %v923_v54  ;;  %v1108_v54 = vlaneseq }
 0x12a   : > { %v1076_v8 = vrot.slane %v944_v3, 4  ;;  %vm5168_vm8 = vcmp.lt.s32.totalorder %v1108_v54, 256 }
 0x12d   : > { %v963_v5 = vpop.f32.mrf.mxu2 }
 0x12e   : > { %v983_v6 = vpop.f32.mrf.mxu3 }
 0x12f   : > { %v984_v57 = vadd.f32 %v983_v6, %v963_v5  ;;  %v6436_v6 = vmov 0 }
 0x130   : > { %v1003_v10 = vpop.f32.mrf.mxu0  ;;  %v6437_v6 = vsel %vm5168_vm8, 4294967295, %v6436_v6 }
 0x131   : > { %v1023_v11 = vpop.f32.mrf.mxu1  ;;  %v1077_v18 = vrot.slane %v984_v57, 4  ;;  %6438 = vst [vmem:[#allocation18_spill] sm:$0xff] %v6437_v6 }
 0x132   : > { %v1024_v12 = vadd.f32 %v1023_v11, %v1003_v10 }
 0x134   : > { %v1068_v14 = vrot.slane %v1024_v12, 4  ;;  %v1080_v51 = vadd.f32 %v1076_v8, %v1024_v12 }
 0x136   : > { %v1072_v61 = vsub.f32 %v944_v3, %v1068_v14  ;;  %v1084_v55 = vmul.f32 %v1080_v51, %v5147_v60  ;;  %v1113_v63 = vmul.f32 %v1080_v51, %v5144_v58 }
 0x137   : > { %v1043_v15 = vpop.f32.mrf.mxu2 }
 0x138   : > { %v1082_v62 = vmul.f32 %v1072_v61, %v5144_v58  ;;  %v1115_v50 = vmul.f32 %v1072_v61, %v5147_v60  ;;  %v1063_v17 = vpop.f32.mrf.mxu3 }
 0x139   : > { %v1064_v16 = vadd.f32 %v1063_v17, %v1043_v15 }
 0x13a   : > { %v1086_v52 = vadd.f32 %v1084_v55, %v1082_v62  ;;  %v1117_v19 = vsub.f32 %v1113_v63, %v1115_v50  ;;  %v4479_v62 = vmov 256.0  }
 0x13b   : > { %v1069_v56 = vrot.slane %v1064_v16, 4  ;;  %v1081_v20 = vadd.f32 %v1077_v18, %v1064_v16  ;;  %3918 = vrcp.f32 %v4479_v62  ;;  %v1163_v18 = vunpack.c.l.s4 %v4480_v59 }
 0x13c   : > { %v1088_v22 = vsel %vm6295_vm0, %v1086_v52, 0.0  ;;  %v1119_v24 = vsel %vm6295_vm0, %v1117_v19, 0.0 }
 0x13d   : > { %v1089_v27 = vrot.slane %v1088_v22, 4  ;;  %v1120_v28 = vrot.slane %v1119_v24, 4  ;;  %v1073_v29 = vsub.f32 %v984_v57, %v1069_v56  ;;  %v1085_v31 = vmul.f32 %v1081_v20, %v5159_v26 }
 0x13e   : > { %v1114_v32 = vmul.f32 %v1081_v20, %v5154_v21  ;;  %v5182_v52 = vunpack.c.0.s8 %v1163_v18 }
 0x13f   : > { %v1083_v30 = vmul.f32 %v1073_v29, %v5154_v21  ;;  %v1116_v33 = vmul.f32 %v1073_v29, %v5159_v26  ;;  %v1090_v25 = vadd.f32 %v1089_v27, %v1088_v22  ;;  %v1121_v34 = vadd.f32 %v1120_v28, %v1119_v24 }
 0x140   : > { %6440 = vst [vmem:[#allocation20_spill] sm:$0xff] %v5182_v52 }
 0x141   : > { %v1087_v35 = vadd.f32 %v1085_v31, %v1083_v30  ;;  %v1118_v36 = vsub.f32 %v1114_v32, %v1116_v33  ;;  %v1091_v38 = vrot.slane %v1090_v25, 2  ;;  %v1122_v39 = vrot.slane %v1121_v34, 2  ;;  %v3919_v55 = vpop.eup %3918 }
 0x142   : > { %v1154_v63 = vmul.f32 256.0, %v3919_v55  ;;  %vm1158_vm10 = vweird.f32 %v3919_v55  ;;  %v4481_v32 = vmov 255.0  }
 0x143   : > { %v1095_v37 = vsel %vm6295_vm0, %v1087_v35, 0.0  ;;  %v1126_v23 = vsel %vm6295_vm0, %v1118_v36, 0.0  ;;  %v1092_v44 = vadd.f32 %v1091_v38, %v1090_v25  ;;  %v1123_v45 = vadd.f32 %v1122_v39, %v1121_v34 }
 0x144   : > { %v1096_v40 = vrot.slane %v1095_v37, 4  ;;  %v1127_v41 = vrot.slane %v1126_v23, 4  ;;  %v1155_v50 = vsub.f32 1.0, %v1154_v63  ;;  %3920 = vrcp.f32 %v4481_v32 }
 0x145   : > { %v1093_v0 = vrot.slane %v1092_v44, 1  ;;  %v1124_v1 = vrot.slane %v1123_v45, 1 }
 0x146   : > { %v1097_v42 = vadd.f32 %v1096_v40, %v1095_v37  ;;  %v1128_v43 = vadd.f32 %v1127_v41, %v1126_v23  ;;  %v1156_v15 = vmul.f32 %v3919_v55, %v1155_v50 }
 0x147   : > { %v1094_v7 = vadd.f32 %v1093_v0, %v1092_v44  ;;  %v1125_v8 = vadd.f32 %v1124_v1, %v1123_v45 }
 0x148   : > { %v1098_v46 = vrot.slane %v1097_v42, 2  ;;  %v1129_v47 = vrot.slane %v1128_v43, 2  ;;  %v1157_v17 = vadd.f32 %v3919_v55, %v1156_v15 }
 0x14a   : > { %v1099_v48 = vadd.f32 %v1098_v46, %v1097_v42  ;;  %v1130_v49 = vadd.f32 %v1129_v47, %v1128_v43  ;;  %v5180_v16 = vsel %vm1158_vm10, %v3919_v55, %v1157_v17  ;;  %v3921_v33 = vpop.eup %3920 }
 0x14b   : > { %6439 = vst [vmem:[#allocation19_spill] sm:$0xff] %v5180_v16  ;;  %v1181_v25 = vmul.f32 255.0, %v3921_v33  ;;  %vm1185_vm11 = vweird.f32 %v3921_v33 }
 0x14c   : > { %v1100_v2 = vrot.slane %v1099_v48, 1  ;;  %v1131_v3 = vrot.slane %v1130_v49, 1 }
 0x14d   : > { %v1182_v34 = vsub.f32 1.0, %v1181_v25 }
 0x14e   : > { %v1101_v4 = vadd.f32 %v1100_v2, %v1099_v48  ;;  %v1132_v5 = vadd.f32 %v1131_v3, %v1130_v49 }
 0x14f   : > { %v1183_v35 = vmul.f32 %v3921_v33, %v1182_v34 }
 0x150   : > { %v1104_v9 = vrot.slane %v1101_v4, 7  ;;  %v1135_v10 = vrot.slane %v1132_v5, 7  ;;  %v5200_v4 = vld [vmem:[%s6156_s8 + $0x8] sm:$0xff] }
 0x151   : > { %v1184_v36 = vadd.f32 %v3921_v33, %v1183_v35  ;;  %v5256_v34 = vperm.slane %v5200_v4, 2 }
 0x152   : > { %v1106_v11 = vsel %vm6294_vm7, %v1094_v7, %v1104_v9  ;;  %v1136_v12 = vsel %vm6294_vm7, %v1125_v8, %v1135_v10  ;;  %v5205_v8 = vperm.slane %v5200_v4, 4  ;;  %v5210_v9 = vld [vmem:[%s6156_s8] sm:$0xff] }
 0x153   : > { %1112 = vst.msk [vmem:[#allocation2] ss:$2 sm:$0x3] %vm5168_vm8, %v1106_v11  ;;  %v5191_v37 = vsel %vm1185_vm11, %v3921_v33, %v1184_v36  ;;  %v5213_v10 = vperm.slane %v5210_v9, 4  ;;  %v5253_v25 = vperm.slane %v5210_v9, 2 }
 0x154   : > { %1139 = vst.msk [vmem:[#allocation2 + $0x1] ss:$2 sm:$0x3] %vm5168_vm8, %v1136_v12  ;;  %v1314_v11 = vrot.slane %v5205_v8, 6 }
 0x155   : > { %6441 = vst [vmem:[#allocation21_spill] sm:$0xff] %v5191_v37 }
 0x156   : > { %6442 = vst [vmem:[#allocation22_spill] sm:$0xff] %v5205_v8 }
 0x157   : > { %6443 = vst [vmem:[#allocation23_spill] sm:$0xff] %v5213_v10 }
 0x158   : > { %6448 = vst [vmem:[#allocation28_spill] sm:$0xff] %v5253_v25 }
 0x159   : > { %6449 = vst [vmem:[#allocation29_spill] sm:$0xff] %v5256_v34 }
 0x15b   : > { %v1140_v13 = vld [vmem:[#allocation2] sm:$0xf] }
 0x15c   : > { %1142 = vst [vmem:[#allocation1] ss:$4 sm:$0xff] %v1140_v13 }
 0x163   : > { %v1143_v14 = vld.sshfl [vmem:[#allocation1] sm:$0xff pattern:$0x73625140]  ;;  %v1144_v51 = vld.sshfl [vmem:[#allocation1 + $0x8] sm:$0xff pattern:$0x73625140] }
 0x164   : > { %v1148_v53 = vsel %vm1147_vm9, %v1143_v14, 0.0  ;;  %v1149_v57 = vsel %vm1147_vm9, %v1144_v51, 0.0  ;;  %v5220_v14 = vsel %vm1147_vm9, %v5213_v10, %v1314_v11 }
 0x165   : > { %v1150_v61 = vadd.f32 %v1149_v57, %v1148_v53  ;;  %6444 = vst [vmem:[#allocation24_spill] sm:$0xff] %v5220_v14 }
 0x167   : > { %1151 = vadd.xlane.f32.xlu0 %v1150_v61 }
 0x1da   : > { %v1152_v19 = vpop.xlane.xlu0 %1151 }
 0x1db   : > { %v5185_v56 = vmul.f32 %v5180_v16, %v1152_v19 }
 0x1dd   : > { %v1165_v20 = vperm.slane %v5185_v56, %v5182_v52 }
 0x1df   : > { %v1167_v22 = vsub.f32 %v1140_v13, %v1165_v20  ;;  %v5236_v20 = vand.u32 127, %v1108_v54 }
 0x1e1   : > { %v1168_v24 = vmul.f32 %v1167_v22, %v1167_v22  ;;  %6445 = vst [vmem:[#allocation25_spill] sm:$0xff] %v5236_v20  ;;  %vm1247_vm2 = vcmp.lt.s32.totalorder %v5236_v20, 16  ;;  %vm1271_vm3 = vcmp.lt.s32.totalorder %v5236_v20, 15  ;;  %vm1359_vm4 = vcmp.lt.s32.totalorder %v5236_v20, 113 }
 0x1e2   : > { %vm1335_vm5 = vcmp.lt.s32.totalorder %v5236_v20, 127  ;;  %vm1295_vm6 = vcmp.lt.s32.totalorder %v5236_v20, 1  ;;  %vm1383_vm10 = vcmp.lt.s32.totalorder %v5236_v20, 112  ;;  %vm1407_vm11 = vcmp.lt.s32.totalorder %v5236_v20, 111 }
 0x1e3   : > { %1170 = vst [vmem:[#allocation1] ss:$4 sm:$0xff] %v1168_v24  ;;  %v5240_v24 = vperm.slane %v5210_v9, 1 }
 0x1e5   : > { %6446 = vst [vmem:[#allocation26_spill] sm:$0xff] %v5240_v24 }
 0x1ea   : > { %v1171_v27 = vld.sshfl [vmem:[#allocation1] sm:$0xff pattern:$0x73625140]  ;;  %v1172_v28 = vld.sshfl [vmem:[#allocation1 + $0x8] sm:$0xff pattern:$0x73625140] }
 0x1eb   : > { %v1175_v29 = vsel %vm1147_vm9, %v1171_v27, 0.0  ;;  %v1176_v30 = vsel %vm1147_vm9, %v1172_v28, 0.0  ;;  %v5243_v27 = vperm.slane %v5200_v4, 1 }
 0x1ec   : > { %v1177_v31 = vadd.f32 %v1176_v30, %v1175_v29 }
 0x1ed   : > { %6447 = vst [vmem:[#allocation27_spill] sm:$0xff] %v5243_v27 }
 0x1ee   : > { %1178 = vadd.xlane.f32.xlu0 %v1177_v31 }
 0x261   : > { %v1179_v23 = vpop.xlane.xlu0 %1178 }
 0x262   : > { %v1187_v38 = vmul.f32 %v5191_v37, %v1179_v23 }
 0x264   : > { %3922 = vrsqrt.f32 %v1187_v38  ;;  %vm1206_vm13 = vweird.f32 %v1187_v38  ;;  %vm1195_vm15 = vcmp.eq.f32.partialorder %v1187_v38, inf  ;;  %v1198_v48 = vand.u32 2147483648, %v1187_v38 }
 0x265   : > { %vm1197_vm1 = vcmp.eq.f32.partialorder %v1187_v38, 0.0 }
 0x26a   : > { %v3923_v39 = vpop.eup %3922 }
 0x26b   : > { %v1189_v40 = vmul.f32 %v3923_v39, %v1187_v38  ;;  %vm1207_vm12 = vweird.f32 %v3923_v39 }
 0x26c   : > { %vm1208_vm14 = vmor %vm1206_vm13, %vm1207_vm12  ;;  %vm1229_vm12 = vcmp.lt.s32.totalorder %v5236_v20, 17  ;;  %vm1429_vm13 = vcmask 146432   ;;  %v5588_v20 = vld [vmem:[#allocation10 + $0x10] sm:$0xff] }
 0x26d   : > { %v1190_v41 = vmul.f32 %v3923_v39, %v1189_v40  ;;  %6468 = vst [vmem:[#allocation48_spill] sm:$0xff] %v5588_v20 }
 0x26f   : > { %v1191_v42 = vmul.f32 0.5, %v1190_v41 }
 0x271   : > { %v1192_v43 = vsub.f32 1.5, %v1191_v42 }
 0x273   : > { %v1193_v44 = vmul.f32 %v3923_v39, %v1192_v43 }
 0x275   : > { %v1209_v45 = vsel %vm1208_vm14, %v3923_v39, %v1193_v44  ;;  %v1194_v46 = vmul.f32 %v1193_v44, %v1187_v38  ;;  %v5266_v44 = vperm.slane %v5210_v9, 6  ;;  %vm6288_vm14 = vcmask 588800  }
 0x276   : > { %v1214_v47 = vperm.slane %v1209_v45, %v5182_v52  ;;  %v5269_v45 = vperm.slane %v5200_v4, 6 }
 0x277   : > { %v1196_v49 = vsel %vm1195_vm15, %v1187_v38, %v1194_v46  ;;  %6450 = vst [vmem:[#allocation30_spill] sm:$0xff] %v5266_v44 }
 0x278   : > { %v1216_v0 = vmul.f32 %v1214_v47, %v1167_v22  ;;  %v5195_v1 = vsel %vm1197_vm1, %v1198_v48, %v1196_v49  ;;  %6451 = vst [vmem:[#allocation31_spill] sm:$0xff] %v5269_v45 }
 0x27a   : > { %1218 = vst [vmem:[#allocation1] ss:$4 sm:$0xff] %v1216_v0  ;;  %v1317_v51 = vmul.f32 %v5220_v14, %v1216_v0  ;;  %v5590_v14 = vld [vmem:[#allocation10 + $0x210] sm:$0xff] }
 0x27b   : > { %6469 = vst [vmem:[#allocation49_spill] sm:$0xff] %v5590_v14 }
 0x281   : > { %v1219_v2 = vld.sshfl [vmem:[#allocation1] sm:$0xff pattern:$0x73625140]  ;;  %v1220_v3 = vld.sshfl [vmem:[#allocation1 + $0x8] sm:$0xff pattern:$0x73625140] }
 0x282   : > { %1238 = vst [vmem:[#allocation1] ss:$4 sm:$0xff] %v1216_v0 }
 0x289   : > { %v1239_v5 = vld.sshfl [vmem:[#allocation1] sm:$0xff pattern:$0x73625140]  ;;  %v1240_v7 = vld.sshfl [vmem:[#allocation1 + $0x8] sm:$0xff pattern:$0x73625140] }
 0x28a   : > { %1262 = vst [vmem:[#allocation1] ss:$4 sm:$0xff] %v1216_v0  ;;  %1245 = vrot.lane.b32.xlu1 %v1240_v7, %s4482_s16  ;;  %1243 = vrot.lane.b32.xlu2 %v1239_v5, %s4482_s16 }
 0x291   : > { %v1263_v12 = vld.sshfl [vmem:[#allocation1] sm:$0xff pattern:$0x73625140]  ;;  %v1264_v13 = vld.sshfl [vmem:[#allocation1 + $0x8] sm:$0xff pattern:$0x73625140] }
 0x292   : > { %1286 = vst [vmem:[#allocation1] ss:$4 sm:$0xff] %v1216_v0  ;;  %1269 = vrot.lane.b32.xlu0 %v1264_v13, %s4483_s9  ;;  %1267 = vrot.lane.b32.xlu2 %v1263_v12, %s4483_s9  ;;  %v5279_v12 = vperm.slane %v5210_v9, 5  ;;  %v5282_v13 = vperm.slane %v5200_v4, 5 }
 0x294   : > { %6452 = vst [vmem:[#allocation32_spill] sm:$0xff] %v5279_v12 }
 0x295   : > { %6453 = vst [vmem:[#allocation33_spill] sm:$0xff] %v5282_v13 }
 0x299   : > { %v1287_v53 = vld.sshfl [vmem:[#allocation1] sm:$0xff pattern:$0x73625140]  ;;  %v1288_v57 = vld.sshfl [vmem:[#allocation1 + $0x8] sm:$0xff pattern:$0x73625140] }
 0x29a   : > { %1319 = vst [vmem:[#allocation1] ss:$4 sm:$0xff] %v1317_v51  ;;  %1291 = vrot.lane.b32.xlu1 %v1287_v53, %s4484_s20  ;;  %v5286_v51 = vperm.slane %v5210_v9, 3  ;;  %v5289_v53 = vperm.slane %v5200_v4, 3 }
 0x29c   : > { %6454 = vst [vmem:[#allocation34_spill] sm:$0xff] %v5286_v51 }
 0x29d   : > { %6455 = vst [vmem:[#allocation35_spill] sm:$0xff] %v5289_v53 }
 0x2a1   : > { %v1320_v61 = vld.sshfl [vmem:[#allocation1] sm:$0xff pattern:$0x73625140]  ;;  %v1321_v62 = vld.sshfl [vmem:[#allocation1 + $0x8] sm:$0xff pattern:$0x73625140] }
 0x2a2   : > { %1326 = vst [vmem:[#allocation1] ss:$4 sm:$0xff] %v1216_v0 }
 0x2a3   : > { %1324 = vst [vmem:[#allocation3 + $0x8] sm:$0x3] %v1320_v61 }
 0x2a4   : > { %1325 = vst [vmem:[#allocation3] sm:$0x3] %v1321_v62 }
 0x2a9   : > { %v1327_v55 = vld.sshfl [vmem:[#allocation1] sm:$0xff pattern:$0x73625140]  ;;  %v1328_v63 = vld.sshfl [vmem:[#allocation1 + $0x8] sm:$0xff pattern:$0x73625140] }
 0x2aa   : > { %1331 = vrot.lane.b32.xlu1 %v1327_v55, %s4485_s21  ;;  %1350 = vst [vmem:[#allocation1] ss:$4 sm:$0xff] %v1216_v0 }
 0x2b1   : > { %v1351_v50 = vld.sshfl [vmem:[#allocation1] sm:$0xff pattern:$0x73625140]  ;;  %v1352_v15 = vld.sshfl [vmem:[#allocation1 + $0x8] sm:$0xff pattern:$0x73625140] }
 0x2b2   : > { %1333 = vrot.lane.b32.xlu1 %v1328_v63, %s4485_s21  ;;  %1355 = vrot.lane.b32.xlu2 %v1351_v50, %s4486_s22  ;;  %1374 = vst [vmem:[#allocation1] ss:$4 sm:$0xff] %v1216_v0 }
 0x2b9   : > { %v1376_v17 = vld.sshfl [vmem:[#allocation1 + $0x8] sm:$0xff pattern:$0x73625140]  ;;  %v1375_v59 = vld.sshfl [vmem:[#allocation1] sm:$0xff pattern:$0x73625140] }
 0x2ba   : > { %1357 = vrot.lane.b32.xlu2 %v1352_v15, %s4486_s22  ;;  %1381 = vrot.lane.b32.xlu1 %v1376_v17, %s4487_s23  ;;  %1398 = vst [vmem:[#allocation1] ss:$4 sm:$0xff] %v1216_v0 }
 0x2bb   : > { %1379 = vrot.lane.b32.xlu0 %v1375_v59, %s4487_s23 }
 0x2c1   : > { %v1400_v18 = vld.sshfl [vmem:[#allocation1 + $0x8] sm:$0xff pattern:$0x73625140]  ;;  %v1399_v19 = vld.sshfl [vmem:[#allocation1] sm:$0xff pattern:$0x73625140] }
 0x2c2   : > { %1405 = vrot.lane.b32.xlu1 %v1400_v18, %s4488_s24  ;;  %1403 = vrot.lane.b32.xlu2 %v1399_v19, %s4488_s24 }
 0x2c3   : > { %1223 = vrot.lane.b32.xlu0 %v1219_v2, %s4489_s25 }
 0x2ca   : > { %1225 = vrot.lane.b32.xlu1 %v1220_v3, %s4489_s25  ;;  %1293 = vrot.lane.b32.xlu2 %v1288_v57, %s4484_s20 }
 0x2e4   : > { %v1244_v22 = vpop.permute.xlu2 %1243 }
 0x2ec   : > { %v1268_v35 = vpop.permute.xlu2 %1267 }
 0x2fc   : > { %v1246_v28 = vpop.permute.xlu1 %1245 }
 0x2fd   : > { %v1248_v29 = vsel %vm1247_vm2, %v1244_v22, %v1246_v28  ;;  %v1249_v30 = vsel %vm1247_vm2, %v1246_v28, %v1244_v22 }
 0x2fe   : > { %v1252_v31 = vmul.f32 %v5240_v24, %v1249_v30  ;;  %v1253_v54 = vmul.f32 %v5243_v27, %v1248_v29  ;;  %v1423_v30 = vld [vmem:[%s6153_s5] sm:$0xff] }
 0x300   : > { %v1256_v32 = vrot.slane %v1252_v31, 6  ;;  %v1257_v33 = vrot.slane %v1253_v54, 6  ;;  %v5308_v31 = vperm.slane %v5210_v9, 7  ;;  %v5311_v54 = vperm.slane %v5200_v4, 7 }
 0x302   : > { %1260 = vst [vmem:[#allocation3 + $0x28] sm:$0xc] %v1256_v32  ;;  %v6225_v32 = vmov 0  }
 0x303   : > { %1261 = vst [vmem:[#allocation3 + $0x10] sm:$0xc] %v1257_v33  ;;  %3909 = vset.pattern.permute.xlu2 %v6225_v32  ;;  %3910 = vset.pattern.permute.xlu1 %v6225_v32 }
 0x304   : > { %v1270_v36 = vpop.permute.xlu0 %1269  ;;  %6456 = vst [vmem:[#allocation36_spill] sm:$0xff] %v5308_v31  ;;  %1426 = vperm.xlu2 %3909, %v1423_v30   ;;  %3911 = vset.pattern.permute.xlu0 %v6225_v32  ;;  %v586_v32 = vld [vmem:[#allocation10 + $0x118] sm:$0xff] }
 0x305   : > { %v1272_v23 = vsel %vm1271_vm3, %v1268_v35, %v1270_v36  ;;  %v1273_v38 = vsel %vm1271_vm3, %v1270_v36, %v1268_v35  ;;  %6457 = vst [vmem:[#allocation37_spill] sm:$0xff] %v5311_v54 }
 0x306   : > { %v1276_v39 = vmul.f32 %v5253_v25, %v1273_v38  ;;  %v1277_v40 = vmul.f32 %v5256_v34, %v1272_v23 }
 0x308   : > { %v1280_v41 = vrot.slane %v1276_v39, 4  ;;  %v1281_v42 = vrot.slane %v1277_v40, 4 }
 0x30a   : > { %1284 = vst [vmem:[#allocation3 + $0x28] sm:$0x30] %v1280_v41 }
 0x30b   : > { %1285 = vst [vmem:[#allocation3 + $0x10] sm:$0x30] %v1281_v42  ;;  %v5326_v42 = vld [vmem:[%s6156_s8 + $0x10] ss:$0 sm:$0xff] }
 0x30c   : > { %v1356_v43 = vpop.permute.xlu2 %1355  ;;  %v1292_v46 = vpop.permute.xlu1 %1291 }
 0x314   : > { %v1358_v47 = vpop.permute.xlu2 %1357 }
 0x315   : > { %v1360_v48 = vsel %vm1359_vm4, %v1356_v43, %v1358_v47  ;;  %v1361_v49 = vsel %vm1359_vm4, %v1358_v47, %v1356_v43  ;;  %v5331_v43 = vld [vmem:[%s6156_s8 + $0x18] ss:$0 sm:$0xff] }
 0x316   : > { %v1364_v0 = vmul.f32 %v5266_v44, %v1360_v48  ;;  %v1365_v2 = vmul.f32 %v5269_v45, %v1361_v49 }
 0x318   : > { %v1368_v3 = vrot.slane %v1364_v0, 4  ;;  %v1369_v5 = vrot.slane %v1365_v2, 4  ;;  %v5341_v2 = vperm.slane %v5210_v9, 0 }
 0x31a   : > { %1372 = vst [vmem:[#allocation3 + $0x8] sm:$0x30] %v1368_v3  ;;  %v5344_v3 = vperm.slane %v5200_v4, 0 }
 0x31b   : > { %1373 = vst [vmem:[#allocation3] sm:$0x30] %v1369_v5 }
 0x31c   : > { %v1332_v7 = vpop.permute.xlu1 %1331  ;;  %v1404_v11 = vpop.permute.xlu2 %1403  ;;  %6458 = vst [vmem:[#allocation38_spill] sm:$0xff] %v5341_v2 }
 0x31d   : > { %6459 = vst [vmem:[#allocation39_spill] sm:$0xff] %v5344_v3 }
 0x324   : > { %v1334_v57 = vpop.permute.xlu1 %1333  ;;  %v1294_v61 = vpop.permute.xlu2 %1293 }
 0x325   : > { %v1336_v62 = vsel %vm1335_vm5, %v1332_v7, %v1334_v57  ;;  %v1337_v55 = vsel %vm1335_vm5, %v1334_v57, %v1332_v7  ;;  %v1296_v63 = vsel %vm1295_vm6, %v1292_v46, %v1294_v61  ;;  %v1297_v50 = vsel %vm1295_vm6, %v1294_v61, %v1292_v46 }
 0x326   : > { %v1340_v15 = vmul.f32 %v5279_v12, %v1336_v62  ;;  %v1341_v17 = vmul.f32 %v5282_v13, %v1337_v55  ;;  %v1300_v59 = vmul.f32 %v5286_v51, %v1297_v50  ;;  %v1301_v18 = vmul.f32 %v5289_v53, %v1296_v63  ;;  %v1416_v50 = vld [vmem:[%s6152_s4] sm:$0xff] }
 0x328   : > { %v1344_v19 = vrot.slane %v1340_v15, 6  ;;  %v1345_v22 = vrot.slane %v1341_v17, 6  ;;  %v1304_v28 = vrot.slane %v1300_v59, 2  ;;  %v1305_v29 = vrot.slane %v1301_v18, 2 }
 0x32a   : > { %1348 = vst [vmem:[#allocation3 + $0x8] sm:$0xc] %v1344_v19 }
 0x32b   : > { %1349 = vst [vmem:[#allocation3] sm:$0xc] %v1345_v22 }
 0x32c   : > { %1308 = vst [vmem:[#allocation3 + $0x28] sm:$0xc0] %v1304_v28  ;;  %v1382_v33 = vpop.permute.xlu1 %1381 }
 0x32d   : > { %1309 = vst [vmem:[#allocation3 + $0x10] sm:$0xc0] %v1305_v29  ;;  %v1380_v35 = vpop.permute.xlu0 %1379 }
 0x32e   : > { %v1384_v36 = vsel %vm1383_vm10, %v1380_v35, %v1382_v33  ;;  %v1385_v23 = vsel %vm1383_vm10, %v1382_v33, %v1380_v35 }
 0x32f   : > { %v1388_v38 = vmul.f32 %v5308_v31, %v1384_v36  ;;  %v1389_v39 = vmul.f32 %v5311_v54, %v1385_v23 }
 0x331   : > { %v1392_v40 = vrot.slane %v1388_v38, 2  ;;  %v1393_v41 = vrot.slane %v1389_v39, 2 }
 0x333   : > { %1396 = vst [vmem:[#allocation3 + $0x8] sm:$0xc0] %v1392_v40 }
 0x334   : > { %1397 = vst [vmem:[#allocation3] sm:$0xc0] %v1393_v41  ;;  %v1406_v46 = vpop.permute.xlu1 %1405 }
 0x335   : > { %v1408_v47 = vsel %vm1407_vm11, %v1404_v11, %v1406_v46  ;;  %v1409_v48 = vsel %vm1407_vm11, %v1406_v46, %v1404_v11  ;;  %v1224_v5 = vpop.permute.xlu0 %1223 }
 0x336   : > { %v1412_v49 = vmul.f32 %v5326_v42, %v1408_v47  ;;  %v1413_v0 = vmul.f32 %v5331_v43, %v1409_v48 }
 0x338   : > { %1414 = vst [vmem:[#allocation3 + $0x18] sm:$0x3] %v1412_v49 }
 0x339   : > { %1415 = vst [vmem:[#allocation3 + $0x20] sm:$0x3] %v1413_v0 }
 0x33a   : > { %v1419_v4 = vld [vmem:[#allocation3 + $0x8] sm:$0xff] }
 0x33b   : > { %v1420_v63 = vld [vmem:[#allocation3] sm:$0xff] }
 0x33c   : > { %v1226_v7 = vpop.permute.xlu1 %1225 }
 0x33d   : > { %v1230_v57 = vsel %vm1229_vm12, %v1224_v5, %v1226_v7  ;;  %v1231_v11 = vsel %vm1229_vm12, %v1226_v7, %v1224_v5 }
 0x33e   : > { %v1234_v61 = vmul.f32 %v5341_v2, %v1231_v11  ;;  %v1235_v62 = vmul.f32 %v5344_v3, %v1230_v57  ;;  %v1584_v11 = vld [vmem:[%s6155_s7] sm:$0x3] }
 0x33f   : > { %v1421_v55 = vld [vmem:[#allocation3 + $0x18] sm:$0x3] }
 0x340   : > { %1236 = vst [vmem:[#allocation3 + $0x28] sm:$0x3] %v1234_v61  ;;  %3843 = vmatpush.msk.msra.mxu0 %vm1147_vm9, %v1421_v55  ;;  %v1422_v9 = vld [vmem:[#allocation3 + $0x20] sm:$0x3]  ;;  %v611_v61 = vld [vmem:[#allocation10 + $0x1e0] sm:$0xff] }
 0x341   : > { %1237 = vst [vmem:[#allocation3 + $0x10] sm:$0x3] %v1235_v62  ;;  %3845 = vmatpush.msk.msra.mxu1 %vm1147_vm9, %v1422_v9  ;;  %v675_v62 = vld [vmem:[#allocation10 + $0x3e0] sm:$0xff] }
 0x342   : > { %1453 = vmatpush.msra.mxu0 %v1419_v4  ;;  %v607_v55 = vld [vmem:[#allocation10 + $0x1c0] sm:$0xff] }
 0x343   : > { %1473 = vmatpush.msra.mxu1 %v1420_v63  ;;  %v671_v4 = vld [vmem:[#allocation10 + $0x3c0] sm:$0xff] }
 0x347   : > { %v1417_v15 = vld [vmem:[#allocation3 + $0x28] sm:$0xff] }
 0x348   : > { %1454 = vmatpush.msra.mxu0 %v1417_v15  ;;  %v1418_v17 = vld [vmem:[#allocation3 + $0x10] sm:$0xff] }
 0x349   : > { %1474 = vmatpush.msra.mxu1 %v1418_v17  ;;  %3844 = vmatmul.msk.f32.vlgmr.msra.gmra.mxu0 %vm1429_vm13, %v1416_v50  ;;  %v667_v17 = vld [vmem:[#allocation10 + $0x3a0] sm:$0xff] }
 0x34a   : > { %3846 = vmatmul.msk.f32.vlgmr.msra.gmra.mxu1 %vm1429_vm13, %v1416_v50  ;;  %1666 = vmatpush.msrb.mxu0 %v611_v61  ;;  %v603_v50 = vld [vmem:[#allocation10 + $0x1a0] sm:$0xff] }
 0x34b   : > { %1686 = vmatpush.msrb.mxu1 %v675_v62  ;;  %v647_v61 = vld [vmem:[#allocation10 + $0x300] sm:$0xff] }
 0x34c   : > { %1667 = vmatpush.msrb.mxu0 %v607_v55  ;;  %v5438_v62 = vld [vmem:[#allocation10 + $0xe0] sm:$0xff] }
 0x34d   : > { %1687 = vmatpush.msrb.mxu1 %v671_v4  ;;  %v643_v55 = vld [vmem:[#allocation10 + $0x2e0] sm:$0xff] }
 0x34e   : > { %1668 = vmatpush.msrb.mxu0 %v603_v50  ;;  %v5440_v4 = vld [vmem:[#allocation10 + $0xc0] sm:$0xff] }
 0x34f   : > { %1688 = vmatpush.msrb.mxu1 %v667_v17 }
 0x35e   : > { %v1427_v59 = vpop.permute.xlu2 %1426 }
 0x3c6   : > { %v1456_v18 = vpop.f32.mrf.mxu0 }
 0x3c7   : > { %v1476_v19 = vpop.f32.mrf.mxu1  ;;  %v1457_v22 = vadd.f32 %v1456_v18, %v1427_v59 }
 0x3c8   : > { %v1477_v28 = vadd.f32 %v1476_v19, %v1427_v59 }
 0x3c9   : > { %v5359_v29 = vmax.f32 %v1457_v22, 0.0 }
 0x3ca   : > { %v5361_v30 = vmax.f32 %v1477_v28, 0.0  ;;  %v599_v28 = vld [vmem:[#allocation10 + $0x180] sm:$0xff] }
 0x3cb   : > { %1545 = vrot.lane.b32.xlu2 %v5359_v29, %s4487_s23  ;;  %1555 = vrot.lane.b32.xlu0 %v5359_v29, %s4488_s24 }
 0x3cc   : > { %1557 = vrot.lane.b32.xlu1 %v5361_v30, %s4488_s24  ;;  %1669 = vmatpush.msrb.mxu0 %v599_v28  ;;  %v5457_v28 = vld [vmem:[#allocation10 + $0x80] sm:$0xff] }
 0x3d3   : > { %1537 = vrot.lane.b32.xlu2 %v5361_v30, %s4486_s22  ;;  %1547 = vrot.lane.b32.xlu0 %v5361_v30, %s4487_s23 }
 0x3d4   : > { %1535 = vrot.lane.b32.xlu1 %v5359_v29, %s4486_s22 }
 0x3db   : > { %1511 = vrot.lane.b32.xlu2 %v5359_v29, %s4484_s20  ;;  %1525 = vrot.lane.b32.xlu0 %v5359_v29, %s4485_s21 }
 0x3dc   : > { %1527 = vrot.lane.b32.xlu1 %v5361_v30, %s4485_s21 }
 0x3e3   : > { %1503 = vrot.lane.b32.xlu2 %v5361_v30, %s4483_s9  ;;  %1513 = vrot.lane.b32.xlu0 %v5361_v30, %s4484_s20 }
 0x3e4   : > { %1501 = vrot.lane.b32.xlu1 %v5359_v29, %s4483_s9 }
 0x3eb   : > { %1481 = vrot.lane.b32.xlu2 %v5359_v29, %s4489_s25  ;;  %1491 = vrot.lane.b32.xlu0 %v5359_v29, %s4482_s16 }
 0x3ec   : > { %1493 = vrot.lane.b32.xlu1 %v5361_v30, %s4482_s16 }
 0x3f3   : > { %1483 = vrot.lane.b32.xlu0 %v5361_v30, %s4489_s25 }
 0x3f4   : > { %1587 = vperm.xlu1 %3910, %v1584_v11   ;;  %v583_v11 = vld [vmem:[#allocation10 + $0x100] sm:$0xff] }
 0x425   : > { %v1546_v33 = vpop.permute.xlu2 %1545 }
 0x42d   : > { %v1538_v41 = vpop.permute.xlu2 %1537 }
 0x435   : > { %v1512_v9 = vpop.permute.xlu2 %1511 }
 0x43d   : > { %v1556_v35 = vpop.permute.xlu0 %1555 }
 0x43e   : > { %v1558_v36 = vpop.permute.xlu1 %1557 }
 0x43f   : > { %v1559_v23 = vsel %vm1407_vm11, %v1556_v35, %v1558_v36  ;;  %v1560_v38 = vsel %vm1407_vm11, %v1558_v36, %v1556_v35  ;;  %v1521_v35 = vmul.f32 %v5359_v29, %v5213_v10  ;;  %v1522_v36 = vmul.f32 %v5361_v30, %v5205_v8  ;;  %v5550_v8 = vld [vmem:[#allocation10 + $0x2f0] sm:$0xff]  ;;  %v582_v10 = vld [vmem:[#allocation10 + $0xf8] sm:$0xff] }
 0x440   : > { %v1561_v39 = vmul.f32 %v5326_v42, %v1559_v23  ;;  %v1562_v40 = vmul.f32 %v5331_v43, %v1560_v38  ;;  %v595_v23 = vld [vmem:[#allocation10 + $0x160] sm:$0xff] }
 0x441   : > { %v659_v38 = vld [vmem:[#allocation10 + $0x360] sm:$0xff]  ;;  %1670 = vmatpush.msrb.mxu0 %v595_v23 }
 0x442   : > { %1601 = vmatpush.msra.mxu2 %v1561_v39  ;;  %1621 = vmatpush.msra.mxu3 %v1562_v40  ;;  %v591_v39 = vld [vmem:[#allocation10 + $0x140] sm:$0xff] }
 0x443   : > { %1671 = vmatpush.msrb.mxu0 %v591_v39 }
 0x445   : > { %v1548_v46 = vpop.permute.xlu0 %1547 }
 0x446   : > { %v1536_v47 = vpop.permute.xlu1 %1535  ;;  %v1549_v48 = vsel %vm1383_vm10, %v1546_v33, %v1548_v46  ;;  %v1550_v49 = vsel %vm1383_vm10, %v1548_v46, %v1546_v33  ;;  %v663_v33 = vld [vmem:[#allocation10 + $0x380] sm:$0xff]  ;;  %v1504_v46 = vpop.permute.xlu2 %1503 }
 0x447   : > { %v1539_v0 = vsel %vm1359_vm4, %v1536_v47, %v1538_v41  ;;  %v1540_v5 = vsel %vm1359_vm4, %v1538_v41, %v1536_v47  ;;  %v1551_v42 = vmul.f32 %v1549_v48, %v5308_v31  ;;  %v1552_v43 = vmul.f32 %v1550_v49, %v5311_v54  ;;  %1689 = vmatpush.msrb.mxu1 %v663_v33  ;;  %v655_v41 = vld [vmem:[#allocation10 + $0x340] sm:$0xff]  ;;  %v642_v54 = vld [vmem:[#allocation10 + $0x2d8] sm:$0xff]  ;;  %v5558_v31 = vld [vmem:[#allocation10 + $0xb0] sm:$0xff] }
 0x448   : > { %v1541_v7 = vmul.f32 %v1539_v0, %v5266_v44  ;;  %v1542_v57 = vmul.f32 %v1540_v5, %v5269_v45  ;;  %v5459_v33 = vld [vmem:[#allocation10 + $0x280] sm:$0xff]  ;;  %v5560_v45 = vld [vmem:[#allocation10 + $0x2b0] sm:$0xff] }
 0x449   : > { %1602 = vmatpush.msra.mxu2 %v1551_v42  ;;  %1622 = vmatpush.msra.mxu3 %v1552_v43  ;;  %v587_v42 = vld [vmem:[#allocation10 + $0x120] sm:$0xff]  ;;  %6460 = vst [vmem:[#allocation40_spill] sm:$0xff] %v5560_v45  ;;  %v5564_v44 = vld [vmem:[#allocation10 + $0x90] sm:$0xff] }
 0x44a   : > { %1690 = vmatpush.msrb.mxu1 %v659_v38  ;;  %v651_v43 = vld [vmem:[#allocation10 + $0x320] sm:$0xff]  ;;  %1672 = vmatpush.msrb.mxu0 %v587_v42 }
 0x44b   : > { %1603 = vmatpush.msra.mxu2 %v1541_v7  ;;  %1623 = vmatpush.msra.mxu3 %v1542_v57  ;;  %v5486_v42 = vld [vmem:[#allocation10 + $0x20] sm:$0xff] }
 0x44c   : > { %1691 = vmatpush.msrb.mxu1 %v655_v41  ;;  %1673 = vmatpush.msrb.mxu0 %v583_v11  ;;  %v5492_v11 = vld [vmem:[#allocation10] sm:$0xff] }
 0x44d   : > { %v1526_v63 = vpop.permute.xlu0 %1525 }
 0x44e   : > { %v1528_v15 = vpop.permute.xlu1 %1527  ;;  %1692 = vmatpush.msrb.mxu1 %v651_v43  ;;  %1674 = vmatpush.msrb.mxu0 %v5438_v62  ;;  %v1482_v23 = vpop.permute.xlu2 %1481  ;;  %v5488_v43 = vld [vmem:[#allocation10 + $0x220] sm:$0xff] }
 0x44f   : > { %v1529_v59 = vsel %vm1335_vm5, %v1526_v63, %v1528_v15  ;;  %v1530_v18 = vsel %vm1335_vm5, %v1528_v15, %v1526_v63  ;;  %v5442_v63 = vld [vmem:[#allocation10 + $0x2c0] sm:$0xff] }
 0x450   : > { %v1531_v19 = vmul.f32 %v1529_v59, %v5279_v12  ;;  %v1532_v22 = vmul.f32 %v1530_v18, %v5282_v13  ;;  %1693 = vmatpush.msrb.mxu1 %v647_v61  ;;  %1675 = vmatpush.msrb.mxu0 %v5440_v4  ;;  %v5494_v61 = vld [vmem:[#allocation10 + $0x200] sm:$0xff]  ;;  %v5566_v13 = vld [vmem:[#allocation10 + $0x290] sm:$0xff] }
 0x451   : > { %6461 = vst [vmem:[#allocation41_spill] sm:$0xff] %v5566_v13  ;;  %v5570_v12 = vld [vmem:[#allocation10 + $0x70] sm:$0xff] }
 0x452   : > { %1604 = vmatpush.msra.mxu2 %v1531_v19  ;;  %1624 = vmatpush.msra.mxu3 %v1532_v22  ;;  %v5453_v19 = vld [vmem:[#allocation10 + $0xa0] sm:$0xff]  ;;  %6462 = vst [vmem:[#allocation42_spill] sm:$0xff] %v5570_v12 }
 0x453   : > { %1694 = vmatpush.msrb.mxu1 %v643_v55  ;;  %v5455_v22 = vld [vmem:[#allocation10 + $0x2a0] sm:$0xff]  ;;  %1676 = vmatpush.msrb.mxu0 %v5453_v19  ;;  %v600_v55 = vld [vmem:[#allocation10 + $0x188] sm:$0xff] }
 0x454   : > { %1605 = vmatpush.msra.mxu2 %v1521_v35  ;;  %1625 = vmatpush.msra.mxu3 %v1522_v36  ;;  %v5463_v35 = vld [vmem:[#allocation10 + $0x60] sm:$0xff] }
 0x455   : > { %v1514_v40 = vpop.permute.xlu0 %1513  ;;  %1695 = vmatpush.msrb.mxu1 %v5442_v63  ;;  %v5465_v36 = vld [vmem:[#allocation10 + $0x260] sm:$0xff]  ;;  %1677 = vmatpush.msrb.mxu0 %v5457_v28 }
 0x456   : > { %v1502_v47 = vpop.permute.xlu1 %1501  ;;  %v1515_v48 = vsel %vm1295_vm6, %v1512_v9, %v1514_v40  ;;  %v1516_v29 = vsel %vm1295_vm6, %v1514_v40, %v1512_v9 }
 0x457   : > { %v1505_v30 = vsel %vm1271_vm3, %v1502_v47, %v1504_v46  ;;  %v1506_v49 = vsel %vm1271_vm3, %v1504_v46, %v1502_v47  ;;  %v1517_v0 = vmul.f32 %v1516_v29, %v5286_v51  ;;  %v1518_v5 = vmul.f32 %v1515_v48, %v5289_v53  ;;  %1696 = vmatpush.msrb.mxu1 %v5455_v22  ;;  %v1565_v47 = vld [vmem:[%s6154_s6] sm:$0x3]  ;;  %v612_v48 = vld [vmem:[#allocation10 + $0x1e8] sm:$0xff]  ;;  %v5572_v53 = vld [vmem:[#allocation10 + $0x270] sm:$0xff] }
 0x458   : > { %v1507_v7 = vmul.f32 %v1506_v49, %v5253_v25  ;;  %v1508_v57 = vmul.f32 %v1505_v30, %v5256_v34  ;;  %1678 = vmatpush.msrb.mxu0 %v5463_v35  ;;  %v676_v29 = vld [vmem:[#allocation10 + $0x3e8] sm:$0xff]  ;;  %v5480_v30 = vld [vmem:[#allocation10 + $0x40] sm:$0xff]  ;;  %6463 = vst [vmem:[#allocation43_spill] sm:$0xff] %v5572_v53  ;;  %v5576_v51 = vld [vmem:[#allocation10 + $0x50] sm:$0xff] }
 0x459   : > { %1606 = vmatpush.msra.mxu2 %v1517_v0  ;;  %1626 = vmatpush.msra.mxu3 %v1518_v5  ;;  %v5482_v49 = vld [vmem:[#allocation10 + $0x240] sm:$0xff]  ;;  %v608_v0 = vld [vmem:[#allocation10 + $0x1c8] sm:$0xff]  ;;  %6464 = vst [vmem:[#allocation44_spill] sm:$0xff] %v5576_v51  ;;  %v5578_v34 = vld [vmem:[#allocation10 + $0x250] sm:$0xff] }
 0x45a   : > { %1697 = vmatpush.msrb.mxu1 %v5459_v33  ;;  %v672_v5 = vld [vmem:[#allocation10 + $0x3c8] sm:$0xff]  ;;  %1679 = vmatpush.msrb.mxu0 %v5480_v30  ;;  %6465 = vst [vmem:[#allocation45_spill] sm:$0xff] %v5578_v34  ;;  %v5582_v25 = vld [vmem:[#allocation10 + $0x30] sm:$0xff] }
 0x45b   : > { %1607 = vmatpush.msra.mxu2 %v1507_v7  ;;  %1627 = vmatpush.msra.mxu3 %v1508_v57  ;;  %v604_v7 = vld [vmem:[#allocation10 + $0x1a8] sm:$0xff]  ;;  %6466 = vst [vmem:[#allocation46_spill] sm:$0xff] %v5582_v25 }
 0x45c   : > { %1698 = vmatpush.msrb.mxu1 %v5465_v36  ;;  %v668_v57 = vld [vmem:[#allocation10 + $0x3a8] sm:$0xff]  ;;  %1680 = vmatpush.msrb.mxu0 %v5486_v42 }
 0x45d   : > { %v1492_v9 = vpop.permute.xlu0 %1491 }
 0x45e   : > { %v1494_v50 = vpop.permute.xlu1 %1493  ;;  %1699 = vmatpush.msrb.mxu1 %v5482_v49  ;;  %1681 = vmatpush.msrb.mxu0 %v5492_v11 }
 0x45f   : > { %v1495_v15 = vsel %vm1247_vm2, %v1492_v9, %v1494_v50  ;;  %v1496_v17 = vsel %vm1247_vm2, %v1494_v50, %v1492_v9  ;;  %v664_v9 = vld [vmem:[#allocation10 + $0x388] sm:$0xff]  ;;  %v5498_v50 = vld [vmem:[#allocation10 + $0x1f0] sm:$0xff] }
 0x460   : > { %v1497_v59 = vmul.f32 %v1496_v17, %v5240_v24  ;;  %v1498_v18 = vmul.f32 %v1495_v15, %v5243_v27  ;;  %1700 = vmatpush.msrb.mxu1 %v5488_v43  ;;  %v5500_v15 = vld [vmem:[#allocation10 + $0x3f0] sm:$0xff]  ;;  %v596_v17 = vld [vmem:[#allocation10 + $0x168] sm:$0xff]  ;;  %1746 = vmatpush.msra.mxu0 %v5498_v50 }
 0x461   : > { %v5584_v27 = vld [vmem:[#allocation10 + $0x230] sm:$0xff] }
 0x462   : > { %1608 = vmatpush.msra.mxu2 %v1497_v59  ;;  %1628 = vmatpush.msra.mxu3 %v1498_v18  ;;  %v660_v59 = vld [vmem:[#allocation10 + $0x368] sm:$0xff]  ;;  %6467 = vst [vmem:[#allocation47_spill] sm:$0xff] %v5584_v27 }
 0x463   : > { %1701 = vmatpush.msrb.mxu1 %v5494_v61  ;;  %v592_v18 = vld [vmem:[#allocation10 + $0x148] sm:$0xff] }
 0x465   : > { %v1484_v38 = vpop.permute.xlu0 %1483  ;;  %1766 = vmatpush.msra.mxu1 %v5500_v15 }
 0x466   : > { %v1485_v39 = vsel %vm1229_vm12, %v1482_v23, %v1484_v38  ;;  %v1486_v40 = vsel %vm1229_vm12, %v1484_v38, %v1482_v23  ;;  %v656_v23 = vld [vmem:[#allocation10 + $0x348] sm:$0xff]  ;;  %v1588_v24 = vpop.permute.xlu1 %1587 }
 0x467   : > { %v1487_v41 = vmul.f32 %v1486_v40, %v5341_v2  ;;  %v1488_v46 = vmul.f32 %v1485_v39, %v5344_v3  ;;  %v588_v38 = vld [vmem:[#allocation10 + $0x128] sm:$0xff]  ;;  %v646_v3 = vld [vmem:[#allocation10 + $0x2f8] sm:$0xff] }
 0x468   : > { %v652_v39 = vld [vmem:[#allocation10 + $0x328] sm:$0xff]  ;;  %v578_v2 = vld [vmem:[#allocation10 + $0xd8] sm:$0xff] }
 0x469   : > { %1609 = vmatpush.msra.mxu2 %v1487_v41  ;;  %1629 = vmatpush.msra.mxu3 %v1488_v46  ;;  %v584_v40 = vld [vmem:[#allocation10 + $0x108] sm:$0xff] }
 0x46a   : > { %3847 = vmatmul.msk.f32.vlgmr.msra.gmra.mxu2 %vm6288_vm14, %v1565_v47  ;;  %3848 = vmatmul.msk.f32.vlgmr.msra.gmra.mxu3 %vm6288_vm14, %v1565_v47  ;;  %v648_v41 = vld [vmem:[#allocation10 + $0x308] sm:$0xff] }
 0x46b   : > { %1706 = vmatpush.msrb.mxu2 %v612_v48  ;;  %1726 = vmatpush.msrb.mxu3 %v676_v29  ;;  %v580_v46 = vld [vmem:[#allocation10 + $0xe8] sm:$0xff] }
 0x46c   : > { %v644_v47 = vld [vmem:[#allocation10 + $0x2e8] sm:$0xff] }
 0x46d   : > { %1707 = vmatpush.msrb.mxu2 %v608_v0  ;;  %1727 = vmatpush.msrb.mxu3 %v672_v5  ;;  %v576_v48 = vld [vmem:[#allocation10 + $0xc8] sm:$0xff] }
 0x46e   : > { %v640_v29 = vld [vmem:[#allocation10 + $0x2c8] sm:$0xff] }
 0x46f   : > { %1708 = vmatpush.msrb.mxu2 %v604_v7  ;;  %1728 = vmatpush.msrb.mxu3 %v668_v57  ;;  %v572_v0 = vld [vmem:[#allocation10 + $0xa8] sm:$0xff] }
 0x470   : > { %v636_v5 = vld [vmem:[#allocation10 + $0x2a8] sm:$0xff] }
 0x471   : > { %1709 = vmatpush.msrb.mxu2 %v600_v55  ;;  %1729 = vmatpush.msrb.mxu3 %v664_v9  ;;  %v568_v7 = vld [vmem:[#allocation10 + $0x88] sm:$0xff] }
 0x472   : > { %v632_v57 = vld [vmem:[#allocation10 + $0x288] sm:$0xff] }
 0x473   : > { %1710 = vmatpush.msrb.mxu2 %v596_v17  ;;  %1730 = vmatpush.msrb.mxu3 %v660_v59  ;;  %v564_v55 = vld [vmem:[#allocation10 + $0x68] sm:$0xff] }
 0x474   : > { %v628_v9 = vld [vmem:[#allocation10 + $0x268] sm:$0xff] }
 0x475   : > { %1711 = vmatpush.msrb.mxu2 %v592_v18  ;;  %1731 = vmatpush.msrb.mxu3 %v656_v23  ;;  %v560_v17 = vld [vmem:[#allocation10 + $0x48] sm:$0xff] }
 0x476   : > { %v624_v59 = vld [vmem:[#allocation10 + $0x248] sm:$0xff] }
 0x477   : > { %1712 = vmatpush.msrb.mxu2 %v588_v38  ;;  %1732 = vmatpush.msrb.mxu3 %v652_v39  ;;  %v556_v18 = vld [vmem:[#allocation10 + $0x28] sm:$0xff] }
 0x478   : > { %v620_v23 = vld [vmem:[#allocation10 + $0x228] sm:$0xff] }
 0x479   : > { %1713 = vmatpush.msrb.mxu2 %v584_v40  ;;  %1733 = vmatpush.msrb.mxu3 %v648_v41  ;;  %v552_v38 = vld [vmem:[#allocation10 + $0x8] sm:$0xff]  ;;  %v614_v40 = vld [vmem:[#allocation10 + $0x1f8] sm:$0xff] }
 0x47a   : > { %v616_v39 = vld [vmem:[#allocation10 + $0x208] sm:$0xff]  ;;  %v678_v41 = vld [vmem:[#allocation10 + $0x3f8] sm:$0xff] }
 0x47b   : > { %1714 = vmatpush.msrb.mxu2 %v580_v46  ;;  %1734 = vmatpush.msrb.mxu3 %v644_v47  ;;  %v5506_v46 = vld [vmem:[#allocation10 + $0x1d0] sm:$0xff] }
 0x47c   : > { %v5508_v47 = vld [vmem:[#allocation10 + $0x3d0] sm:$0xff]  ;;  %1747 = vmatpush.msra.mxu0 %v5506_v46 }
 0x47d   : > { %1715 = vmatpush.msrb.mxu2 %v576_v48  ;;  %1735 = vmatpush.msrb.mxu3 %v640_v29  ;;  %v610_v48 = vld [vmem:[#allocation10 + $0x1d8] sm:$0xff] }
 0x47e   : > { %1767 = vmatpush.msra.mxu1 %v5508_v47  ;;  %v674_v29 = vld [vmem:[#allocation10 + $0x3d8] sm:$0xff] }
 0x47f   : > { %1716 = vmatpush.msrb.mxu2 %v572_v0  ;;  %1736 = vmatpush.msrb.mxu3 %v636_v5  ;;  %v5512_v0 = vld [vmem:[#allocation10 + $0x1b0] sm:$0xff] }
 0x480   : > { %v5514_v5 = vld [vmem:[#allocation10 + $0x3b0] sm:$0xff]  ;;  %1748 = vmatpush.msra.mxu0 %v5512_v0 }
 0x481   : > { %1717 = vmatpush.msrb.mxu2 %v568_v7  ;;  %1737 = vmatpush.msrb.mxu3 %v632_v57  ;;  %v606_v7 = vld [vmem:[#allocation10 + $0x1b8] sm:$0xff] }
 0x482   : > { %1768 = vmatpush.msra.mxu1 %v5514_v5  ;;  %v670_v57 = vld [vmem:[#allocation10 + $0x3b8] sm:$0xff] }
 0x483   : > { %1718 = vmatpush.msrb.mxu2 %v564_v55  ;;  %1738 = vmatpush.msrb.mxu3 %v628_v9  ;;  %v5518_v55 = vld [vmem:[#allocation10 + $0x190] sm:$0xff] }
 0x484   : > { %v5520_v9 = vld [vmem:[#allocation10 + $0x390] sm:$0xff]  ;;  %1749 = vmatpush.msra.mxu0 %v5518_v55 }
 0x485   : > { %1719 = vmatpush.msrb.mxu2 %v560_v17  ;;  %1739 = vmatpush.msrb.mxu3 %v624_v59  ;;  %v602_v17 = vld [vmem:[#allocation10 + $0x198] sm:$0xff] }
 0x486   : > { %1769 = vmatpush.msra.mxu1 %v5520_v9  ;;  %v666_v59 = vld [vmem:[#allocation10 + $0x398] sm:$0xff] }
 0x487   : > { %1720 = vmatpush.msrb.mxu2 %v556_v18  ;;  %1740 = vmatpush.msrb.mxu3 %v620_v23  ;;  %v5524_v18 = vld [vmem:[#allocation10 + $0x170] sm:$0xff] }
 0x488   : > { %v5526_v23 = vld [vmem:[#allocation10 + $0x370] sm:$0xff]  ;;  %1750 = vmatpush.msra.mxu0 %v5524_v18 }
 0x489   : > { %1721 = vmatpush.msrb.mxu2 %v552_v38  ;;  %1741 = vmatpush.msrb.mxu3 %v616_v39  ;;  %v598_v38 = vld [vmem:[#allocation10 + $0x178] sm:$0xff] }
 0x48a   : > { %1770 = vmatpush.msra.mxu1 %v5526_v23  ;;  %v662_v39 = vld [vmem:[#allocation10 + $0x378] sm:$0xff] }
 0x48b   : > { %1786 = vmatpush.msra.mxu2 %v614_v40  ;;  %1806 = vmatpush.msra.mxu3 %v678_v41  ;;  %v5530_v40 = vld [vmem:[#allocation10 + $0x150] sm:$0xff] }
 0x48c   : > { %v5532_v41 = vld [vmem:[#allocation10 + $0x350] sm:$0xff]  ;;  %1751 = vmatpush.msra.mxu0 %v5530_v40 }
 0x48d   : > { %1787 = vmatpush.msra.mxu2 %v610_v48  ;;  %1807 = vmatpush.msra.mxu3 %v674_v29  ;;  %v594_v48 = vld [vmem:[#allocation10 + $0x158] sm:$0xff] }
 0x48e   : > { %1771 = vmatpush.msra.mxu1 %v5532_v41  ;;  %v658_v29 = vld [vmem:[#allocation10 + $0x358] sm:$0xff] }
 0x48f   : > { %1788 = vmatpush.msra.mxu2 %v606_v7  ;;  %1808 = vmatpush.msra.mxu3 %v670_v57  ;;  %v5536_v7 = vld [vmem:[#allocation10 + $0x130] sm:$0xff] }
 0x490   : > { %v5538_v57 = vld [vmem:[#allocation10 + $0x330] sm:$0xff]  ;;  %1752 = vmatpush.msra.mxu0 %v5536_v7 }
 0x491   : > { %1789 = vmatpush.msra.mxu2 %v602_v17  ;;  %1809 = vmatpush.msra.mxu3 %v666_v59  ;;  %v590_v17 = vld [vmem:[#allocation10 + $0x138] sm:$0xff] }
 0x492   : > { %1772 = vmatpush.msra.mxu1 %v5538_v57  ;;  %v654_v59 = vld [vmem:[#allocation10 + $0x338] sm:$0xff] }
 0x493   : > { %1790 = vmatpush.msra.mxu2 %v598_v38  ;;  %1810 = vmatpush.msra.mxu3 %v662_v39  ;;  %v5542_v38 = vld [vmem:[#allocation10 + $0x110] sm:$0xff] }
 0x494   : > { %v5544_v39 = vld [vmem:[#allocation10 + $0x310] sm:$0xff]  ;;  %1753 = vmatpush.msra.mxu0 %v5542_v38 }
 0x495   : > { %1791 = vmatpush.msra.mxu2 %v594_v48  ;;  %1811 = vmatpush.msra.mxu3 %v658_v29  ;;  %v650_v48 = vld [vmem:[#allocation10 + $0x318] sm:$0xff]  ;;  %v5548_v29 = vld [vmem:[#allocation10 + $0xf0] sm:$0xff] }
 0x496   : > { %1773 = vmatpush.msra.mxu1 %v5544_v39  ;;  %1754 = vmatpush.msra.mxu0 %v5548_v29 }
 0x497   : > { %1792 = vmatpush.msra.mxu2 %v590_v17  ;;  %1812 = vmatpush.msra.mxu3 %v654_v59  ;;  %v5552_v17 = vld [vmem:[#allocation10 + $0xd0] sm:$0xff] }
 0x498   : > { %1774 = vmatpush.msra.mxu1 %v5550_v8  ;;  %v5556_v59 = vld [vmem:[#allocation10 + $0x2d0] sm:$0xff]  ;;  %1755 = vmatpush.msra.mxu0 %v5552_v17 }
 0x499   : > { %1793 = vmatpush.msra.mxu2 %v586_v32  ;;  %1813 = vmatpush.msra.mxu3 %v650_v48  ;;  %v574_v32 = vld [vmem:[#allocation10 + $0xb8] sm:$0xff] }
 0x49a   : > { %1775 = vmatpush.msra.mxu1 %v5556_v59  ;;  %v638_v48 = vld [vmem:[#allocation10 + $0x2b8] sm:$0xff]  ;;  %1756 = vmatpush.msra.mxu0 %v5558_v31 }
 0x49b   : > { %1794 = vmatpush.msra.mxu2 %v582_v10  ;;  %1814 = vmatpush.msra.mxu3 %v646_v3  ;;  %v570_v10 = vld [vmem:[#allocation10 + $0x98] sm:$0xff] }
 0x49c   : > { %1776 = vmatpush.msra.mxu1 %v5560_v45  ;;  %v634_v3 = vld [vmem:[#allocation10 + $0x298] sm:$0xff]  ;;  %1757 = vmatpush.msra.mxu0 %v5564_v44 }
 0x49d   : > { %1795 = vmatpush.msra.mxu2 %v578_v2  ;;  %1815 = vmatpush.msra.mxu3 %v642_v54  ;;  %v566_v54 = vld [vmem:[#allocation10 + $0x78] sm:$0xff] }
 0x49e   : > { %1777 = vmatpush.msra.mxu1 %v5566_v13  ;;  %v630_v2 = vld [vmem:[#allocation10 + $0x278] sm:$0xff]  ;;  %1758 = vmatpush.msra.mxu0 %v5570_v12 }
 0x49f   : > { %1796 = vmatpush.msra.mxu2 %v574_v32  ;;  %1816 = vmatpush.msra.mxu3 %v638_v48  ;;  %v562_v32 = vld [vmem:[#allocation10 + $0x58] sm:$0xff] }
 0x4a0   : > { %1778 = vmatpush.msra.mxu1 %v5572_v53  ;;  %v626_v48 = vld [vmem:[#allocation10 + $0x258] sm:$0xff]  ;;  %1759 = vmatpush.msra.mxu0 %v5576_v51 }
 0x4a1   : > { %1797 = vmatpush.msra.mxu2 %v570_v10  ;;  %1817 = vmatpush.msra.mxu3 %v634_v3  ;;  %v558_v10 = vld [vmem:[#allocation10 + $0x38] sm:$0xff] }
 0x4a2   : > { %1779 = vmatpush.msra.mxu1 %v5578_v34  ;;  %v622_v3 = vld [vmem:[#allocation10 + $0x238] sm:$0xff]  ;;  %1760 = vmatpush.msra.mxu0 %v5582_v25 }
 0x4a3   : > { %1798 = vmatpush.msra.mxu2 %v566_v54  ;;  %1818 = vmatpush.msra.mxu3 %v630_v2  ;;  %v554_v54 = vld [vmem:[#allocation10 + $0x18] sm:$0xff] }
 0x4a4   : > { %1780 = vmatpush.msra.mxu1 %v5584_v27  ;;  %v618_v2 = vld [vmem:[#allocation10 + $0x218] sm:$0xff]  ;;  %1761 = vmatpush.msra.mxu0 %v5588_v20 }
 0x4a5   : > { %1799 = vmatpush.msra.mxu2 %v562_v32  ;;  %1819 = vmatpush.msra.mxu3 %v626_v48 }
 0x4a6   : > { %1781 = vmatpush.msra.mxu1 %v5590_v14 }
 0x4a7   : > { %1800 = vmatpush.msra.mxu2 %v558_v10  ;;  %1820 = vmatpush.msra.mxu3 %v622_v3 }
 0x4a9   : > { %1801 = vmatpush.msra.mxu2 %v554_v54  ;;  %1821 = vmatpush.msra.mxu3 %v618_v2 }
 0x4ed   : > { %v1611_v37 = vpop.f32.mrf.mxu2  ;;  %v1631_v52 = vpop.f32.mrf.mxu3 }
 0x4ee   : > { %v1612_v16 = vadd.f32 %v1611_v37, %v1588_v24  ;;  %v1632_v6 = vadd.f32 %v1631_v52, %v1588_v24 }
 0x4f0   : > { %v1634_v32 = vmul.f32 %v1612_v16, %v5195_v1  ;;  %v1635_v48 = vmul.f32 %v1632_v6, %v5195_v1 }
 0x4f2   : > { %v1636_v27 = vadd.f32 %v1634_v32, %v5185_v56  ;;  %v1637_v34 = vadd.f32 %v1635_v48, %v5185_v56 }
 0x4f4   : > { %v1638_v53 = vperm.slane %v1636_v27, 0  ;;  %v1642_v25 = vperm.slane %v1636_v27, 1  ;;  %v1639_v10 = vperm.slane %v1637_v34, 0  ;;  %v1643_v3 = vperm.slane %v1637_v34, 1 }
 0x4f6   : > { %v1640_v52 = vmul.f32 %v1638_v53, %v5144_v58  ;;  %v1644_v37 = vmul.f32 %v1642_v25, %v5147_v60  ;;  %v1650_v24 = vmul.f32 %v1638_v53, %v5147_v60  ;;  %v1652_v54 = vmul.f32 %v1642_v25, %v5144_v58  ;;  %v3928_v58 = vld [vmem:[#allocation8 + $0x1e0] sm:$0xff]  ;;  %v5627_v60 = vld [vmem:[#allocation5 + $0x8] sm:$0xff] }
 0x4f7   : > { %v1641_v16 = vmul.f32 %v1639_v10, %v5154_v21  ;;  %v1645_v6 = vmul.f32 %v1643_v3, %v5159_v26  ;;  %v1651_v1 = vmul.f32 %v1639_v10, %v5159_v26  ;;  %v1653_v56 = vmul.f32 %v1643_v3, %v5154_v21  ;;  %v3929_v10 = vld [vmem:[#allocation8 + $0x1e8] sm:$0xff]  ;;  %v3930_v3 = vld [vmem:[#allocation8 + $0x3e0] sm:$0xff] }
 0x4f8   : > { %v1646_v2 = vsub.f32 %v1640_v52, %v1644_v37  ;;  %v1654_v27 = vadd.f32 %v1652_v54, %v1650_v24  ;;  %v3931_v52 = vld [vmem:[#allocation8 + $0x3e8] sm:$0xff]  ;;  %v3932_v37 = vld [vmem:[#allocation8 + $0x1c0] sm:$0xff]  ;;  %v5623_v21 = vstv %s422_s13 }
 0x4f9   : > { %v1647_v32 = vsub.f32 %v1641_v16, %v1645_v6  ;;  %v1655_v34 = vadd.f32 %v1653_v56, %v1651_v1  ;;  %v3933_v24 = vld [vmem:[#allocation8 + $0x1c8] sm:$0xff]  ;;  %v3934_v54 = vld [vmem:[#allocation8 + $0x3c0] sm:$0xff] }
 0x4fa   : > { %1648 = vst [vmem:[#allocation6] sm:$0xf] %v1646_v2  ;;  %v1658_v48 = vrot.slane %v1654_v27, 4  ;;  %v3936_v16 = vld [vmem:[#allocation8 + $0x1a0] sm:$0xff]  ;;  %v3937_v6 = vld [vmem:[#allocation8 + $0x1a8] sm:$0xff] }
 0x4fb   : > { %1649 = vst [vmem:[#allocation6 + $0x8] sm:$0xf] %v1647_v32  ;;  %v1659_v14 = vrot.slane %v1655_v34, 4  ;;  %v3938_v1 = vld [vmem:[#allocation8 + $0x3a0] sm:$0xff]  ;;  %v3941_v2 = vld [vmem:[#allocation8 + $0x188] sm:$0xff] }
 0x4fc   : > { %1662 = vst [vmem:[#allocation6] sm:$0xf0] %v1658_v48  ;;  %v3940_v56 = vld [vmem:[#allocation8 + $0x180] sm:$0xff]  ;;  %v3943_v32 = vld [vmem:[#allocation8 + $0x388] sm:$0xff] }
 0x4fd   : > { %1663 = vst [vmem:[#allocation6 + $0x8] sm:$0xf0] %v1659_v14  ;;  %v3935_v14 = vld [vmem:[#allocation8 + $0x3c8] sm:$0xff]  ;;  %v3942_v27 = vld [vmem:[#allocation8 + $0x380] sm:$0xff] }
 0x4fe   : > { %v3944_v34 = vld [vmem:[#allocation8 + $0x160] sm:$0xff]  ;;  %v3945_v48 = vld [vmem:[#allocation8 + $0x168] sm:$0xff] }
 0x503   : > { %v1664_v53 = vld [vmem:[#allocation6] sm:$0xff] }
 0x504   : > { %1682 = vmatmul.f32.vlgmr.msrb.gmra.mxu0 %v1664_v53  ;;  %v1665_v25 = vld [vmem:[#allocation6 + $0x8] sm:$0xff]  ;;  %1722 = vmatmul.f32.vlgmr.msrb.gmra.mxu2 %v1664_v53 }
 0x505   : > { %1702 = vmatmul.f32.vlgmr.msrb.gmra.mxu1 %v1665_v25  ;;  %1742 = vmatmul.f32.vlgmr.msrb.gmra.mxu3 %v1665_v25 }
 0x506   : > { %1901 = vmatpush.msrb.mxu0 %v3928_v58  ;;  %1941 = vmatpush.msrb.mxu2 %v3929_v10  ;;  %v3939_v58 = vld [vmem:[#allocation8 + $0x3a8] sm:$0xff]  ;;  %v3946_v10 = vld [vmem:[#allocation8 + $0x360] sm:$0xff] }
 0x507   : > { %1921 = vmatpush.msrb.mxu1 %v3930_v3  ;;  %1961 = vmatpush.msrb.mxu3 %v3931_v52  ;;  %v3947_v3 = vld [vmem:[#allocation8 + $0x368] sm:$0xff]  ;;  %v3948_v52 = vld [vmem:[#allocation8 + $0x140] sm:$0xff] }
 0x508   : > { %1902 = vmatpush.msrb.mxu0 %v3932_v37  ;;  %1942 = vmatpush.msrb.mxu2 %v3933_v24  ;;  %v3951_v37 = vld [vmem:[#allocation8 + $0x348] sm:$0xff]  ;;  %v3952_v24 = vld [vmem:[#allocation8 + $0x120] sm:$0xff] }
 0x509   : > { %1922 = vmatpush.msrb.mxu1 %v3934_v54  ;;  %1962 = vmatpush.msrb.mxu3 %v3935_v14  ;;  %v3953_v54 = vld [vmem:[#allocation8 + $0x128] sm:$0xff]  ;;  %v3954_v14 = vld [vmem:[#allocation8 + $0x320] sm:$0xff] }
 0x50a   : > { %1903 = vmatpush.msrb.mxu0 %v3936_v16  ;;  %1943 = vmatpush.msrb.mxu2 %v3937_v6  ;;  %v3955_v16 = vld [vmem:[#allocation8 + $0x328] sm:$0xff]  ;;  %v3956_v6 = vld [vmem:[#allocation8 + $0x100] sm:$0xff] }
 0x50b   : > { %1923 = vmatpush.msrb.mxu1 %v3938_v1  ;;  %1963 = vmatpush.msrb.mxu3 %v3939_v58  ;;  %v3957_v1 = vld [vmem:[#allocation8 + $0x108] sm:$0xff]  ;;  %v3958_v58 = vld [vmem:[#allocation8 + $0x300] sm:$0xff] }
 0x50c   : > { %1762 = vmatmul.f32.vlgmr.msra.gmra.mxu0 %v1664_v53  ;;  %1802 = vmatmul.f32.vlgmr.msra.gmra.mxu2 %v1664_v53  ;;  %v3949_v53 = vld [vmem:[#allocation8 + $0x148] sm:$0xff] }
 0x50d   : > { %1782 = vmatmul.f32.vlgmr.msra.gmra.mxu1 %v1665_v25  ;;  %1822 = vmatmul.f32.vlgmr.msra.gmra.mxu3 %v1665_v25  ;;  %v3950_v25 = vld [vmem:[#allocation8 + $0x340] sm:$0xff] }
 0x50e   : > { %1904 = vmatpush.msrb.mxu0 %v3940_v56  ;;  %1944 = vmatpush.msrb.mxu2 %v3941_v2  ;;  %v3959_v56 = vld [vmem:[#allocation8 + $0x308] sm:$0xff]  ;;  %v3960_v2 = vld [vmem:[#allocation8 + $0xe0] sm:$0xff] }
 0x50f   : > { %1924 = vmatpush.msrb.mxu1 %v3942_v27  ;;  %1964 = vmatpush.msrb.mxu3 %v3943_v32  ;;  %v3961_v27 = vld [vmem:[#allocation8 + $0xe8] sm:$0xff]  ;;  %v3962_v32 = vld [vmem:[#allocation8 + $0x2e0] sm:$0xff] }
 0x510   : > { %1905 = vmatpush.msrb.mxu0 %v3944_v34  ;;  %1945 = vmatpush.msrb.mxu2 %v3945_v48  ;;  %v3963_v34 = vld [vmem:[#allocation8 + $0x2e8] sm:$0xff]  ;;  %v3964_v48 = vld [vmem:[#allocation8 + $0xc0] sm:$0xff] }
 0x511   : > { %1925 = vmatpush.msrb.mxu1 %v3946_v10  ;;  %1965 = vmatpush.msrb.mxu3 %v3947_v3  ;;  %v3965_v10 = vld [vmem:[#allocation8 + $0xc8] sm:$0xff]  ;;  %v3966_v3 = vld [vmem:[#allocation8 + $0x2c0] sm:$0xff] }
 0x512   : > { %1906 = vmatpush.msrb.mxu0 %v3948_v52  ;;  %1946 = vmatpush.msrb.mxu2 %v3949_v53  ;;  %v3967_v52 = vld [vmem:[#allocation8 + $0x2c8] sm:$0xff]  ;;  %v3968_v53 = vld [vmem:[#allocation8 + $0xa0] sm:$0xff] }
 0x513   : > { %1926 = vmatpush.msrb.mxu1 %v3950_v25  ;;  %1966 = vmatpush.msrb.mxu3 %v3951_v37  ;;  %v3969_v25 = vld [vmem:[#allocation8 + $0xa8] sm:$0xff]  ;;  %v3970_v37 = vld [vmem:[#allocation8 + $0x2a0] sm:$0xff] }
 0x514   : > { %1907 = vmatpush.msrb.mxu0 %v3952_v24  ;;  %1947 = vmatpush.msrb.mxu2 %v3953_v54  ;;  %v3971_v24 = vld [vmem:[#allocation8 + $0x2a8] sm:$0xff]  ;;  %v3972_v54 = vld [vmem:[#allocation8 + $0x80] sm:$0xff] }
 0x515   : > { %1927 = vmatpush.msrb.mxu1 %v3954_v14  ;;  %1967 = vmatpush.msrb.mxu3 %v3955_v16  ;;  %v3973_v14 = vld [vmem:[#allocation8 + $0x88] sm:$0xff]  ;;  %v3974_v16 = vld [vmem:[#allocation8 + $0x280] sm:$0xff] }
 0x516   : > { %1908 = vmatpush.msrb.mxu0 %v3956_v6  ;;  %1948 = vmatpush.msrb.mxu2 %v3957_v1  ;;  %v3975_v6 = vld [vmem:[#allocation8 + $0x288] sm:$0xff]  ;;  %v3976_v1 = vld [vmem:[#allocation8 + $0x60] sm:$0xff] }
 0x517   : > { %1928 = vmatpush.msrb.mxu1 %v3958_v58  ;;  %1968 = vmatpush.msrb.mxu3 %v3959_v56  ;;  %v3977_v58 = vld [vmem:[#allocation8 + $0x68] sm:$0xff]  ;;  %v3978_v56 = vld [vmem:[#allocation8 + $0x260] sm:$0xff] }
 0x518   : > { %1909 = vmatpush.msrb.mxu0 %v3960_v2  ;;  %1949 = vmatpush.msrb.mxu2 %v3961_v27  ;;  %v3979_v2 = vld [vmem:[#allocation8 + $0x268] sm:$0xff]  ;;  %v3980_v27 = vld [vmem:[#allocation8 + $0x40] sm:$0xff] }
 0x519   : > { %1929 = vmatpush.msrb.mxu1 %v3962_v32  ;;  %1969 = vmatpush.msrb.mxu3 %v3963_v34  ;;  %v3981_v32 = vld [vmem:[#allocation8 + $0x48] sm:$0xff]  ;;  %v3982_v34 = vld [vmem:[#allocation8 + $0x240] sm:$0xff] }
 0x51a   : > { %1910 = vmatpush.msrb.mxu0 %v3964_v48  ;;  %1950 = vmatpush.msrb.mxu2 %v3965_v10  ;;  %v3983_v48 = vld [vmem:[#allocation8 + $0x248] sm:$0xff]  ;;  %v3984_v10 = vld [vmem:[#allocation8 + $0x20] sm:$0xff] }
 0x51b   : > { %1930 = vmatpush.msrb.mxu1 %v3966_v3  ;;  %1970 = vmatpush.msrb.mxu3 %v3967_v52  ;;  %v3985_v3 = vld [vmem:[#allocation8 + $0x28] sm:$0xff]  ;;  %v3986_v52 = vld [vmem:[#allocation8 + $0x220] sm:$0xff] }
 0x51c   : > { %1911 = vmatpush.msrb.mxu0 %v3968_v53  ;;  %1951 = vmatpush.msrb.mxu2 %v3969_v25  ;;  %v3987_v53 = vld [vmem:[#allocation8 + $0x228] sm:$0xff]  ;;  %v3988_v25 = vld [vmem:[#allocation8] sm:$0xff] }
 0x51d   : > { %1931 = vmatpush.msrb.mxu1 %v3970_v37  ;;  %1971 = vmatpush.msrb.mxu3 %v3971_v24  ;;  %v3989_v37 = vld [vmem:[#allocation8 + $0x8] sm:$0xff]  ;;  %v3990_v24 = vld [vmem:[#allocation8 + $0x1f0] sm:$0xff] }
 0x51e   : > { %1912 = vmatpush.msrb.mxu0 %v3972_v54  ;;  %1952 = vmatpush.msrb.mxu2 %v3973_v14  ;;  %v3991_v54 = vld [vmem:[#allocation8 + $0x1f8] sm:$0xff]  ;;  %v3992_v14 = vld [vmem:[#allocation8 + $0x200] sm:$0xff] }
 0x51f   : > { %1932 = vmatpush.msrb.mxu1 %v3974_v16  ;;  %1972 = vmatpush.msrb.mxu3 %v3975_v6  ;;  %v3993_v16 = vld [vmem:[#allocation8 + $0x208] sm:$0xff]  ;;  %v3994_v6 = vld [vmem:[#allocation8 + $0x1d0] sm:$0xff] }
 0x520   : > { %1913 = vmatpush.msrb.mxu0 %v3976_v1  ;;  %1953 = vmatpush.msrb.mxu2 %v3977_v58  ;;  %v3995_v1 = vld [vmem:[#allocation8 + $0x1d8] sm:$0xff]  ;;  %v3996_v58 = vld [vmem:[#allocation8 + $0x3f0] sm:$0xff] }
 0x521   : > { %1933 = vmatpush.msrb.mxu1 %v3978_v56  ;;  %1973 = vmatpush.msrb.mxu3 %v3979_v2  ;;  %v3997_v56 = vld [vmem:[#allocation8 + $0x3f8] sm:$0xff]  ;;  %v3998_v2 = vld [vmem:[#allocation8 + $0x1b0] sm:$0xff] }
 0x522   : > { %1914 = vmatpush.msrb.mxu0 %v3980_v27  ;;  %1954 = vmatpush.msrb.mxu2 %v3981_v32  ;;  %v3999_v27 = vld [vmem:[#allocation8 + $0x1b8] sm:$0xff]  ;;  %v4000_v32 = vld [vmem:[#allocation8 + $0x3d0] sm:$0xff] }
 0x523   : > { %1934 = vmatpush.msrb.mxu1 %v3982_v34  ;;  %1974 = vmatpush.msrb.mxu3 %v3983_v48  ;;  %v4001_v34 = vld [vmem:[#allocation8 + $0x3d8] sm:$0xff]  ;;  %v4002_v48 = vld [vmem:[#allocation8 + $0x190] sm:$0xff] }
 0x524   : > { %1915 = vmatpush.msrb.mxu0 %v3984_v10  ;;  %1955 = vmatpush.msrb.mxu2 %v3985_v3  ;;  %v4003_v10 = vld [vmem:[#allocation8 + $0x198] sm:$0xff]  ;;  %v4004_v3 = vld [vmem:[#allocation8 + $0x3b0] sm:$0xff] }
 0x525   : > { %1935 = vmatpush.msrb.mxu1 %v3986_v52  ;;  %1975 = vmatpush.msrb.mxu3 %v3987_v53  ;;  %v4005_v52 = vld [vmem:[#allocation8 + $0x3b8] sm:$0xff]  ;;  %v4006_v53 = vld [vmem:[#allocation8 + $0x170] sm:$0xff] }
 0x526   : > { %1916 = vmatpush.msrb.mxu0 %v3988_v25  ;;  %1956 = vmatpush.msrb.mxu2 %v3989_v37  ;;  %v4007_v25 = vld [vmem:[#allocation8 + $0x178] sm:$0xff]  ;;  %v4008_v37 = vld [vmem:[#allocation8 + $0x390] sm:$0xff] }
 0x527   : > { %1936 = vmatpush.msrb.mxu1 %v3992_v14  ;;  %1976 = vmatpush.msrb.mxu3 %v3993_v16  ;;  %v4011_v14 = vld [vmem:[#allocation8 + $0x158] sm:$0xff]  ;;  %v4012_v16 = vld [vmem:[#allocation8 + $0x370] sm:$0xff] }
 0x528   : > { %1981 = vmatpush.msra.mxu0 %v3990_v24  ;;  %2021 = vmatpush.msra.mxu2 %v3991_v54  ;;  %v4009_v24 = vld [vmem:[#allocation8 + $0x398] sm:$0xff]  ;;  %v4010_v54 = vld [vmem:[#allocation8 + $0x150] sm:$0xff] }
 0x529   : > { %2001 = vmatpush.msra.mxu1 %v3996_v58  ;;  %2041 = vmatpush.msra.mxu3 %v3997_v56  ;;  %v4015_v58 = vld [vmem:[#allocation8 + $0x138] sm:$0xff]  ;;  %v4016_v56 = vld [vmem:[#allocation8 + $0x350] sm:$0xff] }
 0x52a   : > { %1982 = vmatpush.msra.mxu0 %v3994_v6  ;;  %2022 = vmatpush.msra.mxu2 %v3995_v1  ;;  %v4013_v6 = vld [vmem:[#allocation8 + $0x378] sm:$0xff]  ;;  %v4014_v1 = vld [vmem:[#allocation8 + $0x130] sm:$0xff] }
 0x52b   : > { %2002 = vmatpush.msra.mxu1 %v4000_v32  ;;  %2042 = vmatpush.msra.mxu3 %v4001_v34  ;;  %v4019_v32 = vld [vmem:[#allocation8 + $0x118] sm:$0xff]  ;;  %v4020_v34 = vld [vmem:[#allocation8 + $0x330] sm:$0xff] }
 0x52c   : > { %1983 = vmatpush.msra.mxu0 %v3998_v2  ;;  %2023 = vmatpush.msra.mxu2 %v3999_v27  ;;  %v4017_v2 = vld [vmem:[#allocation8 + $0x358] sm:$0xff]  ;;  %v4018_v27 = vld [vmem:[#allocation8 + $0x110] sm:$0xff] }
 0x52d   : > { %2003 = vmatpush.msra.mxu1 %v4004_v3  ;;  %2043 = vmatpush.msra.mxu3 %v4005_v52  ;;  %v4023_v3 = vld [vmem:[#allocation8 + $0xf8] sm:$0xff]  ;;  %v4024_v52 = vld [vmem:[#allocation8 + $0x310] sm:$0xff] }
 0x52e   : > { %1984 = vmatpush.msra.mxu0 %v4002_v48  ;;  %2024 = vmatpush.msra.mxu2 %v4003_v10  ;;  %v4021_v48 = vld [vmem:[#allocation8 + $0x338] sm:$0xff]  ;;  %v4022_v10 = vld [vmem:[#allocation8 + $0xf0] sm:$0xff] }
 0x52f   : > { %2004 = vmatpush.msra.mxu1 %v4008_v37  ;;  %2044 = vmatpush.msra.mxu3 %v4009_v24  ;;  %v4027_v37 = vld [vmem:[#allocation8 + $0xd8] sm:$0xff]  ;;  %v4028_v24 = vld [vmem:[#allocation8 + $0x2f0] sm:$0xff] }
 0x530   : > { %1985 = vmatpush.msra.mxu0 %v4006_v53  ;;  %2025 = vmatpush.msra.mxu2 %v4007_v25  ;;  %v4025_v53 = vld [vmem:[#allocation8 + $0x318] sm:$0xff]  ;;  %v4026_v25 = vld [vmem:[#allocation8 + $0xd0] sm:$0xff] }
 0x531   : > { %2005 = vmatpush.msra.mxu1 %v4012_v16  ;;  %2045 = vmatpush.msra.mxu3 %v4013_v6  ;;  %v4031_v16 = vld [vmem:[#allocation8 + $0xb8] sm:$0xff]  ;;  %v4032_v6 = vld [vmem:[#allocation8 + $0x2d0] sm:$0xff] }
 0x532   : > { %1986 = vmatpush.msra.mxu0 %v4010_v54  ;;  %2026 = vmatpush.msra.mxu2 %v4011_v14  ;;  %v4029_v54 = vld [vmem:[#allocation8 + $0x2f8] sm:$0xff]  ;;  %v4030_v14 = vld [vmem:[#allocation8 + $0xb0] sm:$0xff] }
 0x533   : > { %2006 = vmatpush.msra.mxu1 %v4016_v56  ;;  %2046 = vmatpush.msra.mxu3 %v4017_v2  ;;  %v4035_v56 = vld [vmem:[#allocation8 + $0x98] sm:$0xff]  ;;  %v4036_v2 = vld [vmem:[#allocation8 + $0x2b0] sm:$0xff] }
 0x534   : > { %1987 = vmatpush.msra.mxu0 %v4014_v1  ;;  %2027 = vmatpush.msra.mxu2 %v4015_v58  ;;  %v4033_v1 = vld [vmem:[#allocation8 + $0x2d8] sm:$0xff]  ;;  %v4034_v58 = vld [vmem:[#allocation8 + $0x90] sm:$0xff] }
 0x535   : > { %2007 = vmatpush.msra.mxu1 %v4020_v34  ;;  %2047 = vmatpush.msra.mxu3 %v4021_v48  ;;  %v4039_v34 = vld [vmem:[#allocation8 + $0x78] sm:$0xff]  ;;  %v4040_v48 = vld [vmem:[#allocation8 + $0x290] sm:$0xff] }
 0x536   : > { %1988 = vmatpush.msra.mxu0 %v4018_v27  ;;  %2028 = vmatpush.msra.mxu2 %v4019_v32  ;;  %v4037_v27 = vld [vmem:[#allocation8 + $0x2b8] sm:$0xff]  ;;  %v4038_v32 = vld [vmem:[#allocation8 + $0x70] sm:$0xff] }
 0x537   : > { %2008 = vmatpush.msra.mxu1 %v4024_v52  ;;  %2048 = vmatpush.msra.mxu3 %v4025_v53  ;;  %v4043_v52 = vld [vmem:[#allocation8 + $0x58] sm:$0xff]  ;;  %v4044_v53 = vld [vmem:[#allocation8 + $0x270] sm:$0xff] }
 0x538   : > { %1989 = vmatpush.msra.mxu0 %v4022_v10  ;;  %2029 = vmatpush.msra.mxu2 %v4023_v3  ;;  %v4041_v10 = vld [vmem:[#allocation8 + $0x298] sm:$0xff]  ;;  %v4042_v3 = vld [vmem:[#allocation8 + $0x50] sm:$0xff] }
 0x539   : > { %2009 = vmatpush.msra.mxu1 %v4028_v24  ;;  %2049 = vmatpush.msra.mxu3 %v4029_v54  ;;  %v4047_v24 = vld [vmem:[#allocation8 + $0x38] sm:$0xff]  ;;  %v4048_v54 = vld [vmem:[#allocation8 + $0x250] sm:$0xff] }
 0x53a   : > { %1990 = vmatpush.msra.mxu0 %v4026_v25  ;;  %2030 = vmatpush.msra.mxu2 %v4027_v37  ;;  %v4045_v25 = vld [vmem:[#allocation8 + $0x278] sm:$0xff]  ;;  %v4046_v37 = vld [vmem:[#allocation8 + $0x30] sm:$0xff] }
 0x53b   : > { %2010 = vmatpush.msra.mxu1 %v4032_v6  ;;  %2050 = vmatpush.msra.mxu3 %v4033_v1  ;;  %v4051_v6 = vld [vmem:[#allocation8 + $0x18] sm:$0xff]  ;;  %v4052_v1 = vld [vmem:[#allocation8 + $0x230] sm:$0xff] }
 0x53c   : > { %1991 = vmatpush.msra.mxu0 %v4030_v14  ;;  %2031 = vmatpush.msra.mxu2 %v4031_v16  ;;  %v4049_v14 = vld [vmem:[#allocation8 + $0x258] sm:$0xff]  ;;  %v4050_v16 = vld [vmem:[#allocation8 + $0x10] sm:$0xff] }
 0x53d   : > { %2011 = vmatpush.msra.mxu1 %v4036_v2  ;;  %2051 = vmatpush.msra.mxu3 %v4037_v27  ;;  %v4055_v2 = vld [vmem:[#allocation8 + $0x218] sm:$0xff]  ;;  %v417_v27 = vld [vmem:[%s409_s12] sm:$0xf] }
 0x53e   : > { %1992 = vmatpush.msra.mxu0 %v4034_v58  ;;  %2032 = vmatpush.msra.mxu2 %v4035_v56  ;;  %v4053_v58 = vld [vmem:[#allocation8 + $0x238] sm:$0xff]  ;;  %v4054_v56 = vld [vmem:[#allocation8 + $0x210] sm:$0xff]  ;;  %vm1842_vm15 = vcmp.gt.f32.partialorder %v417_v27, 0.5 }
 0x53f   : > { %2012 = vmatpush.msra.mxu1 %v4040_v48  ;;  %2052 = vmatpush.msra.mxu3 %v4041_v10  ;;  %v6470_v48 = vmov 0  }
 0x540   : > { %1993 = vmatpush.msra.mxu0 %v4038_v32  ;;  %2033 = vmatpush.msra.mxu2 %v4039_v34  ;;  %v1845_v10 = vsel %vm1842_vm15, 1, %v6470_v48 }
 0x541   : > { %2013 = vmatpush.msra.mxu1 %v4044_v53  ;;  %2053 = vmatpush.msra.mxu3 %v4045_v25  ;;  %v1846_v25 = vperm.slane %v1845_v10, 0  ;;  %v1847_v48 = vperm.slane %v1845_v10, 2 }
 0x542   : > { %1994 = vmatpush.msra.mxu0 %v4042_v3  ;;  %2034 = vmatpush.msra.mxu2 %v4043_v52  ;;  %v1865_v3 = vperm.slane %v1845_v10, 1 }
 0x543   : > { %2014 = vmatpush.msra.mxu1 %v4048_v54  ;;  %2054 = vmatpush.msra.mxu3 %v4049_v14 }
 0x544   : > { %1995 = vmatpush.msra.mxu0 %v4046_v37  ;;  %2035 = vmatpush.msra.mxu2 %v4047_v24  ;;  %v5613_v14 = vperm.slane %v1865_v3, 1 }
 0x545   : > { %2015 = vmatpush.msra.mxu1 %v4052_v1  ;;  %2055 = vmatpush.msra.mxu3 %v4053_v58  ;;  %v5615_v1 = vld [vmem:[#allocation5] sm:$0xff] }
 0x546   : > { %1996 = vmatpush.msra.mxu0 %v4050_v16  ;;  %2036 = vmatpush.msra.mxu2 %v4051_v6  ;;  %v5618_v58 = vrot.slane %v5615_v1, 4  ;;  %vm6291_vm1 = vcmp.eq.s32.totalorder %v5613_v14, 1 }
 0x547   : > { %2016 = vmatpush.msra.mxu1 %v4054_v56  ;;  %2056 = vmatpush.msra.mxu3 %v4055_v2  ;;  %v5620_v56 = vperm.slane %v1846_v25, 0  ;;  %v1866_v2 = vperm.slane %v1845_v10, 3  ;;  %v5630_v25 = vrot.slane %v5627_v60, 4 }
 0x548   : > { %6471 = vst [vmem:[#allocation50_spill] sm:$0xff] %v5618_v58 }
 0x549   : > { %6472 = vst [vmem:[#allocation51_spill] sm:$0xff] %v5620_v56  ;;  %vm6296_vm15 = vcmp.eq.s32.totalorder %v5620_v56, 1 }
 0x581   : > { %v1683_v32 = vpop.f32.mrf.mxu0 }
 0x582   : > { %v1703_v34 = vpop.f32.mrf.mxu1 }
 0x583   : > { %v1704_v52 = vadd.f32 %v1703_v34, %v1683_v32 }
 0x585   : > { %v1836_v16 = vrot.slane %v1704_v52, 4 }
 0x587   : > { %v1723_v53 = vpop.f32.mrf.mxu2 }
 0x588   : > { %v1743_v37 = vpop.f32.mrf.mxu3 }
 0x589   : > { %v1763_v24 = vpop.f32.mrf.mxu0  ;;  %v1744_v27 = vadd.f32 %v1743_v37, %v1723_v53  ;;  %v5632_v53 = vperm.slane %v1866_v2, 1 }
 0x58a   : > { %v1783_v54 = vpop.f32.mrf.mxu1 }
 0x58b   : > { %v1784_v6 = vadd.f32 %v1783_v54, %v1763_v24  ;;  %v1837_v37 = vrot.slane %v1744_v27, 4  ;;  %vm6298_vm14 = vcmp.eq.s32.totalorder %v5632_v53, 1 }
 0x58d   : > { %v1828_v32 = vrot.slane %v1784_v6, 4  ;;  %v1840_v34 = vadd.f32 %v1836_v16, %v1784_v6 }
 0x58f   : > { %v1832_v26 = vsub.f32 %v1704_v52, %v1828_v32  ;;  %v1863_v3 = vsub.f32 %v1840_v34, %v5618_v58  ;;  %v1803_v24 = vpop.f32.mrf.mxu2  ;;  %v5638_v32 = vperm.slane %v1847_v48, 0 }
 0x590   : > { %v1823_v54 = vpop.f32.mrf.mxu3 }
 0x591   : > { %v1843_v10 = vsub.f32 %v1832_v26, %v5615_v1  ;;  %v1871_v52 = vsel %vm6291_vm1, %v1863_v3, 0.0  ;;  %v1824_v16 = vadd.f32 %v1823_v54, %v1803_v24  ;;  %v1891_v54 = vrot.slane %v1840_v34, 4 }
 0x592   : > { %v1873_v6 = vmul.f32 %v1871_v52, %v5623_v21  ;;  %vm6297_vm1 = vcmp.eq.s32.totalorder %v5638_v32, 1 }
 0x593   : > { %v1852_v58 = vsel %vm6296_vm15, %v1843_v10, 0.0  ;;  %v1829_v20 = vrot.slane %v1824_v16, 4  ;;  %v1841_v13 = vadd.f32 %v1837_v37, %v1824_v16 }
 0x594   : > { %v1855_v51 = vmul.f32 %v5623_v21, %v1852_v58  ;;  %v1883_v2 = vrot.slane %v1873_v6, 4 }
 0x595   : > { %v1833_v45 = vsub.f32 %v1744_v27, %v1829_v20  ;;  %v1864_v12 = vsub.f32 %v1841_v13, %v5630_v25  ;;  %v1892_v6 = vrot.slane %v1841_v13, 4  ;;  %v4064_v13 = vld [vmem:[#allocation10 + $0x160] sm:$0xff] }
 0x596   : > { %v1875_v3 = vsub.f32 %v5615_v1, %v1855_v51  ;;  %v1887_v24 = vsub.f32 %v5615_v1, %v1883_v2 }
 0x597   : > { %v1844_v48 = vsub.f32 %v1833_v45, %v5627_v60  ;;  %v1872_v37 = vsel %vm6298_vm14, %v1864_v12, 0.0  ;;  %v4058_v12 = vld [vmem:[#allocation10 + $0x1e0] sm:$0xff] }
 0x598   : > { %v1877_v10 = vsub.f32 %v1875_v3, %v1832_v26  ;;  %v1895_v58 = vsub.f32 %v1887_v24, %v1891_v54  ;;  %v1874_v52 = vmul.f32 %v1872_v37, %v5623_v21  ;;  %v4059_v3 = vld [vmem:[#allocation10 + $0x1c0] sm:$0xff] }
 0x599   : > { %v1853_v20 = vsel %vm6297_vm1, %v1844_v48, 0.0  ;;  %v4060_v54 = vld [vmem:[#allocation10 + $0x1a0] sm:$0xff] }
 0x59a   : > { %1879 = vst [vmem:[#allocation5] sm:$0xf] %v1877_v10  ;;  %v1856_v51 = vmul.f32 %v5623_v21, %v1853_v20  ;;  %v1884_v27 = vrot.slane %v1874_v52, 4  ;;  %v4061_v48 = vld [vmem:[#allocation10 + $0x3e0] sm:$0xff] }
 0x59b   : > { %1897 = vst [vmem:[#allocation5] sm:$0xf0] %v1895_v58  ;;  %v4062_v37 = vld [vmem:[#allocation10 + $0x180] sm:$0xff] }
 0x59c   : > { %v1876_v34 = vsub.f32 %v5627_v60, %v1856_v51  ;;  %v1888_v16 = vsub.f32 %v5627_v60, %v1884_v27  ;;  %v4066_v10 = vld [vmem:[#allocation10 + $0x140] sm:$0xff] }
 0x59d   : > { %v4067_v58 = vld [vmem:[#allocation10 + $0x380] sm:$0xff] }
 0x59e   : > { %v1878_v2 = vsub.f32 %v1876_v34, %v1833_v45  ;;  %v1896_v56 = vsub.f32 %v1888_v16, %v1892_v6  ;;  %v4063_v45 = vld [vmem:[#allocation10 + $0x3c0] sm:$0xff] }
 0x59f   : > { %v4068_v52 = vld [vmem:[#allocation10 + $0x120] sm:$0xff] }
 0x5a0   : > { %1880 = vst [vmem:[#allocation5 + $0x8] sm:$0xf] %v1878_v2  ;;  %v4069_v20 = vld [vmem:[#allocation10 + $0x360] sm:$0xff] }
 0x5a1   : > { %1898 = vst [vmem:[#allocation5 + $0x8] sm:$0xf0] %v1896_v56  ;;  %v4065_v56 = vld [vmem:[#allocation10 + $0x3a0] sm:$0xff] }
 0x5a2   : > { %v1899_v26 = vld [vmem:[#allocation5] sm:$0xff] }
 0x5a3   : > { %1917 = vmatmul.f32.vlgmr.msrb.gmra.mxu0 %v1899_v26  ;;  %1957 = vmatmul.f32.vlgmr.msrb.gmra.mxu2 %v1899_v26  ;;  %v4070_v51 = vld [vmem:[#allocation10 + $0x100] sm:$0xff] }
 0x5a4   : > { %2605 = vmatpush.msrb.mxu2 %v4058_v12  ;;  %v4071_v27 = vld [vmem:[#allocation10 + $0x340] sm:$0xff] }
 0x5a5   : > { %v4072_v34 = vld [vmem:[#allocation10 + $0x320] sm:$0xff] }
 0x5a6   : > { %2606 = vmatpush.msrb.mxu2 %v4059_v3  ;;  %v4073_v16 = vld [vmem:[#allocation10 + $0x300] sm:$0xff] }
 0x5a7   : > { %v4074_v6 = vld [vmem:[#allocation10 + $0x2e0] sm:$0xff] }
 0x5a8   : > { %v1900_v24 = vld [vmem:[#allocation5 + $0x8] sm:$0xff]  ;;  %2607 = vmatpush.msrb.mxu2 %v4060_v54  ;;  %v6485_v54 = vld [vmem:[#allocation16_spill] sm:$0xff] }
 0x5a9   : > { %1937 = vmatmul.f32.vlgmr.msrb.gmra.mxu1 %v1900_v24  ;;  %1977 = vmatmul.f32.vlgmr.msrb.gmra.mxu3 %v1900_v24 }
 0x5aa   : > { %2625 = vmatpush.msrb.mxu3 %v4061_v48  ;;  %2608 = vmatpush.msrb.mxu2 %v4062_v37  ;;  %v6486_v37 = vld [vmem:[#allocation17_spill] sm:$0xff] }
 0x5ab   : > { %1997 = vmatmul.f32.vlgmr.msra.gmra.mxu0 %v1899_v26  ;;  %2037 = vmatmul.f32.vlgmr.msra.gmra.mxu2 %v1899_v26 }
 0x5ac   : > { %2626 = vmatpush.msrb.mxu3 %v4063_v45  ;;  %2609 = vmatpush.msrb.mxu2 %v4064_v13 }
 0x5ae   : > { %2627 = vmatpush.msrb.mxu3 %v4065_v56  ;;  %2610 = vmatpush.msrb.mxu2 %v4066_v10 }
 0x5b0   : > { %2628 = vmatpush.msrb.mxu3 %v4067_v58  ;;  %2611 = vmatpush.msrb.mxu2 %v4068_v52 }
 0x5b1   : > { %2017 = vmatmul.f32.vlgmr.msra.gmra.mxu1 %v1900_v24  ;;  %2057 = vmatmul.f32.vlgmr.msra.gmra.mxu3 %v1900_v24 }
 0x5b2   : > { %2629 = vmatpush.msrb.mxu3 %v4069_v20  ;;  %2612 = vmatpush.msrb.mxu2 %v4070_v51 }
 0x5b4   : > { %2630 = vmatpush.msrb.mxu3 %v4071_v27  ;;  %2613 = vmatpush.msrb.mxu2 %v5438_v62  ;;  %v6473_v62 = vld [vmem:[#allocation42_spill] sm:$0xff] }
 0x5b6   : > { %2631 = vmatpush.msrb.mxu3 %v4072_v34  ;;  %2614 = vmatpush.msrb.mxu2 %v5440_v4  ;;  %v6474_v4 = vld [vmem:[#allocation40_spill] sm:$0xff] }
 0x5b8   : > { %2632 = vmatpush.msrb.mxu3 %v4073_v16  ;;  %2615 = vmatpush.msrb.mxu2 %v5453_v19  ;;  %v6476_v19 = vld [vmem:[#allocation41_spill] sm:$0xff] }
 0x5ba   : > { %2633 = vmatpush.msrb.mxu3 %v4074_v6  ;;  %2616 = vmatpush.msrb.mxu2 %v5457_v28  ;;  %v6478_v28 = vld [vmem:[#allocation43_spill] sm:$0xff] }
 0x5bc   : > { %2634 = vmatpush.msrb.mxu3 %v5442_v63  ;;  %2617 = vmatpush.msrb.mxu2 %v5463_v35  ;;  %v6475_v63 = vld [vmem:[#allocation44_spill] sm:$0xff] }
 0x5be   : > { %2635 = vmatpush.msrb.mxu3 %v5455_v22  ;;  %2618 = vmatpush.msrb.mxu2 %v5480_v30  ;;  %v6477_v22 = vld [vmem:[#allocation46_spill] sm:$0xff] }
 0x5c0   : > { %2636 = vmatpush.msrb.mxu3 %v5459_v33  ;;  %2619 = vmatpush.msrb.mxu2 %v5486_v42  ;;  %v6479_v33 = vld [vmem:[#allocation48_spill] sm:$0xff] }
 0x5c2   : > { %2637 = vmatpush.msrb.mxu3 %v5465_v36  ;;  %2620 = vmatpush.msrb.mxu2 %v5492_v11 }
 0x5c4   : > { %2685 = vmatpush.msra.mxu2 %v5498_v50  ;;  %2638 = vmatpush.msrb.mxu3 %v5482_v49 }
 0x5c6   : > { %2686 = vmatpush.msra.mxu2 %v5506_v46  ;;  %2639 = vmatpush.msrb.mxu3 %v5488_v43 }
 0x5c8   : > { %2687 = vmatpush.msra.mxu2 %v5512_v0  ;;  %2640 = vmatpush.msrb.mxu3 %v5494_v61 }
 0x5ca   : > { %2705 = vmatpush.msra.mxu3 %v5500_v15  ;;  %2688 = vmatpush.msra.mxu2 %v5518_v55  ;;  %v6483_v55 = vld [vmem:[#allocation15_spill] sm:$0xff] }
 0x5cc   : > { %2706 = vmatpush.msra.mxu3 %v5508_v47  ;;  %2689 = vmatpush.msra.mxu2 %v5524_v18 }
 0x5ce   : > { %2707 = vmatpush.msra.mxu3 %v5514_v5  ;;  %2690 = vmatpush.msra.mxu2 %v5530_v40  ;;  %v6484_v40 = vld [vmem:[#allocation14_spill] sm:$0xff] }
 0x5d0   : > { %2708 = vmatpush.msra.mxu3 %v5520_v9  ;;  %2691 = vmatpush.msra.mxu2 %v5536_v7 }
 0x5d2   : > { %2709 = vmatpush.msra.mxu3 %v5526_v23  ;;  %2692 = vmatpush.msra.mxu2 %v5542_v38 }
 0x5d4   : > { %2710 = vmatpush.msra.mxu3 %v5532_v41  ;;  %2693 = vmatpush.msra.mxu2 %v5548_v29 }
 0x5d6   : > { %2711 = vmatpush.msra.mxu3 %v5538_v57  ;;  %2694 = vmatpush.msra.mxu2 %v5552_v17 }
 0x5d8   : > { %2712 = vmatpush.msra.mxu3 %v5544_v39  ;;  %2695 = vmatpush.msra.mxu2 %v5558_v31  ;;  %v6480_v31 = vld [vmem:[#allocation45_spill] sm:$0xff] }
 0x5da   : > { %2713 = vmatpush.msra.mxu3 %v5550_v8  ;;  %2696 = vmatpush.msra.mxu2 %v5564_v44  ;;  %v6481_v8 = vld [vmem:[#allocation47_spill] sm:$0xff]  ;;  %v6482_v44 = vld [vmem:[#allocation49_spill] sm:$0xff] }
 0x5dc   : > { %2714 = vmatpush.msra.mxu3 %v5556_v59  ;;  %2697 = vmatpush.msra.mxu2 %v6473_v62 }
 0x5de   : > { %2715 = vmatpush.msra.mxu3 %v6474_v4  ;;  %2698 = vmatpush.msra.mxu2 %v6475_v63 }
 0x5e0   : > { %2716 = vmatpush.msra.mxu3 %v6476_v19  ;;  %2699 = vmatpush.msra.mxu2 %v6477_v22 }
 0x5e2   : > { %2717 = vmatpush.msra.mxu3 %v6478_v28  ;;  %2700 = vmatpush.msra.mxu2 %v6479_v33 }
 0x5e4   : > { %2718 = vmatpush.msra.mxu3 %v6480_v31 }
 0x5e6   : > { %2719 = vmatpush.msra.mxu3 %v6481_v8 }
 0x5e8   : > { %2720 = vmatpush.msra.mxu3 %v6482_v44 }
 0x620   : > { %v1918_v35 = vpop.f32.mrf.mxu0 }
 0x626   : > { %v1938_v36 = vpop.f32.mrf.mxu1  ;;  %v1958_v30 = vpop.f32.mrf.mxu2 }
 0x627   : > { %v1939_v49 = vadd.f32 %v1938_v36, %v1918_v35 }
 0x628   : > { %v1998_v43 = vpop.f32.mrf.mxu0 }
 0x629   : > { %v2071_v61 = vrot.slane %v1939_v49, 4 }
 0x62c   : > { %v1978_v42 = vpop.f32.mrf.mxu3 }
 0x62d   : > { %v1979_v15 = vadd.f32 %v1978_v42, %v1958_v30 }
 0x62e   : > { %v2018_v11 = vpop.f32.mrf.mxu1  ;;  %v2038_v18 = vpop.f32.mrf.mxu2 }
 0x62f   : > { %v2019_v50 = vadd.f32 %v2018_v11, %v1998_v43  ;;  %v2072_v5 = vrot.slane %v1979_v15, 4 }
 0x631   : > { %v2063_v46 = vrot.slane %v2019_v50, 4  ;;  %v2075_v47 = vadd.f32 %v2071_v61, %v2019_v50 }
 0x633   : > { %v2067_v0 = vsub.f32 %v1939_v49, %v2063_v46  ;;  %v2079_v9 = vmul.f32 %v2075_v47, %v6483_v55  ;;  %v2103_v7 = vmul.f32 %v2075_v47, %v6484_v40 }
 0x634   : > { %v2058_v23 = vpop.f32.mrf.mxu3 }
 0x635   : > { %v2077_v41 = vmul.f32 %v2067_v0, %v6484_v40  ;;  %v2105_v57 = vmul.f32 %v2067_v0, %v6483_v55  ;;  %v2059_v38 = vadd.f32 %v2058_v23, %v2038_v18 }
 0x637   : > { %v2081_v39 = vadd.f32 %v2079_v9, %v2077_v41  ;;  %v2107_v29 = vsub.f32 %v2103_v7, %v2105_v57  ;;  %v2064_v17 = vrot.slane %v2059_v38, 4  ;;  %v2076_v59 = vadd.f32 %v2072_v5, %v2059_v38  ;;  %v6488_v57 = vld [vmem:[#allocation19_spill] sm:$0xff] }
 0x639   : > { %v2083_v2 = vsel %vm6295_vm0, %v2081_v39, 0.0  ;;  %v2109_v26 = vsel %vm6295_vm0, %v2107_v29, 0.0  ;;  %v2068_v12 = vsub.f32 %v1979_v15, %v2064_v17  ;;  %v2080_v45 = vmul.f32 %v2076_v59, %v6486_v37  ;;  %v6489_v39 = vld [vmem:[#allocation20_spill] sm:$0xff] }
 0x63a   : > { %v2084_v3 = vrot.slane %v2083_v2, 4  ;;  %v2110_v24 = vrot.slane %v2109_v26, 4  ;;  %v2104_v13 = vmul.f32 %v2076_v59, %v6485_v54 }
 0x63b   : > { %v2078_v48 = vmul.f32 %v2068_v12, %v6485_v54  ;;  %v2106_v56 = vmul.f32 %v2068_v12, %v6486_v37 }
 0x63c   : > { %v2085_v10 = vadd.f32 %v2084_v3, %v2083_v2  ;;  %v2111_v58 = vadd.f32 %v2110_v24, %v2109_v26 }
 0x63d   : > { %v2082_v52 = vadd.f32 %v2080_v45, %v2078_v48  ;;  %v2108_v20 = vsub.f32 %v2104_v13, %v2106_v56  ;;  %v6490_v45 = vld [vmem:[#allocation21_spill] sm:$0xff] }
 0x63e   : > { %v2086_v34 = vrot.slane %v2085_v10, 2  ;;  %v2112_v16 = vrot.slane %v2111_v58, 2 }
 0x63f   : > { %v2090_v51 = vsel %vm6295_vm0, %v2082_v52, 0.0  ;;  %v2116_v27 = vsel %vm6295_vm0, %v2108_v20, 0.0 }
 0x640   : > { %v2091_v6 = vrot.slane %v2090_v51, 4  ;;  %v2117_v62 = vrot.slane %v2116_v27, 4  ;;  %v2087_v19 = vadd.f32 %v2086_v34, %v2085_v10  ;;  %v2113_v22 = vadd.f32 %v2112_v16, %v2111_v58 }
 0x642   : > { %v2092_v4 = vadd.f32 %v2091_v6, %v2090_v51  ;;  %v2118_v63 = vadd.f32 %v2117_v62, %v2116_v27  ;;  %v2088_v44 = vrot.slane %v2087_v19, 1  ;;  %v2114_v35 = vrot.slane %v2113_v22, 1 }
 0x644   : > { %v2093_v28 = vrot.slane %v2092_v4, 2  ;;  %v2119_v33 = vrot.slane %v2118_v63, 2  ;;  %v2089_v43 = vadd.f32 %v2088_v44, %v2087_v19  ;;  %v2115_v11 = vadd.f32 %v2114_v35, %v2113_v22  ;;  %v6491_v44 = vld [vmem:[#allocation24_spill] sm:$0xff] }
 0x646   : > { %v2094_v31 = vadd.f32 %v2093_v28, %v2092_v4  ;;  %v2120_v8 = vadd.f32 %v2119_v33, %v2118_v63 }
 0x648   : > { %v2095_v36 = vrot.slane %v2094_v31, 1  ;;  %v2121_v30 = vrot.slane %v2120_v8, 1 }
 0x64a   : > { %v2096_v49 = vadd.f32 %v2095_v36, %v2094_v31  ;;  %v2122_v42 = vadd.f32 %v2121_v30, %v2120_v8 }
 0x64c   : > { %v2099_v61 = vrot.slane %v2096_v49, 7  ;;  %v2125_v50 = vrot.slane %v2122_v42, 7 }
 0x64e   : > { %v2100_v15 = vsel %vm6294_vm7, %v2089_v43, %v2099_v61  ;;  %v2126_v46 = vsel %vm6294_vm7, %v2115_v11, %v2125_v50 }
 0x64f   : > { %2102 = vst.msk [vmem:[#allocation2] ss:$2 sm:$0x3] %vm5168_vm8, %v2100_v15 }
 0x650   : > { %2128 = vst.msk [vmem:[#allocation2 + $0x1] ss:$2 sm:$0x3] %vm5168_vm8, %v2126_v46 }
 0x657   : > { %v2129_v0 = vld [vmem:[#allocation2] sm:$0xf] }
 0x658   : > { %2131 = vst [vmem:[#allocation1] ss:$4 sm:$0xff] %v2129_v0 }
 0x65f   : > { %v2132_v5 = vld.sshfl [vmem:[#allocation1] sm:$0xff pattern:$0x73625140]  ;;  %v2133_v9 = vld.sshfl [vmem:[#allocation1 + $0x8] sm:$0xff pattern:$0x73625140] }
 0x660   : > { %v2136_v18 = vsel %vm1147_vm9, %v2132_v5, 0.0  ;;  %v2137_v23 = vsel %vm1147_vm9, %v2133_v9, 0.0  ;;  %v2364_v5 = vld [vmem:[%s6153_s5] sm:$0xff] }
 0x661   : > { %v2138_v41 = vadd.f32 %v2137_v23, %v2136_v18 }
 0x663   : > { %2139 = vadd.xlane.f32.xlu2 %v2138_v41 }
 0x6d6   : > { %v2140_v7 = vpop.xlane.xlu2 %2139 }
 0x6d7   : > { %v5725_v38 = vmul.f32 %v2140_v7, %v6488_v57 }
 0x6d9   : > { %v2146_v29 = vperm.slane %v5725_v38, %v6489_v39 }
 0x6db   : > { %v2148_v17 = vsub.f32 %v2129_v0, %v2146_v29  ;;  %v4335_v29 = vld [vmem:[#allocation10 + $0x1e8] sm:$0xff] }
 0x6dd   : > { %v2149_v59 = vmul.f32 %v2148_v17, %v2148_v17 }
 0x6df   : > { %2151 = vst [vmem:[#allocation1] ss:$4 sm:$0xff] %v2149_v59 }
 0x6e6   : > { %v2152_v2 = vld.sshfl [vmem:[#allocation1] sm:$0xff pattern:$0x73625140]  ;;  %v2153_v26 = vld.sshfl [vmem:[#allocation1 + $0x8] sm:$0xff pattern:$0x73625140] }
 0x6e7   : > { %v2156_v12 = vsel %vm1147_vm9, %v2152_v2, 0.0  ;;  %v2157_v3 = vsel %vm1147_vm9, %v2153_v26, 0.0 }
 0x6e8   : > { %v2158_v24 = vadd.f32 %v2157_v3, %v2156_v12  ;;  %v6493_v12 = vld [vmem:[#allocation26_spill] sm:$0xff] }
 0x6ea   : > { %2159 = vadd.xlane.f32.xlu0 %v2158_v24  ;;  %v6494_v24 = vld [vmem:[#allocation27_spill] sm:$0xff] }
 0x75d   : > { %v2160_v48 = vpop.xlane.xlu0 %2159 }
 0x75e   : > { %v2161_v13 = vmul.f32 %v2160_v48, %v6490_v45 }
 0x760   : > { %3924 = vrsqrt.f32 %v2161_v13  ;;  %vm2180_vm0 = vweird.f32 %v2161_v13  ;;  %vm2169_vm1 = vcmp.eq.f32.partialorder %v2161_v13, inf  ;;  %v2172_v6 = vand.u32 2147483648, %v2161_v13 }
 0x761   : > { %vm2171_vm14 = vcmp.eq.f32.partialorder %v2161_v13, 0.0 }
 0x766   : > { %v3925_v56 = vpop.eup %3924 }
 0x767   : > { %v2163_v10 = vmul.f32 %v3925_v56, %v2161_v13  ;;  %vm2181_vm7 = vweird.f32 %v3925_v56 }
 0x768   : > { %vm2182_vm15 = vmor %vm2180_vm0, %vm2181_vm7  ;;  %vm6509_vm0 = vcmask 588800  }
 0x769   : > { %v2164_v58 = vmul.f32 %v3925_v56, %v2163_v10  ;;  %v6496_v10 = vld [vmem:[#allocation29_spill] sm:$0xff]  ;;  %vm6510_vm7 = vmmov %vm6509_vm0 }
 0x76b   : > { %v2165_v52 = vmul.f32 0.5, %v2164_v58 }
 0x76d   : > { %v2166_v20 = vsub.f32 1.5, %v2165_v52 }
 0x76f   : > { %v2167_v51 = vmul.f32 %v3925_v56, %v2166_v20 }
 0x771   : > { %v2183_v27 = vsel %vm2182_vm15, %v3925_v56, %v2167_v51  ;;  %v2168_v34 = vmul.f32 %v2167_v51, %v2161_v13  ;;  %vm6514_vm15 = vcmp.eq.s32.totalorder %v5613_v14, 1 }
 0x772   : > { %v2188_v16 = vperm.slane %v2183_v27, %v6489_v39 }
 0x773   : > { %v2170_v62 = vsel %vm2169_vm1, %v2161_v13, %v2168_v34  ;;  %v6495_v13 = vld [vmem:[#allocation28_spill] sm:$0xff]  ;;  %vm6512_vm1 = vcmp.eq.s32.totalorder %v5638_v32, 1 }
 0x774   : > { %v2190_v4 = vmul.f32 %v2188_v16, %v2148_v17  ;;  %v5733_v63 = vsel %vm2171_vm14, %v2172_v6, %v2170_v62  ;;  %vm6511_vm14 = vcmp.eq.s32.totalorder %v5632_v53, 1 }
 0x776   : > { %2192 = vst [vmem:[#allocation1] ss:$4 sm:$0xff] %v2190_v4  ;;  %v2270_v35 = vmul.f32 %v2190_v4, %v6491_v44 }
 0x77d   : > { %v2193_v19 = vld.sshfl [vmem:[#allocation1] sm:$0xff pattern:$0x73625140]  ;;  %v2194_v22 = vld.sshfl [vmem:[#allocation1 + $0x8] sm:$0xff pattern:$0x73625140] }
 0x77e   : > { %2207 = vst [vmem:[#allocation1] ss:$4 sm:$0xff] %v2190_v4 }
 0x785   : > { %v2208_v28 = vld.sshfl [vmem:[#allocation1] sm:$0xff pattern:$0x73625140]  ;;  %v2209_v33 = vld.sshfl [vmem:[#allocation1 + $0x8] sm:$0xff pattern:$0x73625140] }
 0x786   : > { %2212 = vrot.lane.b32.xlu1 %v2208_v28, %s4482_s16  ;;  %2228 = vst [vmem:[#allocation1] ss:$4 sm:$0xff] %v2190_v4 }
 0x78d   : > { %v2230_v31 = vld.sshfl [vmem:[#allocation1 + $0x8] sm:$0xff pattern:$0x73625140]  ;;  %v2229_v8 = vld.sshfl [vmem:[#allocation1] sm:$0xff pattern:$0x73625140] }
 0x78e   : > { %2214 = vrot.lane.b32.xlu1 %v2209_v33, %s4482_s16  ;;  %2235 = vrot.lane.b32.xlu0 %v2230_v31, %s4483_s9  ;;  %2249 = vst [vmem:[#allocation1] ss:$4 sm:$0xff] %v2190_v4  ;;  %v6498_v33 = vld [vmem:[#allocation35_spill] sm:$0xff] }
 0x78f   : > { %2233 = vrot.lane.b32.xlu2 %v2229_v8, %s4483_s9 }
 0x795   : > { %v2250_v36 = vld.sshfl [vmem:[#allocation1] sm:$0xff pattern:$0x73625140]  ;;  %v2251_v30 = vld.sshfl [vmem:[#allocation1 + $0x8] sm:$0xff pattern:$0x73625140] }
 0x796   : > { %2254 = vrot.lane.b32.xlu1 %v2250_v36, %s4484_s20  ;;  %2272 = vst [vmem:[#allocation1] ss:$4 sm:$0xff] %v2270_v35 }
 0x79d   : > { %v2273_v49 = vld.sshfl [vmem:[#allocation1] sm:$0xff pattern:$0x73625140]  ;;  %v2274_v42 = vld.sshfl [vmem:[#allocation1 + $0x8] sm:$0xff pattern:$0x73625140] }
 0x79e   : > { %2279 = vst [vmem:[#allocation1] ss:$4 sm:$0xff] %v2190_v4 }
 0x79f   : > { %2277 = vst [vmem:[#allocation3 + $0x8] sm:$0x3] %v2273_v49 }
 0x7a0   : > { %2278 = vst [vmem:[#allocation3] sm:$0x3] %v2274_v42  ;;  %v6499_v42 = vld [vmem:[#allocation32_spill] sm:$0xff] }
 0x7a5   : > { %v2280_v43 = vld.sshfl [vmem:[#allocation1] sm:$0xff pattern:$0x73625140]  ;;  %v2281_v11 = vld.sshfl [vmem:[#allocation1 + $0x8] sm:$0xff pattern:$0x73625140] }
 0x7a6   : > { %2284 = vrot.lane.b32.xlu1 %v2280_v43, %s4485_s21  ;;  %2300 = vst [vmem:[#allocation1] ss:$4 sm:$0xff] %v2190_v4 }
 0x7ad   : > { %v2301_v61 = vld.sshfl [vmem:[#allocation1] sm:$0xff pattern:$0x73625140]  ;;  %v2302_v50 = vld.sshfl [vmem:[#allocation1 + $0x8] sm:$0xff pattern:$0x73625140] }
 0x7ae   : > { %2286 = vrot.lane.b32.xlu1 %v2281_v11, %s4485_s21  ;;  %2321 = vst [vmem:[#allocation1] ss:$4 sm:$0xff] %v2190_v4  ;;  %v6500_v11 = vld [vmem:[#allocation33_spill] sm:$0xff] }
 0x7b5   : > { %v2323_v15 = vld.sshfl [vmem:[#allocation1 + $0x8] sm:$0xff pattern:$0x73625140]  ;;  %v2322_v46 = vld.sshfl [vmem:[#allocation1] sm:$0xff pattern:$0x73625140] }
 0x7b6   : > { %2305 = vrot.lane.b32.xlu1 %v2301_v61, %s4486_s22  ;;  %2328 = vrot.lane.b32.xlu2 %v2323_v15, %s4487_s23  ;;  %2342 = vst [vmem:[#allocation1] ss:$4 sm:$0xff] %v2190_v4 }
 0x7bd   : > { %v2343_v0 = vld.sshfl [vmem:[#allocation1] sm:$0xff pattern:$0x73625140]  ;;  %v2344_v9 = vld.sshfl [vmem:[#allocation1 + $0x8] sm:$0xff pattern:$0x73625140] }
 0x7be   : > { %2307 = vrot.lane.b32.xlu1 %v2302_v50, %s4486_s22  ;;  %2256 = vrot.lane.b32.xlu2 %v2251_v30, %s4484_s20 }
 0x7bf   : > { %2347 = vrot.lane.b32.xlu0 %v2343_v0, %s4488_s24 }
 0x7c6   : > { %2367 = vperm.xlu2 %3909, %v2364_v5   ;;  %2326 = vrot.lane.b32.xlu1 %v2322_v46, %s4487_s23 }
 0x7c7   : > { %2197 = vrot.lane.b32.xlu0 %v2193_v19, %s4489_s25 }
 0x7ce   : > { %2349 = vrot.lane.b32.xlu1 %v2344_v9, %s4488_s24 }
 0x7d6   : > { %2199 = vrot.lane.b32.xlu1 %v2194_v22, %s4489_s25  ;;  %v6497_v22 = vld [vmem:[#allocation34_spill] sm:$0xff] }
 0x7e9   : > { %v2234_v23 = vpop.permute.xlu2 %2233 }
 0x7f8   : > { %v2213_v18 = vpop.permute.xlu1 %2212 }
 0x800   : > { %v2215_v41 = vpop.permute.xlu1 %2214  ;;  %v2236_v7 = vpop.permute.xlu0 %2235 }
 0x801   : > { %v2216_v17 = vsel %vm1247_vm2, %v2213_v18, %v2215_v41  ;;  %v2217_v59 = vsel %vm1247_vm2, %v2215_v41, %v2213_v18  ;;  %v2237_v2 = vsel %vm1271_vm3, %v2234_v23, %v2236_v7  ;;  %v2238_v26 = vsel %vm1271_vm3, %v2236_v7, %v2234_v23  ;;  %v6501_v18 = vld [vmem:[#allocation30_spill] sm:$0xff]  ;;  %v6502_v41 = vld [vmem:[#allocation31_spill] sm:$0xff] }
 0x802   : > { %v2218_v3 = vmul.f32 %v2217_v59, %v6493_v12  ;;  %v2219_v48 = vmul.f32 %v2216_v17, %v6494_v24  ;;  %v2239_v56 = vmul.f32 %v2238_v26, %v6495_v13  ;;  %v2240_v58 = vmul.f32 %v2237_v2, %v6496_v10 }
 0x804   : > { %v2222_v52 = vrot.slane %v2218_v3, 6  ;;  %v2223_v20 = vrot.slane %v2219_v48, 6  ;;  %v2243_v51 = vrot.slane %v2239_v56, 4  ;;  %v2244_v27 = vrot.slane %v2240_v58, 4  ;;  %v6503_v48 = vld [vmem:[#allocation36_spill] sm:$0xff]  ;;  %v6504_v58 = vld [vmem:[#allocation37_spill] sm:$0xff] }
 0x806   : > { %2226 = vst [vmem:[#allocation3 + $0x28] sm:$0xc] %v2222_v52 }
 0x807   : > { %2227 = vst [vmem:[#allocation3 + $0x10] sm:$0xc] %v2223_v20 }
 0x808   : > { %2247 = vst [vmem:[#allocation3 + $0x28] sm:$0x30] %v2243_v51  ;;  %v2255_v34 = vpop.permute.xlu1 %2254 }
 0x809   : > { %2248 = vst [vmem:[#allocation3 + $0x10] sm:$0x30] %v2244_v27 }
 0x810   : > { %v2329_v16 = vpop.permute.xlu2 %2328 }
 0x818   : > { %v2285_v6 = vpop.permute.xlu1 %2284  ;;  %v2257_v62 = vpop.permute.xlu2 %2256 }
 0x819   : > { %v2258_v4 = vsel %vm1295_vm6, %v2255_v34, %v2257_v62  ;;  %v2259_v19 = vsel %vm1295_vm6, %v2257_v62, %v2255_v34 }
 0x81a   : > { %v2260_v28 = vmul.f32 %v2259_v19, %v6497_v22  ;;  %v2261_v31 = vmul.f32 %v2258_v4, %v6498_v33  ;;  %v4076_v19 = vld [vmem:[%s6156_s8 + $0x18] ss:$0 sm:$0xff] }
 0x81c   : > { %v2264_v8 = vrot.slane %v2260_v28, 2  ;;  %v2265_v35 = vrot.slane %v2261_v31, 2 }
 0x81e   : > { %2268 = vst [vmem:[#allocation3 + $0x28] sm:$0xc0] %v2264_v8 }
 0x81f   : > { %2269 = vst [vmem:[#allocation3 + $0x10] sm:$0xc0] %v2265_v35 }
 0x820   : > { %v2287_v36 = vpop.permute.xlu1 %2286 }
 0x821   : > { %v2288_v30 = vsel %vm1335_vm5, %v2285_v6, %v2287_v36  ;;  %v2289_v49 = vsel %vm1335_vm5, %v2287_v36, %v2285_v6 }
 0x822   : > { %v2290_v43 = vmul.f32 %v2288_v30, %v6499_v42  ;;  %v2291_v61 = vmul.f32 %v2289_v49, %v6500_v11  ;;  %v6505_v30 = vld [vmem:[#allocation38_spill] sm:$0xff] }
 0x824   : > { %v2294_v50 = vrot.slane %v2290_v43, 6  ;;  %v2295_v15 = vrot.slane %v2291_v61, 6  ;;  %v6506_v43 = vld [vmem:[#allocation39_spill] sm:$0xff] }
 0x826   : > { %2298 = vst [vmem:[#allocation3 + $0x8] sm:$0xc] %v2294_v50 }
 0x827   : > { %2299 = vst [vmem:[#allocation3] sm:$0xc] %v2295_v15 }
 0x828   : > { %v2306_v46 = vpop.permute.xlu1 %2305 }
 0x830   : > { %v2308_v0 = vpop.permute.xlu1 %2307 }
 0x831   : > { %v2309_v5 = vsel %vm1359_vm4, %v2306_v46, %v2308_v0  ;;  %v2310_v9 = vsel %vm1359_vm4, %v2308_v0, %v2306_v46  ;;  %v2348_v27 = vpop.permute.xlu0 %2347 }
 0x832   : > { %v2311_v23 = vmul.f32 %v2309_v5, %v6501_v18  ;;  %v2312_v7 = vmul.f32 %v2310_v9, %v6502_v41  ;;  %v2357_v5 = vld [vmem:[%s6152_s4] sm:$0xff] }
 0x834   : > { %v2315_v17 = vrot.slane %v2311_v23, 4  ;;  %v2316_v59 = vrot.slane %v2312_v7, 4  ;;  %v2368_v7 = vpop.permute.xlu2 %2367 }
 0x836   : > { %2319 = vst [vmem:[#allocation3 + $0x8] sm:$0x30] %v2315_v17 }
 0x837   : > { %2320 = vst [vmem:[#allocation3] sm:$0x30] %v2316_v59 }
 0x838   : > { %v2327_v2 = vpop.permute.xlu1 %2326 }
 0x839   : > { %v2330_v26 = vsel %vm1383_vm10, %v2327_v2, %v2329_v16  ;;  %v2331_v3 = vsel %vm1383_vm10, %v2329_v16, %v2327_v2  ;;  %v4075_v16 = vld [vmem:[%s6156_s8 + $0x10] ss:$0 sm:$0xff]  ;;  %v2198_v31 = vpop.permute.xlu0 %2197 }
 0x83a   : > { %v2332_v56 = vmul.f32 %v2330_v26, %v6503_v48  ;;  %v2333_v52 = vmul.f32 %v2331_v3, %v6504_v58 }
 0x83c   : > { %v2336_v20 = vrot.slane %v2332_v56, 2  ;;  %v2337_v51 = vrot.slane %v2333_v52, 2  ;;  %v2524_v52 = vld [vmem:[%s6155_s7] sm:$0x3] }
 0x83e   : > { %2340 = vst [vmem:[#allocation3 + $0x8] sm:$0xc0] %v2336_v20 }
 0x83f   : > { %2341 = vst [vmem:[#allocation3] sm:$0xc0] %v2337_v51 }
 0x840   : > { %v2350_v34 = vpop.permute.xlu1 %2349 }
 0x841   : > { %v2351_v6 = vsel %vm1407_vm11, %v2348_v27, %v2350_v34  ;;  %v2352_v62 = vsel %vm1407_vm11, %v2350_v34, %v2348_v27 }
 0x842   : > { %v2353_v4 = vmul.f32 %v4075_v16, %v2351_v6  ;;  %v2354_v28 = vmul.f32 %v4076_v19, %v2352_v62 }
 0x844   : > { %2355 = vst [vmem:[#allocation3 + $0x18] sm:$0x3] %v2353_v4 }
 0x845   : > { %2356 = vst [vmem:[#allocation3 + $0x20] sm:$0x3] %v2354_v28  ;;  %v2360_v46 = vld [vmem:[#allocation3 + $0x8] sm:$0xff] }
 0x846   : > { %v2361_v0 = vld [vmem:[#allocation3] sm:$0xff] }
 0x848   : > { %v2200_v8 = vpop.permute.xlu1 %2199 }
 0x849   : > { %v2201_v35 = vsel %vm1229_vm12, %v2198_v31, %v2200_v8  ;;  %v2202_v36 = vsel %vm1229_vm12, %v2200_v8, %v2198_v31 }
 0x84a   : > { %v2203_v49 = vmul.f32 %v2202_v36, %v6505_v30  ;;  %v2204_v61 = vmul.f32 %v2201_v35, %v6506_v43 }
 0x84b   : > { %v2362_v50 = vld [vmem:[#allocation3 + $0x18] sm:$0x3] }
 0x84c   : > { %2205 = vst [vmem:[#allocation3 + $0x28] sm:$0x3] %v2203_v49  ;;  %3849 = vmatpush.msk.msrb.mxu0 %vm1147_vm9, %v2362_v50  ;;  %v2363_v15 = vld [vmem:[#allocation3 + $0x20] sm:$0x3] }
 0x84d   : > { %2206 = vst [vmem:[#allocation3 + $0x10] sm:$0x3] %v2204_v61  ;;  %3851 = vmatpush.msk.msrb.mxu1 %vm1147_vm9, %v2363_v15 }
 0x84e   : > { %2393 = vmatpush.msrb.mxu0 %v2360_v46 }
 0x84f   : > { %2413 = vmatpush.msrb.mxu1 %v2361_v0 }
 0x853   : > { %v2358_v9 = vld [vmem:[#allocation3 + $0x28] sm:$0xff] }
 0x854   : > { %2394 = vmatpush.msrb.mxu0 %v2358_v9  ;;  %v2359_v23 = vld [vmem:[#allocation3 + $0x10] sm:$0xff] }
 0x855   : > { %2414 = vmatpush.msrb.mxu1 %v2359_v23  ;;  %3850 = vmatmul.msk.f32.vlgmr.msrb.gmra.mxu0 %vm1429_vm13, %v2357_v5 }
 0x856   : > { %3852 = vmatmul.msk.f32.vlgmr.msrb.gmra.mxu1 %vm1429_vm13, %v2357_v5 }
 0x8d2   : > { %v2396_v17 = vpop.f32.mrf.mxu0 }
 0x8d3   : > { %v2397_v59 = vadd.f32 %v2396_v17, %v2368_v7  ;;  %v2416_v2 = vpop.f32.mrf.mxu1 }
 0x8d4   : > { %v2417_v26 = vadd.f32 %v2416_v2, %v2368_v7 }
 0x8d5   : > { %v2419_v3 = vmax.f32 %v2397_v59, 0.0  ;;  %v6507_v59 = vld [vmem:[#allocation23_spill] sm:$0xff] }
 0x8d6   : > { %v2420_v56 = vmax.f32 %v2417_v26, 0.0  ;;  %v6508_v26 = vld [vmem:[#allocation22_spill] sm:$0xff] }
 0x8d7   : > { %2485 = vrot.lane.b32.xlu2 %v2419_v3, %s4487_s23  ;;  %2495 = vrot.lane.b32.xlu0 %v2419_v3, %s4488_s24  ;;  %v2461_v2 = vmul.f32 %v2419_v3, %v6507_v59 }
 0x8d8   : > { %2497 = vrot.lane.b32.xlu1 %v2420_v56, %s4488_s24 }
 0x8df   : > { %2477 = vrot.lane.b32.xlu2 %v2420_v56, %s4486_s22  ;;  %2487 = vrot.lane.b32.xlu0 %v2420_v56, %s4487_s23 }
 0x8e0   : > { %2475 = vrot.lane.b32.xlu1 %v2419_v3, %s4486_s22 }
 0x8e7   : > { %2451 = vrot.lane.b32.xlu2 %v2419_v3, %s4484_s20  ;;  %2465 = vrot.lane.b32.xlu0 %v2419_v3, %s4485_s21 }
 0x8e8   : > { %2467 = vrot.lane.b32.xlu1 %v2420_v56, %s4485_s21 }
 0x8ef   : > { %2443 = vrot.lane.b32.xlu2 %v2420_v56, %s4483_s9  ;;  %2453 = vrot.lane.b32.xlu0 %v2420_v56, %s4484_s20 }
 0x8f0   : > { %2441 = vrot.lane.b32.xlu1 %v2419_v3, %s4483_s9 }
 0x8f7   : > { %2421 = vrot.lane.b32.xlu2 %v2419_v3, %s4489_s25  ;;  %2431 = vrot.lane.b32.xlu0 %v2419_v3, %s4482_s16 }
 0x8f8   : > { %2433 = vrot.lane.b32.xlu1 %v2420_v56, %s4482_s16 }
 0x8ff   : > { %2423 = vrot.lane.b32.xlu0 %v2420_v56, %s4489_s25 }
 0x900   : > { %2527 = vperm.xlu1 %3910, %v2524_v52   ;;  %v2462_v52 = vmul.f32 %v2420_v56, %v6508_v26 }
 0x931   : > { %v2486_v20 = vpop.permute.xlu2 %2485 }
 0x939   : > { %v2478_v28 = vpop.permute.xlu2 %2477 }
 0x941   : > { %v2452_v46 = vpop.permute.xlu2 %2451 }
 0x949   : > { %v2496_v51 = vpop.permute.xlu0 %2495 }
 0x94a   : > { %v2498_v27 = vpop.permute.xlu1 %2497 }
 0x94b   : > { %v2499_v34 = vsel %vm1407_vm11, %v2496_v51, %v2498_v27  ;;  %v2500_v6 = vsel %vm1407_vm11, %v2498_v27, %v2496_v51  ;;  %v2444_v51 = vpop.permute.xlu2 %2443 }
 0x94c   : > { %v2501_v62 = vmul.f32 %v4075_v16, %v2499_v34  ;;  %v2502_v4 = vmul.f32 %v4076_v19, %v2500_v6 }
 0x94e   : > { %2540 = vmatpush.msra.mxu0 %v2501_v62  ;;  %2560 = vmatpush.msra.mxu1 %v2502_v4 }
 0x951   : > { %v2488_v31 = vpop.permute.xlu0 %2487 }
 0x952   : > { %v2476_v8 = vpop.permute.xlu1 %2475  ;;  %v2489_v35 = vsel %vm1383_vm10, %v2486_v20, %v2488_v31  ;;  %v2490_v36 = vsel %vm1383_vm10, %v2488_v31, %v2486_v20 }
 0x953   : > { %v2479_v49 = vsel %vm1359_vm4, %v2476_v8, %v2478_v28  ;;  %v2480_v61 = vsel %vm1359_vm4, %v2478_v28, %v2476_v8  ;;  %v2491_v16 = vmul.f32 %v2489_v35, %v6503_v48  ;;  %v2492_v19 = vmul.f32 %v2490_v36, %v6504_v58 }
 0x954   : > { %v2481_v50 = vmul.f32 %v2479_v49, %v6501_v18  ;;  %v2482_v15 = vmul.f32 %v2480_v61, %v6502_v41 }
 0x955   : > { %2541 = vmatpush.msra.mxu0 %v2491_v16  ;;  %2561 = vmatpush.msra.mxu1 %v2492_v19  ;;  %v2422_v19 = vpop.permute.xlu2 %2421 }
 0x957   : > { %2542 = vmatpush.msra.mxu0 %v2481_v50  ;;  %2562 = vmatpush.msra.mxu1 %v2482_v15 }
 0x959   : > { %v2466_v0 = vpop.permute.xlu0 %2465 }
 0x95a   : > { %v2468_v5 = vpop.permute.xlu1 %2467 }
 0x95b   : > { %v2469_v9 = vsel %vm1335_vm5, %v2466_v0, %v2468_v5  ;;  %v2470_v23 = vsel %vm1335_vm5, %v2468_v5, %v2466_v0 }
 0x95c   : > { %v2471_v7 = vmul.f32 %v2469_v9, %v6499_v42  ;;  %v2472_v17 = vmul.f32 %v2470_v23, %v6500_v11  ;;  %v2505_v9 = vld [vmem:[%s6154_s6] sm:$0x3]  ;;  %v4077_v23 = vld [vmem:[#allocation10 + $0x1e8] sm:$0xff] }
 0x95e   : > { %2543 = vmatpush.msra.mxu0 %v2471_v7  ;;  %2563 = vmatpush.msra.mxu1 %v2472_v17  ;;  %v4078_v7 = vld [vmem:[#allocation10 + $0x3e8] sm:$0xff] }
 0x95f   : > { %v4079_v17 = vld [vmem:[#allocation10 + $0x1c8] sm:$0xff] }
 0x960   : > { %2544 = vmatpush.msra.mxu0 %v2461_v2  ;;  %2564 = vmatpush.msra.mxu1 %v2462_v52  ;;  %v4080_v2 = vld [vmem:[#allocation10 + $0x3c8] sm:$0xff] }
 0x961   : > { %v2454_v20 = vpop.permute.xlu0 %2453  ;;  %v4081_v52 = vld [vmem:[#allocation10 + $0x1a8] sm:$0xff] }
 0x962   : > { %v2442_v27 = vpop.permute.xlu1 %2441  ;;  %v2455_v34 = vsel %vm1295_vm6, %v2452_v46, %v2454_v20  ;;  %v2456_v6 = vsel %vm1295_vm6, %v2454_v20, %v2452_v46  ;;  %v4082_v20 = vld [vmem:[#allocation10 + $0x3a8] sm:$0xff] }
 0x963   : > { %v2445_v62 = vsel %vm1271_vm3, %v2442_v27, %v2444_v51  ;;  %v2446_v4 = vsel %vm1271_vm3, %v2444_v51, %v2442_v27  ;;  %v2457_v3 = vmul.f32 %v2456_v6, %v6497_v22  ;;  %v2458_v56 = vmul.f32 %v2455_v34, %v6498_v33  ;;  %v4083_v51 = vld [vmem:[#allocation10 + $0x188] sm:$0xff] }
 0x964   : > { %v2447_v28 = vmul.f32 %v2446_v4, %v6495_v13  ;;  %v2448_v31 = vmul.f32 %v2445_v62, %v6496_v10  ;;  %v4084_v27 = vld [vmem:[#allocation10 + $0x388] sm:$0xff] }
 0x965   : > { %2545 = vmatpush.msra.mxu0 %v2457_v3  ;;  %2565 = vmatpush.msra.mxu1 %v2458_v56  ;;  %v4085_v34 = vld [vmem:[#allocation10 + $0x168] sm:$0xff] }
 0x966   : > { %v4086_v6 = vld [vmem:[#allocation10 + $0x368] sm:$0xff] }
 0x967   : > { %2546 = vmatpush.msra.mxu0 %v2447_v28  ;;  %2566 = vmatpush.msra.mxu1 %v2448_v31  ;;  %v4087_v62 = vld [vmem:[#allocation10 + $0x148] sm:$0xff] }
 0x968   : > { %v4088_v4 = vld [vmem:[#allocation10 + $0x348] sm:$0xff] }
 0x969   : > { %v2432_v8 = vpop.permute.xlu0 %2431  ;;  %v4089_v3 = vld [vmem:[#allocation10 + $0x128] sm:$0xff] }
 0x96a   : > { %v2434_v35 = vpop.permute.xlu1 %2433  ;;  %v4090_v56 = vld [vmem:[#allocation10 + $0x328] sm:$0xff] }
 0x96b   : > { %v2435_v36 = vsel %vm1247_vm2, %v2432_v8, %v2434_v35  ;;  %v2436_v49 = vsel %vm1247_vm2, %v2434_v35, %v2432_v8  ;;  %v4091_v28 = vld [vmem:[#allocation10 + $0x108] sm:$0xff] }
 0x96c   : > { %v2437_v61 = vmul.f32 %v2436_v49, %v6493_v12  ;;  %v2438_v16 = vmul.f32 %v2435_v36, %v6494_v24  ;;  %v4092_v31 = vld [vmem:[#allocation10 + $0x308] sm:$0xff] }
 0x96d   : > { %v4093_v8 = vld [vmem:[#allocation10 + $0xe8] sm:$0xff] }
 0x96e   : > { %2547 = vmatpush.msra.mxu0 %v2437_v61  ;;  %2567 = vmatpush.msra.mxu1 %v2438_v16  ;;  %v4094_v35 = vld [vmem:[#allocation10 + $0x2e8] sm:$0xff] }
 0x96f   : > { %v4095_v36 = vld [vmem:[#allocation10 + $0xc8] sm:$0xff] }
 0x970   : > { %v4096_v49 = vld [vmem:[#allocation10 + $0x2c8] sm:$0xff] }
 0x971   : > { %v2424_v50 = vpop.permute.xlu0 %2423  ;;  %v4097_v61 = vld [vmem:[#allocation10 + $0xa8] sm:$0xff] }
 0x972   : > { %v2425_v15 = vsel %vm1229_vm12, %v2422_v19, %v2424_v50  ;;  %v2426_v46 = vsel %vm1229_vm12, %v2424_v50, %v2422_v19  ;;  %v4098_v16 = vld [vmem:[#allocation10 + $0x2a8] sm:$0xff] }
 0x973   : > { %v2427_v0 = vmul.f32 %v2426_v46, %v6505_v30  ;;  %v2428_v5 = vmul.f32 %v2425_v15, %v6506_v43  ;;  %v4099_v19 = vld [vmem:[#allocation10 + $0x88] sm:$0xff] }
 0x974   : > { %v4100_v50 = vld [vmem:[#allocation10 + $0x288] sm:$0xff] }
 0x975   : > { %2548 = vmatpush.msra.mxu0 %v2427_v0  ;;  %2568 = vmatpush.msra.mxu1 %v2428_v5  ;;  %v4101_v15 = vld [vmem:[#allocation10 + $0x68] sm:$0xff] }
 0x976   : > { %3853 = vmatmul.msk.f32.vlgmr.msra.gmra.mxu0 %vm6509_vm0, %v2505_v9  ;;  %3854 = vmatmul.msk.f32.vlgmr.msra.gmra.mxu1 %vm6510_vm7, %v2505_v9  ;;  %v4102_v46 = vld [vmem:[#allocation10 + $0x268] sm:$0xff]  ;;  %vm6517_vm7 = vcmask 1043456  }
 0x977   : > { %2645 = vmatpush.msrb.mxu0 %v4077_v23  ;;  %2665 = vmatpush.msrb.mxu1 %v4078_v7  ;;  %v4103_v0 = vld [vmem:[#allocation10 + $0x48] sm:$0xff] }
 0x978   : > { %v4104_v5 = vld [vmem:[#allocation10 + $0x248] sm:$0xff] }
 0x979   : > { %2646 = vmatpush.msrb.mxu0 %v4079_v17  ;;  %2666 = vmatpush.msrb.mxu1 %v4080_v2  ;;  %v4105_v9 = vld [vmem:[#allocation10 + $0x28] sm:$0xff]  ;;  %v4109_v2 = vld [vmem:[#allocation10 + $0x1f8] sm:$0xff] }
 0x97a   : > { %v4106_v23 = vld [vmem:[#allocation10 + $0x228] sm:$0xff] }
 0x97b   : > { %2647 = vmatpush.msrb.mxu0 %v4081_v52  ;;  %2667 = vmatpush.msrb.mxu1 %v4082_v20  ;;  %v4107_v7 = vld [vmem:[#allocation10 + $0x8] sm:$0xff]  ;;  %v4110_v52 = vld [vmem:[#allocation10 + $0x3f8] sm:$0xff] }
 0x97c   : > { %v4108_v17 = vld [vmem:[#allocation10 + $0x208] sm:$0xff]  ;;  %v4111_v20 = vld [vmem:[#allocation10 + $0x1d8] sm:$0xff] }
 0x97d   : > { %2648 = vmatpush.msrb.mxu0 %v4083_v51  ;;  %2668 = vmatpush.msrb.mxu1 %v4084_v27  ;;  %v4112_v51 = vld [vmem:[#allocation10 + $0x3d8] sm:$0xff] }
 0x97e   : > { %v4113_v27 = vld [vmem:[#allocation10 + $0x1b8] sm:$0xff] }
 0x97f   : > { %2649 = vmatpush.msrb.mxu0 %v4085_v34  ;;  %2669 = vmatpush.msrb.mxu1 %v4086_v6  ;;  %v4114_v34 = vld [vmem:[#allocation10 + $0x3b8] sm:$0xff] }
 0x980   : > { %v4115_v6 = vld [vmem:[#allocation10 + $0x198] sm:$0xff] }
 0x981   : > { %2650 = vmatpush.msrb.mxu0 %v4087_v62  ;;  %2670 = vmatpush.msrb.mxu1 %v4088_v4  ;;  %v4116_v62 = vld [vmem:[#allocation10 + $0x398] sm:$0xff] }
 0x982   : > { %v4117_v4 = vld [vmem:[#allocation10 + $0x178] sm:$0xff] }
 0x983   : > { %2651 = vmatpush.msrb.mxu0 %v4089_v3  ;;  %2671 = vmatpush.msrb.mxu1 %v4090_v56  ;;  %v4118_v3 = vld [vmem:[#allocation10 + $0x378] sm:$0xff] }
 0x984   : > { %v4119_v56 = vld [vmem:[#allocation10 + $0x158] sm:$0xff] }
 0x985   : > { %2652 = vmatpush.msrb.mxu0 %v4091_v28  ;;  %2672 = vmatpush.msrb.mxu1 %v4092_v31  ;;  %v4120_v28 = vld [vmem:[#allocation10 + $0x358] sm:$0xff] }
 0x986   : > { %v4121_v31 = vld [vmem:[#allocation10 + $0x138] sm:$0xff] }
 0x987   : > { %2653 = vmatpush.msrb.mxu0 %v4093_v8  ;;  %2673 = vmatpush.msrb.mxu1 %v4094_v35  ;;  %v4122_v8 = vld [vmem:[#allocation10 + $0x338] sm:$0xff] }
 0x988   : > { %v4123_v35 = vld [vmem:[#allocation10 + $0x118] sm:$0xff] }
 0x989   : > { %2654 = vmatpush.msrb.mxu0 %v4095_v36  ;;  %2674 = vmatpush.msrb.mxu1 %v4096_v49  ;;  %v4124_v36 = vld [vmem:[#allocation10 + $0x318] sm:$0xff] }
 0x98a   : > { %v4125_v49 = vld [vmem:[#allocation10 + $0xf8] sm:$0xff] }
 0x98b   : > { %2655 = vmatpush.msrb.mxu0 %v4097_v61  ;;  %2675 = vmatpush.msrb.mxu1 %v4098_v16  ;;  %v4126_v61 = vld [vmem:[#allocation10 + $0x2f8] sm:$0xff] }
 0x98c   : > { %v4127_v16 = vld [vmem:[#allocation10 + $0xd8] sm:$0xff] }
 0x98d   : > { %2656 = vmatpush.msrb.mxu0 %v4099_v19  ;;  %2676 = vmatpush.msrb.mxu1 %v4100_v50  ;;  %v4128_v19 = vld [vmem:[#allocation10 + $0x2d8] sm:$0xff] }
 0x98e   : > { %v4129_v50 = vld [vmem:[#allocation10 + $0xb8] sm:$0xff] }
 0x98f   : > { %2657 = vmatpush.msrb.mxu0 %v4101_v15  ;;  %2677 = vmatpush.msrb.mxu1 %v4102_v46  ;;  %v4130_v15 = vld [vmem:[#allocation10 + $0x2b8] sm:$0xff] }
 0x990   : > { %v4131_v46 = vld [vmem:[#allocation10 + $0x98] sm:$0xff] }
 0x991   : > { %2658 = vmatpush.msrb.mxu0 %v4103_v0  ;;  %2678 = vmatpush.msrb.mxu1 %v4104_v5  ;;  %v4132_v0 = vld [vmem:[#allocation10 + $0x298] sm:$0xff] }
 0x992   : > { %v4133_v5 = vld [vmem:[#allocation10 + $0x78] sm:$0xff] }
 0x993   : > { %2659 = vmatpush.msrb.mxu0 %v4105_v9  ;;  %2679 = vmatpush.msrb.mxu1 %v4106_v23  ;;  %v4134_v9 = vld [vmem:[#allocation10 + $0x278] sm:$0xff] }
 0x994   : > { %v4135_v23 = vld [vmem:[#allocation10 + $0x58] sm:$0xff] }
 0x995   : > { %2660 = vmatpush.msrb.mxu0 %v4107_v7  ;;  %2680 = vmatpush.msrb.mxu1 %v4108_v17  ;;  %v4136_v7 = vld [vmem:[#allocation10 + $0x258] sm:$0xff] }
 0x996   : > { %v4137_v17 = vld [vmem:[#allocation10 + $0x38] sm:$0xff] }
 0x997   : > { %2725 = vmatpush.msra.mxu0 %v4109_v2  ;;  %2745 = vmatpush.msra.mxu1 %v4110_v52  ;;  %v4138_v2 = vld [vmem:[#allocation10 + $0x238] sm:$0xff] }
 0x998   : > { %v4139_v52 = vld [vmem:[#allocation10 + $0x18] sm:$0xff] }
 0x999   : > { %2726 = vmatpush.msra.mxu0 %v4111_v20  ;;  %2746 = vmatpush.msra.mxu1 %v4112_v51  ;;  %v4140_v20 = vld [vmem:[#allocation10 + $0x218] sm:$0xff]  ;;  %v2528_v51 = vpop.permute.xlu1 %2527 }
 0x99b   : > { %2727 = vmatpush.msra.mxu0 %v4113_v27  ;;  %2747 = vmatpush.msra.mxu1 %v4114_v34 }
 0x99d   : > { %2728 = vmatpush.msra.mxu0 %v4115_v6  ;;  %2748 = vmatpush.msra.mxu1 %v4116_v62 }
 0x99f   : > { %2729 = vmatpush.msra.mxu0 %v4117_v4  ;;  %2749 = vmatpush.msra.mxu1 %v4118_v3 }
 0x9a1   : > { %2730 = vmatpush.msra.mxu0 %v4119_v56  ;;  %2750 = vmatpush.msra.mxu1 %v4120_v28 }
 0x9a3   : > { %2731 = vmatpush.msra.mxu0 %v4121_v31  ;;  %2751 = vmatpush.msra.mxu1 %v4122_v8 }
 0x9a5   : > { %2732 = vmatpush.msra.mxu0 %v4123_v35  ;;  %2752 = vmatpush.msra.mxu1 %v4124_v36 }
 0x9a7   : > { %2733 = vmatpush.msra.mxu0 %v4125_v49  ;;  %2753 = vmatpush.msra.mxu1 %v4126_v61 }
 0x9a9   : > { %2734 = vmatpush.msra.mxu0 %v4127_v16  ;;  %2754 = vmatpush.msra.mxu1 %v4128_v19 }
 0x9ab   : > { %2735 = vmatpush.msra.mxu0 %v4129_v50  ;;  %2755 = vmatpush.msra.mxu1 %v4130_v15 }
 0x9ad   : > { %2736 = vmatpush.msra.mxu0 %v4131_v46  ;;  %2756 = vmatpush.msra.mxu1 %v4132_v0 }
 0x9af   : > { %2737 = vmatpush.msra.mxu0 %v4133_v5  ;;  %2757 = vmatpush.msra.mxu1 %v4134_v9 }
 0x9b1   : > { %2738 = vmatpush.msra.mxu0 %v4135_v23  ;;  %2758 = vmatpush.msra.mxu1 %v4136_v7 }
 0x9b3   : > { %2739 = vmatpush.msra.mxu0 %v4137_v17  ;;  %2759 = vmatpush.msra.mxu1 %v4138_v2 }
 0x9b5   : > { %2740 = vmatpush.msra.mxu0 %v4139_v52  ;;  %2760 = vmatpush.msra.mxu1 %v4140_v20  ;;  %v4141_v52 = vld [vmem:[#allocation8 + $0x3e0] sm:$0xff]  ;;  %v4142_v20 = vld [vmem:[#allocation8 + $0x3e8] sm:$0xff] }
 0x9f3   : > { %v2550_v27 = vpop.f32.mrf.mxu0  ;;  %v2570_v34 = vpop.f32.mrf.mxu1 }
 0x9f4   : > { %v2551_v6 = vadd.f32 %v2550_v27, %v2528_v51  ;;  %v2571_v62 = vadd.f32 %v2570_v34, %v2528_v51  ;;  %v4143_v51 = vld [vmem:[#allocation8 + $0x1e0] sm:$0xff]  ;;  %v4144_v27 = vld [vmem:[#allocation8 + $0x1e8] sm:$0xff] }
 0x9f5   : > { %v4145_v34 = vld [vmem:[#allocation8 + $0x3c0] sm:$0xff] }
 0x9f6   : > { %v2573_v4 = vmul.f32 %v2551_v6, %v5733_v63  ;;  %v2574_v3 = vmul.f32 %v2571_v62, %v5733_v63  ;;  %v4146_v6 = vld [vmem:[#allocation8 + $0x3c8] sm:$0xff]  ;;  %v4147_v62 = vld [vmem:[#allocation8 + $0x1c0] sm:$0xff] }
 0x9f8   : > { %v2575_v56 = vadd.f32 %v2573_v4, %v5725_v38  ;;  %v2576_v28 = vadd.f32 %v2574_v3, %v5725_v38  ;;  %v4148_v4 = vld [vmem:[#allocation8 + $0x1c8] sm:$0xff]  ;;  %v4149_v3 = vld [vmem:[#allocation8 + $0x3a0] sm:$0xff] }
 0x9fa   : > { %v2577_v31 = vperm.slane %v2575_v56, 0  ;;  %v2581_v8 = vperm.slane %v2575_v56, 1  ;;  %v2578_v35 = vperm.slane %v2576_v28, 0  ;;  %v2582_v36 = vperm.slane %v2576_v28, 1  ;;  %v4150_v56 = vld [vmem:[#allocation8 + $0x3a8] sm:$0xff]  ;;  %v4151_v28 = vld [vmem:[#allocation8 + $0x1a0] sm:$0xff] }
 0x9fc   : > { %v2579_v49 = vmul.f32 %v2577_v31, %v6484_v40  ;;  %v2583_v61 = vmul.f32 %v2581_v8, %v6483_v55  ;;  %v2589_v16 = vmul.f32 %v2577_v31, %v6483_v55  ;;  %v2591_v19 = vmul.f32 %v2581_v8, %v6484_v40  ;;  %v4152_v31 = vld [vmem:[#allocation8 + $0x1a8] sm:$0xff]  ;;  %v4153_v8 = vld [vmem:[#allocation8 + $0x380] sm:$0xff] }
 0x9fd   : > { %v2580_v50 = vmul.f32 %v2578_v35, %v6485_v54  ;;  %v2584_v63 = vmul.f32 %v2582_v36, %v6486_v37  ;;  %v2590_v15 = vmul.f32 %v2578_v35, %v6486_v37  ;;  %v2592_v38 = vmul.f32 %v2582_v36, %v6485_v54  ;;  %v4154_v35 = vld [vmem:[#allocation8 + $0x388] sm:$0xff]  ;;  %v4155_v36 = vld [vmem:[#allocation8 + $0x180] sm:$0xff] }
 0x9fe   : > { %v2585_v46 = vsub.f32 %v2579_v49, %v2583_v61  ;;  %v2593_v0 = vadd.f32 %v2591_v19, %v2589_v16  ;;  %v4156_v49 = vld [vmem:[#allocation8 + $0x188] sm:$0xff]  ;;  %v4157_v61 = vld [vmem:[#allocation8 + $0x360] sm:$0xff] }
 0x9ff   : > { %v2586_v5 = vsub.f32 %v2580_v50, %v2584_v63  ;;  %v2594_v9 = vadd.f32 %v2592_v38, %v2590_v15  ;;  %v4158_v16 = vld [vmem:[#allocation8 + $0x368] sm:$0xff]  ;;  %v4159_v19 = vld [vmem:[#allocation8 + $0x160] sm:$0xff] }
 0xa00   : > { %2587 = vst [vmem:[#allocation6] sm:$0xf] %v2585_v46  ;;  %v2597_v23 = vrot.slane %v2593_v0, 4  ;;  %v4160_v50 = vld [vmem:[#allocation8 + $0x168] sm:$0xff]  ;;  %v4161_v63 = vld [vmem:[#allocation8 + $0x340] sm:$0xff] }
 0xa01   : > { %2588 = vst [vmem:[#allocation6 + $0x8] sm:$0xf] %v2586_v5  ;;  %v2598_v7 = vrot.slane %v2594_v9, 4  ;;  %v4162_v15 = vld [vmem:[#allocation8 + $0x348] sm:$0xff]  ;;  %v4163_v38 = vld [vmem:[#allocation8 + $0x140] sm:$0xff] }
 0xa02   : > { %2601 = vst [vmem:[#allocation6] sm:$0xf0] %v2597_v23  ;;  %v4164_v46 = vld [vmem:[#allocation8 + $0x148] sm:$0xff]  ;;  %v4165_v0 = vld [vmem:[#allocation8 + $0x320] sm:$0xff] }
 0xa03   : > { %2602 = vst [vmem:[#allocation6 + $0x8] sm:$0xf0] %v2598_v7  ;;  %v4166_v5 = vld [vmem:[#allocation8 + $0x328] sm:$0xff]  ;;  %v4167_v9 = vld [vmem:[#allocation8 + $0x120] sm:$0xff] }
 0xa04   : > { %v4168_v23 = vld [vmem:[#allocation8 + $0x128] sm:$0xff]  ;;  %v4169_v7 = vld [vmem:[#allocation8 + $0x300] sm:$0xff] }
 0xa09   : > { %v2603_v17 = vld [vmem:[#allocation6] sm:$0xff] }
 0xa0a   : > { %2621 = vmatmul.f32.vlgmr.msrb.gmra.mxu2 %v2603_v17  ;;  %v2604_v2 = vld [vmem:[#allocation6 + $0x8] sm:$0xff]  ;;  %2661 = vmatmul.f32.vlgmr.msrb.gmra.mxu0 %v2603_v17 }
 0xa0b   : > { %2641 = vmatmul.f32.vlgmr.msrb.gmra.mxu3 %v2604_v2  ;;  %2681 = vmatmul.f32.vlgmr.msrb.gmra.mxu1 %v2604_v2 }
 0xa0c   : > { %2839 = vmatpush.msrb.mxu3 %v4141_v52  ;;  %2879 = vmatpush.msrb.mxu1 %v4142_v20  ;;  %v4172_v52 = vld [vmem:[#allocation8 + $0x108] sm:$0xff]  ;;  %v4173_v20 = vld [vmem:[#allocation8 + $0x2e0] sm:$0xff] }
 0xa0d   : > { %2819 = vmatpush.msrb.mxu2 %v4143_v51  ;;  %2859 = vmatpush.msrb.mxu0 %v4144_v27  ;;  %v4174_v51 = vld [vmem:[#allocation8 + $0x2e8] sm:$0xff]  ;;  %v4175_v27 = vld [vmem:[#allocation8 + $0xe0] sm:$0xff] }
 0xa0e   : > { %2840 = vmatpush.msrb.mxu3 %v4145_v34  ;;  %2880 = vmatpush.msrb.mxu1 %v4146_v6  ;;  %v4176_v34 = vld [vmem:[#allocation8 + $0xe8] sm:$0xff]  ;;  %v4177_v6 = vld [vmem:[#allocation8 + $0x2c0] sm:$0xff] }
 0xa0f   : > { %2820 = vmatpush.msrb.mxu2 %v4147_v62  ;;  %2860 = vmatpush.msrb.mxu0 %v4148_v4  ;;  %v4178_v62 = vld [vmem:[#allocation8 + $0x2c8] sm:$0xff]  ;;  %v4179_v4 = vld [vmem:[#allocation8 + $0xc0] sm:$0xff] }
 0xa10   : > { %2841 = vmatpush.msrb.mxu3 %v4149_v3  ;;  %2881 = vmatpush.msrb.mxu1 %v4150_v56  ;;  %v4180_v3 = vld [vmem:[#allocation8 + $0xc8] sm:$0xff]  ;;  %v4181_v56 = vld [vmem:[#allocation8 + $0x2a0] sm:$0xff] }
 0xa11   : > { %2821 = vmatpush.msrb.mxu2 %v4151_v28  ;;  %2861 = vmatpush.msrb.mxu0 %v4152_v31  ;;  %v4182_v28 = vld [vmem:[#allocation8 + $0x2a8] sm:$0xff]  ;;  %v4183_v31 = vld [vmem:[#allocation8 + $0xa0] sm:$0xff] }
 0xa12   : > { %2701 = vmatmul.f32.vlgmr.msra.gmra.mxu2 %v2603_v17  ;;  %2741 = vmatmul.f32.vlgmr.msra.gmra.mxu0 %v2603_v17  ;;  %v4170_v17 = vld [vmem:[#allocation8 + $0x308] sm:$0xff] }
 0xa13   : > { %2721 = vmatmul.f32.vlgmr.msra.gmra.mxu3 %v2604_v2  ;;  %2761 = vmatmul.f32.vlgmr.msra.gmra.mxu1 %v2604_v2  ;;  %v4171_v2 = vld [vmem:[#allocation8 + $0x100] sm:$0xff] }
 0xa14   : > { %2842 = vmatpush.msrb.mxu3 %v4153_v8  ;;  %2882 = vmatpush.msrb.mxu1 %v4154_v35  ;;  %v4184_v8 = vld [vmem:[#allocation8 + $0xa8] sm:$0xff]  ;;  %v4185_v35 = vld [vmem:[#allocation8 + $0x280] sm:$0xff] }
 0xa15   : > { %2822 = vmatpush.msrb.mxu2 %v4155_v36  ;;  %2862 = vmatpush.msrb.mxu0 %v4156_v49  ;;  %v4186_v36 = vld [vmem:[#allocation8 + $0x288] sm:$0xff]  ;;  %v4187_v49 = vld [vmem:[#allocation8 + $0x80] sm:$0xff] }
 0xa16   : > { %2843 = vmatpush.msrb.mxu3 %v4157_v61  ;;  %2883 = vmatpush.msrb.mxu1 %v4158_v16  ;;  %v4188_v61 = vld [vmem:[#allocation8 + $0x88] sm:$0xff]  ;;  %v4189_v16 = vld [vmem:[#allocation8 + $0x260] sm:$0xff] }
 0xa17   : > { %2823 = vmatpush.msrb.mxu2 %v4159_v19  ;;  %2863 = vmatpush.msrb.mxu0 %v4160_v50  ;;  %v4190_v19 = vld [vmem:[#allocation8 + $0x268] sm:$0xff]  ;;  %v4191_v50 = vld [vmem:[#allocation8 + $0x60] sm:$0xff] }
 0xa18   : > { %2844 = vmatpush.msrb.mxu3 %v4161_v63  ;;  %2884 = vmatpush.msrb.mxu1 %v4162_v15  ;;  %v4192_v63 = vld [vmem:[#allocation8 + $0x68] sm:$0xff]  ;;  %v4193_v15 = vld [vmem:[#allocation8 + $0x240] sm:$0xff] }
 0xa19   : > { %2824 = vmatpush.msrb.mxu2 %v4163_v38  ;;  %2864 = vmatpush.msrb.mxu0 %v4164_v46  ;;  %v4194_v38 = vld [vmem:[#allocation8 + $0x248] sm:$0xff]  ;;  %v4195_v46 = vld [vmem:[#allocation8 + $0x40] sm:$0xff] }
 0xa1a   : > { %2845 = vmatpush.msrb.mxu3 %v4165_v0  ;;  %2885 = vmatpush.msrb.mxu1 %v4166_v5  ;;  %v4196_v0 = vld [vmem:[#allocation8 + $0x48] sm:$0xff]  ;;  %v4197_v5 = vld [vmem:[#allocation8 + $0x220] sm:$0xff] }
 0xa1b   : > { %2825 = vmatpush.msrb.mxu2 %v4167_v9  ;;  %2865 = vmatpush.msrb.mxu0 %v4168_v23  ;;  %v4198_v9 = vld [vmem:[#allocation8 + $0x228] sm:$0xff]  ;;  %v4199_v23 = vld [vmem:[#allocation8 + $0x20] sm:$0xff] }
 0xa1c   : > { %2846 = vmatpush.msrb.mxu3 %v4169_v7  ;;  %2886 = vmatpush.msrb.mxu1 %v4170_v17  ;;  %v4200_v7 = vld [vmem:[#allocation8 + $0x28] sm:$0xff]  ;;  %v4201_v17 = vld [vmem:[#allocation8 + $0x200] sm:$0xff] }
 0xa1d   : > { %2826 = vmatpush.msrb.mxu2 %v4171_v2  ;;  %2866 = vmatpush.msrb.mxu0 %v4172_v52  ;;  %v4202_v2 = vld [vmem:[#allocation8 + $0x208] sm:$0xff]  ;;  %v4203_v52 = vld [vmem:[#allocation8 + $0x3f0] sm:$0xff] }
 0xa1e   : > { %2847 = vmatpush.msrb.mxu3 %v4173_v20  ;;  %2887 = vmatpush.msrb.mxu1 %v4174_v51  ;;  %v4204_v20 = vld [vmem:[#allocation8 + $0x3f8] sm:$0xff]  ;;  %v4205_v51 = vld [vmem:[#allocation8] sm:$0xff] }
 0xa1f   : > { %2827 = vmatpush.msrb.mxu2 %v4175_v27  ;;  %2867 = vmatpush.msrb.mxu0 %v4176_v34  ;;  %v4206_v27 = vld [vmem:[#allocation8 + $0x8] sm:$0xff]  ;;  %v4207_v34 = vld [vmem:[#allocation8 + $0x3d0] sm:$0xff] }
 0xa20   : > { %2848 = vmatpush.msrb.mxu3 %v4177_v6  ;;  %2888 = vmatpush.msrb.mxu1 %v4178_v62  ;;  %v4208_v6 = vld [vmem:[#allocation8 + $0x3d8] sm:$0xff]  ;;  %v4209_v62 = vld [vmem:[#allocation8 + $0x1f0] sm:$0xff] }
 0xa21   : > { %2828 = vmatpush.msrb.mxu2 %v4179_v4  ;;  %2868 = vmatpush.msrb.mxu0 %v4180_v3  ;;  %v4210_v4 = vld [vmem:[#allocation8 + $0x1f8] sm:$0xff]  ;;  %v4211_v3 = vld [vmem:[#allocation8 + $0x3b0] sm:$0xff] }
 0xa22   : > { %2849 = vmatpush.msrb.mxu3 %v4181_v56  ;;  %2889 = vmatpush.msrb.mxu1 %v4182_v28  ;;  %v4212_v56 = vld [vmem:[#allocation8 + $0x3b8] sm:$0xff]  ;;  %v4213_v28 = vld [vmem:[#allocation8 + $0x1d0] sm:$0xff] }
 0xa23   : > { %2829 = vmatpush.msrb.mxu2 %v4183_v31  ;;  %2869 = vmatpush.msrb.mxu0 %v4184_v8  ;;  %v4214_v31 = vld [vmem:[#allocation8 + $0x1d8] sm:$0xff]  ;;  %v4215_v8 = vld [vmem:[#allocation8 + $0x390] sm:$0xff] }
 0xa24   : > { %2850 = vmatpush.msrb.mxu3 %v4185_v35  ;;  %2890 = vmatpush.msrb.mxu1 %v4186_v36  ;;  %v4216_v35 = vld [vmem:[#allocation8 + $0x398] sm:$0xff]  ;;  %v4217_v36 = vld [vmem:[#allocation8 + $0x1b0] sm:$0xff] }
 0xa25   : > { %2830 = vmatpush.msrb.mxu2 %v4187_v49  ;;  %2870 = vmatpush.msrb.mxu0 %v4188_v61  ;;  %v4218_v49 = vld [vmem:[#allocation8 + $0x1b8] sm:$0xff]  ;;  %v4219_v61 = vld [vmem:[#allocation8 + $0x370] sm:$0xff] }
 0xa26   : > { %2851 = vmatpush.msrb.mxu3 %v4189_v16  ;;  %2891 = vmatpush.msrb.mxu1 %v4190_v19  ;;  %v4220_v16 = vld [vmem:[#allocation8 + $0x378] sm:$0xff]  ;;  %v4221_v19 = vld [vmem:[#allocation8 + $0x190] sm:$0xff] }
 0xa27   : > { %2831 = vmatpush.msrb.mxu2 %v4191_v50  ;;  %2871 = vmatpush.msrb.mxu0 %v4192_v63  ;;  %v4222_v50 = vld [vmem:[#allocation8 + $0x198] sm:$0xff]  ;;  %v4223_v63 = vld [vmem:[#allocation8 + $0x350] sm:$0xff] }
 0xa28   : > { %2852 = vmatpush.msrb.mxu3 %v4193_v15  ;;  %2892 = vmatpush.msrb.mxu1 %v4194_v38  ;;  %v4224_v15 = vld [vmem:[#allocation8 + $0x358] sm:$0xff]  ;;  %v4225_v38 = vld [vmem:[#allocation8 + $0x170] sm:$0xff] }
 0xa29   : > { %2832 = vmatpush.msrb.mxu2 %v4195_v46  ;;  %2872 = vmatpush.msrb.mxu0 %v4196_v0  ;;  %v4226_v46 = vld [vmem:[#allocation8 + $0x178] sm:$0xff]  ;;  %v4227_v0 = vld [vmem:[#allocation8 + $0x330] sm:$0xff] }
 0xa2a   : > { %2853 = vmatpush.msrb.mxu3 %v4197_v5  ;;  %2893 = vmatpush.msrb.mxu1 %v4198_v9  ;;  %v4228_v5 = vld [vmem:[#allocation8 + $0x338] sm:$0xff]  ;;  %v4229_v9 = vld [vmem:[#allocation8 + $0x150] sm:$0xff] }
 0xa2b   : > { %2833 = vmatpush.msrb.mxu2 %v4199_v23  ;;  %2873 = vmatpush.msrb.mxu0 %v4200_v7  ;;  %v4230_v23 = vld [vmem:[#allocation8 + $0x158] sm:$0xff]  ;;  %v4231_v7 = vld [vmem:[#allocation8 + $0x310] sm:$0xff] }
 0xa2c   : > { %2854 = vmatpush.msrb.mxu3 %v4201_v17  ;;  %2894 = vmatpush.msrb.mxu1 %v4202_v2  ;;  %v4232_v17 = vld [vmem:[#allocation8 + $0x318] sm:$0xff]  ;;  %v4233_v2 = vld [vmem:[#allocation8 + $0x130] sm:$0xff] }
 0xa2d   : > { %2834 = vmatpush.msrb.mxu2 %v4205_v51  ;;  %2874 = vmatpush.msrb.mxu0 %v4206_v27  ;;  %v4236_v51 = vld [vmem:[#allocation8 + $0x2f8] sm:$0xff]  ;;  %v4237_v27 = vld [vmem:[#allocation8 + $0x110] sm:$0xff] }
 0xa2e   : > { %2919 = vmatpush.msra.mxu3 %v4203_v52  ;;  %2959 = vmatpush.msra.mxu1 %v4204_v20  ;;  %v4234_v52 = vld [vmem:[#allocation8 + $0x138] sm:$0xff]  ;;  %v4235_v20 = vld [vmem:[#allocation8 + $0x2f0] sm:$0xff] }
 0xa2f   : > { %2899 = vmatpush.msra.mxu2 %v4209_v62  ;;  %2939 = vmatpush.msra.mxu0 %v4210_v4  ;;  %v4240_v62 = vld [vmem:[#allocation8 + $0x2d8] sm:$0xff]  ;;  %v4241_v4 = vld [vmem:[#allocation8 + $0xf0] sm:$0xff] }
 0xa30   : > { %2920 = vmatpush.msra.mxu3 %v4207_v34  ;;  %2960 = vmatpush.msra.mxu1 %v4208_v6  ;;  %v4238_v34 = vld [vmem:[#allocation8 + $0x118] sm:$0xff]  ;;  %v4239_v6 = vld [vmem:[#allocation8 + $0x2d0] sm:$0xff] }
 0xa31   : > { %2900 = vmatpush.msra.mxu2 %v4213_v28  ;;  %2940 = vmatpush.msra.mxu0 %v4214_v31  ;;  %v4244_v28 = vld [vmem:[#allocation8 + $0x2b8] sm:$0xff]  ;;  %v4245_v31 = vld [vmem:[#allocation8 + $0xd0] sm:$0xff] }
 0xa32   : > { %2921 = vmatpush.msra.mxu3 %v4211_v3  ;;  %2961 = vmatpush.msra.mxu1 %v4212_v56  ;;  %v4242_v3 = vld [vmem:[#allocation8 + $0xf8] sm:$0xff]  ;;  %v4243_v56 = vld [vmem:[#allocation8 + $0x2b0] sm:$0xff] }
 0xa33   : > { %2901 = vmatpush.msra.mxu2 %v4217_v36  ;;  %2941 = vmatpush.msra.mxu0 %v4218_v49  ;;  %v4248_v36 = vld [vmem:[#allocation8 + $0x298] sm:$0xff]  ;;  %v4249_v49 = vld [vmem:[#allocation8 + $0xb0] sm:$0xff] }
 0xa34   : > { %2922 = vmatpush.msra.mxu3 %v4215_v8  ;;  %2962 = vmatpush.msra.mxu1 %v4216_v35  ;;  %v4246_v8 = vld [vmem:[#allocation8 + $0xd8] sm:$0xff]  ;;  %v4247_v35 = vld [vmem:[#allocation8 + $0x290] sm:$0xff] }
 0xa35   : > { %2902 = vmatpush.msra.mxu2 %v4221_v19  ;;  %2942 = vmatpush.msra.mxu0 %v4222_v50  ;;  %v4252_v19 = vld [vmem:[#allocation8 + $0x278] sm:$0xff]  ;;  %v4253_v50 = vld [vmem:[#allocation8 + $0x90] sm:$0xff] }
 0xa36   : > { %2923 = vmatpush.msra.mxu3 %v4219_v61  ;;  %2963 = vmatpush.msra.mxu1 %v4220_v16  ;;  %v4250_v61 = vld [vmem:[#allocation8 + $0xb8] sm:$0xff]  ;;  %v4251_v16 = vld [vmem:[#allocation8 + $0x270] sm:$0xff] }
 0xa37   : > { %2903 = vmatpush.msra.mxu2 %v4225_v38  ;;  %2943 = vmatpush.msra.mxu0 %v4226_v46  ;;  %v4256_v38 = vld [vmem:[#allocation8 + $0x258] sm:$0xff]  ;;  %v4257_v46 = vld [vmem:[#allocation8 + $0x70] sm:$0xff] }
 0xa38   : > { %2924 = vmatpush.msra.mxu3 %v4223_v63  ;;  %2964 = vmatpush.msra.mxu1 %v4224_v15  ;;  %v4254_v63 = vld [vmem:[#allocation8 + $0x98] sm:$0xff]  ;;  %v4255_v15 = vld [vmem:[#allocation8 + $0x250] sm:$0xff] }
 0xa39   : > { %2904 = vmatpush.msra.mxu2 %v4229_v9  ;;  %2944 = vmatpush.msra.mxu0 %v4230_v23  ;;  %v4260_v9 = vld [vmem:[#allocation8 + $0x238] sm:$0xff]  ;;  %v4261_v23 = vld [vmem:[#allocation8 + $0x50] sm:$0xff] }
 0xa3a   : > { %2925 = vmatpush.msra.mxu3 %v4227_v0  ;;  %2965 = vmatpush.msra.mxu1 %v4228_v5  ;;  %v4258_v0 = vld [vmem:[#allocation8 + $0x78] sm:$0xff]  ;;  %v4259_v5 = vld [vmem:[#allocation8 + $0x230] sm:$0xff] }
 0xa3b   : > { %2905 = vmatpush.msra.mxu2 %v4233_v2  ;;  %2945 = vmatpush.msra.mxu0 %v4234_v52  ;;  %v4264_v2 = vld [vmem:[#allocation8 + $0x218] sm:$0xff]  ;;  %v4265_v52 = vld [vmem:[#allocation8 + $0x30] sm:$0xff] }
 0xa3c   : > { %2926 = vmatpush.msra.mxu3 %v4231_v7  ;;  %2966 = vmatpush.msra.mxu1 %v4232_v17  ;;  %v4262_v7 = vld [vmem:[#allocation8 + $0x58] sm:$0xff]  ;;  %v4263_v17 = vld [vmem:[#allocation8 + $0x210] sm:$0xff] }
 0xa3d   : > { %2906 = vmatpush.msra.mxu2 %v4237_v27  ;;  %2946 = vmatpush.msra.mxu0 %v4238_v34  ;;  %v4268_v27 = vld [vmem:[#allocation8 + $0x18] sm:$0xff] }
 0xa3e   : > { %2927 = vmatpush.msra.mxu3 %v4235_v20  ;;  %2967 = vmatpush.msra.mxu1 %v4236_v51  ;;  %v4266_v20 = vld [vmem:[#allocation8 + $0x38] sm:$0xff]  ;;  %v4267_v51 = vld [vmem:[#allocation8 + $0x10] sm:$0xff] }
 0xa3f   : > { %2907 = vmatpush.msra.mxu2 %v4241_v4  ;;  %2947 = vmatpush.msra.mxu0 %v4242_v3 }
 0xa40   : > { %2928 = vmatpush.msra.mxu3 %v4239_v6  ;;  %2968 = vmatpush.msra.mxu1 %v4240_v62 }
 0xa41   : > { %2908 = vmatpush.msra.mxu2 %v4245_v31  ;;  %2948 = vmatpush.msra.mxu0 %v4246_v8 }
 0xa42   : > { %2929 = vmatpush.msra.mxu3 %v4243_v56  ;;  %2969 = vmatpush.msra.mxu1 %v4244_v28 }
 0xa43   : > { %2909 = vmatpush.msra.mxu2 %v4249_v49  ;;  %2949 = vmatpush.msra.mxu0 %v4250_v61 }
 0xa44   : > { %2930 = vmatpush.msra.mxu3 %v4247_v35  ;;  %2970 = vmatpush.msra.mxu1 %v4248_v36 }
 0xa45   : > { %2910 = vmatpush.msra.mxu2 %v4253_v50  ;;  %2950 = vmatpush.msra.mxu0 %v4254_v63 }
 0xa46   : > { %2931 = vmatpush.msra.mxu3 %v4251_v16  ;;  %2971 = vmatpush.msra.mxu1 %v4252_v19 }
 0xa47   : > { %2911 = vmatpush.msra.mxu2 %v4257_v46  ;;  %2951 = vmatpush.msra.mxu0 %v4258_v0 }
 0xa48   : > { %2932 = vmatpush.msra.mxu3 %v4255_v15  ;;  %2972 = vmatpush.msra.mxu1 %v4256_v38 }
 0xa49   : > { %2912 = vmatpush.msra.mxu2 %v4261_v23  ;;  %2952 = vmatpush.msra.mxu0 %v4262_v7 }
 0xa4a   : > { %2933 = vmatpush.msra.mxu3 %v4259_v5  ;;  %2973 = vmatpush.msra.mxu1 %v4260_v9 }
 0xa4b   : > { %2913 = vmatpush.msra.mxu2 %v4265_v52  ;;  %2953 = vmatpush.msra.mxu0 %v4266_v20  ;;  %v6513_v52 = vld [vmem:[#allocation50_spill] sm:$0xff] }
 0xa4c   : > { %2934 = vmatpush.msra.mxu3 %v4263_v17  ;;  %2974 = vmatpush.msra.mxu1 %v4264_v2 }
 0xa4d   : > { %2914 = vmatpush.msra.mxu2 %v4267_v51  ;;  %2954 = vmatpush.msra.mxu0 %v4268_v27 }
 0xa87   : > { %v2662_v34 = vpop.f32.mrf.mxu0 }
 0xa88   : > { %v2682_v6 = vpop.f32.mrf.mxu1 }
 0xa89   : > { %v2683_v62 = vadd.f32 %v2682_v6, %v2662_v34 }
 0xa8b   : > { %v2776_v31 = vrot.slane %v2683_v62, 4 }
 0xa8d   : > { %v2622_v4 = vpop.f32.mrf.mxu2 }
 0xa8e   : > { %v2642_v3 = vpop.f32.mrf.mxu3 }
 0xa8f   : > { %v2742_v56 = vpop.f32.mrf.mxu0  ;;  %v2643_v35 = vadd.f32 %v2642_v3, %v2622_v4 }
 0xa90   : > { %v2762_v28 = vpop.f32.mrf.mxu1 }
 0xa91   : > { %v2763_v8 = vadd.f32 %v2762_v28, %v2742_v56  ;;  %v2775_v63 = vrot.slane %v2643_v35, 4  ;;  %v6515_v28 = vld [vmem:[#allocation51_spill] sm:$0xff] }
 0xa92   : > { %vm6516_vm0 = vcmp.eq.s32.totalorder %v6515_v28, 1 }
 0xa93   : > { %v2768_v36 = vrot.slane %v2763_v8, 4  ;;  %v2780_v49 = vadd.f32 %v2776_v31, %v2763_v8 }
 0xa95   : > { %v2772_v61 = vsub.f32 %v2683_v62, %v2768_v36  ;;  %v2788_v16 = vsub.f32 %v2780_v49, %v5630_v25  ;;  %v2702_v19 = vpop.f32.mrf.mxu2  ;;  %v2810_v34 = vrot.slane %v2780_v49, 4 }
 0xa96   : > { %v2722_v50 = vpop.f32.mrf.mxu3 }
 0xa97   : > { %v2782_v15 = vsub.f32 %v2772_v61, %v5627_v60  ;;  %v2790_v38 = vsel %vm6511_vm14, %v2788_v16, 0.0  ;;  %v2723_v46 = vadd.f32 %v2722_v50, %v2702_v19  ;;  %vm6518_vm14 = vmmov %vm6517_vm7 }
 0xa98   : > { %v2792_v0 = vmul.f32 %v2790_v38, %v5623_v21 }
 0xa99   : > { %v2784_v5 = vsel %vm6512_vm1, %v2782_v15, 0.0  ;;  %v2767_v9 = vrot.slane %v2723_v46, 4  ;;  %v2779_v23 = vadd.f32 %v2775_v63, %v2723_v46  ;;  %vm6519_vm1 = vmmov %vm6517_vm7 }
 0xa9a   : > { %v2786_v7 = vmul.f32 %v2784_v5, %v5623_v21  ;;  %v2802_v17 = vrot.slane %v2792_v0, 4 }
 0xa9b   : > { %v2771_v2 = vsub.f32 %v2643_v35, %v2767_v9  ;;  %v2787_v20 = vsub.f32 %v2779_v23, %v6513_v52  ;;  %v2809_v16 = vrot.slane %v2779_v23, 4 }
 0xa9c   : > { %v2794_v51 = vsub.f32 %v5627_v60, %v2786_v7  ;;  %v2806_v27 = vsub.f32 %v5627_v60, %v2802_v17 }
 0xa9d   : > { %v2781_v6 = vsub.f32 %v2771_v2, %v5615_v1  ;;  %v2789_v62 = vsel %vm6514_vm15, %v2787_v20, 0.0  ;;  %vm6520_vm15 = vmmov %vm6519_vm1 }
 0xa9e   : > { %v2796_v4 = vsub.f32 %v2794_v51, %v2772_v61  ;;  %v2814_v3 = vsub.f32 %v2806_v27, %v2810_v34  ;;  %v2791_v56 = vmul.f32 %v2789_v62, %v5623_v21 }
 0xa9f   : > { %v2783_v31 = vsel %vm6516_vm0, %v2781_v6, 0.0  ;;  %vm6521_vm0 = vcmask 1040384  }
 0xaa0   : > { %2798 = vst [vmem:[#allocation5 + $0x8] sm:$0xf] %v2796_v4  ;;  %v2785_v8 = vmul.f32 %v2783_v31, %v5623_v21  ;;  %v2801_v35 = vrot.slane %v2791_v56, 4 }
 0xaa1   : > { %2816 = vst [vmem:[#allocation5 + $0x8] sm:$0xf0] %v2814_v3 }
 0xaa2   : > { %v2793_v36 = vsub.f32 %v5615_v1, %v2785_v8  ;;  %v2805_v49 = vsub.f32 %v5615_v1, %v2801_v35 }
 0xaa4   : > { %v2795_v19 = vsub.f32 %v2793_v36, %v2771_v2  ;;  %v2813_v50 = vsub.f32 %v2805_v49, %v2809_v16 }
 0xaa6   : > { %2797 = vst [vmem:[#allocation5] sm:$0xf] %v2795_v19 }
 0xaa7   : > { %2815 = vst [vmem:[#allocation5] sm:$0xf0] %v2813_v50 }
 0xaa8   : > { %v2818_v61 = vld [vmem:[#allocation5 + $0x8] sm:$0xff] }
 0xaa9   : > { %2855 = vmatmul.f32.vlgmr.msrb.gmra.mxu3 %v2818_v61  ;;  %2895 = vmatmul.f32.vlgmr.msrb.gmra.mxu1 %v2818_v61 }
 0xaae   : > { %v2817_v63 = vld [vmem:[#allocation5] sm:$0xff] }
 0xaaf   : > { %2835 = vmatmul.f32.vlgmr.msrb.gmra.mxu2 %v2817_v63  ;;  %2875 = vmatmul.f32.vlgmr.msrb.gmra.mxu0 %v2817_v63 }
 0xab1   : > { %2935 = vmatmul.f32.vlgmr.msra.gmra.mxu3 %v2818_v61  ;;  %2975 = vmatmul.f32.vlgmr.msra.gmra.mxu1 %v2818_v61 }
 0xab7   : > { %2915 = vmatmul.f32.vlgmr.msra.gmra.mxu2 %v2817_v63  ;;  %2955 = vmatmul.f32.vlgmr.msra.gmra.mxu0 %v2817_v63 }
 0xb26   : > { %v2896_v15 = vpop.f32.mrf.mxu1 }
 0xb2c   : > { %v2876_v38 = vpop.f32.mrf.mxu0  ;;  %v2856_v46 = vpop.f32.mrf.mxu3 }
 0xb2d   : > { %v2897_v0 = vadd.f32 %v2896_v15, %v2876_v38 }
 0xb2e   : > { %v2976_v9 = vpop.f32.mrf.mxu1 }
 0xb2f   : > { %v2990_v7 = vrot.slane %v2897_v0, 4 }
 0xb32   : > { %v2836_v5 = vpop.f32.mrf.mxu2 }
 0xb33   : > { %v2857_v2 = vadd.f32 %v2856_v46, %v2836_v5 }
 0xb34   : > { %v2956_v23 = vpop.f32.mrf.mxu0  ;;  %v2936_v6 = vpop.f32.mrf.mxu3 }
 0xb35   : > { %v2977_v17 = vadd.f32 %v2976_v9, %v2956_v23  ;;  %v2989_v34 = vrot.slane %v2857_v2, 4 }
 0xb37   : > { %v2982_v20 = vrot.slane %v2977_v17, 4  ;;  %v2994_v51 = vadd.f32 %v2990_v7, %v2977_v17 }
 0xb39   : > { %v2986_v27 = vsub.f32 %v2897_v0, %v2982_v20  ;;  %v2998_v62 = vmul.f32 %v2994_v51, %v6486_v37  ;;  %v3022_v56 = vmul.f32 %v2994_v51, %v6485_v54 }
 0xb3a   : > { %v2916_v4 = vpop.f32.mrf.mxu2 }
 0xb3b   : > { %v2996_v3 = vmul.f32 %v2986_v27, %v6485_v54  ;;  %v3024_v31 = vmul.f32 %v2986_v27, %v6486_v37  ;;  %v2937_v8 = vadd.f32 %v2936_v6, %v2916_v4 }
 0xb3d   : > { %v3000_v35 = vadd.f32 %v2998_v62, %v2996_v3  ;;  %v3026_v36 = vsub.f32 %v3022_v56, %v3024_v31  ;;  %v2981_v49 = vrot.slane %v2937_v8, 4  ;;  %v2993_v16 = vadd.f32 %v2989_v34, %v2937_v8 }
 0xb3f   : > { %v3008_v19 = vsel %vm6517_vm7, %v3000_v35, 0.0  ;;  %v3034_v50 = vsel %vm6518_vm14, %v3026_v36, 0.0  ;;  %v2985_v61 = vsub.f32 %v2857_v2, %v2981_v49  ;;  %v2997_v46 = vmul.f32 %v2993_v16, %v6483_v55  ;;  %vm6522_vm7 = vmmov %vm6521_vm0 }
 0xb40   : > { %v3009_v63 = vrot.slane %v3008_v19, 4  ;;  %v3035_v15 = vrot.slane %v3034_v50, 4  ;;  %v3021_v0 = vmul.f32 %v2993_v16, %v6484_v40 }
 0xb41   : > { %v2995_v38 = vmul.f32 %v2985_v61, %v6484_v40  ;;  %v3023_v5 = vmul.f32 %v2985_v61, %v6483_v55 }
 0xb42   : > { %v3010_v9 = vadd.f32 %v3009_v63, %v3008_v19  ;;  %v3036_v23 = vadd.f32 %v3035_v15, %v3034_v50 }
 0xb43   : > { %v2999_v7 = vadd.f32 %v2997_v46, %v2995_v38  ;;  %v3025_v17 = vsub.f32 %v3021_v0, %v3023_v5 }
 0xb44   : > { %v3011_v20 = vrot.slane %v3010_v9, 2  ;;  %v3037_v51 = vrot.slane %v3036_v23, 2 }
 0xb45   : > { %v3001_v27 = vsel %vm6519_vm1, %v2999_v7, 0.0  ;;  %v3027_v2 = vsel %vm6520_vm15, %v3025_v17, 0.0 }
 0xb46   : > { %v3012_v34 = vadd.f32 %v3011_v20, %v3010_v9  ;;  %v3038_v6 = vadd.f32 %v3037_v51, %v3036_v23  ;;  %v3002_v62 = vrot.slane %v3001_v27, 4  ;;  %v3028_v4 = vrot.slane %v3027_v2, 4 }
 0xb48   : > { %v3013_v3 = vrot.slane %v3012_v34, 1  ;;  %v3039_v56 = vrot.slane %v3038_v6, 1  ;;  %v3003_v31 = vadd.f32 %v3002_v62, %v3001_v27  ;;  %v3029_v8 = vadd.f32 %v3028_v4, %v3027_v2 }
 0xb4a   : > { %v3004_v35 = vrot.slane %v3003_v31, 2  ;;  %v3030_v36 = vrot.slane %v3029_v8, 2  ;;  %v3014_v49 = vadd.f32 %v3013_v3, %v3012_v34  ;;  %v3040_v16 = vadd.f32 %v3039_v56, %v3038_v6 }
 0xb4c   : > { %v3005_v19 = vadd.f32 %v3004_v35, %v3003_v31  ;;  %v3031_v50 = vadd.f32 %v3030_v36, %v3029_v8  ;;  %v3017_v15 = vrot.slane %v3014_v49, 7  ;;  %v3043_v38 = vrot.slane %v3040_v16, 7 }
 0xb4e   : > { %v3006_v61 = vrot.slane %v3005_v19, 1  ;;  %v3032_v63 = vrot.slane %v3031_v50, 1 }
 0xb50   : > { %v3007_v46 = vadd.f32 %v3006_v61, %v3005_v19  ;;  %v3033_v0 = vadd.f32 %v3032_v63, %v3031_v50 }
 0xb52   : > { %v3018_v5 = vsel %vm6521_vm0, %v3007_v46, %v3017_v15  ;;  %v3044_v9 = vsel %vm6522_vm7, %v3033_v0, %v3043_v38 }
 0xb53   : > { %3020 = vst.msk [vmem:[#allocation2] ss:$2 sm:$0x3] %vm5168_vm8, %v3018_v5 }
 0xb54   : > { %3046 = vst.msk [vmem:[#allocation2 + $0x1] ss:$2 sm:$0x3] %vm5168_vm8, %v3044_v9 }
 0xb5b   : > { %v3047_v23 = vld [vmem:[#allocation2] sm:$0xf] }
 0xb5c   : > { %3049 = vst [vmem:[#allocation1] ss:$4 sm:$0xff] %v3047_v23 }
 0xb63   : > { %v3050_v7 = vld.sshfl [vmem:[#allocation1] sm:$0xff pattern:$0x73625140]  ;;  %v3051_v17 = vld.sshfl [vmem:[#allocation1 + $0x8] sm:$0xff pattern:$0x73625140] }
 0xb64   : > { %v3054_v20 = vsel %vm1147_vm9, %v3050_v7, 0.0  ;;  %v3055_v51 = vsel %vm1147_vm9, %v3051_v17, 0.0 }
 0xb65   : > { %v3056_v27 = vadd.f32 %v3055_v51, %v3054_v20 }
 0xb67   : > { %3057 = vadd.xlane.f32.xlu2 %v3056_v27 }
 0xbda   : > { %v3058_v2 = vpop.xlane.xlu2 %3057 }
 0xbdb   : > { %v5939_v34 = vmul.f32 %v3058_v2, %v6488_v57 }
 0xbdd   : > { %v3064_v6 = vperm.slane %v5939_v34, %v6489_v39 }
 0xbdf   : > { %v3066_v62 = vsub.f32 %v3047_v23, %v3064_v6 }
 0xbe1   : > { %v3067_v47 = vmul.f32 %v3066_v62, %v3066_v62 }
 0xbe3   : > { %3069 = vst [vmem:[#allocation1] ss:$4 sm:$0xff] %v3067_v47 }
 0xbea   : > { %v3070_v4 = vld.sshfl [vmem:[#allocation1] sm:$0xff pattern:$0x73625140]  ;;  %v3071_v3 = vld.sshfl [vmem:[#allocation1 + $0x8] sm:$0xff pattern:$0x73625140] }
 0xbeb   : > { %v3074_v56 = vsel %vm1147_vm9, %v3070_v4, 0.0  ;;  %v3075_v31 = vsel %vm1147_vm9, %v3071_v3, 0.0 }
 0xbec   : > { %v3076_v8 = vadd.f32 %v3075_v31, %v3074_v56 }
 0xbee   : > { %3077 = vadd.xlane.f32.xlu0 %v3076_v8 }
 0xc61   : > { %v3078_v35 = vpop.xlane.xlu0 %3077 }
 0xc62   : > { %v3079_v36 = vmul.f32 %v3078_v35, %v6490_v45 }
 0xc64   : > { %3926 = vrsqrt.f32 %v3079_v36  ;;  %vm3098_vm14 = vweird.f32 %v3079_v36  ;;  %vm3087_vm15 = vcmp.eq.f32.partialorder %v3079_v36, inf  ;;  %v3090_v46 = vand.u32 2147483648, %v3079_v36 }
 0xc65   : > { %vm3089_vm0 = vcmp.eq.f32.partialorder %v3079_v36, 0.0 }
 0xc6a   : > { %v3927_v57 = vpop.eup %3926 }
 0xc6b   : > { %v3081_v49 = vmul.f32 %v3927_v57, %v3079_v36  ;;  %vm3099_vm8 = vweird.f32 %v3927_v57 }
 0xc6c   : > { %vm3100_vm1 = vmor %vm3098_vm14, %vm3099_vm8 }
 0xc6d   : > { %v3082_v16 = vmul.f32 %v3927_v57, %v3081_v49 }
 0xc6f   : > { %v3083_v19 = vmul.f32 0.5, %v3082_v16 }
 0xc71   : > { %v3084_v50 = vsub.f32 1.5, %v3083_v19 }
 0xc73   : > { %v3085_v61 = vmul.f32 %v3927_v57, %v3084_v50 }
 0xc75   : > { %v3101_v63 = vsel %vm3100_vm1, %v3927_v57, %v3085_v61  ;;  %v3086_v15 = vmul.f32 %v3085_v61, %v3079_v36 }
 0xc76   : > { %v3106_v38 = vperm.slane %v3101_v63, %v6489_v39 }
 0xc77   : > { %v3088_v0 = vsel %vm3087_vm15, %v3079_v36, %v3086_v15  ;;  %v3282_v36 = vld [vmem:[%s6153_s5] sm:$0xff] }
 0xc78   : > { %v3108_v5 = vmul.f32 %v3106_v38, %v3066_v62  ;;  %v5947_v45 = vsel %vm3089_vm0, %v3090_v46, %v3088_v0 }
 0xc7a   : > { %3110 = vst [vmem:[#allocation1] ss:$4 sm:$0xff] %v3108_v5  ;;  %v3188_v51 = vmul.f32 %v3108_v5, %v6491_v44 }
 0xc81   : > { %v3111_v9 = vld.sshfl [vmem:[#allocation1] sm:$0xff pattern:$0x73625140]  ;;  %v3112_v23 = vld.sshfl [vmem:[#allocation1 + $0x8] sm:$0xff pattern:$0x73625140] }
 0xc82   : > { %3125 = vst [vmem:[#allocation1] ss:$4 sm:$0xff] %v3108_v5 }
 0xc89   : > { %v3127_v7 = vld.sshfl [vmem:[#allocation1 + $0x8] sm:$0xff pattern:$0x73625140]  ;;  %v3126_v17 = vld.sshfl [vmem:[#allocation1] sm:$0xff pattern:$0x73625140] }
 0xc8a   : > { %3132 = vrot.lane.b32.xlu0 %v3127_v7, %s4482_s16  ;;  %3130 = vrot.lane.b32.xlu1 %v3126_v17, %s4482_s16  ;;  %3146 = vst [vmem:[#allocation1] ss:$4 sm:$0xff] %v3108_v5 }
 0xc91   : > { %v3148_v20 = vld.sshfl [vmem:[#allocation1 + $0x8] sm:$0xff pattern:$0x73625140]  ;;  %v3147_v39 = vld.sshfl [vmem:[#allocation1] sm:$0xff pattern:$0x73625140] }
 0xc92   : > { %3153 = vrot.lane.b32.xlu2 %v3148_v20, %s4483_s9  ;;  %3151 = vrot.lane.b32.xlu1 %v3147_v39, %s4483_s9  ;;  %3167 = vst [vmem:[#allocation1] ss:$4 sm:$0xff] %v3108_v5 }
 0xc99   : > { %v3168_v27 = vld.sshfl [vmem:[#allocation1] sm:$0xff pattern:$0x73625140]  ;;  %v3169_v2 = vld.sshfl [vmem:[#allocation1 + $0x8] sm:$0xff pattern:$0x73625140] }
 0xc9a   : > { %3172 = vrot.lane.b32.xlu0 %v3168_v27, %s4484_s20  ;;  %3190 = vst [vmem:[#allocation1] ss:$4 sm:$0xff] %v3188_v51 }
 0xca1   : > { %v3191_v6 = vld.sshfl [vmem:[#allocation1] sm:$0xff pattern:$0x73625140]  ;;  %v3192_v62 = vld.sshfl [vmem:[#allocation1 + $0x8] sm:$0xff pattern:$0x73625140] }
 0xca2   : > { %3197 = vst [vmem:[#allocation1] ss:$4 sm:$0xff] %v3108_v5 }
 0xca3   : > { %3195 = vst [vmem:[#allocation3 + $0x8] sm:$0x3] %v3191_v6 }
 0xca4   : > { %3196 = vst [vmem:[#allocation3] sm:$0x3] %v3192_v62 }
 0xca9   : > { %v3198_v47 = vld.sshfl [vmem:[#allocation1] sm:$0xff pattern:$0x73625140]  ;;  %v3199_v4 = vld.sshfl [vmem:[#allocation1 + $0x8] sm:$0xff pattern:$0x73625140] }
 0xcaa   : > { %3202 = vrot.lane.b32.xlu1 %v3198_v47, %s4485_s21  ;;  %3218 = vst [vmem:[#allocation1] ss:$4 sm:$0xff] %v3108_v5 }
 0xcb1   : > { %v3219_v3 = vld.sshfl [vmem:[#allocation1] sm:$0xff pattern:$0x73625140]  ;;  %v3220_v56 = vld.sshfl [vmem:[#allocation1 + $0x8] sm:$0xff pattern:$0x73625140] }
 0xcb2   : > { %3204 = vrot.lane.b32.xlu1 %v3199_v4, %s4485_s21  ;;  %3239 = vst [vmem:[#allocation1] ss:$4 sm:$0xff] %v3108_v5 }
 0xcb9   : > { %v3241_v44 = vld.sshfl [vmem:[#allocation1 + $0x8] sm:$0xff pattern:$0x73625140]  ;;  %v3240_v31 = vld.sshfl [vmem:[#allocation1] sm:$0xff pattern:$0x73625140] }
 0xcba   : > { %3223 = vrot.lane.b32.xlu1 %v3219_v3, %s4486_s22  ;;  %3246 = vrot.lane.b32.xlu2 %v3241_v44, %s4487_s23  ;;  %3260 = vst [vmem:[#allocation1] ss:$4 sm:$0xff] %v3108_v5 }
 0xcc1   : > { %v3261_v8 = vld.sshfl [vmem:[#allocation1] sm:$0xff pattern:$0x73625140]  ;;  %v3262_v35 = vld.sshfl [vmem:[#allocation1 + $0x8] sm:$0xff pattern:$0x73625140] }
 0xcc2   : > { %3225 = vrot.lane.b32.xlu1 %v3220_v56, %s4486_s22  ;;  %3115 = vrot.lane.b32.xlu2 %v3111_v9, %s4489_s25 }
 0xcc3   : > { %3265 = vrot.lane.b32.xlu0 %v3261_v8, %s4488_s24 }
 0xcca   : > { %3244 = vrot.lane.b32.xlu1 %v3240_v31, %s4487_s23 }
 0xccb   : > { %3117 = vrot.lane.b32.xlu0 %v3112_v23, %s4489_s25 }
 0xcd2   : > { %3267 = vrot.lane.b32.xlu1 %v3262_v35, %s4488_s24 }
 0xcda   : > { %3174 = vrot.lane.b32.xlu1 %v3169_v2, %s4484_s20 }
 0xce2   : > { %3285 = vperm.xlu1 %3910, %v3282_v36  }
 0xcec   : > { %v3154_v38 = vpop.permute.xlu2 %3153 }
 0xcfc   : > { %v3133_v57 = vpop.permute.xlu0 %3132  ;;  %v3131_v49 = vpop.permute.xlu1 %3130 }
 0xcfd   : > { %v3134_v16 = vsel %vm1247_vm2, %v3131_v49, %v3133_v57  ;;  %v3135_v19 = vsel %vm1247_vm2, %v3133_v57, %v3131_v49 }
 0xcfe   : > { %v3136_v50 = vmul.f32 %v3135_v19, %v6493_v12  ;;  %v3137_v61 = vmul.f32 %v3134_v16, %v6494_v24 }
 0xd00   : > { %v3140_v63 = vrot.slane %v3136_v50, 6  ;;  %v3141_v15 = vrot.slane %v3137_v61, 6 }
 0xd02   : > { %3144 = vst [vmem:[#allocation3 + $0x28] sm:$0xc] %v3140_v63 }
 0xd03   : > { %3145 = vst [vmem:[#allocation3 + $0x10] sm:$0xc] %v3141_v15 }
 0xd04   : > { %v3152_v46 = vpop.permute.xlu1 %3151 }
 0xd05   : > { %v3155_v0 = vsel %vm1271_vm3, %v3152_v46, %v3154_v38  ;;  %v3156_v5 = vsel %vm1271_vm3, %v3154_v38, %v3152_v46 }
 0xd06   : > { %v3157_v9 = vmul.f32 %v3156_v5, %v6495_v13  ;;  %v3158_v23 = vmul.f32 %v3155_v0, %v6496_v10 }
 0xd08   : > { %v3161_v7 = vrot.slane %v3157_v9, 4  ;;  %v3162_v17 = vrot.slane %v3158_v23, 4 }
 0xd0a   : > { %3165 = vst [vmem:[#allocation3 + $0x28] sm:$0x30] %v3161_v7 }
 0xd0b   : > { %3166 = vst [vmem:[#allocation3 + $0x10] sm:$0x30] %v3162_v17 }
 0xd0c   : > { %v3173_v3 = vpop.permute.xlu0 %3172 }
 0xd14   : > { %v3247_v56 = vpop.permute.xlu2 %3246 }
 0xd1c   : > { %v3203_v20 = vpop.permute.xlu1 %3202  ;;  %v3116_v50 = vpop.permute.xlu2 %3115 }
 0xd24   : > { %v3205_v39 = vpop.permute.xlu1 %3204 }
 0xd25   : > { %v3206_v51 = vsel %vm1335_vm5, %v3203_v20, %v3205_v39  ;;  %v3207_v27 = vsel %vm1335_vm5, %v3205_v39, %v3203_v20 }
 0xd26   : > { %v3208_v2 = vmul.f32 %v3206_v51, %v6499_v42  ;;  %v3209_v6 = vmul.f32 %v3207_v27, %v6500_v11  ;;  %v6012_v27 = vld [vmem:[%s6156_s8 + $0x10] ss:$0 sm:$0xff] }
 0xd28   : > { %v3212_v62 = vrot.slane %v3208_v2, 6  ;;  %v3213_v47 = vrot.slane %v3209_v6, 6  ;;  %v6018_v6 = vld [vmem:[%s6156_s8 + $0x18] ss:$0 sm:$0xff] }
 0xd2a   : > { %3216 = vst [vmem:[#allocation3 + $0x8] sm:$0xc] %v3212_v62 }
 0xd2b   : > { %3217 = vst [vmem:[#allocation3] sm:$0xc] %v3213_v47 }
 0xd2c   : > { %v3224_v4 = vpop.permute.xlu1 %3223 }
 0xd34   : > { %v3226_v44 = vpop.permute.xlu1 %3225 }
 0xd35   : > { %v3227_v31 = vsel %vm1359_vm4, %v3224_v4, %v3226_v44  ;;  %v3228_v8 = vsel %vm1359_vm4, %v3226_v44, %v3224_v4  ;;  %v3266_v35 = vpop.permute.xlu0 %3265 }
 0xd36   : > { %v3229_v36 = vmul.f32 %v3227_v31, %v6501_v18  ;;  %v3230_v57 = vmul.f32 %v3228_v8, %v6502_v41 }
 0xd38   : > { %v3233_v49 = vrot.slane %v3229_v36, 4  ;;  %v3234_v16 = vrot.slane %v3230_v57, 4 }
 0xd3a   : > { %3237 = vst [vmem:[#allocation3 + $0x8] sm:$0x30] %v3233_v49 }
 0xd3b   : > { %3238 = vst [vmem:[#allocation3] sm:$0x30] %v3234_v16 }
 0xd3c   : > { %v3245_v19 = vpop.permute.xlu1 %3244 }
 0xd3d   : > { %v3248_v61 = vsel %vm1383_vm10, %v3245_v19, %v3247_v56  ;;  %v3249_v63 = vsel %vm1383_vm10, %v3247_v56, %v3245_v19  ;;  %v3118_v15 = vpop.permute.xlu0 %3117 }
 0xd3e   : > { %v3250_v38 = vmul.f32 %v3248_v61, %v6503_v48  ;;  %v3251_v46 = vmul.f32 %v3249_v63, %v6504_v58  ;;  %v3119_v0 = vsel %vm1229_vm12, %v3116_v50, %v3118_v15  ;;  %v3120_v5 = vsel %vm1229_vm12, %v3118_v15, %v3116_v50  ;;  %v4271_v61 = vld [vmem:[#allocation10 + $0x1e0] sm:$0xff] }
 0xd3f   : > { %v3121_v9 = vmul.f32 %v3120_v5, %v6505_v30  ;;  %v3122_v17 = vmul.f32 %v3119_v0, %v6506_v43  ;;  %v4272_v63 = vld [vmem:[#allocation10 + $0x3e0] sm:$0xff] }
 0xd40   : > { %v3254_v23 = vrot.slane %v3250_v38, 2  ;;  %v3255_v7 = vrot.slane %v3251_v46, 2  ;;  %v4273_v15 = vld [vmem:[#allocation10 + $0x1c0] sm:$0xff] }
 0xd41   : > { %3123 = vst [vmem:[#allocation3 + $0x28] sm:$0x3] %v3121_v9  ;;  %v4274_v38 = vld [vmem:[#allocation10 + $0x3c0] sm:$0xff] }
 0xd42   : > { %3258 = vst [vmem:[#allocation3 + $0x8] sm:$0xc0] %v3254_v23  ;;  %v4275_v46 = vld [vmem:[#allocation10 + $0x1a0] sm:$0xff] }
 0xd43   : > { %3259 = vst [vmem:[#allocation3] sm:$0xc0] %v3255_v7  ;;  %v4276_v0 = vld [vmem:[#allocation10 + $0x3a0] sm:$0xff] }
 0xd44   : > { %3124 = vst [vmem:[#allocation3 + $0x10] sm:$0x3] %v3122_v17  ;;  %v3268_v20 = vpop.permute.xlu1 %3267  ;;  %v4277_v5 = vld [vmem:[#allocation10 + $0x180] sm:$0xff] }
 0xd45   : > { %v3269_v39 = vsel %vm1407_vm11, %v3266_v35, %v3268_v20  ;;  %v3270_v51 = vsel %vm1407_vm11, %v3268_v20, %v3266_v35  ;;  %v4278_v9 = vld [vmem:[#allocation10 + $0x380] sm:$0xff] }
 0xd46   : > { %v3271_v2 = vmul.f32 %v6012_v27, %v3269_v39  ;;  %v3272_v62 = vmul.f32 %v6018_v6, %v3270_v51  ;;  %v4279_v23 = vld [vmem:[#allocation10 + $0x160] sm:$0xff] }
 0xd47   : > { %v4280_v7 = vld [vmem:[#allocation10 + $0x360] sm:$0xff] }
 0xd48   : > { %3273 = vst [vmem:[#allocation3 + $0x18] sm:$0x3] %v3271_v2  ;;  %v4281_v17 = vld [vmem:[#allocation10 + $0x140] sm:$0xff] }
 0xd49   : > { %3274 = vst [vmem:[#allocation3 + $0x20] sm:$0x3] %v3272_v62  ;;  %v3278_v49 = vld [vmem:[#allocation3 + $0x8] sm:$0xff]  ;;  %v4282_v20 = vld [vmem:[#allocation10 + $0x340] sm:$0xff] }
 0xd4a   : > { %v3279_v16 = vld [vmem:[#allocation3] sm:$0xff]  ;;  %v4283_v39 = vld [vmem:[#allocation10 + $0x120] sm:$0xff] }
 0xd4b   : > { %v4284_v51 = vld [vmem:[#allocation10 + $0x320] sm:$0xff] }
 0xd4c   : > { %v3175_v47 = vpop.permute.xlu1 %3174  ;;  %v4285_v2 = vld [vmem:[#allocation10 + $0x100] sm:$0xff] }
 0xd4d   : > { %v3176_v4 = vsel %vm1295_vm6, %v3173_v3, %v3175_v47  ;;  %v3177_v56 = vsel %vm1295_vm6, %v3175_v47, %v3173_v3  ;;  %v3275_v3 = vld [vmem:[%s6152_s4] sm:$0xff] }
 0xd4e   : > { %v3178_v44 = vmul.f32 %v3177_v56, %v6497_v22  ;;  %v3179_v31 = vmul.f32 %v3176_v4, %v6498_v33  ;;  %v4286_v62 = vld [vmem:[#allocation10 + $0x300] sm:$0xff] }
 0xd4f   : > { %v3280_v8 = vld [vmem:[#allocation3 + $0x18] sm:$0x3]  ;;  %v4287_v47 = vld [vmem:[#allocation10 + $0xe0] sm:$0xff] }
 0xd50   : > { %v3182_v35 = vrot.slane %v3178_v44, 2  ;;  %v3183_v36 = vrot.slane %v3179_v31, 2  ;;  %3855 = vmatpush.msk.msrb.mxu0 %vm1147_vm9, %v3280_v8  ;;  %v3281_v57 = vld [vmem:[#allocation3 + $0x20] sm:$0x3]  ;;  %v4288_v4 = vld [vmem:[#allocation10 + $0x2e0] sm:$0xff] }
 0xd51   : > { %3857 = vmatpush.msk.msrb.mxu1 %vm1147_vm9, %v3281_v57  ;;  %v4289_v56 = vld [vmem:[#allocation10 + $0xc0] sm:$0xff]  ;;  %vm6523_vm9 = vcmask 588800  }
 0xd52   : > { %3186 = vst [vmem:[#allocation3 + $0x28] sm:$0xc0] %v3182_v35  ;;  %3311 = vmatpush.msrb.mxu0 %v3278_v49  ;;  %v4290_v44 = vld [vmem:[#allocation10 + $0x2c0] sm:$0xff] }
 0xd53   : > { %3187 = vst [vmem:[#allocation3 + $0x10] sm:$0xc0] %v3183_v36  ;;  %3331 = vmatpush.msrb.mxu1 %v3279_v16  ;;  %v4291_v31 = vld [vmem:[#allocation10 + $0xa0] sm:$0xff] }
 0xd54   : > { %v4292_v8 = vld [vmem:[#allocation10 + $0x2a0] sm:$0xff] }
 0xd55   : > { %v4293_v35 = vld [vmem:[#allocation10 + $0x80] sm:$0xff] }
 0xd56   : > { %v4294_v36 = vld [vmem:[#allocation10 + $0x280] sm:$0xff] }
 0xd57   : > { %v4295_v57 = vld [vmem:[#allocation10 + $0x60] sm:$0xff] }
 0xd58   : > { %v4296_v49 = vld [vmem:[#allocation10 + $0x260] sm:$0xff] }
 0xd59   : > { %v3276_v19 = vld [vmem:[#allocation3 + $0x28] sm:$0xff]  ;;  %v4297_v16 = vld [vmem:[#allocation10 + $0x40] sm:$0xff] }
 0xd5a   : > { %3312 = vmatpush.msrb.mxu0 %v3276_v19  ;;  %v3277_v50 = vld [vmem:[#allocation3 + $0x10] sm:$0xff] }
 0xd5b   : > { %3332 = vmatpush.msrb.mxu1 %v3277_v50  ;;  %3856 = vmatmul.msk.f32.vlgmr.msrb.gmra.mxu0 %vm1429_vm13, %v3275_v3  ;;  %v4299_v19 = vld [vmem:[#allocation10 + $0x20] sm:$0xff] }
 0xd5c   : > { %3858 = vmatmul.msk.f32.vlgmr.msrb.gmra.mxu1 %vm1429_vm13, %v3275_v3  ;;  %3523 = vmatpush.msra.mxu0 %v4271_v61  ;;  %v4298_v3 = vld [vmem:[#allocation10 + $0x240] sm:$0xff] }
 0xd5d   : > { %3543 = vmatpush.msra.mxu1 %v4272_v63  ;;  %v4300_v50 = vld [vmem:[#allocation10 + $0x220] sm:$0xff] }
 0xd5e   : > { %3524 = vmatpush.msra.mxu0 %v4273_v15  ;;  %v4301_v61 = vld [vmem:[#allocation10] sm:$0xff]  ;;  %v4303_v15 = vld [vmem:[#allocation10 + $0x1f0] sm:$0xff] }
 0xd5f   : > { %3544 = vmatpush.msra.mxu1 %v4274_v38  ;;  %v4302_v63 = vld [vmem:[#allocation10 + $0x200] sm:$0xff]  ;;  %v4304_v38 = vld [vmem:[#allocation10 + $0x3f0] sm:$0xff] }
 0xd60   : > { %3525 = vmatpush.msra.mxu0 %v4275_v46  ;;  %v4305_v46 = vld [vmem:[#allocation10 + $0x1d0] sm:$0xff] }
 0xd61   : > { %3545 = vmatpush.msra.mxu1 %v4276_v0  ;;  %v4306_v0 = vld [vmem:[#allocation10 + $0x3d0] sm:$0xff] }
 0xd62   : > { %3526 = vmatpush.msra.mxu0 %v4277_v5  ;;  %v4307_v5 = vld [vmem:[#allocation10 + $0x1b0] sm:$0xff] }
 0xd63   : > { %3546 = vmatpush.msra.mxu1 %v4278_v9  ;;  %v4308_v9 = vld [vmem:[#allocation10 + $0x3b0] sm:$0xff] }
 0xd64   : > { %3527 = vmatpush.msra.mxu0 %v4279_v23  ;;  %v4309_v23 = vld [vmem:[#allocation10 + $0x190] sm:$0xff] }
 0xd65   : > { %3547 = vmatpush.msra.mxu1 %v4280_v7  ;;  %v4310_v7 = vld [vmem:[#allocation10 + $0x390] sm:$0xff] }
 0xd66   : > { %3528 = vmatpush.msra.mxu0 %v4281_v17  ;;  %v4311_v17 = vld [vmem:[#allocation10 + $0x170] sm:$0xff] }
 0xd67   : > { %3548 = vmatpush.msra.mxu1 %v4282_v20  ;;  %v4312_v20 = vld [vmem:[#allocation10 + $0x370] sm:$0xff] }
 0xd68   : > { %3529 = vmatpush.msra.mxu0 %v4283_v39  ;;  %v4313_v39 = vld [vmem:[#allocation10 + $0x150] sm:$0xff] }
 0xd69   : > { %3549 = vmatpush.msra.mxu1 %v4284_v51  ;;  %v4314_v51 = vld [vmem:[#allocation10 + $0x350] sm:$0xff] }
 0xd6a   : > { %3530 = vmatpush.msra.mxu0 %v4285_v2  ;;  %v4315_v2 = vld [vmem:[#allocation10 + $0x130] sm:$0xff] }
 0xd6b   : > { %3550 = vmatpush.msra.mxu1 %v4286_v62  ;;  %v4316_v62 = vld [vmem:[#allocation10 + $0x330] sm:$0xff] }
 0xd6c   : > { %3531 = vmatpush.msra.mxu0 %v4287_v47  ;;  %v4317_v47 = vld [vmem:[#allocation10 + $0x110] sm:$0xff] }
 0xd6d   : > { %3551 = vmatpush.msra.mxu1 %v4288_v4  ;;  %v4318_v4 = vld [vmem:[#allocation10 + $0x310] sm:$0xff] }
 0xd6e   : > { %3532 = vmatpush.msra.mxu0 %v4289_v56  ;;  %v4319_v56 = vld [vmem:[#allocation10 + $0xf0] sm:$0xff] }
 0xd6f   : > { %3552 = vmatpush.msra.mxu1 %v4290_v44  ;;  %v4320_v44 = vld [vmem:[#allocation10 + $0x2f0] sm:$0xff] }
 0xd70   : > { %3533 = vmatpush.msra.mxu0 %v4291_v31  ;;  %v4321_v31 = vld [vmem:[#allocation10 + $0xd0] sm:$0xff] }
 0xd71   : > { %3553 = vmatpush.msra.mxu1 %v4292_v8  ;;  %v4322_v8 = vld [vmem:[#allocation10 + $0x2d0] sm:$0xff] }
 0xd72   : > { %3534 = vmatpush.msra.mxu0 %v4293_v35  ;;  %v4323_v35 = vld [vmem:[#allocation10 + $0xb0] sm:$0xff] }
 0xd73   : > { %3554 = vmatpush.msra.mxu1 %v4294_v36  ;;  %v4324_v36 = vld [vmem:[#allocation10 + $0x2b0] sm:$0xff] }
 0xd74   : > { %3535 = vmatpush.msra.mxu0 %v4295_v57  ;;  %v4325_v57 = vld [vmem:[#allocation10 + $0x90] sm:$0xff] }
 0xd75   : > { %3555 = vmatpush.msra.mxu1 %v4296_v49  ;;  %v4326_v49 = vld [vmem:[#allocation10 + $0x290] sm:$0xff] }
 0xd76   : > { %3536 = vmatpush.msra.mxu0 %v4297_v16  ;;  %v4327_v16 = vld [vmem:[#allocation10 + $0x70] sm:$0xff] }
 0xd77   : > { %3556 = vmatpush.msra.mxu1 %v4298_v3  ;;  %v4328_v3 = vld [vmem:[#allocation10 + $0x270] sm:$0xff] }
 0xd78   : > { %3537 = vmatpush.msra.mxu0 %v4299_v19  ;;  %v4329_v19 = vld [vmem:[#allocation10 + $0x50] sm:$0xff] }
 0xd79   : > { %3557 = vmatpush.msra.mxu1 %v4300_v50  ;;  %v4330_v50 = vld [vmem:[#allocation10 + $0x250] sm:$0xff] }
 0xd7a   : > { %3538 = vmatpush.msra.mxu0 %v4301_v61  ;;  %v4331_v61 = vld [vmem:[#allocation10 + $0x30] sm:$0xff] }
 0xd7b   : > { %3558 = vmatpush.msra.mxu1 %v4302_v63  ;;  %v4332_v63 = vld [vmem:[#allocation10 + $0x230] sm:$0xff] }
 0xd7c   : > { %3603 = vmatpush.msrb.mxu0 %v4303_v15  ;;  %v4333_v15 = vld [vmem:[#allocation10 + $0x10] sm:$0xff] }
 0xd7d   : > { %3623 = vmatpush.msrb.mxu1 %v4304_v38  ;;  %v4334_v38 = vld [vmem:[#allocation10 + $0x210] sm:$0xff] }
 0xd7e   : > { %3604 = vmatpush.msrb.mxu0 %v4305_v46  ;;  %v3286_v46 = vpop.permute.xlu1 %3285 }
 0xd7f   : > { %3624 = vmatpush.msrb.mxu1 %v4306_v0 }
 0xd80   : > { %3605 = vmatpush.msrb.mxu0 %v4307_v5 }
 0xd81   : > { %3625 = vmatpush.msrb.mxu1 %v4308_v9 }
 0xd82   : > { %3606 = vmatpush.msrb.mxu0 %v4309_v23 }
 0xd83   : > { %3626 = vmatpush.msrb.mxu1 %v4310_v7 }
 0xd84   : > { %3607 = vmatpush.msrb.mxu0 %v4311_v17 }
 0xd85   : > { %3627 = vmatpush.msrb.mxu1 %v4312_v20 }
 0xd86   : > { %3608 = vmatpush.msrb.mxu0 %v4313_v39 }
 0xd87   : > { %3628 = vmatpush.msrb.mxu1 %v4314_v51 }
 0xd88   : > { %3609 = vmatpush.msrb.mxu0 %v4315_v2 }
 0xd89   : > { %3629 = vmatpush.msrb.mxu1 %v4316_v62 }
 0xd8a   : > { %3610 = vmatpush.msrb.mxu0 %v4317_v47 }
 0xd8b   : > { %3630 = vmatpush.msrb.mxu1 %v4318_v4 }
 0xd8c   : > { %3611 = vmatpush.msrb.mxu0 %v4319_v56 }
 0xd8d   : > { %3631 = vmatpush.msrb.mxu1 %v4320_v44 }
 0xd8e   : > { %3612 = vmatpush.msrb.mxu0 %v4321_v31 }
 0xd8f   : > { %3632 = vmatpush.msrb.mxu1 %v4322_v8 }
 0xd90   : > { %3613 = vmatpush.msrb.mxu0 %v4323_v35 }
 0xd91   : > { %3633 = vmatpush.msrb.mxu1 %v4324_v36 }
 0xd92   : > { %3614 = vmatpush.msrb.mxu0 %v4325_v57 }
 0xd93   : > { %3634 = vmatpush.msrb.mxu1 %v4326_v49  ;;  %v3442_v49 = vld [vmem:[%s6155_s7] sm:$0x3] }
 0xd94   : > { %3615 = vmatpush.msrb.mxu0 %v4327_v16 }
 0xd95   : > { %3635 = vmatpush.msrb.mxu1 %v4328_v3 }
 0xd96   : > { %3616 = vmatpush.msrb.mxu0 %v4329_v19 }
 0xd97   : > { %3636 = vmatpush.msrb.mxu1 %v4330_v50 }
 0xd98   : > { %3617 = vmatpush.msrb.mxu0 %v4331_v61 }
 0xd99   : > { %3637 = vmatpush.msrb.mxu1 %v4332_v63 }
 0xd9a   : > { %3618 = vmatpush.msrb.mxu0 %v4333_v15 }
 0xd9b   : > { %3638 = vmatpush.msrb.mxu1 %v4334_v38 }
 0xdd8   : > { %v3314_v0 = vpop.f32.mrf.mxu0 }
 0xdd9   : > { %v3315_v5 = vadd.f32 %v3314_v0, %v3286_v46  ;;  %v3334_v9 = vpop.f32.mrf.mxu1 }
 0xdda   : > { %v3335_v23 = vadd.f32 %v3334_v9, %v3286_v46 }
 0xddb   : > { %v3337_v7 = vmax.f32 %v3315_v5, 0.0 }
 0xddc   : > { %v3338_v17 = vmax.f32 %v3335_v23, 0.0 }
 0xddd   : > { %3403 = vrot.lane.b32.xlu1 %v3337_v7, %s4487_s23  ;;  %3413 = vrot.lane.b32.xlu2 %v3337_v7, %s4488_s24  ;;  %v3379_v46 = vmul.f32 %v3337_v7, %v6507_v59 }
 0xdde   : > { %3415 = vrot.lane.b32.xlu0 %v3338_v17, %s4488_s24  ;;  %v3380_v0 = vmul.f32 %v3338_v17, %v6508_v26  ;;  %s414_s24 = scalar_lea.vmem %s6158_s10, %s3863_s29 }
 0xde5   : > { %3395 = vrot.lane.b32.xlu1 %v3338_v17, %s4486_s22  ;;  %3405 = vrot.lane.b32.xlu2 %v3338_v17, %s4487_s23 }
 0xde6   : > { %3393 = vrot.lane.b32.xlu0 %v3337_v7, %s4486_s22 }
 0xded   : > { %3369 = vrot.lane.b32.xlu1 %v3337_v7, %s4484_s20  ;;  %3383 = vrot.lane.b32.xlu2 %v3337_v7, %s4485_s21 }
 0xdee   : > { %3385 = vrot.lane.b32.xlu0 %v3338_v17, %s4485_s21 }
 0xdf5   : > { %3361 = vrot.lane.b32.xlu1 %v3338_v17, %s4483_s9  ;;  %3371 = vrot.lane.b32.xlu2 %v3338_v17, %s4484_s20 }
 0xdf6   : > { %3359 = vrot.lane.b32.xlu0 %v3337_v7, %s4483_s9 }
 0xdfd   : > { %3339 = vrot.lane.b32.xlu1 %v3337_v7, %s4489_s25  ;;  %3349 = vrot.lane.b32.xlu2 %v3337_v7, %s4482_s16 }
 0xdfe   : > { %3351 = vrot.lane.b32.xlu0 %v3338_v17, %s4482_s16 }
 0xe05   : > { %3341 = vrot.lane.b32.xlu2 %v3338_v17, %s4489_s25 }
 0xe06   : > { %3445 = vperm.xlu0 %3911, %v3442_v49   ;;  %v4346_v49 = vld [vmem:[#allocation10 + $0x348] sm:$0xff] }
 0xe37   : > { %v3414_v20 = vpop.permute.xlu2 %3413 }
 0xe3f   : > { %v3406_v39 = vpop.permute.xlu2 %3405 }
 0xe47   : > { %v3384_v44 = vpop.permute.xlu2 %3383 }
 0xe4f   : > { %v3404_v51 = vpop.permute.xlu1 %3403  ;;  %v3372_v3 = vpop.permute.xlu2 %3371 }
 0xe50   : > { %v3416_v2 = vpop.permute.xlu0 %3415  ;;  %v3407_v4 = vsel %vm1383_vm10, %v3404_v51, %v3406_v39  ;;  %v3408_v56 = vsel %vm1383_vm10, %v3406_v39, %v3404_v51 }
 0xe51   : > { %v3417_v62 = vsel %vm1407_vm11, %v3414_v20, %v3416_v2  ;;  %v3418_v47 = vsel %vm1407_vm11, %v3416_v2, %v3414_v20  ;;  %v3409_v35 = vmul.f32 %v3407_v4, %v6503_v48  ;;  %v3410_v36 = vmul.f32 %v3408_v56, %v6504_v58  ;;  %v3423_v56 = vld [vmem:[%s6154_s6] sm:$0x3] }
 0xe52   : > { %v3419_v31 = vmul.f32 %v6012_v27, %v3417_v62  ;;  %v3420_v8 = vmul.f32 %v6018_v6, %v3418_v47 }
 0xe54   : > { %3458 = vmatpush.msrb.mxu2 %v3419_v31  ;;  %3478 = vmatpush.msrb.mxu3 %v3420_v8  ;;  %v4341_v31 = vld [vmem:[#allocation10 + $0x188] sm:$0xff] }
 0xe55   : > { %v4342_v8 = vld [vmem:[#allocation10 + $0x388] sm:$0xff] }
 0xe56   : > { %3459 = vmatpush.msrb.mxu2 %v3409_v35  ;;  %3479 = vmatpush.msrb.mxu3 %v3410_v36  ;;  %v4343_v35 = vld [vmem:[#allocation10 + $0x168] sm:$0xff] }
 0xe57   : > { %v3396_v57 = vpop.permute.xlu1 %3395  ;;  %v3350_v5 = vpop.permute.xlu2 %3349  ;;  %v4344_v36 = vld [vmem:[#allocation10 + $0x368] sm:$0xff] }
 0xe58   : > { %v3394_v16 = vpop.permute.xlu0 %3393 }
 0xe59   : > { %v3397_v27 = vsel %vm1359_vm4, %v3394_v16, %v3396_v57  ;;  %v3398_v6 = vsel %vm1359_vm4, %v3396_v57, %v3394_v16  ;;  %v4345_v57 = vld [vmem:[#allocation10 + $0x148] sm:$0xff]  ;;  %vm6526_vm4 = vcmp.eq.s32.totalorder %v6515_v28, 1 }
 0xe5a   : > { %v3399_v48 = vmul.f32 %v3397_v27, %v6501_v18  ;;  %v3400_v58 = vmul.f32 %v3398_v6, %v6502_v41  ;;  %v4347_v16 = vld [vmem:[#allocation10 + $0x128] sm:$0xff] }
 0xe5b   : > { %v4348_v27 = vld [vmem:[#allocation10 + $0x328] sm:$0xff] }
 0xe5c   : > { %3460 = vmatpush.msrb.mxu2 %v3399_v48  ;;  %3480 = vmatpush.msrb.mxu3 %v3400_v58  ;;  %v4349_v6 = vld [vmem:[#allocation10 + $0x108] sm:$0xff] }
 0xe5d   : > { %v4350_v48 = vld [vmem:[#allocation10 + $0x308] sm:$0xff] }
 0xe5e   : > { %v4351_v58 = vld [vmem:[#allocation10 + $0xe8] sm:$0xff] }
 0xe5f   : > { %v3370_v19 = vpop.permute.xlu1 %3369 }
 0xe60   : > { %v3386_v50 = vpop.permute.xlu0 %3385  ;;  %v3373_v18 = vsel %vm1295_vm6, %v3370_v19, %v3372_v3  ;;  %v3374_v41 = vsel %vm1295_vm6, %v3372_v3, %v3370_v19  ;;  %v4352_v3 = vld [vmem:[#allocation10 + $0x2e8] sm:$0xff]  ;;  %vm6528_vm6 = vcmp.eq.s32.totalorder %v5638_v32, 1 }
 0xe61   : > { %v3387_v61 = vsel %vm1335_vm5, %v3384_v44, %v3386_v50  ;;  %v3388_v63 = vsel %vm1335_vm5, %v3386_v50, %v3384_v44  ;;  %v3375_v9 = vmul.f32 %v3374_v41, %v6497_v22  ;;  %v3376_v23 = vmul.f32 %v3373_v18, %v6498_v33  ;;  %v3342_v33 = vpop.permute.xlu2 %3341  ;;  %v4340_v44 = vld [vmem:[#allocation10 + $0x3a8] sm:$0xff] }
 0xe62   : > { %v3389_v15 = vmul.f32 %v3387_v61, %v6499_v42  ;;  %v3390_v38 = vmul.f32 %v3388_v63, %v6500_v11  ;;  %v4353_v19 = vld [vmem:[#allocation10 + $0xc8] sm:$0xff]  ;;  %vm6527_vm5 = vcmp.eq.s32.totalorder %v5632_v53, 1 }
 0xe63   : > { %v4354_v50 = vld [vmem:[#allocation10 + $0x2c8] sm:$0xff] }
 0xe64   : > { %3461 = vmatpush.msrb.mxu2 %v3389_v15  ;;  %3481 = vmatpush.msrb.mxu3 %v3390_v38  ;;  %v4355_v61 = vld [vmem:[#allocation10 + $0xa8] sm:$0xff] }
 0xe65   : > { %v4356_v63 = vld [vmem:[#allocation10 + $0x2a8] sm:$0xff] }
 0xe66   : > { %3462 = vmatpush.msrb.mxu2 %v3379_v46  ;;  %3482 = vmatpush.msrb.mxu3 %v3380_v0  ;;  %v4357_v15 = vld [vmem:[#allocation10 + $0x88] sm:$0xff] }
 0xe67   : > { %v3362_v42 = vpop.permute.xlu1 %3361  ;;  %v4358_v38 = vld [vmem:[#allocation10 + $0x288] sm:$0xff] }
 0xe68   : > { %v3360_v11 = vpop.permute.xlu0 %3359  ;;  %3463 = vmatpush.msrb.mxu2 %v3375_v9  ;;  %3483 = vmatpush.msrb.mxu3 %v3376_v23  ;;  %v4359_v18 = vld [vmem:[#allocation10 + $0x68] sm:$0xff] }
 0xe69   : > { %v3363_v20 = vsel %vm1271_vm3, %v3360_v11, %v3362_v42  ;;  %v3364_v39 = vsel %vm1271_vm3, %v3362_v42, %v3360_v11  ;;  %v4360_v41 = vld [vmem:[#allocation10 + $0x268] sm:$0xff]  ;;  %v4367_v11 = vld [vmem:[#allocation10 + $0x1f8] sm:$0xff]  ;;  %vm6525_vm3 = vcmp.eq.s32.totalorder %v5613_v14, 1 }
 0xe6a   : > { %v3365_v59 = vmul.f32 %v3364_v39, %v6495_v13  ;;  %v3366_v26 = vmul.f32 %v3363_v20, %v6496_v10  ;;  %v4361_v46 = vld [vmem:[#allocation10 + $0x48] sm:$0xff]  ;;  %v4368_v20 = vld [vmem:[#allocation10 + $0x3f8] sm:$0xff] }
 0xe6b   : > { %v4362_v0 = vld [vmem:[#allocation10 + $0x248] sm:$0xff]  ;;  %v4369_v39 = vld [vmem:[#allocation10 + $0x1d8] sm:$0xff] }
 0xe6c   : > { %3464 = vmatpush.msrb.mxu2 %v3365_v59  ;;  %3484 = vmatpush.msrb.mxu3 %v3366_v26  ;;  %v4364_v9 = vld [vmem:[#allocation10 + $0x228] sm:$0xff]  ;;  %v4370_v59 = vld [vmem:[#allocation10 + $0x3d8] sm:$0xff] }
 0xe6d   : > { %v4365_v23 = vld [vmem:[#allocation10 + $0x8] sm:$0xff]  ;;  %v4371_v26 = vld [vmem:[#allocation10 + $0x1b8] sm:$0xff] }
 0xe6e   : > { %v4366_v42 = vld [vmem:[#allocation10 + $0x208] sm:$0xff] }
 0xe6f   : > { %v3340_v22 = vpop.permute.xlu1 %3339 }
 0xe70   : > { %v3352_v7 = vpop.permute.xlu0 %3351  ;;  %v3343_v2 = vsel %vm1229_vm12, %v3340_v22, %v3342_v33  ;;  %v3344_v62 = vsel %vm1229_vm12, %v3342_v33, %v3340_v22  ;;  %v4372_v22 = vld [vmem:[#allocation10 + $0x3b8] sm:$0xff] }
 0xe71   : > { %v3353_v17 = vsel %vm1247_vm2, %v3350_v5, %v3352_v7  ;;  %v3354_v51 = vsel %vm1247_vm2, %v3352_v7, %v3350_v5  ;;  %v3345_v47 = vmul.f32 %v3344_v62, %v6505_v30  ;;  %v3346_v4 = vmul.f32 %v3343_v2, %v6506_v43  ;;  %vm6524_vm2 = vmmov %vm6523_vm9  ;;  %v4338_v30 = vld [vmem:[#allocation10 + $0x3c8] sm:$0xff]  ;;  %v4373_v33 = vld [vmem:[#allocation10 + $0x198] sm:$0xff] }
 0xe72   : > { %v3355_v13 = vmul.f32 %v3354_v51, %v6493_v12  ;;  %v3356_v10 = vmul.f32 %v3353_v17, %v6494_v24  ;;  %v4336_v12 = vld [vmem:[#allocation10 + $0x3e8] sm:$0xff]  ;;  %v4374_v7 = vld [vmem:[#allocation10 + $0x398] sm:$0xff] }
 0xe73   : > { %v4337_v24 = vld [vmem:[#allocation10 + $0x1c8] sm:$0xff]  ;;  %v4375_v17 = vld [vmem:[#allocation10 + $0x178] sm:$0xff] }
 0xe74   : > { %3465 = vmatpush.msrb.mxu2 %v3355_v13  ;;  %3485 = vmatpush.msrb.mxu3 %v3356_v10  ;;  %v4339_v43 = vld [vmem:[#allocation10 + $0x1a8] sm:$0xff]  ;;  %v4376_v51 = vld [vmem:[#allocation10 + $0x378] sm:$0xff] }
 0xe75   : > { %v4363_v5 = vld [vmem:[#allocation10 + $0x28] sm:$0xff]  ;;  %v4377_v2 = vld [vmem:[#allocation10 + $0x158] sm:$0xff] }
 0xe76   : > { %3466 = vmatpush.msrb.mxu2 %v3345_v47  ;;  %3486 = vmatpush.msrb.mxu3 %v3346_v4  ;;  %v4378_v62 = vld [vmem:[#allocation10 + $0x358] sm:$0xff] }
 0xe77   : > { %3859 = vmatmul.msk.f32.vlgmr.msrb.gmra.mxu2 %vm6523_vm9, %v3423_v56  ;;  %3860 = vmatmul.msk.f32.vlgmr.msrb.gmra.mxu3 %vm6524_vm2, %v3423_v56  ;;  %v4379_v13 = vld [vmem:[#allocation10 + $0x138] sm:$0xff] }
 0xe78   : > { %3563 = vmatpush.msra.mxu2 %v4335_v29  ;;  %3583 = vmatpush.msra.mxu3 %v4336_v12  ;;  %v4380_v10 = vld [vmem:[#allocation10 + $0x338] sm:$0xff] }
 0xe79   : > { %v4381_v47 = vld [vmem:[#allocation10 + $0x118] sm:$0xff] }
 0xe7a   : > { %3564 = vmatpush.msra.mxu2 %v4337_v24  ;;  %3584 = vmatpush.msra.mxu3 %v4338_v30  ;;  %v4382_v4 = vld [vmem:[#allocation10 + $0x318] sm:$0xff] }
 0xe7b   : > { %v4383_v56 = vld [vmem:[#allocation10 + $0xf8] sm:$0xff] }
 0xe7c   : > { %3565 = vmatpush.msra.mxu2 %v4339_v43  ;;  %3585 = vmatpush.msra.mxu3 %v4340_v44  ;;  %v4384_v29 = vld [vmem:[#allocation10 + $0x2f8] sm:$0xff] }
 0xe7d   : > { %v4385_v12 = vld [vmem:[#allocation10 + $0xd8] sm:$0xff] }
 0xe7e   : > { %3566 = vmatpush.msra.mxu2 %v4341_v31  ;;  %3586 = vmatpush.msra.mxu3 %v4342_v8  ;;  %v4386_v24 = vld [vmem:[#allocation10 + $0x2d8] sm:$0xff] }
 0xe7f   : > { %v4387_v30 = vld [vmem:[#allocation10 + $0xb8] sm:$0xff] }
 0xe80   : > { %3567 = vmatpush.msra.mxu2 %v4343_v35  ;;  %3587 = vmatpush.msra.mxu3 %v4344_v36  ;;  %v4388_v43 = vld [vmem:[#allocation10 + $0x2b8] sm:$0xff] }
 0xe81   : > { %v4389_v44 = vld [vmem:[#allocation10 + $0x98] sm:$0xff] }
 0xe82   : > { %3568 = vmatpush.msra.mxu2 %v4345_v57  ;;  %3588 = vmatpush.msra.mxu3 %v4346_v49  ;;  %v4390_v31 = vld [vmem:[#allocation10 + $0x298] sm:$0xff] }
 0xe83   : > { %v4391_v8 = vld [vmem:[#allocation10 + $0x78] sm:$0xff] }
 0xe84   : > { %3569 = vmatpush.msra.mxu2 %v4347_v16  ;;  %3589 = vmatpush.msra.mxu3 %v4348_v27  ;;  %v4392_v35 = vld [vmem:[#allocation10 + $0x278] sm:$0xff] }
 0xe85   : > { %v4393_v36 = vld [vmem:[#allocation10 + $0x58] sm:$0xff] }
 0xe86   : > { %3570 = vmatpush.msra.mxu2 %v4349_v6  ;;  %3590 = vmatpush.msra.mxu3 %v4350_v48  ;;  %v4394_v57 = vld [vmem:[#allocation10 + $0x258] sm:$0xff]  ;;  %v3446_v48 = vpop.permute.xlu0 %3445 }
 0xe87   : > { %v4395_v49 = vld [vmem:[#allocation10 + $0x38] sm:$0xff] }
 0xe88   : > { %3571 = vmatpush.msra.mxu2 %v4351_v58  ;;  %3591 = vmatpush.msra.mxu3 %v4352_v3  ;;  %v4396_v16 = vld [vmem:[#allocation10 + $0x238] sm:$0xff] }
 0xe89   : > { %v4397_v27 = vld [vmem:[#allocation10 + $0x18] sm:$0xff] }
 0xe8a   : > { %3572 = vmatpush.msra.mxu2 %v4353_v19  ;;  %3592 = vmatpush.msra.mxu3 %v4354_v50  ;;  %v4398_v6 = vld [vmem:[#allocation10 + $0x218] sm:$0xff] }
 0xe8c   : > { %3573 = vmatpush.msra.mxu2 %v4355_v61  ;;  %3593 = vmatpush.msra.mxu3 %v4356_v63 }
 0xe8e   : > { %3574 = vmatpush.msra.mxu2 %v4357_v15  ;;  %3594 = vmatpush.msra.mxu3 %v4358_v38 }
 0xe90   : > { %3575 = vmatpush.msra.mxu2 %v4359_v18  ;;  %3595 = vmatpush.msra.mxu3 %v4360_v41 }
 0xe92   : > { %3576 = vmatpush.msra.mxu2 %v4361_v46  ;;  %3596 = vmatpush.msra.mxu3 %v4362_v0 }
 0xe94   : > { %3577 = vmatpush.msra.mxu2 %v4363_v5  ;;  %3597 = vmatpush.msra.mxu3 %v4364_v9 }
 0xe96   : > { %3578 = vmatpush.msra.mxu2 %v4365_v23  ;;  %3598 = vmatpush.msra.mxu3 %v4366_v42 }
 0xe98   : > { %3643 = vmatpush.msrb.mxu2 %v4367_v11  ;;  %3663 = vmatpush.msrb.mxu3 %v4368_v20 }
 0xe9a   : > { %3644 = vmatpush.msrb.mxu2 %v4369_v39  ;;  %3664 = vmatpush.msrb.mxu3 %v4370_v59 }
 0xe9c   : > { %3645 = vmatpush.msrb.mxu2 %v4371_v26  ;;  %3665 = vmatpush.msrb.mxu3 %v4372_v22 }
 0xe9e   : > { %3646 = vmatpush.msrb.mxu2 %v4373_v33  ;;  %3666 = vmatpush.msrb.mxu3 %v4374_v7 }
 0xea0   : > { %3647 = vmatpush.msrb.mxu2 %v4375_v17  ;;  %3667 = vmatpush.msrb.mxu3 %v4376_v51 }
 0xea2   : > { %3648 = vmatpush.msrb.mxu2 %v4377_v2  ;;  %3668 = vmatpush.msrb.mxu3 %v4378_v62 }
 0xea4   : > { %3649 = vmatpush.msrb.mxu2 %v4379_v13  ;;  %3669 = vmatpush.msrb.mxu3 %v4380_v10 }
 0xea6   : > { %3650 = vmatpush.msrb.mxu2 %v4381_v47  ;;  %3670 = vmatpush.msrb.mxu3 %v4382_v4 }
 0xea8   : > { %3651 = vmatpush.msrb.mxu2 %v4383_v56  ;;  %3671 = vmatpush.msrb.mxu3 %v4384_v29 }
 0xeaa   : > { %3652 = vmatpush.msrb.mxu2 %v4385_v12  ;;  %3672 = vmatpush.msrb.mxu3 %v4386_v24 }
 0xeac   : > { %3653 = vmatpush.msrb.mxu2 %v4387_v30  ;;  %3673 = vmatpush.msrb.mxu3 %v4388_v43 }
 0xeae   : > { %3654 = vmatpush.msrb.mxu2 %v4389_v44  ;;  %3674 = vmatpush.msrb.mxu3 %v4390_v31 }
 0xeb0   : > { %3655 = vmatpush.msrb.mxu2 %v4391_v8  ;;  %3675 = vmatpush.msrb.mxu3 %v4392_v35 }
 0xeb2   : > { %3656 = vmatpush.msrb.mxu2 %v4393_v36  ;;  %3676 = vmatpush.msrb.mxu3 %v4394_v57 }
 0xeb4   : > { %3657 = vmatpush.msrb.mxu2 %v4395_v49  ;;  %3677 = vmatpush.msrb.mxu3 %v4396_v16 }
 0xeb6   : > { %3658 = vmatpush.msrb.mxu2 %v4397_v27  ;;  %3678 = vmatpush.msrb.mxu3 %v4398_v6 }
 0xefa   : > { %v3468_v58 = vpop.f32.mrf.mxu2  ;;  %v3488_v3 = vpop.f32.mrf.mxu3 }
 0xefb   : > { %v3469_v19 = vadd.f32 %v3468_v58, %v3446_v48  ;;  %v3489_v50 = vadd.f32 %v3488_v3, %v3446_v48 }
 0xefd   : > { %v3491_v61 = vmul.f32 %v3469_v19, %v5947_v45  ;;  %v3492_v63 = vmul.f32 %v3489_v50, %v5947_v45 }
 0xeff   : > { %v3493_v15 = vadd.f32 %v3491_v61, %v5939_v34  ;;  %v3494_v38 = vadd.f32 %v3492_v63, %v5939_v34 }
 0xf01   : > { %v3495_v18 = vperm.slane %v3493_v15, 0  ;;  %v3499_v41 = vperm.slane %v3493_v15, 1  ;;  %v3496_v46 = vperm.slane %v3494_v38, 0  ;;  %v3500_v0 = vperm.slane %v3494_v38, 1 }
 0xf03   : > { %v3497_v5 = vmul.f32 %v3495_v18, %v6484_v40  ;;  %v3501_v9 = vmul.f32 %v3499_v41, %v6483_v55  ;;  %v3507_v23 = vmul.f32 %v3495_v18, %v6483_v55  ;;  %v3509_v42 = vmul.f32 %v3499_v41, %v6484_v40 }
 0xf04   : > { %v3498_v11 = vmul.f32 %v3496_v46, %v6485_v54  ;;  %v3502_v45 = vmul.f32 %v3500_v0, %v6486_v37  ;;  %v3508_v20 = vmul.f32 %v3496_v46, %v6486_v37  ;;  %v3510_v34 = vmul.f32 %v3500_v0, %v6485_v54 }
 0xf05   : > { %v3503_v39 = vsub.f32 %v3497_v5, %v3501_v9  ;;  %v3511_v59 = vadd.f32 %v3509_v42, %v3507_v23 }
 0xf06   : > { %v3504_v26 = vsub.f32 %v3498_v11, %v3502_v45  ;;  %v3512_v22 = vadd.f32 %v3510_v34, %v3508_v20 }
 0xf07   : > { %3505 = vst [vmem:[#allocation6] sm:$0xf] %v3503_v39  ;;  %v3515_v33 = vrot.slane %v3511_v59, 4 }
 0xf08   : > { %3506 = vst [vmem:[#allocation6 + $0x8] sm:$0xf] %v3504_v26  ;;  %v3516_v7 = vrot.slane %v3512_v22, 4 }
 0xf09   : > { %3519 = vst [vmem:[#allocation6] sm:$0xf0] %v3515_v33 }
 0xf0a   : > { %3520 = vst [vmem:[#allocation6 + $0x8] sm:$0xf0] %v3516_v7 }
 0xf10   : > { %v3521_v55 = vld [vmem:[#allocation6] sm:$0xff] }
 0xf11   : > { %3539 = vmatmul.f32.vlgmr.msra.gmra.mxu0 %v3521_v55  ;;  %v3522_v40 = vld [vmem:[#allocation6 + $0x8] sm:$0xff]  ;;  %3579 = vmatmul.f32.vlgmr.msra.gmra.mxu2 %v3521_v55 }
 0xf12   : > { %3559 = vmatmul.f32.vlgmr.msra.gmra.mxu1 %v3522_v40  ;;  %3599 = vmatmul.f32.vlgmr.msra.gmra.mxu3 %v3522_v40 }
 0xf19   : > { %3619 = vmatmul.f32.vlgmr.msrb.gmra.mxu0 %v3521_v55  ;;  %3659 = vmatmul.f32.vlgmr.msrb.gmra.mxu2 %v3521_v55 }
 0xf1a   : > { %3639 = vmatmul.f32.vlgmr.msrb.gmra.mxu1 %v3522_v40  ;;  %3679 = vmatmul.f32.vlgmr.msrb.gmra.mxu3 %v3522_v40 }
 0xf8e   : > { %v3540_v54 = vpop.f32.mrf.mxu0 }
 0xf8f   : > { %v3560_v37 = vpop.f32.mrf.mxu1 }
 0xf90   : > { %v3561_v17 = vadd.f32 %v3560_v37, %v3540_v54 }
 0xf92   : > { %v3693_v10 = vrot.slane %v3561_v17, 4 }
 0xf94   : > { %v3580_v51 = vpop.f32.mrf.mxu2 }
 0xf95   : > { %v3600_v2 = vpop.f32.mrf.mxu3 }
 0xf96   : > { %v3620_v62 = vpop.f32.mrf.mxu0  ;;  %v3601_v4 = vadd.f32 %v3600_v2, %v3580_v51 }
 0xf97   : > { %v3640_v13 = vpop.f32.mrf.mxu1 }
 0xf98   : > { %v3641_v47 = vadd.f32 %v3640_v13, %v3620_v62  ;;  %v3694_v44 = vrot.slane %v3601_v4, 4 }
 0xf9a   : > { %v3685_v56 = vrot.slane %v3641_v47, 4  ;;  %v3697_v29 = vadd.f32 %v3693_v10, %v3641_v47 }
 0xf9c   : > { %v3689_v12 = vsub.f32 %v3561_v17, %v3685_v56  ;;  %v3705_v24 = vsub.f32 %v3697_v29, %v6513_v52  ;;  %v3660_v30 = vpop.f32.mrf.mxu2  ;;  %v3727_v14 = vrot.slane %v3697_v29, 4 }
 0xf9d   : > { %v3680_v43 = vpop.f32.mrf.mxu3 }
 0xf9e   : > { %v3699_v31 = vsub.f32 %v3689_v12, %v5615_v1  ;;  %v3707_v8 = vsel %vm6525_vm3, %v3705_v24, 0.0  ;;  %v3681_v35 = vadd.f32 %v3680_v43, %v3660_v30 }
 0xf9f   : > { %v3709_v36 = vmul.f32 %v3707_v8, %v5623_v21 }
 0xfa0   : > { %v3701_v57 = vsel %vm6526_vm4, %v3699_v31, 0.0  ;;  %v3686_v49 = vrot.slane %v3681_v35, 4  ;;  %v3698_v16 = vadd.f32 %v3694_v44, %v3681_v35 }
 0xfa1   : > { %v3703_v27 = vmul.f32 %v3701_v57, %v5623_v21  ;;  %v3719_v6 = vrot.slane %v3709_v36, 4 }
 0xfa2   : > { %v3690_v52 = vsub.f32 %v3601_v4, %v3686_v49  ;;  %v3706_v48 = vsub.f32 %v3698_v16, %v5630_v25  ;;  %v3728_v41 = vrot.slane %v3698_v16, 4 }
 0xfa3   : > { %v3711_v58 = vsub.f32 %v5615_v1, %v3703_v27  ;;  %v3723_v3 = vsub.f32 %v5615_v1, %v3719_v6 }
 0xfa4   : > { %v3700_v19 = vsub.f32 %v3690_v52, %v5627_v60  ;;  %v3708_v28 = vsel %vm6527_vm5, %v3706_v48, 0.0 }
 0xfa5   : > { %v3713_v50 = vsub.f32 %v3711_v58, %v3689_v12  ;;  %v3731_v61 = vsub.f32 %v3723_v3, %v3727_v14  ;;  %v3710_v63 = vmul.f32 %v3708_v28, %v5623_v21 }
 0xfa6   : > { %v3702_v15 = vsel %vm6528_vm6, %v3700_v19, 0.0 }
 0xfa7   : > { %3715 = vst [vmem:[#allocation5] sm:$0xf] %v3713_v50  ;;  %v3704_v25 = vmul.f32 %v3702_v15, %v5623_v21  ;;  %v3720_v38 = vrot.slane %v3710_v63, 4 }
 0xfa8   : > { %3733 = vst [vmem:[#allocation5] sm:$0xf0] %v3731_v61 }
 0xfa9   : > { %v3712_v1 = vsub.f32 %v5627_v60, %v3704_v25  ;;  %v3724_v18 = vsub.f32 %v5627_v60, %v3720_v38 }
 0xfab   : > { %v3714_v46 = vsub.f32 %v3712_v1, %v3690_v52  ;;  %v3732_v53 = vsub.f32 %v3724_v18, %v3728_v41 }
 0xfad   : > { %3716 = vst [vmem:[#allocation5 + $0x8] sm:$0xf] %v3714_v46 }
 0xfae   : > { %3734 = vst [vmem:[#allocation5 + $0x8] sm:$0xf0] %v3732_v53 }
 0xfaf   : > { %v3735_v32 = vld [vmem:[#allocation5] sm:$0xff] }
 0xfb0   : > { %3737 = vst [vmem:[%s414_s24] sm:$0xff] %v3735_v32 }
 0xfb5   : > { %v3736_v0 = vld [vmem:[#allocation5 + $0x8] sm:$0xff] }
 0xfb6   : > { %3738 = vst [vmem:[%s414_s24 + $0x8] sm:$0xff] %v3736_v0 }
 0xfb7 PF: > { %s23_s15 = sadd.s32 1, %s4473_s15  }
 0xfb8   : > { %p20_p7 = scmp.ge.s32.totalorder %s23_s15, 4  }
 0xfba   :  { %22 = sbr.rel (!%p20_p7) target bundleno = 4 (0x4), region = 103 }
 0xfbf   :  { %3760 = vsyncpa [#allocation9], 1 }
 0xfc0   :  { %3762 = vsyncpa [#allocation9 + $0x1], 1 }
 0xfc1   :  { %3763 = vsyncpa [#allocation11], 1 }

</bundles_post_ra>
